<compile_context>
chip_gen: v5e
topology: v5e:2x2
jax: 0.10.0
libtpu: 0.0.40
codegen_flags: <defaults>
</compile_context>

<pallas_src>
import functools

import jax
import jax.numpy as jnp
import numpy as np
from jax import lax
from jax.experimental import pallas as pl
from jax.experimental.pallas import tpu as pltpu

M = 2            # number of SK branches
R = 16           # reduction ratio r
L = 32           # minimum bottleneck width
EPS = 1e-5       # BatchNorm eps
PADMAX = M       # max halo across branches (padding = 1 + i)


# ----------------------------------------------------------------------------
# Fused kernel: one grid step handles `bblk` images.
#   x_ref     : (bblk, Hp, Wp*C)  zero-padded input, lane-flattened (w-major,
#                                 c-minor)
#   w_ref     : (M*9, W*C)        depthwise weights, BN scale folded, tiled
#                                 over W
#   b_ref     : (M,  W*C)         folded BN bias, tiled over W
#   fc1wt_ref : (W*C, d)          fc1 weight^T tiled over W, pre-scaled by
#                                 1/(H*W) and the fc1 BN scale
#   fc1b_ref  : (1, d)            fc1 folded BN bias
#   fc2wt_ref : (d, M*W*C)        fc2 weight^T, pre-tiled across W
#   v_ref     : (bblk, H, W*C)    output V
# ----------------------------------------------------------------------------
def _sk_fused_kernel(x_ref, w_ref, b_ref, fc1wt_ref, fc1b_ref, fc2wt_ref,
                     v_ref, *, bblk, H, W, C):
    WC = W * C

    # Conv taps / biases stay resident as values (~14 vregs) -> no per-tap
    # VMEM row loads inside the inner loop.
    w_all = w_ref[...]            # (M*9, WC)
    bias_all = b_ref[...]         # (M, WC)
    fc1b = fc1b_ref[...]          # (1, d)

    # For a column shift s (in units of C lanes), the (branch, kw) taps that
    # read that shifted view: s = dil*(kw-1).  The centre view (s=0) is shared
    # by both branches; s=-2 / s=+2 are 128-lane aligned (free slices).
    shift_users = (
        (-2, ((1, 0),)),
        (-1, ((0, 0),)),
        (0,  ((0, 1), (1, 1))),
        (1,  ((0, 2),)),
        (2,  ((1, 2),)),
    )

    for b in range(bblk):                        # unrolled; bblk is small
        xb = x_ref[b]                            # (Hp, Wp*C)

        # ---- depthwise dilated 3x3 conv + folded-BN bias + ReLU ----------
        acc = [None] * M
        for s, users in shift_users:
            off = (PADMAX + s) * C
            xw = xb[:, off:off + WC]             # one lane shift, reused
            for i, kw in users:
                dil = 1 + i
                for kh in range(3):
                    t = i * 9 + kh * 3 + kw
                    h0 = PADMAX + dil * (kh - 1)
                    term = xw[h0:h0 + H, :] * w_all[t:t + 1, :]
                    acc[i] = term if acc[i] is None else acc[i] + term

        y0 = jnp.maximum(acc[0] + bias_all[0:1, :], 0.0)     # (H, WC)
        y1 = jnp.maximum(acc[1] + bias_all[1:2, :], 0.0)     # (H, WC)

        # ---- global-average-pool finish + fc1 + BN + ReLU ---------------
        # 1/(H*W), the per-W lane-group reduction and the fc1 BN scale are
        # folded into fc1wt, so the MXU finishes the GAP + fc1 in one matmul.
        col = jnp.sum(y0 + y1, axis=0, keepdims=True)        # (1, WC)
        z = jnp.dot(col, fc1wt_ref[...],
                    preferred_element_type=jnp.float32)      # (1, d)
        z = jnp.maximum(z + fc1b, 0.0)

        # ---- fc2 (pre-tiled across W -> lane-replicated logits) ---------
        logits = jnp.dot(z, fc2wt_ref[...],
                         preferred_element_type=jnp.float32)  # (1, M*WC)

        # ---- softmax over the two branches (M == 2) ----------------------
        l0 = logits[:, :WC]
        l1 = logits[:, WC:]
        mx = jnp.maximum(l0, l1)
        e0 = jnp.exp(l0 - mx)
        e1 = jnp.exp(l1 - mx)
        den = e0 + e1
        inv = pl.reciprocal(den, approx=True)    # EUP slot
        inv = inv * (2.0 - den * inv)            # Newton step -> ~f32 exact
        a0 = e0 * inv                            # (1, WC); a1 = 1 - a0

        # ---- V = a0*y0 + a1*y1 = y1 + a0*(y0 - y1) ----------------------
        v_ref[b] = y1 + a0 * (y0 - y1)


# ----------------------------------------------------------------------------
# Wrapper (glue): layout conversion, halo padding, weight prep, pallas_call.
# ----------------------------------------------------------------------------
@jax.jit
def sk_block_forward(x_nchw, params):
    B, C, H, W = x_nchw.shape
    # groups=32 grouped conv is exactly depthwise only when C == 32.
    assert C == 32, "SKBlock Pallas kernel requires in==out==32 channels"
    d = params["fc1_w"].shape[0]
    WC = W * C
    Hp = H + 2 * PADMAX
    WpC = (W + 2 * PADMAX) * C
    inv_hw = 1.0 / float(H * W)

    # Batch packing: amortize per-grid-step overhead, keep the grid even
    # (>= 2 steps) when possible so v7x's two TensorCores stay balanced.
    bmax = 8
    nb = -(-B // bmax)
    if B >= 2 and nb % 2 == 1:
        nb += 1
    bblk = -(-B // nb)
    Bpad = nb * bblk

    # NCHW -> zero-padded, lane-flattened (Bpad, Hp, Wp*C).  (Cheap glue.)
    x = jnp.transpose(x_nchw, (0, 2, 3, 1))                       # NHWC
    xpad = jnp.pad(x, ((0, Bpad - B), (PADMAX, PADMAX),
                       (PADMAX, PADMAX), (0, 0)))
    xflat = xpad.reshape(Bpad, Hp, WpC)

    # Fold BN scale into the depthwise weights; tile channel vectors across W
    # so they line up with the (w-major, c-minor) lane-flattened layout.
    w = params["conv_w_hwc"] * params["conv_scale"][:, None, None, :]  # (M,3,3,C)
    w_flat = jnp.tile(w.reshape(M * 9, C), (1, W))                     # (M*9, WC)
    bias_flat = jnp.tile(params["conv_bias"], (1, W))                  # (M, WC)
    # fc1: fold 1/(H*W), the per-W reduction and the fc1 BN scale into W^T.
    fc1_wt = jnp.tile(params["fc1_w"].T, (W, 1)) * inv_hw \
        * params["fc1_scale"]                                          # (WC, d)
    # fc2: pre-tile across W so logits (and softmax weights) come out
    # lane-replicated in the (w-major, c-minor) layout.
    fc2_wt = jnp.tile(params["fc2_w"].T.reshape(d, M, 1, C),
                      (1, 1, W, 1)).reshape(d, M * WC)                 # (d, M*WC)

    kernel = functools.partial(_sk_fused_kernel, bblk=bblk, H=H, W=W, C=C)
    v_flat = pl.pallas_call(
        kernel,
        grid=(nb,),
        in_specs=[
            pl.BlockSpec((bblk, Hp, WpC), lambda b: (b, 0, 0)),
            pl.BlockSpec((M * 9, WC), lambda b: (0, 0)),
            pl.BlockSpec((M, WC), lambda b: (0, 0)),
            pl.BlockSpec((WC, d), lambda b: (0, 0)),
            pl.BlockSpec((1, d), lambda b: (0, 0)),
            pl.BlockSpec((d, M * WC), lambda b: (0, 0)),
        ],
        out_specs=pl.BlockSpec((bblk, H, WC), lambda b: (b, 0, 0)),
        out_shape=jax.ShapeDtypeStruct((Bpad, H, WC), jnp.float32),
        compiler_params=pltpu.CompilerParams(
            dimension_semantics=("parallel",)),
    )(xflat, w_flat, bias_flat, fc1_wt, params["fc1_bias"], fc2_wt)

    v = v_flat[:B].reshape(B, H, W, C)
    return jnp.transpose(v, (0, 3, 1, 2))                          # back to NCHW


# ----------------------------------------------------------------------------
# Deterministic synthetic parameters (shapes from SKBlock.__init__).
# ----------------------------------------------------------------------------
def init_params(key, channels):
    C = channels
    d = max(C // R, L)
    k = jax.random.split(key, 12)

    conv_w = 0.1 * jax.random.normal(k[0], (M, C, 3, 3), jnp.float32)  # depthwise
    g = 0.5 + jax.random.uniform(k[1], (M, C), jnp.float32)
    b = 0.1 * jax.random.normal(k[2], (M, C), jnp.float32)
    mu = 0.1 * jax.random.normal(k[3], (M, C), jnp.float32)
    var = 0.5 + jax.random.uniform(k[4], (M, C), jnp.float32)
    conv_scale = g / jnp.sqrt(var + EPS)
    conv_bias = b - mu * conv_scale

    fc1_w = 0.1 * jax.random.normal(k[5], (d, C), jnp.float32)
    g1 = 0.5 + jax.random.uniform(k[6], (d,), jnp.float32)
    b1 = 0.1 * jax.random.normal(k[7], (d,), jnp.float32)
    mu1 = 0.1 * jax.random.normal(k[8], (d,), jnp.float32)
    var1 = 0.5 + jax.random.uniform(k[9], (d,), jnp.float32)
    fc1_scale = g1 / jnp.sqrt(var1 + EPS)
    fc1_bias = b1 - mu1 * fc1_scale

    fc2_w = 0.1 * jax.random.normal(k[10], (M * C, d), jnp.float32)

    return {
        "conv_w": conv_w,                                    # (M, C, 3, 3)
        "conv_w_hwc": jnp.transpose(conv_w, (0, 2, 3, 1)),   # (M, 3, 3, C)
        "conv_scale": conv_scale,                            # (M, C)
        "conv_bias": conv_bias,                              # (M, C)
        "fc1_w": fc1_w,                                      # (d, C)
        "fc1_scale": fc1_scale.reshape(1, d),
        "fc1_bias": fc1_bias.reshape(1, d),
        "fc2_w": fc2_w,                                      # (M*C, d)
    }


# ----------------------------------------------------------------------------
# Pure-JAX reference (independent path via lax.conv_general_dilated).
# ----------------------------------------------------------------------------
def reference_forward(x_nchw, p):
    B, C, H, W = x_nchw.shape
    outs = []
    for i in range(M):
        dil = 1 + i
        w = p["conv_w"][i].reshape(C, 1, 3, 3)
        y = lax.conv_general_dilated(
            x_nchw, w, window_strides=(1, 1),
            padding=[(dil, dil), (dil, dil)],
            rhs_dilation=(dil, dil),
            feature_group_count=C,
            dimension_numbers=("NCHW", "OIHW", "NCHW"))
        sc = p["conv_scale"][i].reshape(1, C, 1, 1)
        bs = p["conv_bias"][i].reshape(1, C, 1, 1)
        outs.append(jnp.maximum(y * sc + bs, 0.0))
    U = outs[0] + outs[1]
    s = U.mean(axis=(2, 3))                                   # (B, C)
    z = jnp.maximum(s @ p["fc1_w"].T * p["fc1_scale"] + p["fc1_bias"], 0.0)
    logits = z @ p["fc2_w"].T                                 # (B, M*C)
    ab = jax.nn.softmax(logits.reshape(B, M, C), axis=1)
    return sum(outs[i] * ab[:, i][:, :, None, None] for i in range(M))


if __name__ == "__main__":
    # groups=32 requires channel counts divisible by 32; use in==out==32 so
    # the grouped conv is exactly depthwise.
    channels, B, H, W = 32, 2, 16, 16
    key = jax.random.PRNGKey(0)
    kx, kp = jax.random.split(key)
    x = jax.random.normal(kx, (B, channels, H, W), jnp.float32)
    params = init_params(kp, channels)

    v = sk_block_forward(x, params)
    v = jax.block_until_ready(v)

    ref = reference_forward(x, params)
    np.testing.assert_allclose(np.asarray(v), np.asarray(ref),
                               rtol=1e-4, atol=1e-4)
    print("KERNEL_OK")
</pallas_src>

<mosaic_0001>
module attributes {stable_mosaic.version = 11 : i64} {
  func.func @_sk_fused_kernel(%arg0: i32, %arg1: memref<1x20x640xf32, #tpu.memory_space<vmem>>, %arg2: memref<18x512xf32, #tpu.memory_space<vmem>>, %arg3: memref<2x512xf32, #tpu.memory_space<vmem>>, %arg4: memref<512x32xf32, #tpu.memory_space<vmem>>, %arg5: memref<1x32xf32, #tpu.memory_space<vmem>>, %arg6: memref<32x1024xf32, #tpu.memory_space<vmem>>, %arg7: memref<1x16x512xf32, #tpu.memory_space<vmem>>) attributes {dimension_semantics = [#tpu.dimension_semantics<parallel>], iteration_bounds = array<i64: 2>, scalar_prefetch = 0 : i64, scratch_operands = 0 : i64, tpu.core_type = #tpu.core_type<tc>, window_params = [{transform_indices = @transform_0, window_bounds = array<i64: 1, 20, 640>}, {pipeline_mode = #tpu.pipeline_mode<synchronous>, transform_indices = @transform_1, window_bounds = array<i64: 18, 512>}, {pipeline_mode = #tpu.pipeline_mode<synchronous>, transform_indices = @transform_2, window_bounds = array<i64: 2, 512>}, {pipeline_mode = #tpu.pipeline_mode<synchronous>, transform_indices = @transform_3, window_bounds = array<i64: 512, 32>}, {pipeline_mode = #tpu.pipeline_mode<synchronous>, transform_indices = @transform_4, window_bounds = array<i64: 1, 32>}, {pipeline_mode = #tpu.pipeline_mode<synchronous>, transform_indices = @transform_5, window_bounds = array<i64: 32, 1024>}, {transform_indices = @transform_6, window_bounds = array<i64: 1, 16, 512>}]} {
    %c0 = arith.constant 0 : index
    %c0_0 = arith.constant 0 : index
    %0 = vector.load %arg2[%c0, %c0_0] : memref<18x512xf32, #tpu.memory_space<vmem>>, vector<18x512xf32>
    %c0_1 = arith.constant 0 : index
    %c0_2 = arith.constant 0 : index
    %1 = vector.load %arg3[%c0_1, %c0_2] : memref<2x512xf32, #tpu.memory_space<vmem>>, vector<2x512xf32>
    %c0_3 = arith.constant 0 : index
    %c0_4 = arith.constant 0 : index
    %2 = vector.load %arg5[%c0_3, %c0_4] : memref<1x32xf32, #tpu.memory_space<vmem>>, vector<1x32xf32>
    %c0_5 = arith.constant 0 : index
    %c0_6 = arith.constant 0 : index
    %c0_7 = arith.constant 0 : index
    %3 = vector.load %arg1[%c0_5, %c0_6, %c0_7] : memref<1x20x640xf32, #tpu.memory_space<vmem>>, vector<1x20x640xf32>
    %4 = vector.shape_cast %3 : vector<1x20x640xf32> to vector<20x640xf32>
    %5 = vector.extract_strided_slice %4 {offsets = [0, 0], sizes = [20, 512], strides = [1, 1]} : vector<20x640xf32> to vector<20x512xf32>
    %6 = vector.extract_strided_slice %5 {offsets = [0, 0], sizes = [16, 512], strides = [1, 1]} : vector<20x512xf32> to vector<16x512xf32>
    %7 = vector.extract_strided_slice %0 {offsets = [9, 0], sizes = [1, 512], strides = [1, 1]} : vector<18x512xf32> to vector<1x512xf32>
    %8 = vector.broadcast %7 : vector<1x512xf32> to vector<16x512xf32>
    %9 = arith.mulf %6, %8 : vector<16x512xf32>
    %10 = vector.extract_strided_slice %5 {offsets = [2, 0], sizes = [16, 512], strides = [1, 1]} : vector<20x512xf32> to vector<16x512xf32>
    %11 = vector.extract_strided_slice %0 {offsets = [12, 0], sizes = [1, 512], strides = [1, 1]} : vector<18x512xf32> to vector<1x512xf32>
    %12 = vector.broadcast %11 : vector<1x512xf32> to vector<16x512xf32>
    %13 = arith.mulf %10, %12 : vector<16x512xf32>
    %14 = arith.addf %9, %13 : vector<16x512xf32>
    %15 = vector.extract_strided_slice %5 {offsets = [4, 0], sizes = [16, 512], strides = [1, 1]} : vector<20x512xf32> to vector<16x512xf32>
    %16 = vector.extract_strided_slice %0 {offsets = [15, 0], sizes = [1, 512], strides = [1, 1]} : vector<18x512xf32> to vector<1x512xf32>
    %17 = vector.broadcast %16 : vector<1x512xf32> to vector<16x512xf32>
    %18 = arith.mulf %15, %17 : vector<16x512xf32>
    %19 = arith.addf %14, %18 : vector<16x512xf32>
    %20 = vector.extract_strided_slice %4 {offsets = [0, 32], sizes = [20, 512], strides = [1, 1]} : vector<20x640xf32> to vector<20x512xf32>
    %21 = vector.extract_strided_slice %20 {offsets = [1, 0], sizes = [16, 512], strides = [1, 1]} : vector<20x512xf32> to vector<16x512xf32>
    %22 = vector.extract_strided_slice %0 {offsets = [0, 0], sizes = [1, 512], strides = [1, 1]} : vector<18x512xf32> to vector<1x512xf32>
    %23 = vector.broadcast %22 : vector<1x512xf32> to vector<16x512xf32>
    %24 = arith.mulf %21, %23 : vector<16x512xf32>
    %25 = vector.extract_strided_slice %20 {offsets = [2, 0], sizes = [16, 512], strides = [1, 1]} : vector<20x512xf32> to vector<16x512xf32>
    %26 = vector.extract_strided_slice %0 {offsets = [3, 0], sizes = [1, 512], strides = [1, 1]} : vector<18x512xf32> to vector<1x512xf32>
    %27 = vector.broadcast %26 : vector<1x512xf32> to vector<16x512xf32>
    %28 = arith.mulf %25, %27 : vector<16x512xf32>
    %29 = arith.addf %24, %28 : vector<16x512xf32>
    %30 = vector.extract_strided_slice %20 {offsets = [3, 0], sizes = [16, 512], strides = [1, 1]} : vector<20x512xf32> to vector<16x512xf32>
    %31 = vector.extract_strided_slice %0 {offsets = [6, 0], sizes = [1, 512], strides = [1, 1]} : vector<18x512xf32> to vector<1x512xf32>
    %32 = vector.broadcast %31 : vector<1x512xf32> to vector<16x512xf32>
    %33 = arith.mulf %30, %32 : vector<16x512xf32>
    %34 = arith.addf %29, %33 : vector<16x512xf32>
    %35 = vector.extract_strided_slice %4 {offsets = [0, 64], sizes = [20, 512], strides = [1, 1]} : vector<20x640xf32> to vector<20x512xf32>
    %36 = vector.extract_strided_slice %35 {offsets = [1, 0], sizes = [16, 512], strides = [1, 1]} : vector<20x512xf32> to vector<16x512xf32>
    %37 = vector.extract_strided_slice %0 {offsets = [1, 0], sizes = [1, 512], strides = [1, 1]} : vector<18x512xf32> to vector<1x512xf32>
    %38 = vector.broadcast %37 : vector<1x512xf32> to vector<16x512xf32>
    %39 = arith.mulf %36, %38 : vector<16x512xf32>
    %40 = arith.addf %34, %39 : vector<16x512xf32>
    %41 = vector.extract_strided_slice %35 {offsets = [2, 0], sizes = [16, 512], strides = [1, 1]} : vector<20x512xf32> to vector<16x512xf32>
    %42 = vector.extract_strided_slice %0 {offsets = [4, 0], sizes = [1, 512], strides = [1, 1]} : vector<18x512xf32> to vector<1x512xf32>
    %43 = vector.broadcast %42 : vector<1x512xf32> to vector<16x512xf32>
    %44 = arith.mulf %41, %43 : vector<16x512xf32>
    %45 = arith.addf %40, %44 : vector<16x512xf32>
    %46 = vector.extract_strided_slice %35 {offsets = [3, 0], sizes = [16, 512], strides = [1, 1]} : vector<20x512xf32> to vector<16x512xf32>
    %47 = vector.extract_strided_slice %0 {offsets = [7, 0], sizes = [1, 512], strides = [1, 1]} : vector<18x512xf32> to vector<1x512xf32>
    %48 = vector.broadcast %47 : vector<1x512xf32> to vector<16x512xf32>
    %49 = arith.mulf %46, %48 : vector<16x512xf32>
    %50 = arith.addf %45, %49 : vector<16x512xf32>
    %51 = vector.extract_strided_slice %35 {offsets = [0, 0], sizes = [16, 512], strides = [1, 1]} : vector<20x512xf32> to vector<16x512xf32>
    %52 = vector.extract_strided_slice %0 {offsets = [10, 0], sizes = [1, 512], strides = [1, 1]} : vector<18x512xf32> to vector<1x512xf32>
    %53 = vector.broadcast %52 : vector<1x512xf32> to vector<16x512xf32>
    %54 = arith.mulf %51, %53 : vector<16x512xf32>
    %55 = arith.addf %19, %54 : vector<16x512xf32>
    %56 = vector.extract_strided_slice %35 {offsets = [2, 0], sizes = [16, 512], strides = [1, 1]} : vector<20x512xf32> to vector<16x512xf32>
    %57 = vector.extract_strided_slice %0 {offsets = [13, 0], sizes = [1, 512], strides = [1, 1]} : vector<18x512xf32> to vector<1x512xf32>
    %58 = vector.broadcast %57 : vector<1x512xf32> to vector<16x512xf32>
    %59 = arith.mulf %56, %58 : vector<16x512xf32>
    %60 = arith.addf %55, %59 : vector<16x512xf32>
    %61 = vector.extract_strided_slice %35 {offsets = [4, 0], sizes = [16, 512], strides = [1, 1]} : vector<20x512xf32> to vector<16x512xf32>
    %62 = vector.extract_strided_slice %0 {offsets = [16, 0], sizes = [1, 512], strides = [1, 1]} : vector<18x512xf32> to vector<1x512xf32>
    %63 = vector.broadcast %62 : vector<1x512xf32> to vector<16x512xf32>
    %64 = arith.mulf %61, %63 : vector<16x512xf32>
    %65 = arith.addf %60, %64 : vector<16x512xf32>
    %66 = vector.extract_strided_slice %4 {offsets = [0, 96], sizes = [20, 512], strides = [1, 1]} : vector<20x640xf32> to vector<20x512xf32>
    %67 = vector.extract_strided_slice %66 {offsets = [1, 0], sizes = [16, 512], strides = [1, 1]} : vector<20x512xf32> to vector<16x512xf32>
    %68 = vector.extract_strided_slice %0 {offsets = [2, 0], sizes = [1, 512], strides = [1, 1]} : vector<18x512xf32> to vector<1x512xf32>
    %69 = vector.broadcast %68 : vector<1x512xf32> to vector<16x512xf32>
    %70 = arith.mulf %67, %69 : vector<16x512xf32>
    %71 = arith.addf %50, %70 : vector<16x512xf32>
    %72 = vector.extract_strided_slice %66 {offsets = [2, 0], sizes = [16, 512], strides = [1, 1]} : vector<20x512xf32> to vector<16x512xf32>
    %73 = vector.extract_strided_slice %0 {offsets = [5, 0], sizes = [1, 512], strides = [1, 1]} : vector<18x512xf32> to vector<1x512xf32>
    %74 = vector.broadcast %73 : vector<1x512xf32> to vector<16x512xf32>
    %75 = arith.mulf %72, %74 : vector<16x512xf32>
    %76 = arith.addf %71, %75 : vector<16x512xf32>
    %77 = vector.extract_strided_slice %66 {offsets = [3, 0], sizes = [16, 512], strides = [1, 1]} : vector<20x512xf32> to vector<16x512xf32>
    %78 = vector.extract_strided_slice %0 {offsets = [8, 0], sizes = [1, 512], strides = [1, 1]} : vector<18x512xf32> to vector<1x512xf32>
    %79 = vector.broadcast %78 : vector<1x512xf32> to vector<16x512xf32>
    %80 = arith.mulf %77, %79 : vector<16x512xf32>
    %81 = arith.addf %76, %80 : vector<16x512xf32>
    %82 = vector.extract_strided_slice %4 {offsets = [0, 128], sizes = [20, 512], strides = [1, 1]} : vector<20x640xf32> to vector<20x512xf32>
    %83 = vector.extract_strided_slice %82 {offsets = [0, 0], sizes = [16, 512], strides = [1, 1]} : vector<20x512xf32> to vector<16x512xf32>
    %84 = vector.extract_strided_slice %0 {offsets = [11, 0], sizes = [1, 512], strides = [1, 1]} : vector<18x512xf32> to vector<1x512xf32>
    %85 = vector.broadcast %84 : vector<1x512xf32> to vector<16x512xf32>
    %86 = arith.mulf %83, %85 : vector<16x512xf32>
    %87 = arith.addf %65, %86 : vector<16x512xf32>
    %88 = vector.extract_strided_slice %82 {offsets = [2, 0], sizes = [16, 512], strides = [1, 1]} : vector<20x512xf32> to vector<16x512xf32>
    %89 = vector.extract_strided_slice %0 {offsets = [14, 0], sizes = [1, 512], strides = [1, 1]} : vector<18x512xf32> to vector<1x512xf32>
    %90 = vector.broadcast %89 : vector<1x512xf32> to vector<16x512xf32>
    %91 = arith.mulf %88, %90 : vector<16x512xf32>
    %92 = arith.addf %87, %91 : vector<16x512xf32>
    %93 = vector.extract_strided_slice %82 {offsets = [4, 0], sizes = [16, 512], strides = [1, 1]} : vector<20x512xf32> to vector<16x512xf32>
    %94 = vector.extract_strided_slice %0 {offsets = [17, 0], sizes = [1, 512], strides = [1, 1]} : vector<18x512xf32> to vector<1x512xf32>
    %95 = vector.broadcast %94 : vector<1x512xf32> to vector<16x512xf32>
    %96 = arith.mulf %93, %95 : vector<16x512xf32>
    %97 = arith.addf %92, %96 : vector<16x512xf32>
    %98 = vector.extract_strided_slice %1 {offsets = [0, 0], sizes = [1, 512], strides = [1, 1]} : vector<2x512xf32> to vector<1x512xf32>
    %99 = vector.broadcast %98 : vector<1x512xf32> to vector<16x512xf32>
    %100 = arith.addf %81, %99 : vector<16x512xf32>
    %cst = arith.constant 0.000000e+00 : f32
    %101 = vector.broadcast %cst : f32 to vector<16x512xf32>
    %102 = arith.maximumf %100, %101 : vector<16x512xf32>
    %103 = vector.extract_strided_slice %1 {offsets = [1, 0], sizes = [1, 512], strides = [1, 1]} : vector<2x512xf32> to vector<1x512xf32>
    %104 = vector.broadcast %103 : vector<1x512xf32> to vector<16x512xf32>
    %105 = arith.addf %97, %104 : vector<16x512xf32>
    %cst_8 = arith.constant 0.000000e+00 : f32
    %106 = vector.broadcast %cst_8 : f32 to vector<16x512xf32>
    %107 = arith.maximumf %105, %106 : vector<16x512xf32>
    %108 = arith.addf %102, %107 : vector<16x512xf32>
    %cst_9 = arith.constant dense<0.000000e+00> : vector<512xf32>
    %109 = vector.multi_reduction <add>, %108, %cst_9 [0] : vector<16x512xf32> to vector<512xf32>
    %110 = vector.shape_cast %109 : vector<512xf32> to vector<1x512xf32>
    %c0_10 = arith.constant 0 : index
    %c0_11 = arith.constant 0 : index
    %111 = vector.load %arg4[%c0_10, %c0_11] : memref<512x32xf32, #tpu.memory_space<vmem>>, vector<512x32xf32>
    %cst_12 = arith.constant dense<0.000000e+00> : vector<1x32xf32>
    %112 = tpu.matmul %110, %111, %cst_12 {dimension_numbers = #tpu.dot_dimension_numbers<[1], [0], [0], [1], [0, 0, 1, 1], [], []>} : vector<1x512xf32>, vector<512x32xf32>, vector<1x32xf32> -> vector<1x32xf32>
    %113 = arith.addf %112, %2 : vector<1x32xf32>
    %cst_13 = arith.constant 0.000000e+00 : f32
    %114 = vector.broadcast %cst_13 : f32 to vector<1x32xf32>
    %115 = arith.maximumf %113, %114 : vector<1x32xf32>
    %c0_14 = arith.constant 0 : index
    %c0_15 = arith.constant 0 : index
    %116 = vector.load %arg6[%c0_14, %c0_15] : memref<32x1024xf32, #tpu.memory_space<vmem>>, vector<32x1024xf32>
    %cst_16 = arith.constant dense<0.000000e+00> : vector<1x1024xf32>
    %117 = tpu.matmul %115, %116, %cst_16 {dimension_numbers = #tpu.dot_dimension_numbers<[1], [0], [0], [1], [0, 0, 1, 1], [], []>} : vector<1x32xf32>, vector<32x1024xf32>, vector<1x1024xf32> -> vector<1x1024xf32>
    %118 = vector.extract_strided_slice %117 {offsets = [0, 0], sizes = [1, 512], strides = [1, 1]} : vector<1x1024xf32> to vector<1x512xf32>
    %119 = vector.extract_strided_slice %117 {offsets = [0, 512], sizes = [1, 512], strides = [1, 1]} : vector<1x1024xf32> to vector<1x512xf32>
    %120 = arith.maximumf %118, %119 : vector<1x512xf32>
    %121 = arith.subf %118, %120 : vector<1x512xf32>
    %122 = math.exp %121 : vector<1x512xf32>
    %123 = arith.subf %119, %120 : vector<1x512xf32>
    %124 = math.exp %123 : vector<1x512xf32>
    %125 = arith.addf %122, %124 : vector<1x512xf32>
    %126 = tpu.reciprocal %125 {approx = true} : vector<1x512xf32> -> vector<1x512xf32>
    %127 = arith.mulf %125, %126 : vector<1x512xf32>
    %cst_17 = arith.constant 2.000000e+00 : f32
    %128 = vector.broadcast %cst_17 : f32 to vector<1x512xf32>
    %129 = arith.subf %128, %127 : vector<1x512xf32>
    %130 = arith.mulf %126, %129 : vector<1x512xf32>
    %131 = arith.mulf %122, %130 : vector<1x512xf32>
    %132 = arith.subf %102, %107 : vector<16x512xf32>
    %133 = vector.broadcast %131 : vector<1x512xf32> to vector<16x512xf32>
    %134 = arith.mulf %133, %132 : vector<16x512xf32>
    %135 = arith.addf %107, %134 : vector<16x512xf32>
    %c0_18 = arith.constant 0 : index
    %c0_19 = arith.constant 0 : index
    %c0_20 = arith.constant 0 : index
    %136 = vector.load %arg7[%c0_18, %c0_19, %c0_20] : memref<1x16x512xf32, #tpu.memory_space<vmem>>, vector<1x16x512xf32>
    %137 = vector.shape_cast %136 : vector<1x16x512xf32> to vector<16x512xf32>
    %138 = vector.shape_cast %135 : vector<16x512xf32> to vector<1x16x512xf32>
    tpu.vector_store %arg7[%c0_18, %c0_19, %c0_20], %138 {strides = array<i32>} : memref<1x16x512xf32, #tpu.memory_space<vmem>>, vector<1x16x512xf32>,
    return
  }
  func.func @transform_0(%arg0: i32) -> (i32, i32, i32) {
    %c0_i32 = arith.constant 0 : i32
    %c0_i32_0 = arith.constant 0 : i32
    %c0_i32_1 = arith.constant 0 : i32
    return %arg0, %c0_i32, %c0_i32_0 : i32, i32, i32
  }
  func.func @transform_1(%arg0: i32) -> (i32, i32) {
    %c0_i32 = arith.constant 0 : i32
    %c0_i32_0 = arith.constant 0 : i32
    %c0_i32_1 = arith.constant 0 : i32
    return %c0_i32, %c0_i32_0 : i32, i32
  }
  func.func @transform_2(%arg0: i32) -> (i32, i32) {
    %c0_i32 = arith.constant 0 : i32
    %c0_i32_0 = arith.constant 0 : i32
    %c0_i32_1 = arith.constant 0 : i32
    return %c0_i32, %c0_i32_0 : i32, i32
  }
  func.func @transform_3(%arg0: i32) -> (i32, i32) {
    %c0_i32 = arith.constant 0 : i32
    %c0_i32_0 = arith.constant 0 : i32
    %c0_i32_1 = arith.constant 0 : i32
    return %c0_i32, %c0_i32_0 : i32, i32
  }
  func.func @transform_4(%arg0: i32) -> (i32, i32) {
    %c0_i32 = arith.constant 0 : i32
    %c0_i32_0 = arith.constant 0 : i32
    %c0_i32_1 = arith.constant 0 : i32
    return %c0_i32, %c0_i32_0 : i32, i32
  }
  func.func @transform_5(%arg0: i32) -> (i32, i32) {
    %c0_i32 = arith.constant 0 : i32
    %c0_i32_0 = arith.constant 0 : i32
    %c0_i32_1 = arith.constant 0 : i32
    return %c0_i32, %c0_i32_0 : i32, i32
  }
  func.func @transform_6(%arg0: i32) -> (i32, i32, i32) {
    %c0_i32 = arith.constant 0 : i32
    %c0_i32_0 = arith.constant 0 : i32
    %c0_i32_1 = arith.constant 0 : i32
    return %arg0, %c0_i32, %c0_i32_0 : i32, i32, i32
  }
}

</mosaic_0001>

<bundles_post_ra>
// kernel: tile.35
= control target key start
LH: loop header
LB: loop body
LE: loop exit
PB: predicated region body
PF: predicated region fallthrough
CT: control target
= control target key end

     0   :  { %vm227_vm0 = vcmask 1041409   ;;  %vm231_vm1 = vcmask 1042434   ;;  %vm235_vm2 = vcmask 1043459   ;;  %vm239_vm3 = vcmask 1044484   ;;  %s4537_s25 = smov 96   ;;  %s4538_s13 = smov 64   ;;  %s8544_s0 = inlined_call_operand.vmem [shape: f32[32,2,16,1,1,32], index: 0, kind: input, shape index: {}]   ;;  %s8545_s1 = inlined_call_operand.vmem [shape: f32[32,1024], index: 1, kind: output, shape index: {}]  }
   0x1   :  { %vm243_vm4 = vcmask 1045509   ;;  %v3690_v0 = vld [vmem:[%s8544_s0 + $0x103] sm:$0x1]   ;;  %vm247_vm5 = vcmask 1046534   ;;  %vm251_vm6 = vcmask 1047559   ;;  %s4539_s18 = smov 32  }
   0x2   :  { %v3691_v1 = vld [vmem:[%s8544_s0 + $0x122] sm:$0x2]   ;;  %v3699_v23 = vld [vmem:[%s8544_s0 + $0x113] sm:$0x1]   ;;  %vm3_vm7 = vcmask 261120   ;;  %vm255_vm8 = vcmask 1048320  }
   0x3   :  { %v3692_v2 = vld [vmem:[%s8544_s0 + $0x141] sm:$0x4]   ;;  %v297_v4 = vsel %vm227_vm0, %v3691_v1, %v3690_v0  ;;  %v3700_v24 = vld [vmem:[%s8544_s0 + $0x132] sm:$0x2]   ;;  %vm1374_vm9 = vcmask 785920   ;;  %vm2493_vm10 = vcmask 523520  }
   0x4   :  { %v3693_v3 = vld [vmem:[%s8544_s0 + $0x160] sm:$0x8]   ;;  %v301_v7 = vsel %vm231_vm1, %v3692_v2, %v297_v4  ;;  %v3701_v25 = vld [vmem:[%s8544_s0 + $0x151] sm:$0x4]   ;;  %v332_v29 = vsel %vm227_vm0, %v3700_v24, %v3699_v23 }
   0x5   :  { %v3694_v5 = vld [vmem:[%s8544_s0 + $0x17f] sm:$0x10]   ;;  %v305_v11 = vsel %vm235_vm2, %v3693_v3, %v301_v7  ;;  %v3702_v30 = vld [vmem:[%s8544_s0 + $0x170] sm:$0x8]   ;;  %v336_v34 = vsel %vm231_vm1, %v3701_v25, %v332_v29 }
   0x6   :  { %v3695_v6 = vld [vmem:[%s8544_s0 + $0x19e] sm:$0x20]   ;;  %v309_v16 = vsel %vm239_vm3, %v3694_v5, %v305_v11  ;;  %v3703_v31 = vld [vmem:[%s8544_s0 + $0x18f] sm:$0x10]   ;;  %v340_v39 = vsel %vm235_vm2, %v3702_v30, %v336_v34 }
   0x7   :  { %v3696_v8 = vld [vmem:[%s8544_s0 + $0x1bd] sm:$0x40]   ;;  %v313_v21 = vsel %vm243_vm4, %v3695_v6, %v309_v16  ;;  %v3704_v35 = vld [vmem:[%s8544_s0 + $0x1ae] sm:$0x20]   ;;  %v344_v44 = vsel %vm239_vm3, %v3703_v31, %v340_v39  ;;  %v3762_v31 = vld [vmem:[%s8544_s0 + $0x107] sm:$0x1]  }
   0x8   :  { %v3673_v9 = vld [vmem:[%s8544_s0 + $0x3] sm:$0x1]   ;;  %v317_v26 = vsel %vm247_vm5, %v3696_v8, %v313_v21  ;;  %v3705_v36 = vld [vmem:[%s8544_s0 + $0x1cd] sm:$0x40]   ;;  %v348_v49 = vsel %vm243_vm4, %v3704_v35, %v344_v44  ;;  %v3764_v35 = vld [vmem:[%s8544_s0 + $0x145] sm:$0x4]  }
   0x9   :  { %v3674_v10 = vld [vmem:[%s8544_s0 + $0x22] sm:$0x2]   ;;  %v3681_v37 = vld [vmem:[%s8544_s0 + $0x13] sm:$0x1]   ;;  %v352_v54 = vsel %vm247_vm5, %v3705_v36, %v348_v49  ;;  %v3765_v36 = vld [vmem:[%s8544_s0 + $0x164] sm:$0x8]  }
   0xa   :  { %v228_v12 = vsel %vm227_vm0, %v3674_v10, %v3673_v9  ;;  %v3675_v13 = vld [vmem:[%s8544_s0 + $0x41] sm:$0x4]   ;;  %v3682_v40 = vld [vmem:[%s8544_s0 + $0x32] sm:$0x2]   ;;  %v3755_v49 = vld [vmem:[%s8544_s0 + $0x55] sm:$0x4]  }
   0xb   :  { %v3676_v14 = vld [vmem:[%s8544_s0 + $0x60] sm:$0x8]   ;;  %v232_v18 = vsel %vm231_vm1, %v3675_v13, %v228_v12  ;;  %v3683_v41 = vld [vmem:[%s8544_s0 + $0x51] sm:$0x4]   ;;  %v262_v46 = vsel %vm227_vm0, %v3682_v40, %v3681_v37  ;;  %v3766_v37 = vld [vmem:[%s8544_s0 + $0x183] sm:$0x10]  }
   0xc   :  { %v3677_v15 = vld [vmem:[%s8544_s0 + $0x7f] sm:$0x10]   ;;  %v236_v22 = vsel %vm235_vm2, %v3676_v14, %v232_v18  ;;  %v3684_v42 = vld [vmem:[%s8544_s0 + $0x70] sm:$0x8]   ;;  %v266_v50 = vsel %vm231_vm1, %v3683_v41, %v262_v46 }
   0xd   :  { %v3697_v17 = vld [vmem:[%s8544_s0 + $0x1dc] sm:$0x80]   ;;  %v240_v27 = vsel %vm239_vm3, %v3677_v15, %v236_v22  ;;  %v3706_v45 = vld [vmem:[%s8544_s0 + $0x1ec] sm:$0x80]   ;;  %v270_v55 = vsel %vm235_vm2, %v3684_v42, %v266_v50 }
   0xe   :  { %v3678_v19 = vld [vmem:[%s8544_s0 + $0x9e] sm:$0x20]   ;;  %v321_v32 = vsel %vm251_vm6, %v3697_v17, %v317_v26  ;;  %v3685_v47 = vld [vmem:[%s8544_s0 + $0x8f] sm:$0x10]   ;;  %v356_v0 = vsel %vm251_vm6, %v3706_v45, %v352_v54  ;;  %v3757_v54 = vld [vmem:[%s8544_s0 + $0x93] sm:$0x10]  }
   0xf   :  { %v3679_v20 = vld [vmem:[%s8544_s0 + $0xbd] sm:$0x40]   ;;  %v244_v33 = vsel %vm243_vm4, %v3678_v19, %v240_v27  ;;  %322 = vrot.lane.b32.xlu1 %v321_v32, %s4537_s25  ;;  %v3686_v48 = vld [vmem:[%s8544_s0 + $0xae] sm:$0x20]   ;;  %v274_v60 = vsel %vm239_vm3, %v3685_v47, %v270_v55  ;;  %v3763_v32 = vld [vmem:[%s8544_s0 + $0x126] sm:$0x2]  }
  0x10   :  { %v3680_v28 = vld [vmem:[%s8544_s0 + $0xdc] sm:$0x80]   ;;  %v248_v38 = vsel %vm247_vm5, %v3679_v20, %v244_v33  ;;  %v3687_v51 = vld [vmem:[%s8544_s0 + $0xcd] sm:$0x40]   ;;  %v278_v1 = vsel %vm243_vm4, %v3686_v48, %v274_v60  ;;  %v577_v34 = vsel %vm227_vm0, %v3763_v32, %v3762_v31  ;;  %v3753_v47 = vld [vmem:[%s8544_s0 + $0x17] sm:$0x1]  }
  0x11   :  { %v252_v43 = vsel %vm251_vm6, %v3680_v28, %v248_v38  ;;  %v3735_v52 = vld [vmem:[%s8544_s0 + $0x313] sm:$0x1]   ;;  %v3726_v3 = vld [vmem:[%s8544_s0 + $0x303] sm:$0x1]   ;;  %v282_v6 = vsel %vm247_vm5, %v3687_v51, %v278_v1  ;;  %v581_v42 = vsel %vm231_vm1, %v3764_v35, %v577_v34  ;;  %v3754_v48 = vld [vmem:[%s8544_s0 + $0x36] sm:$0x2]  }
  0x12   :  { %253 = vrot.lane.b32.xlu0 %v252_v43, %s4537_s25  ;;  %v3736_v53 = vld [vmem:[%s8544_s0 + $0x332] sm:$0x2]   ;;  %v3727_v4 = vld [vmem:[%s8544_s0 + $0x322] sm:$0x2]   ;;  %v3767_v43 = vld [vmem:[%s8544_s0 + $0x1a2] sm:$0x20]   ;;  %v585_v46 = vsel %vm235_vm2, %v3765_v36, %v581_v42 }
  0x13   :  { %v472_v56 = vsel %vm227_vm0, %v3736_v53, %v3735_v52  ;;  %v3737_v57 = vld [vmem:[%s8544_s0 + $0x351] sm:$0x4]   ;;  %v3728_v5 = vld [vmem:[%s8544_s0 + $0x341] sm:$0x4]   ;;  %v437_v8 = vsel %vm227_vm0, %v3727_v4, %v3726_v3  ;;  %v589_v51 = vsel %vm239_vm3, %v3766_v37, %v585_v46  ;;  %v542_v52 = vsel %vm227_vm0, %v3754_v48, %v3753_v47  ;;  %v3756_v53 = vld [vmem:[%s8544_s0 + $0x74] sm:$0x8]  }
  0x14   :  { %v3738_v58 = vld [vmem:[%s8544_s0 + $0x370] sm:$0x8]   ;;  %v476_v62 = vsel %vm231_vm1, %v3737_v57, %v472_v56  ;;  %v3729_v9 = vld [vmem:[%s8544_s0 + $0x360] sm:$0x8]   ;;  %v441_v14 = vsel %vm231_vm1, %v3728_v5, %v437_v8  ;;  %v593_v57 = vsel %vm243_vm4, %v3767_v43, %v589_v51  ;;  %v3758_v60 = vld [vmem:[%s8544_s0 + $0xb2] sm:$0x20]  }
  0x15   :  { %v3739_v59 = vld [vmem:[%s8544_s0 + $0x38f] sm:$0x10]   ;;  %v480_v2 = vsel %vm235_vm2, %v3738_v58, %v476_v62  ;;  %v3730_v10 = vld [vmem:[%s8544_s0 + $0x37f] sm:$0x10]   ;;  %v445_v18 = vsel %vm235_vm2, %v3729_v9, %v441_v14  ;;  %v3768_v58 = vld [vmem:[%s8544_s0 + $0x1c1] sm:$0x40]  }
  0x16   :  { %v3688_v61 = vld [vmem:[%s8544_s0 + $0xec] sm:$0x80]   ;;  %v484_v7 = vsel %vm239_vm3, %v3739_v59, %v480_v2  ;;  %v3731_v15 = vld [vmem:[%s8544_s0 + $0x39e] sm:$0x20]   ;;  %v449_v22 = vsel %vm239_vm3, %v3730_v10, %v445_v18  ;;  %v546_v59 = vsel %vm231_vm1, %v3755_v49, %v542_v52  ;;  %v3769_v62 = vld [vmem:[%s8544_s0 + $0x1e0] sm:$0x80]  }
  0x17   :  { %v3740_v63 = vld [vmem:[%s8544_s0 + $0x3ae] sm:$0x20]   ;;  %v286_v11 = vsel %vm251_vm6, %v3688_v61, %v282_v6  ;;  %v3708_v16 = vld [vmem:[%s8544_s0 + $0x203] sm:$0x1]   ;;  %357 = vrot.lane.b32.xlu1 %v356_v0, %s4537_s25  ;;  %v453_v28 = vsel %vm243_vm4, %v3731_v15, %v449_v22  ;;  %v3759_v3 = vld [vmem:[%s8544_s0 + $0xd1] sm:$0x40]  }
  0x18   :  { %v488_v12 = vsel %vm243_vm4, %v3740_v63, %v484_v7  ;;  %v3741_v13 = vld [vmem:[%s8544_s0 + $0x3cd] sm:$0x40]   ;;  %v3709_v19 = vld [vmem:[%s8544_s0 + $0x222] sm:$0x2]   ;;  %v550_v63 = vsel %vm235_vm2, %v3756_v53, %v546_v59  ;;  %v597_v7 = vsel %vm247_vm5, %v3768_v58, %v593_v57  ;;  %v3790_v14 = vld [vmem:[%s8544_s0 + $0x236] sm:$0x2]  }
  0x19   :  { %v3742_v17 = vld [vmem:[%s8544_s0 + $0x3ec] sm:$0x80]   ;;  %v3710_v20 = vld [vmem:[%s8544_s0 + $0x241] sm:$0x4]   ;;  %v367_v24 = vsel %vm227_vm0, %v3709_v19, %v3708_v16  ;;  %v492_v27 = vsel %vm247_vm5, %v3741_v13, %v488_v12  ;;  %v554_v2 = vsel %vm239_vm3, %v3757_v54, %v550_v63  ;;  %v3789_v12 = vld [vmem:[%s8544_s0 + $0x217] sm:$0x1]  }
  0x1a   :  { %v3711_v21 = vld [vmem:[%s8544_s0 + $0x260] sm:$0x8]   ;;  %287 = vrot.lane.b32.xlu0 %v286_v11, %s4537_s25  ;;  %v371_v29 = vsel %vm231_vm1, %v3710_v20, %v367_v24  ;;  %v496_v44 = vsel %vm251_vm6, %v3742_v17, %v492_v27  ;;  %v3717_v61 = vld [vmem:[%s8544_s0 + $0x213] sm:$0x1]   ;;  %v558_v8 = vsel %vm243_vm4, %v3758_v60, %v554_v2  ;;  %v3791_v15 = vld [vmem:[%s8544_s0 + $0x255] sm:$0x4]  }
  0x1b   :  { %v3732_v23 = vld [vmem:[%s8544_s0 + $0x3bd] sm:$0x40]   ;;  %v375_v33 = vsel %vm235_vm2, %v3711_v21, %v371_v29  ;;  %v3718_v0 = vld [vmem:[%s8544_s0 + $0x232] sm:$0x2]   ;;  %v3792_v16 = vld [vmem:[%s8544_s0 + $0x274] sm:$0x8]   ;;  %v562_v17 = vsel %vm247_vm5, %v3759_v3, %v558_v8  ;;  %v682_v21 = vsel %vm227_vm0, %v3790_v14, %v3789_v12 }
  0x1c   :  { %v3712_v25 = vld [vmem:[%s8544_s0 + $0x27f] sm:$0x10]   ;;  %v457_v38 = vsel %vm247_vm5, %v3732_v23, %v453_v28  ;;  %v3719_v1 = vld [vmem:[%s8544_s0 + $0x251] sm:$0x4]   ;;  %v402_v4 = vsel %vm227_vm0, %v3718_v0, %v3717_v61  ;;  %v3760_v18 = vld [vmem:[%s8544_s0 + $0xf0] sm:$0x80]   ;;  %v601_v23 = vsel %vm251_vm6, %v3769_v62, %v597_v7 }
  0x1d   :  { %v3713_v26 = vld [vmem:[%s8544_s0 + $0x29e] sm:$0x20]   ;;  %v379_v40 = vsel %vm239_vm3, %v3712_v25, %v375_v33  ;;  %v3720_v5 = vld [vmem:[%s8544_s0 + $0x270] sm:$0x8]   ;;  %v406_v9 = vsel %vm231_vm1, %v3719_v1, %v402_v4  ;;  %v3793_v22 = vld [vmem:[%s8544_s0 + $0x293] sm:$0x10]   ;;  %v686_v25 = vsel %vm231_vm1, %v3791_v15, %v682_v21  ;;  %v566_v35 = vsel %vm251_vm6, %v3760_v18, %v562_v17 }
  0x1e   :  { %v3714_v30 = vld [vmem:[%s8544_s0 + $0x2bd] sm:$0x40]   ;;  %v383_v45 = vsel %vm243_vm4, %v3713_v26, %v379_v40  ;;  %v3721_v6 = vld [vmem:[%s8544_s0 + $0x28f] sm:$0x10]   ;;  %v410_v13 = vsel %vm235_vm2, %v3720_v5, %v406_v9  ;;  %v3794_v26 = vld [vmem:[%s8544_s0 + $0x2b2] sm:$0x20]  }
  0x1f   :  { %v3733_v39 = vld [vmem:[%s8544_s0 + $0x3dc] sm:$0x80]   ;;  %v387_v50 = vsel %vm247_vm5, %v3714_v30, %v383_v45  ;;  %497 = vrot.lane.b32.xlu1 %v496_v44, %s4537_s25  ;;  %v3722_v10 = vld [vmem:[%s8544_s0 + $0x2ae] sm:$0x20]   ;;  %v414_v19 = vsel %vm239_vm3, %v3721_v6, %v410_v13  ;;  %v3780_v27 = vld [vmem:[%s8544_s0 + $0x207] sm:$0x1]   ;;  %v690_v30 = vsel %vm235_vm2, %v3792_v16, %v686_v25 }
  0x20   :  { %v3715_v41 = vld [vmem:[%s8544_s0 + $0x2dc] sm:$0x80]   ;;  %v461_v55 = vsel %vm251_vm6, %v3733_v39, %v457_v38  ;;  %v3723_v11 = vld [vmem:[%s8544_s0 + $0x2cd] sm:$0x40]   ;;  %v418_v24 = vsel %vm243_vm4, %v3722_v10, %v414_v19  ;;  %v3781_v28 = vld [vmem:[%s8544_s0 + $0x226] sm:$0x2]   ;;  %v694_v37 = vsel %vm239_vm3, %v3793_v22, %v690_v30 }
  0x21   :  { %v391_v56 = vsel %vm251_vm6, %v3715_v41, %v387_v50  ;;  %v3724_v20 = vld [vmem:[%s8544_s0 + $0x2ec] sm:$0x80]   ;;  %v422_v29 = vsel %vm247_vm5, %v3723_v11, %v418_v24  ;;  %v647_v31 = vsel %vm227_vm0, %v3781_v28, %v3780_v27  ;;  %v3782_v32 = vld [vmem:[%s8544_s0 + $0x245] sm:$0x4]   ;;  %v3795_v38 = vld [vmem:[%s8544_s0 + $0x2d1] sm:$0x40]   ;;  %v698_v42 = vsel %vm243_vm4, %v3794_v26, %v694_v37 }
  0x22   :  { %392 = vrot.lane.b32.xlu2 %v391_v56, %s4537_s25  ;;  %462 = vrot.lane.b32.xlu0 %v461_v55, %s4537_s25  ;;  %v3783_v33 = vld [vmem:[%s8544_s0 + $0x264] sm:$0x8]   ;;  %v426_v36 = vsel %vm251_vm6, %v3724_v20, %v422_v29  ;;  %v651_v39 = vsel %vm231_vm1, %v3782_v32, %v647_v31  ;;  %v3796_v43 = vld [vmem:[%s8544_s0 + $0x2f0] sm:$0x80]   ;;  %v702_v52 = vsel %vm247_vm5, %v3795_v38, %v698_v42 }
  0x23   :  { %v3784_v34 = vld [vmem:[%s8544_s0 + $0x283] sm:$0x10]   ;;  %v655_v44 = vsel %vm235_vm2, %v3783_v33, %v651_v39  ;;  %v3816_v59 = vld [vmem:[%s8544_s0 + $0xb] sm:$0x1]   ;;  %v706_v4 = vsel %vm251_vm6, %v3796_v43, %v702_v52  ;;  %v3807_v8 = vld [vmem:[%s8544_s0 + $0x317] sm:$0x1]  }
  0x24   :  { %v3785_v40 = vld [vmem:[%s8544_s0 + $0x2a2] sm:$0x20]   ;;  %v659_v47 = vsel %vm239_vm3, %v3784_v34, %v655_v44  ;;  %v3817_v60 = vld [vmem:[%s8544_s0 + $0x2a] sm:$0x2]   ;;  %v3808_v11 = vld [vmem:[%s8544_s0 + $0x336] sm:$0x2]  }
  0x25   :  { %v3786_v41 = vld [vmem:[%s8544_s0 + $0x2c1] sm:$0x40]   ;;  %v663_v53 = vsel %vm243_vm4, %v3785_v40, %v659_v47  ;;  %v3818_v61 = vld [vmem:[%s8544_s0 + $0x49] sm:$0x4]   ;;  %v787_v1 = vsel %vm227_vm0, %v3817_v60, %v3816_v59  ;;  %v3809_v12 = vld [vmem:[%s8544_s0 + $0x355] sm:$0x4]   ;;  %v752_v18 = vsel %vm227_vm0, %v3808_v11, %v3807_v8 }
  0x26   :  { %v3744_v45 = vld [vmem:[%s8544_s0 + $0x7] sm:$0x1]   ;;  %v667_v62 = vsel %vm247_vm5, %v3786_v41, %v663_v53  ;;  %v3819_v2 = vld [vmem:[%s8544_s0 + $0x68] sm:$0x8]   ;;  %v791_v6 = vsel %vm231_vm1, %v3818_v61, %v787_v1  ;;  %v3810_v13 = vld [vmem:[%s8544_s0 + $0x374] sm:$0x8]  }
  0x27   :  { %602 = vrot.lane.b32.xlu1 %v601_v23, %s4537_s25  ;;  %v3745_v46 = vld [vmem:[%s8544_s0 + $0x26] sm:$0x2]   ;;  %v3820_v3 = vld [vmem:[%s8544_s0 + $0x87] sm:$0x10]   ;;  %v795_v10 = vsel %vm235_vm2, %v3819_v2, %v791_v6  ;;  %v3811_v19 = vld [vmem:[%s8544_s0 + $0x393] sm:$0x10]   ;;  %v756_v23 = vsel %vm231_vm1, %v3809_v12, %v752_v18 }
  0x28   :  { %v507_v48 = vsel %vm227_vm0, %v3745_v46, %v3744_v45  ;;  %v3746_v49 = vld [vmem:[%s8544_s0 + $0x45] sm:$0x4]   ;;  %v3821_v7 = vld [vmem:[%s8544_s0 + $0xa6] sm:$0x20]   ;;  %v799_v16 = vsel %vm239_vm3, %v3820_v3, %v795_v10  ;;  %v3812_v20 = vld [vmem:[%s8544_s0 + $0x3b2] sm:$0x20]   ;;  %v760_v26 = vsel %vm235_vm2, %v3810_v13, %v756_v23 }
  0x29   :  { %v3747_v50 = vld [vmem:[%s8544_s0 + $0x64] sm:$0x8]   ;;  %v511_v55 = vsel %vm231_vm1, %v3746_v49, %v507_v48  ;;  %v3822_v17 = vld [vmem:[%s8544_s0 + $0xc5] sm:$0x40]   ;;  %v803_v21 = vsel %vm243_vm4, %v3821_v7, %v799_v16  ;;  %v3813_v24 = vld [vmem:[%s8544_s0 + $0x3d1] sm:$0x40]   ;;  %v764_v31 = vsel %vm239_vm3, %v3811_v19, %v760_v26 }
  0x2a   :  { %427 = vrot.lane.b32.xlu2 %v426_v36, %s4537_s25  ;;  %v3748_v51 = vld [vmem:[%s8544_s0 + $0x83] sm:$0x10]   ;;  %567 = vrot.lane.b32.xlu0 %v566_v35, %s4537_s25  ;;  %v515_v58 = vsel %vm235_vm2, %v3747_v50, %v511_v55  ;;  %v3823_v22 = vld [vmem:[%s8544_s0 + $0xe4] sm:$0x80]   ;;  %v807_v30 = vsel %vm247_vm5, %v3822_v17, %v803_v21  ;;  %v768_v36 = vsel %vm243_vm4, %v3812_v20, %v764_v31 }
  0x2b   :  { %v3787_v54 = vld [vmem:[%s8544_s0 + $0x2e0] sm:$0x80]   ;;  %v519_v63 = vsel %vm239_vm3, %v3748_v51, %v515_v58  ;;  %v3771_v25 = vld [vmem:[%s8544_s0 + $0x117] sm:$0x1]   ;;  %v3843_v39 = vld [vmem:[%s8544_s0 + $0x11b] sm:$0x1]   ;;  %v772_v41 = vsel %vm247_vm5, %v3813_v24, %v768_v36  ;;  %v811_v47 = vsel %vm251_vm6, %v3823_v22, %v807_v30 }
  0x2c   :  { %v3749_v56 = vld [vmem:[%s8544_s0 + $0xa2] sm:$0x20]   ;;  %v671_v14 = vsel %vm251_vm6, %v3787_v54, %v667_v62  ;;  %v3772_v27 = vld [vmem:[%s8544_s0 + $0x136] sm:$0x2]   ;;  %v3844_v40 = vld [vmem:[%s8544_s0 + $0x13a] sm:$0x2]  }
  0x2d   :  { %v3750_v57 = vld [vmem:[%s8544_s0 + $0xc1] sm:$0x40]   ;;  %v523_v5 = vsel %vm243_vm4, %v3749_v56, %v519_v63  ;;  %v3773_v28 = vld [vmem:[%s8544_s0 + $0x155] sm:$0x4]   ;;  %v612_v33 = vsel %vm227_vm0, %v3772_v27, %v3771_v25  ;;  %v892_v43 = vsel %vm227_vm0, %v3844_v40, %v3843_v39  ;;  %v3845_v44 = vld [vmem:[%s8544_s0 + $0x159] sm:$0x4]  }
  0x2e   :  { %v3751_v0 = vld [vmem:[%s8544_s0 + $0xe0] sm:$0x80]   ;;  %v527_v9 = vsel %vm247_vm5, %v3750_v57, %v523_v5  ;;  %v3774_v29 = vld [vmem:[%s8544_s0 + $0x174] sm:$0x8]   ;;  %v616_v37 = vsel %vm231_vm1, %v3773_v28, %v612_v33  ;;  %v3846_v45 = vld [vmem:[%s8544_s0 + $0x178] sm:$0x8]   ;;  %v896_v50 = vsel %vm231_vm1, %v3845_v44, %v892_v43 }
  0x2f   :  { %v531_v15 = vsel %vm251_vm6, %v3751_v0, %v527_v9  ;;  %707 = vrot.lane.b32.xlu1 %v706_v4, %s4537_s25  ;;  %v3814_v32 = vld [vmem:[%s8544_s0 + $0x3f0] sm:$0x80]   ;;  %v620_v42 = vsel %vm235_vm2, %v3774_v29, %v616_v37  ;;  %v3847_v46 = vld [vmem:[%s8544_s0 + $0x197] sm:$0x10]   ;;  %v900_v53 = vsel %vm235_vm2, %v3846_v45, %v896_v50  ;;  %v3834_v54 = vld [vmem:[%s8544_s0 + $0x10b] sm:$0x1]  }
  0x30   :  { %v3775_v34 = vld [vmem:[%s8544_s0 + $0x193] sm:$0x10]   ;;  %v3848_v51 = vld [vmem:[%s8544_s0 + $0x1b6] sm:$0x20]   ;;  %v3835_v55 = vld [vmem:[%s8544_s0 + $0x12a] sm:$0x2]   ;;  %v776_v57 = vsel %vm251_vm6, %v3814_v32, %v772_v41  ;;  %v904_v59 = vsel %vm239_vm3, %v3847_v46, %v900_v53 }
  0x31   :  { %v3776_v35 = vld [vmem:[%s8544_s0 + $0x1b2] sm:$0x20]   ;;  %v624_v48 = vsel %vm239_vm3, %v3775_v34, %v620_v42  ;;  %v3836_v56 = vld [vmem:[%s8544_s0 + $0x149] sm:$0x4]   ;;  %v3849_v60 = vld [vmem:[%s8544_s0 + $0x1d5] sm:$0x40]   ;;  %v857_v61 = vsel %vm227_vm0, %v3835_v55, %v3834_v54  ;;  %v908_v1 = vsel %vm243_vm4, %v3848_v51, %v904_v59 }
  0x32   :  { %532 = vrot.lane.b32.xlu2 %v531_v15, %s4537_s25  ;;  %672 = vrot.lane.b32.xlu0 %v671_v14, %s4537_s25  ;;  %v3777_v38 = vld [vmem:[%s8544_s0 + $0x1d1] sm:$0x40]   ;;  %v628_v52 = vsel %vm243_vm4, %v3776_v35, %v624_v48  ;;  %v3837_v62 = vld [vmem:[%s8544_s0 + $0x168] sm:$0x8]   ;;  %v861_v3 = vsel %vm231_vm1, %v3836_v56, %v857_v61  ;;  %v912_v11 = vsel %vm247_vm5, %v3849_v60, %v908_v1 }
  0x33   :  { %v3778_v49 = vld [vmem:[%s8544_s0 + $0x1f0] sm:$0x80]   ;;  %v632_v58 = vsel %vm247_vm5, %v3777_v38, %v628_v52  ;;  %v3838_v63 = vld [vmem:[%s8544_s0 + $0x187] sm:$0x10]   ;;  %v3850_v2 = vld [vmem:[%s8544_s0 + $0x1f4] sm:$0x80]   ;;  %v865_v7 = vsel %vm235_vm2, %v3837_v62, %v861_v3 }
  0x34   :  { %v636_v0 = vsel %vm251_vm6, %v3778_v49, %v632_v58  ;;  %v3839_v4 = vld [vmem:[%s8544_s0 + $0x1a6] sm:$0x20]   ;;  %v3798_v6 = vld [vmem:[%s8544_s0 + $0x307] sm:$0x1]   ;;  %v869_v12 = vsel %vm239_vm3, %v3838_v63, %v865_v7  ;;  %v916_v28 = vsel %vm251_vm6, %v3850_v2, %v912_v11  ;;  %v3861_v35 = vld [vmem:[%s8544_s0 + $0x21b] sm:$0x1]  }
  0x35   :  { %v3840_v5 = vld [vmem:[%s8544_s0 + $0x1c5] sm:$0x40]   ;;  %v3799_v8 = vld [vmem:[%s8544_s0 + $0x326] sm:$0x2]   ;;  %v873_v17 = vsel %vm243_vm4, %v3839_v4, %v869_v12  ;;  %v3862_v36 = vld [vmem:[%s8544_s0 + $0x23a] sm:$0x2]  }
  0x36   :  { %v3800_v9 = vld [vmem:[%s8544_s0 + $0x345] sm:$0x4]   ;;  %v3841_v13 = vld [vmem:[%s8544_s0 + $0x1e4] sm:$0x80]   ;;  %v717_v14 = vsel %vm227_vm0, %v3799_v8, %v3798_v6  ;;  %v877_v22 = vsel %vm247_vm5, %v3840_v5, %v873_v17  ;;  %v3863_v37 = vld [vmem:[%s8544_s0 + $0x259] sm:$0x4]   ;;  %v962_v42 = vsel %vm227_vm0, %v3862_v36, %v3861_v35 }
  0x37   :  { %812 = vrot.lane.b32.xlu1 %v811_v47, %s4537_s25  ;;  %v3801_v10 = vld [vmem:[%s8544_s0 + $0x364] sm:$0x8]   ;;  %v721_v18 = vsel %vm231_vm1, %v3800_v9, %v717_v14  ;;  %v3870_v20 = vld [vmem:[%s8544_s0 + $0x30b] sm:$0x1]   ;;  %v881_v38 = vsel %vm251_vm6, %v3841_v13, %v877_v22  ;;  %v3864_v43 = vld [vmem:[%s8544_s0 + $0x278] sm:$0x8]   ;;  %v966_v48 = vsel %vm231_vm1, %v3863_v37, %v962_v42 }
  0x38   :  { %v3802_v15 = vld [vmem:[%s8544_s0 + $0x383] sm:$0x10]   ;;  %v3871_v21 = vld [vmem:[%s8544_s0 + $0x32a] sm:$0x2]   ;;  %v725_v23 = vsel %vm235_vm2, %v3801_v10, %v721_v18  ;;  %v3865_v44 = vld [vmem:[%s8544_s0 + $0x297] sm:$0x10]   ;;  %v970_v52 = vsel %vm235_vm2, %v3864_v43, %v966_v48 }
  0x39   :  { %v3803_v16 = vld [vmem:[%s8544_s0 + $0x3a2] sm:$0x20]   ;;  %v997_v24 = vsel %vm227_vm0, %v3871_v21, %v3870_v20  ;;  %v3872_v25 = vld [vmem:[%s8544_s0 + $0x349] sm:$0x4]   ;;  %v729_v29 = vsel %vm239_vm3, %v3802_v15, %v725_v23  ;;  %v3866_v49 = vld [vmem:[%s8544_s0 + $0x2b6] sm:$0x20]  }
  0x3a   :  { %637 = vrot.lane.b32.xlu2 %v636_v0, %s4537_s25  ;;  %777 = vrot.lane.b32.xlu0 %v776_v57, %s4537_s25  ;;  %v3804_v19 = vld [vmem:[%s8544_s0 + $0x3c1] sm:$0x40]   ;;  %v3873_v26 = vld [vmem:[%s8544_s0 + $0x368] sm:$0x8]   ;;  %v1001_v31 = vsel %vm231_vm1, %v3872_v25, %v997_v24  ;;  %v733_v33 = vsel %vm243_vm4, %v3803_v16, %v729_v29  ;;  %v974_v57 = vsel %vm239_vm3, %v3865_v44, %v970_v52 }
  0x3b   :  { %v3874_v27 = vld [vmem:[%s8544_s0 + $0x387] sm:$0x10]   ;;  %v3805_v30 = vld [vmem:[%s8544_s0 + $0x3e0] sm:$0x80]   ;;  %v1005_v34 = vsel %vm235_vm2, %v3873_v26, %v1001_v31  ;;  %v737_v39 = vsel %vm247_vm5, %v3804_v19, %v733_v33  ;;  %v3867_v50 = vld [vmem:[%s8544_s0 + $0x2d5] sm:$0x40]   ;;  %v978_v62 = vsel %vm243_vm4, %v3866_v49, %v974_v57 }
  0x3c   :  { %v3875_v32 = vld [vmem:[%s8544_s0 + $0x3a6] sm:$0x20]   ;;  %v1009_v40 = vsel %vm239_vm3, %v3874_v27, %v1005_v34  ;;  %v741_v45 = vsel %vm251_vm6, %v3805_v30, %v737_v39  ;;  %v3825_v51 = vld [vmem:[%s8544_s0 + $0x1b] sm:$0x1]   ;;  %v3897_v1 = vld [vmem:[%s8544_s0 + $0x1f] sm:$0x1]   ;;  %v982_v3 = vsel %vm247_vm5, %v3867_v50, %v978_v62 }
  0x3d   :  { %v3876_v41 = vld [vmem:[%s8544_s0 + $0x3c5] sm:$0x40]   ;;  %v1013_v46 = vsel %vm243_vm4, %v3875_v32, %v1009_v40  ;;  %v3826_v53 = vld [vmem:[%s8544_s0 + $0x3a] sm:$0x2]   ;;  %v3898_v2 = vld [vmem:[%s8544_s0 + $0x3e] sm:$0x2]  }
  0x3e   :  { %v3877_v47 = vld [vmem:[%s8544_s0 + $0x3e4] sm:$0x80]   ;;  %v3827_v54 = vld [vmem:[%s8544_s0 + $0x59] sm:$0x4]   ;;  %v1017_v56 = vsel %vm247_vm5, %v3876_v41, %v1013_v46  ;;  %v822_v59 = vsel %vm227_vm0, %v3826_v53, %v3825_v51  ;;  %v1102_v5 = vsel %vm227_vm0, %v3898_v2, %v3897_v1  ;;  %v3899_v6 = vld [vmem:[%s8544_s0 + $0x5d] sm:$0x4]  }
  0x3f   :  { %917 = vrot.lane.b32.xlu1 %v916_v28, %s4537_s25  ;;  %v3828_v55 = vld [vmem:[%s8544_s0 + $0x78] sm:$0x8]   ;;  %v826_v63 = vsel %vm231_vm1, %v3827_v54, %v822_v59  ;;  %v3900_v7 = vld [vmem:[%s8544_s0 + $0x7c] sm:$0x8]   ;;  %v1021_v9 = vsel %vm251_vm6, %v3877_v47, %v1017_v56  ;;  %v1106_v12 = vsel %vm231_vm1, %v3899_v6, %v1102_v5  ;;  %v3888_v16 = vld [vmem:[%s8544_s0 + $0xf] sm:$0x1]  }
  0x40   :  { %v3868_v58 = vld [vmem:[%s8544_s0 + $0x2f4] sm:$0x80]   ;;  %v830_v4 = vsel %vm235_vm2, %v3828_v55, %v826_v63  ;;  %v3901_v8 = vld [vmem:[%s8544_s0 + $0x9b] sm:$0x10]   ;;  %v1110_v15 = vsel %vm235_vm2, %v3900_v7, %v1106_v12  ;;  %v3889_v17 = vld [vmem:[%s8544_s0 + $0x2e] sm:$0x2]  }
  0x41   :  { %v3829_v60 = vld [vmem:[%s8544_s0 + $0x97] sm:$0x10]   ;;  %v3902_v13 = vld [vmem:[%s8544_s0 + $0xba] sm:$0x20]   ;;  %v3890_v18 = vld [vmem:[%s8544_s0 + $0x4d] sm:$0x4]   ;;  %v986_v19 = vsel %vm251_vm6, %v3868_v58, %v982_v3  ;;  %v1114_v21 = vsel %vm239_vm3, %v3901_v8, %v1110_v15  ;;  %v1067_v23 = vsel %vm227_vm0, %v3889_v17, %v3888_v16 }
  0x42   :  { %742 = vrot.lane.b32.xlu2 %v741_v45, %s4537_s25  ;;  %882 = vrot.lane.b32.xlu0 %v881_v38, %s4537_s25  ;;  %v3830_v61 = vld [vmem:[%s8544_s0 + $0xb6] sm:$0x20]   ;;  %v834_v10 = vsel %vm239_vm3, %v3829_v60, %v830_v4  ;;  %v3903_v22 = vld [vmem:[%s8544_s0 + $0xd9] sm:$0x40]   ;;  %v1118_v27 = vsel %vm243_vm4, %v3902_v13, %v1114_v21  ;;  %v1071_v29 = vsel %vm231_vm1, %v3890_v18, %v1067_v23 }
  0x43   :  { %v3831_v0 = vld [vmem:[%s8544_s0 + $0xd5] sm:$0x40]   ;;  %v838_v14 = vsel %vm243_vm4, %v3830_v61, %v834_v10  ;;  %v3891_v24 = vld [vmem:[%s8544_s0 + $0x6c] sm:$0x8]   ;;  %v3904_v28 = vld [vmem:[%s8544_s0 + $0xf8] sm:$0x80]   ;;  %v1122_v37 = vsel %vm247_vm5, %v3903_v22, %v1118_v27 }
  0x44   :  { %v3832_v11 = vld [vmem:[%s8544_s0 + $0xf4] sm:$0x80]   ;;  %v842_v20 = vsel %vm247_vm5, %v3831_v0, %v838_v14  ;;  %v3892_v25 = vld [vmem:[%s8544_s0 + $0x8b] sm:$0x10]   ;;  %v3852_v32 = vld [vmem:[%s8544_s0 + $0x20b] sm:$0x1]   ;;  %v1075_v33 = vsel %vm235_vm2, %v3891_v24, %v1071_v29  ;;  %v1126_v54 = vsel %vm251_vm6, %v3904_v28, %v1122_v37 }
  0x45   :  { %v846_v26 = vsel %vm251_vm6, %v3832_v11, %v842_v20  ;;  %v3893_v30 = vld [vmem:[%s8544_s0 + $0xaa] sm:$0x20]   ;;  %v3853_v34 = vld [vmem:[%s8544_s0 + $0x22a] sm:$0x2]   ;;  %v1079_v38 = vsel %vm239_vm3, %v3892_v25, %v1075_v33  ;;  %v3915_v61 = vld [vmem:[%s8544_s0 + $0x11f] sm:$0x1]  }
  0x46   :  { %v3894_v31 = vld [vmem:[%s8544_s0 + $0xc9] sm:$0x40]   ;;  %v3854_v35 = vld [vmem:[%s8544_s0 + $0x249] sm:$0x4]   ;;  %v927_v40 = vsel %vm227_vm0, %v3853_v34, %v3852_v32  ;;  %v1083_v43 = vsel %vm243_vm4, %v3893_v30, %v1079_v38  ;;  %v3916_v62 = vld [vmem:[%s8544_s0 + $0x13e] sm:$0x2]  }
  0x47   :  { %1022 = vrot.lane.b32.xlu1 %v1021_v9, %s4537_s25  ;;  %v3855_v36 = vld [vmem:[%s8544_s0 + $0x268] sm:$0x8]   ;;  %v3895_v39 = vld [vmem:[%s8544_s0 + $0xe8] sm:$0x80]   ;;  %v931_v44 = vsel %vm231_vm1, %v3854_v35, %v927_v40  ;;  %v1087_v48 = vsel %vm247_vm5, %v3894_v31, %v1083_v43  ;;  %v3917_v63 = vld [vmem:[%s8544_s0 + $0x15d] sm:$0x4]   ;;  %v1172_v4 = vsel %vm227_vm0, %v3916_v62, %v3915_v61 }
  0x48   :  { %v3856_v41 = vld [vmem:[%s8544_s0 + $0x287] sm:$0x10]   ;;  %v3924_v46 = vld [vmem:[%s8544_s0 + $0x20f] sm:$0x1]   ;;  %v935_v49 = vsel %vm235_vm2, %v3855_v36, %v931_v44  ;;  %v1091_v0 = vsel %vm251_vm6, %v3895_v39, %v1087_v48  ;;  %v3918_v5 = vld [vmem:[%s8544_s0 + $0x17c] sm:$0x8]   ;;  %v1176_v10 = vsel %vm231_vm1, %v3917_v63, %v1172_v4 }
  0x49   :  { %v3857_v42 = vld [vmem:[%s8544_s0 + $0x2a6] sm:$0x20]   ;;  %v3925_v47 = vld [vmem:[%s8544_s0 + $0x22e] sm:$0x2]   ;;  %v939_v55 = vsel %vm239_vm3, %v3856_v41, %v935_v49  ;;  %v3919_v6 = vld [vmem:[%s8544_s0 + $0x19b] sm:$0x10]   ;;  %v1180_v14 = vsel %vm235_vm2, %v3918_v5, %v1176_v10 }
  0x4a   :  { %847 = vrot.lane.b32.xlu2 %v846_v26, %s4537_s25  ;;  %987 = vrot.lane.b32.xlu0 %v986_v19, %s4537_s25  ;;  %v3858_v45 = vld [vmem:[%s8544_s0 + $0x2c5] sm:$0x40]   ;;  %v1207_v50 = vsel %vm227_vm0, %v3925_v47, %v3924_v46  ;;  %v3926_v51 = vld [vmem:[%s8544_s0 + $0x24d] sm:$0x4]   ;;  %v943_v59 = vsel %vm243_vm4, %v3857_v42, %v939_v55  ;;  %v1184_v19 = vsel %vm239_vm3, %v3919_v6, %v1180_v14 }
  0x4b   :  { %v3927_v52 = vld [vmem:[%s8544_s0 + $0x26c] sm:$0x8]   ;;  %v3859_v56 = vld [vmem:[%s8544_s0 + $0x2e4] sm:$0x80]   ;;  %v1211_v57 = vsel %vm231_vm1, %v3926_v51, %v1207_v50  ;;  %v947_v1 = vsel %vm247_vm5, %v3858_v45, %v943_v59  ;;  %v3920_v11 = vld [vmem:[%s8544_s0 + $0x1ba] sm:$0x20]  }
  0x4c   :  { %v3928_v53 = vld [vmem:[%s8544_s0 + $0x28b] sm:$0x10]   ;;  %v1215_v60 = vsel %vm235_vm2, %v3927_v52, %v1211_v57  ;;  %v951_v7 = vsel %vm251_vm6, %v3859_v56, %v947_v1  ;;  %v3921_v12 = vld [vmem:[%s8544_s0 + $0x1d9] sm:$0x40]   ;;  %v3879_v13 = vld [vmem:[%s8544_s0 + $0x31b] sm:$0x1]   ;;  %v1188_v24 = vsel %vm243_vm4, %v3920_v11, %v1184_v19 }
  0x4d   :  { %v3929_v58 = vld [vmem:[%s8544_s0 + $0x2aa] sm:$0x20]   ;;  %v1219_v2 = vsel %vm239_vm3, %v3928_v53, %v1215_v60  ;;  %v3880_v15 = vld [vmem:[%s8544_s0 + $0x33a] sm:$0x2]   ;;  %v3922_v20 = vld [vmem:[%s8544_s0 + $0x1f8] sm:$0x80]   ;;  %v1192_v29 = vsel %vm247_vm5, %v3921_v12, %v1188_v24 }
  0x4e   :  { %v3930_v3 = vld [vmem:[%s8544_s0 + $0x2c9] sm:$0x40]   ;;  %v1223_v8 = vsel %vm243_vm4, %v3929_v58, %v1219_v2  ;;  %v3881_v16 = vld [vmem:[%s8544_s0 + $0x359] sm:$0x4]   ;;  %v1032_v21 = vsel %vm227_vm0, %v3880_v15, %v3879_v13  ;;  %v3951_v27 = vld [vmem:[%s8544_s0 + $0x31f] sm:$0x1]   ;;  %v1196_v45 = vsel %vm251_vm6, %v3922_v20, %v1192_v29 }
  0x4f   :  { %1127 = vrot.lane.b32.xlu1 %v1126_v54, %s4537_s25  ;;  %v3931_v9 = vld [vmem:[%s8544_s0 + $0x2e8] sm:$0x80]   ;;  %v3882_v17 = vld [vmem:[%s8544_s0 + $0x378] sm:$0x8]   ;;  %v1227_v18 = vsel %vm247_vm5, %v3930_v3, %v1223_v8  ;;  %v1036_v25 = vsel %vm231_vm1, %v3881_v16, %v1032_v21  ;;  %v3952_v28 = vld [vmem:[%s8544_s0 + $0x33e] sm:$0x2]  }
  0x50   :  { %v3883_v22 = vld [vmem:[%s8544_s0 + $0x397] sm:$0x10]   ;;  %v1040_v30 = vsel %vm235_vm2, %v3882_v17, %v1036_v25  ;;  %v1312_v31 = vsel %vm227_vm0, %v3952_v28, %v3951_v27  ;;  %v3953_v32 = vld [vmem:[%s8544_s0 + $0x35d] sm:$0x4]   ;;  %v1231_v35 = vsel %vm251_vm6, %v3931_v9, %v1227_v18  ;;  %v3942_v42 = vld [vmem:[%s8544_s0 + $0x30f] sm:$0x1]  }
  0x51   :  { %v3884_v23 = vld [vmem:[%s8544_s0 + $0x3b6] sm:$0x20]   ;;  %v3954_v33 = vld [vmem:[%s8544_s0 + $0x37c] sm:$0x8]   ;;  %v1044_v36 = vsel %vm239_vm3, %v3883_v22, %v1040_v30  ;;  %v1316_v38 = vsel %vm231_vm1, %v3953_v32, %v1312_v31  ;;  %v3943_v43 = vld [vmem:[%s8544_s0 + $0x32e] sm:$0x2]  }
  0x52   :  { %952 = vrot.lane.b32.xlu2 %v951_v7, %s4537_s25  ;;  %1092 = vrot.lane.b32.xlu0 %v1091_v0, %s4537_s25  ;;  %v3885_v26 = vld [vmem:[%s8544_s0 + $0x3d5] sm:$0x40]   ;;  %v3955_v34 = vld [vmem:[%s8544_s0 + $0x39b] sm:$0x10]   ;;  %v1048_v40 = vsel %vm243_vm4, %v3884_v23, %v1044_v36  ;;  %v1320_v41 = vsel %vm235_vm2, %v3954_v33, %v1316_v38  ;;  %v1277_v49 = vsel %vm227_vm0, %v3943_v43, %v3942_v42 }
  0x53   :  { %v3886_v37 = vld [vmem:[%s8544_s0 + $0x3f4] sm:$0x80]   ;;  %v3956_v39 = vld [vmem:[%s8544_s0 + $0x3ba] sm:$0x20]   ;;  %v3944_v44 = vld [vmem:[%s8544_s0 + $0x34d] sm:$0x4]   ;;  %v1052_v46 = vsel %vm247_vm5, %v3885_v26, %v1048_v40  ;;  %v1324_v47 = vsel %vm239_vm3, %v3955_v34, %v1320_v41 }
  0x54   :  { %v3957_v48 = vld [vmem:[%s8544_s0 + $0x3d9] sm:$0x40]   ;;  %v3945_v50 = vld [vmem:[%s8544_s0 + $0x36c] sm:$0x8]   ;;  %v1056_v52 = vsel %vm251_vm6, %v3886_v37, %v1052_v46  ;;  %v1328_v53 = vsel %vm243_vm4, %v3956_v39, %v1324_v47  ;;  %v1281_v55 = vsel %vm231_vm1, %v3944_v44, %v1277_v49  ;;  %v3977_v8 = vld [vmem:[%s8544_s0 + $0x102] sm:$0x1]  }
  0x55   :  { %v3946_v51 = vld [vmem:[%s8544_s0 + $0x38b] sm:$0x10]   ;;  %v3958_v54 = vld [vmem:[%s8544_s0 + $0x3f8] sm:$0x80]   ;;  %v1285_v59 = vsel %vm235_vm2, %v3945_v50, %v1281_v55  ;;  %v1332_v63 = vsel %vm247_vm5, %v3957_v48, %v1328_v53  ;;  %v3978_v9 = vld [vmem:[%s8544_s0 + $0x121] sm:$0x2]  }
  0x56   :  { %v3947_v56 = vld [vmem:[%s8544_s0 + $0x3aa] sm:$0x20]   ;;  %v1289_v0 = vsel %vm239_vm3, %v3946_v51, %v1285_v59  ;;  %v1416_v12 = vsel %vm227_vm0, %v3978_v9, %v3977_v8  ;;  %v3979_v13 = vld [vmem:[%s8544_s0 + $0x140] sm:$0x4]   ;;  %v1336_v16 = vsel %vm251_vm6, %v3958_v54, %v1332_v63  ;;  %v3968_v23 = vld [vmem:[%s8544_s0 + $0x12] sm:$0x1]  }
  0x57   :  { %1232 = vrot.lane.b32.xlu1 %v1231_v35, %s4537_s25  ;;  %v3948_v57 = vld [vmem:[%s8544_s0 + $0x3c9] sm:$0x40]   ;;  %v1293_v5 = vsel %vm243_vm4, %v3947_v56, %v1289_v0  ;;  %v3980_v14 = vld [vmem:[%s8544_s0 + $0x15f] sm:$0x8]   ;;  %v1420_v19 = vsel %vm231_vm1, %v3979_v13, %v1416_v12  ;;  %v3969_v24 = vld [vmem:[%s8544_s0 + $0x31] sm:$0x2]  }
  0x58   :  { %v3906_v58 = vld [vmem:[%s8544_s0 + $0x10f] sm:$0x1]   ;;  %v1297_v10 = vsel %vm247_vm5, %v3948_v57, %v1293_v5  ;;  %v3981_v15 = vld [vmem:[%s8544_s0 + $0x17e] sm:$0x10]   ;;  %v1424_v22 = vsel %vm235_vm2, %v3980_v14, %v1420_v19  ;;  %v3970_v25 = vld [vmem:[%s8544_s0 + $0x50] sm:$0x4]   ;;  %v1381_v30 = vsel %vm227_vm0, %v3969_v24, %v3968_v23 }
  0x59   :  { %v3907_v60 = vld [vmem:[%s8544_s0 + $0x12e] sm:$0x2]   ;;  %v3982_v20 = vld [vmem:[%s8544_s0 + $0x19d] sm:$0x20]   ;;  %v1428_v28 = vsel %vm239_vm3, %v3981_v15, %v1424_v22  ;;  %v3971_v31 = vld [vmem:[%s8544_s0 + $0x6f] sm:$0x8]   ;;  %v1385_v36 = vsel %vm231_vm1, %v3970_v25, %v1381_v30 }
  0x5a   :  { %1057 = vrot.lane.b32.xlu2 %v1056_v52, %s4537_s25  ;;  %v3908_v61 = vld [vmem:[%s8544_s0 + $0x14d] sm:$0x4]   ;;  %1197 = vrot.lane.b32.xlu0 %v1196_v45, %s4537_s25  ;;  %v1137_v2 = vsel %vm227_vm0, %v3907_v60, %v3906_v58  ;;  %v3983_v29 = vld [vmem:[%s8544_s0 + $0x1bc] sm:$0x40]   ;;  %v1432_v34 = vsel %vm243_vm4, %v3982_v20, %v1428_v28  ;;  %v1389_v40 = vsel %vm235_vm2, %v3971_v31, %v1385_v36 }
  0x5b   :  { %v3909_v62 = vld [vmem:[%s8544_s0 + $0x16c] sm:$0x8]   ;;  %v1141_v6 = vsel %vm231_vm1, %v3908_v61, %v1137_v2  ;;  %v3972_v32 = vld [vmem:[%s8544_s0 + $0x8e] sm:$0x10]   ;;  %v3984_v35 = vld [vmem:[%s8544_s0 + $0x1db] sm:$0x80]   ;;  %v1436_v44 = vsel %vm247_vm5, %v3983_v29, %v1432_v34 }
  0x5c   :  { %v3949_v1 = vld [vmem:[%s8544_s0 + $0x3e8] sm:$0x80]   ;;  %v1145_v11 = vsel %vm235_vm2, %v3909_v62, %v1141_v6  ;;  %v3973_v37 = vld [vmem:[%s8544_s0 + $0xad] sm:$0x20]   ;;  %v3933_v39 = vld [vmem:[%s8544_s0 + $0x21f] sm:$0x1]   ;;  %v1393_v45 = vsel %vm239_vm3, %v3972_v32, %v1389_v40  ;;  %v1440_v61 = vsel %vm251_vm6, %v3984_v35, %v1436_v44 }
  0x5d   :  { %v3910_v3 = vld [vmem:[%s8544_s0 + $0x18b] sm:$0x10]   ;;  %v1301_v26 = vsel %vm251_vm6, %v3949_v1, %v1297_v10  ;;  %v3974_v38 = vld [vmem:[%s8544_s0 + $0xcc] sm:$0x40]   ;;  %v3934_v41 = vld [vmem:[%s8544_s0 + $0x23e] sm:$0x2]   ;;  %v1397_v50 = vsel %vm243_vm4, %v3973_v37, %v1393_v45 }
  0x5e   :  { %v3911_v4 = vld [vmem:[%s8544_s0 + $0x1aa] sm:$0x20]   ;;  %v1149_v17 = vsel %vm239_vm3, %v3910_v3, %v1145_v11  ;;  %v3935_v42 = vld [vmem:[%s8544_s0 + $0x25d] sm:$0x4]   ;;  %v3975_v46 = vld [vmem:[%s8544_s0 + $0xeb] sm:$0x80]   ;;  %v1242_v47 = vsel %vm227_vm0, %v3934_v41, %v3933_v39  ;;  %v1401_v55 = vsel %vm247_vm5, %v3974_v38, %v1397_v50 }
  0x5f   :  { %v3912_v7 = vld [vmem:[%s8544_s0 + $0x1c9] sm:$0x40]   ;;  %v1153_v21 = vsel %vm243_vm4, %v3911_v4, %v1149_v17  ;;  %1337 = vrot.lane.b32.xlu1 %v1336_v16, %s4537_s25  ;;  %v3936_v43 = vld [vmem:[%s8544_s0 + $0x27c] sm:$0x8]   ;;  %v1246_v51 = vsel %vm231_vm1, %v3935_v42, %v1242_v47  ;;  %v4004_v53 = vld [vmem:[%s8544_s0 + $0x212] sm:$0x1]  }
  0x60   :  { %v3913_v18 = vld [vmem:[%s8544_s0 + $0x1e8] sm:$0x80]   ;;  %v1157_v27 = vsel %vm247_vm5, %v3912_v7, %v1153_v21  ;;  %v3937_v48 = vld [vmem:[%s8544_s0 + $0x29b] sm:$0x10]   ;;  %v4005_v54 = vld [vmem:[%s8544_s0 + $0x231] sm:$0x2]   ;;  %v1250_v56 = vsel %vm235_vm2, %v3936_v43, %v1246_v51  ;;  %v1405_v7 = vsel %vm251_vm6, %v3975_v46, %v1401_v55 }
  0x61   :  { %v1161_v33 = vsel %vm251_vm6, %v3913_v18, %v1157_v27  ;;  %v3938_v49 = vld [vmem:[%s8544_s0 + $0x2ba] sm:$0x20]   ;;  %v1521_v57 = vsel %vm227_vm0, %v4005_v54, %v4004_v53  ;;  %v4006_v58 = vld [vmem:[%s8544_s0 + $0x250] sm:$0x4]   ;;  %v1254_v62 = vsel %vm239_vm3, %v3937_v48, %v1250_v56  ;;  %v3995_v4 = vld [vmem:[%s8544_s0 + $0x202] sm:$0x1]  }
  0x62   :  { %1162 = vrot.lane.b32.xlu2 %v1161_v33, %s4537_s25  ;;  %1302 = vrot.lane.b32.xlu0 %v1301_v26, %s4537_s25  ;;  %v3939_v52 = vld [vmem:[%s8544_s0 + $0x2d9] sm:$0x40]   ;;  %v4007_v59 = vld [vmem:[%s8544_s0 + $0x26f] sm:$0x8]   ;;  %v1525_v0 = vsel %vm231_vm1, %v4006_v58, %v1521_v57  ;;  %v1258_v2 = vsel %vm243_vm4, %v3938_v49, %v1254_v62 }
  0x63   :  { %v4008_v60 = vld [vmem:[%s8544_s0 + $0x28e] sm:$0x10]   ;;  %v3940_v63 = vld [vmem:[%s8544_s0 + $0x2f8] sm:$0x80]   ;;  %v1529_v3 = vsel %vm235_vm2, %v4007_v59, %v1525_v0  ;;  %v3996_v5 = vld [vmem:[%s8544_s0 + $0x221] sm:$0x2]   ;;  %v1262_v8 = vsel %vm247_vm5, %v3939_v52, %v1258_v2 }
  0x64   :  { %v4009_v1 = vld [vmem:[%s8544_s0 + $0x2ad] sm:$0x20]   ;;  %v3997_v6 = vld [vmem:[%s8544_s0 + $0x240] sm:$0x4]   ;;  %v1533_v9 = vsel %vm239_vm3, %v4008_v60, %v1529_v3  ;;  %v1486_v11 = vsel %vm227_vm0, %v3996_v5, %v3995_v4  ;;  %v1266_v14 = vsel %vm251_vm6, %v3940_v63, %v1262_v8  ;;  %v4031_v34 = vld [vmem:[%s8544_s0 + $0x6] sm:$0x1]  }
  0x65   :  { %v4010_v10 = vld [vmem:[%s8544_s0 + $0x2cc] sm:$0x40]   ;;  %v3998_v12 = vld [vmem:[%s8544_s0 + $0x25f] sm:$0x8]   ;;  %v1537_v15 = vsel %vm243_vm4, %v4009_v1, %v1533_v9  ;;  %v1490_v17 = vsel %vm231_vm1, %v3997_v6, %v1486_v11  ;;  %v4032_v35 = vld [vmem:[%s8544_s0 + $0x25] sm:$0x2]  }
  0x66   :  { %v3999_v13 = vld [vmem:[%s8544_s0 + $0x27e] sm:$0x10]   ;;  %v4011_v16 = vld [vmem:[%s8544_s0 + $0x2eb] sm:$0x80]   ;;  %v1494_v21 = vsel %vm235_vm2, %v3998_v12, %v1490_v17  ;;  %v1541_v25 = vsel %vm247_vm5, %v4010_v10, %v1537_v15  ;;  %v1626_v38 = vsel %vm227_vm0, %v4032_v35, %v4031_v34  ;;  %v4033_v39 = vld [vmem:[%s8544_s0 + $0x44] sm:$0x4]  }
  0x67   :  { %1441 = vrot.lane.b32.xlu1 %v1440_v61, %s4538_s13  ;;  %v4000_v18 = vld [vmem:[%s8544_s0 + $0x29d] sm:$0x20]   ;;  %v1498_v26 = vsel %vm239_vm3, %v3999_v13, %v1494_v21  ;;  %v4034_v40 = vld [vmem:[%s8544_s0 + $0x63] sm:$0x8]   ;;  %v1545_v42 = vsel %vm251_vm6, %v4011_v16, %v1541_v25  ;;  %v1630_v45 = vsel %vm231_vm1, %v4033_v39, %v1626_v38  ;;  %v4022_v49 = vld [vmem:[%s8544_s0 + $0x312] sm:$0x1]  }
  0x68   :  { %v4001_v19 = vld [vmem:[%s8544_s0 + $0x2bc] sm:$0x40]   ;;  %v1502_v31 = vsel %vm243_vm4, %v4000_v18, %v1498_v26  ;;  %v4035_v41 = vld [vmem:[%s8544_s0 + $0x82] sm:$0x10]   ;;  %v1634_v48 = vsel %vm235_vm2, %v4034_v40, %v1630_v45  ;;  %v4023_v50 = vld [vmem:[%s8544_s0 + $0x331] sm:$0x2]  }
  0x69   :  { %v3960_v20 = vld [vmem:[%s8544_s0 + $0x2] sm:$0x1]   ;;  %v1506_v36 = vsel %vm247_vm5, %v4001_v19, %v1502_v31  ;;  %v4036_v46 = vld [vmem:[%s8544_s0 + $0xa1] sm:$0x20]   ;;  %v4024_v51 = vld [vmem:[%s8544_s0 + $0x350] sm:$0x4]   ;;  %v1638_v54 = vsel %vm239_vm3, %v4035_v41, %v1634_v48  ;;  %v1591_v56 = vsel %vm227_vm0, %v4023_v50, %v4022_v49 }
  0x6a   :  { %1267 = vrot.lane.b32.xlu2 %v1266_v14, %s4537_s25  ;;  %v3961_v22 = vld [vmem:[%s8544_s0 + $0x21] sm:$0x2]   ;;  %1406 = vrot.lane.b32.xlu0 %v1405_v7, %s4538_s13  ;;  %v4037_v55 = vld [vmem:[%s8544_s0 + $0xc0] sm:$0x40]   ;;  %v1642_v60 = vsel %vm243_vm4, %v4036_v46, %v1638_v54  ;;  %v1595_v62 = vsel %vm231_vm1, %v4024_v51, %v1591_v56 }
  0x6b   :  { %v3962_v23 = vld [vmem:[%s8544_s0 + $0x40] sm:$0x4]   ;;  %v1347_v28 = vsel %vm227_vm0, %v3961_v22, %v3960_v20  ;;  %v4025_v57 = vld [vmem:[%s8544_s0 + $0x36f] sm:$0x8]   ;;  %v4038_v61 = vld [vmem:[%s8544_s0 + $0xdf] sm:$0x80]   ;;  %v1646_v6 = vsel %vm247_vm5, %v4037_v55, %v1642_v60 }
  0x6c   :  { %v3963_v24 = vld [vmem:[%s8544_s0 + $0x5f] sm:$0x8]   ;;  %v1351_v32 = vsel %vm231_vm1, %v3962_v23, %v1347_v28  ;;  %v4026_v58 = vld [vmem:[%s8544_s0 + $0x38e] sm:$0x10]   ;;  %v1599_v2 = vsel %vm235_vm2, %v4025_v57, %v1595_v62  ;;  %v4058_v15 = vld [vmem:[%s8544_s0 + $0x116] sm:$0x1]   ;;  %v1650_v23 = vsel %vm251_vm6, %v4038_v61, %v1646_v6 }
  0x6d   :  { %v4002_v27 = vld [vmem:[%s8544_s0 + $0x2db] sm:$0x80]   ;;  %v1355_v37 = vsel %vm235_vm2, %v3963_v24, %v1351_v32  ;;  %v4027_v63 = vld [vmem:[%s8544_s0 + $0x3ad] sm:$0x20]   ;;  %v1603_v7 = vsel %vm239_vm3, %v4026_v58, %v1599_v2  ;;  %v4059_v16 = vld [vmem:[%s8544_s0 + $0x135] sm:$0x2]  }
  0x6e   :  { %v3964_v29 = vld [vmem:[%s8544_s0 + $0x7e] sm:$0x10]   ;;  %v1510_v52 = vsel %vm251_vm6, %v4002_v27, %v1506_v36  ;;  %v4028_v0 = vld [vmem:[%s8544_s0 + $0x3cc] sm:$0x40]   ;;  %v1607_v12 = vsel %vm243_vm4, %v4027_v63, %v1603_v7  ;;  %v1731_v19 = vsel %vm227_vm0, %v4059_v16, %v4058_v15  ;;  %v4060_v20 = vld [vmem:[%s8544_s0 + $0x154] sm:$0x4]  }
  0x6f   :  { %v3965_v30 = vld [vmem:[%s8544_s0 + $0x9d] sm:$0x20]   ;;  %v1359_v43 = vsel %vm239_vm3, %v3964_v29, %v1355_v37  ;;  %1546 = vrot.lane.b32.xlu1 %v1545_v42, %s4538_s13  ;;  %v3986_v1 = vld [vmem:[%s8544_s0 + $0x112] sm:$0x1]   ;;  %v1611_v17 = vsel %vm247_vm5, %v4028_v0, %v1607_v12  ;;  %v4061_v21 = vld [vmem:[%s8544_s0 + $0x173] sm:$0x8]   ;;  %v1735_v26 = vsel %vm231_vm1, %v4060_v20, %v1731_v19 }
  0x70   :  { %v3966_v33 = vld [vmem:[%s8544_s0 + $0xbc] sm:$0x40]   ;;  %v1363_v47 = vsel %vm243_vm4, %v3965_v30, %v1359_v43  ;;  %v3987_v3 = vld [vmem:[%s8544_s0 + $0x131] sm:$0x2]   ;;  %v4062_v22 = vld [vmem:[%s8544_s0 + $0x192] sm:$0x10]   ;;  %v1739_v29 = vsel %vm235_vm2, %v4061_v21, %v1735_v26 }
  0x71   :  { %v3967_v44 = vld [vmem:[%s8544_s0 + $0xdb] sm:$0x80]   ;;  %v1367_v53 = vsel %vm247_vm5, %v3966_v33, %v1363_v47  ;;  %v3988_v4 = vld [vmem:[%s8544_s0 + $0x150] sm:$0x4]   ;;  %v1451_v9 = vsel %vm227_vm0, %v3987_v3, %v3986_v1  ;;  %v4063_v27 = vld [vmem:[%s8544_s0 + $0x1b1] sm:$0x20]   ;;  %v1743_v35 = vsel %vm239_vm3, %v4062_v22, %v1739_v29 }
  0x72   :  { %v1371_v59 = vsel %vm251_vm6, %v3967_v44, %v1367_v53  ;;  %v3989_v5 = vld [vmem:[%s8544_s0 + $0x16f] sm:$0x8]   ;;  %1511 = vrot.lane.b32.xlu0 %v1510_v52, %s4538_s13  ;;  %v1455_v13 = vsel %vm231_vm1, %v3988_v4, %v1451_v9  ;;  %v4049_v30 = vld [vmem:[%s8544_s0 + $0x106] sm:$0x1]   ;;  %v4064_v36 = vld [vmem:[%s8544_s0 + $0x1d0] sm:$0x40]   ;;  %v1747_v41 = vsel %vm243_vm4, %v4063_v27, %v1743_v35 }
  0x73   :  { %1372 = vrot.lane.b32.xlu2 %v1371_v59, %s4538_s13  ;;  %v4029_v8 = vld [vmem:[%s8544_s0 + $0x3eb] sm:$0x80]   ;;  %v1459_v18 = vsel %vm235_vm2, %v3989_v5, %v1455_v13  ;;  %v4050_v31 = vld [vmem:[%s8544_s0 + $0x125] sm:$0x2]   ;;  %v4065_v42 = vld [vmem:[%s8544_s0 + $0x1ef] sm:$0x80]   ;;  %v1751_v51 = vsel %vm247_vm5, %v4064_v36, %v1747_v41 }
  0x74   :  { %v3990_v10 = vld [vmem:[%s8544_s0 + $0x18e] sm:$0x10]   ;;  %v4051_v32 = vld [vmem:[%s8544_s0 + $0x144] sm:$0x4]   ;;  %v1615_v33 = vsel %vm251_vm6, %v4029_v8, %v1611_v17  ;;  %v1696_v37 = vsel %vm227_vm0, %v4050_v31, %v4049_v30  ;;  %v4013_v46 = vld [vmem:[%s8544_s0 + $0x302] sm:$0x1]   ;;  %v1755_v5 = vsel %vm251_vm6, %v4065_v42, %v1751_v51 }
  0x75   :  { %v3991_v11 = vld [vmem:[%s8544_s0 + $0x1ad] sm:$0x20]   ;;  %v1463_v24 = vsel %vm239_vm3, %v3990_v10, %v1459_v18  ;;  %v4052_v38 = vld [vmem:[%s8544_s0 + $0x163] sm:$0x8]   ;;  %v1700_v43 = vsel %vm231_vm1, %v4051_v32, %v1696_v37  ;;  %v4014_v48 = vld [vmem:[%s8544_s0 + $0x321] sm:$0x2]  }
  0x76   :  { %v3992_v14 = vld [vmem:[%s8544_s0 + $0x1cc] sm:$0x40]   ;;  %v1467_v28 = vsel %vm243_vm4, %v3991_v11, %v1463_v24  ;;  %v4053_v39 = vld [vmem:[%s8544_s0 + $0x182] sm:$0x10]   ;;  %v1704_v47 = vsel %vm235_vm2, %v4052_v38, %v1700_v43  ;;  %v4015_v49 = vld [vmem:[%s8544_s0 + $0x340] sm:$0x4]   ;;  %v1556_v55 = vsel %vm227_vm0, %v4014_v48, %v4013_v46 }
  0x77   :  { %v3993_v25 = vld [vmem:[%s8544_s0 + $0x1eb] sm:$0x80]   ;;  %v1471_v34 = vsel %vm247_vm5, %v3992_v14, %v1467_v28  ;;  %1651 = vrot.lane.b32.xlu1 %v1650_v23, %s4538_s13  ;;  %v4054_v44 = vld [vmem:[%s8544_s0 + $0x1a1] sm:$0x20]   ;;  %v4016_v50 = vld [vmem:[%s8544_s0 + $0x35f] sm:$0x8]   ;;  %v1708_v52 = vsel %vm239_vm3, %v4053_v39, %v1704_v47  ;;  %v1560_v59 = vsel %vm231_vm1, %v4015_v49, %v1556_v55 }
  0x78   :  { %v1475_v40 = vsel %vm251_vm6, %v3993_v25, %v1471_v34  ;;  %v4055_v45 = vld [vmem:[%s8544_s0 + $0x1c0] sm:$0x40]   ;;  %v4017_v56 = vld [vmem:[%s8544_s0 + $0x37e] sm:$0x10]   ;;  %v1712_v58 = vsel %vm243_vm4, %v4054_v44, %v1708_v52  ;;  %v1564_v0 = vsel %vm235_vm2, %v4016_v50, %v1560_v59  ;;  %v4076_v12 = vld [vmem:[%s8544_s0 + $0x216] sm:$0x1]  }
  0x79   :  { %v4056_v53 = vld [vmem:[%s8544_s0 + $0x1df] sm:$0x80]   ;;  %v4018_v57 = vld [vmem:[%s8544_s0 + $0x39d] sm:$0x20]   ;;  %v1716_v63 = vsel %vm247_vm5, %v4055_v45, %v1712_v58  ;;  %v1568_v6 = vsel %vm239_vm3, %v4017_v56, %v1564_v0  ;;  %v4077_v13 = vld [vmem:[%s8544_s0 + $0x235] sm:$0x2]  }
  0x7a   :  { %1616 = vrot.lane.b32.xlu0 %v1615_v33, %s4538_s13  ;;  %v4019_v60 = vld [vmem:[%s8544_s0 + $0x3bc] sm:$0x40]   ;;  %v4085_v61 = vld [vmem:[%s8544_s0 + $0x306] sm:$0x1]   ;;  %v1572_v10 = vsel %vm243_vm4, %v4018_v57, %v1568_v6  ;;  %v4078_v14 = vld [vmem:[%s8544_s0 + $0x254] sm:$0x4]   ;;  %v1720_v15 = vsel %vm251_vm6, %v4056_v53, %v1716_v63  ;;  %v1801_v19 = vsel %vm227_vm0, %v4077_v13, %v4076_v12 }
  0x7b   :  { %1476 = vrot.lane.b32.xlu2 %v1475_v40, %s4538_s13  ;;  %v4086_v62 = vld [vmem:[%s8544_s0 + $0x325] sm:$0x2]   ;;  %v4020_v7 = vld [vmem:[%s8544_s0 + $0x3db] sm:$0x80]   ;;  %v1576_v16 = vsel %vm247_vm5, %v4019_v60, %v1572_v10  ;;  %v4079_v20 = vld [vmem:[%s8544_s0 + $0x273] sm:$0x8]   ;;  %v1805_v25 = vsel %vm231_vm1, %v4078_v14, %v1801_v19 }
  0x7c   :  { %v5900_v54 = vpop.permute.xlu2 %392   ;;  %v1836_v1 = vsel %vm227_vm0, %v4086_v62, %v4085_v61  ;;  %v4087_v2 = vld [vmem:[%s8544_s0 + $0x344] sm:$0x4]   ;;  %v4080_v21 = vld [vmem:[%s8544_s0 + $0x292] sm:$0x10]   ;;  %v1580_v22 = vsel %vm251_vm6, %v4020_v7, %v1576_v16  ;;  %v1809_v29 = vsel %vm235_vm2, %v4079_v20, %v1805_v25  ;;  %v4112_v44 = vld [vmem:[%s8544_s0 + $0x1a] sm:$0x1]  }
  0x7d   :  { %v4088_v3 = vld [vmem:[%s8544_s0 + $0x363] sm:$0x8]   ;;  %v1840_v8 = vsel %vm231_vm1, %v4087_v2, %v1836_v1  ;;  %v4081_v26 = vld [vmem:[%s8544_s0 + $0x2b1] sm:$0x20]   ;;  %v1813_v35 = vsel %vm239_vm3, %v4080_v21, %v1809_v29  ;;  %v4113_v45 = vld [vmem:[%s8544_s0 + $0x39] sm:$0x2]  }
  0x7e   :  { %v4089_v4 = vld [vmem:[%s8544_s0 + $0x382] sm:$0x10]   ;;  %v1844_v11 = vsel %vm235_vm2, %v4088_v3, %v1840_v8  ;;  %v4082_v27 = vld [vmem:[%s8544_s0 + $0x2d0] sm:$0x40]   ;;  %v1817_v41 = vsel %vm243_vm4, %v4081_v26, %v1813_v35  ;;  %v1941_v49 = vsel %vm227_vm0, %v4113_v45, %v4112_v44  ;;  %v4114_v50 = vld [vmem:[%s8544_s0 + $0x58] sm:$0x4]  }
  0x7f   :  { %v4090_v9 = vld [vmem:[%s8544_s0 + $0x3a1] sm:$0x20]   ;;  %v1848_v17 = vsel %vm239_vm3, %v4089_v4, %v1844_v11  ;;  %1756 = vrot.lane.b32.xlu1 %v1755_v5, %s4538_s13  ;;  %v4040_v28 = vld [vmem:[%s8544_s0 + $0x16] sm:$0x1]   ;;  %v1821_v47 = vsel %vm247_vm5, %v4082_v27, %v1817_v41  ;;  %v4115_v51 = vld [vmem:[%s8544_s0 + $0x77] sm:$0x8]   ;;  %v1945_v57 = vsel %vm231_vm1, %v4114_v50, %v1941_v49 }
  0x80   :  { %v4091_v18 = vld [vmem:[%s8544_s0 + $0x3c0] sm:$0x40]   ;;  %v1852_v23 = vsel %vm243_vm4, %v4090_v9, %v1848_v17  ;;  %v4041_v30 = vld [vmem:[%s8544_s0 + $0x35] sm:$0x2]   ;;  %v4116_v52 = vld [vmem:[%s8544_s0 + $0x96] sm:$0x10]   ;;  %v1949_v60 = vsel %vm235_vm2, %v4115_v51, %v1945_v57 }
  0x81   :  { %v4092_v24 = vld [vmem:[%s8544_s0 + $0x3df] sm:$0x80]   ;;  %v4042_v31 = vld [vmem:[%s8544_s0 + $0x54] sm:$0x4]   ;;  %v5993_v33 = vpop.permute.xlu1 %322   ;;  %v1856_v34 = vsel %vm247_vm5, %v4091_v18, %v1852_v23  ;;  %v1661_v38 = vsel %vm227_vm0, %v4041_v30, %v4040_v28  ;;  %v4117_v58 = vld [vmem:[%s8544_s0 + $0xb5] sm:$0x20]   ;;  %v1953_v2 = vsel %vm239_vm3, %v4116_v52, %v1949_v60 }
  0x82   :  { %v4043_v32 = vld [vmem:[%s8544_s0 + $0x73] sm:$0x8]   ;;  %1721 = vrot.lane.b32.xlu0 %v1720_v15, %s4538_s13  ;;  %v1665_v42 = vsel %vm231_vm1, %v4042_v31, %v1661_v38  ;;  %v1860_v53 = vsel %vm251_vm6, %v4092_v24, %v1856_v34  ;;  %v4103_v61 = vld [vmem:[%s8544_s0 + $0xa] sm:$0x1]   ;;  %v4118_v3 = vld [vmem:[%s8544_s0 + $0xd4] sm:$0x40]   ;;  %v1957_v8 = vsel %vm243_vm4, %v4117_v58, %v1953_v2 }
  0x83   :  { %1581 = vrot.lane.b32.xlu2 %v1580_v22, %s4538_s13  ;;  %v4083_v36 = vld [vmem:[%s8544_s0 + $0x2ef] sm:$0x80]   ;;  %v1669_v48 = vsel %vm235_vm2, %v4043_v32, %v1665_v42  ;;  %v4104_v62 = vld [vmem:[%s8544_s0 + $0x29] sm:$0x2]   ;;  %v4119_v9 = vld [vmem:[%s8544_s0 + $0xf3] sm:$0x80]   ;;  %v1961_v19 = vsel %vm247_vm5, %v4118_v3, %v1957_v8 }
  0x84   :  { %v6000_v37 = vpop.permute.xlu2 %427   ;;  %v4044_v39 = vld [vmem:[%s8544_s0 + $0x92] sm:$0x10]   ;;  %v6020_v46 = vpop.permute.xlu0 %253   ;;  %v4105_v63 = vld [vmem:[%s8544_s0 + $0x48] sm:$0x4]   ;;  %v1825_v0 = vsel %vm251_vm6, %v4083_v36, %v1821_v47  ;;  %v1906_v4 = vsel %vm227_vm0, %v4104_v62, %v4103_v61  ;;  %v4067_v13 = vld [vmem:[%s8544_s0 + $0x206] sm:$0x1]  }
  0x85   :  { %v4045_v40 = vld [vmem:[%s8544_s0 + $0xb1] sm:$0x20]   ;;  %v1673_v55 = vsel %vm239_vm3, %v4044_v39, %v1669_v48  ;;  %v4106_v5 = vld [vmem:[%s8544_s0 + $0x67] sm:$0x8]   ;;  %v1910_v10 = vsel %vm231_vm1, %v4105_v63, %v1906_v4  ;;  %v4068_v15 = vld [vmem:[%s8544_s0 + $0x225] sm:$0x2]  }
  0x86   :  { %v4046_v43 = vld [vmem:[%s8544_s0 + $0xd0] sm:$0x40]   ;;  %v1677_v59 = vsel %vm243_vm4, %v4045_v40, %v1673_v55  ;;  %v4107_v6 = vld [vmem:[%s8544_s0 + $0x86] sm:$0x10]   ;;  %v1914_v14 = vsel %vm235_vm2, %v4106_v5, %v1910_v10  ;;  %v4069_v16 = vld [vmem:[%s8544_s0 + $0x244] sm:$0x4]   ;;  %v1766_v23 = vsel %vm227_vm0, %v4068_v15, %v4067_v13  ;;  %v1965_v40 = vsel %vm251_vm6, %v4119_v9, %v1961_v19 }
  0x87   :  { %v4047_v56 = vld [vmem:[%s8544_s0 + $0xef] sm:$0x80]   ;;  %v1681_v1 = vsel %vm247_vm5, %v4046_v43, %v1677_v59  ;;  %1861 = vrot.lane.b32.xlu1 %v1860_v53, %s4538_s13  ;;  %v4108_v11 = vld [vmem:[%s8544_s0 + $0xa5] sm:$0x20]   ;;  %v4070_v17 = vld [vmem:[%s8544_s0 + $0x263] sm:$0x8]   ;;  %v1918_v20 = vsel %vm239_vm3, %v4107_v6, %v1914_v14  ;;  %v1770_v27 = vsel %vm231_vm1, %v4069_v16, %v1766_v23 }
  0x88   :  { %v1685_v7 = vsel %vm251_vm6, %v4047_v56, %v1681_v1  ;;  %v4109_v12 = vld [vmem:[%s8544_s0 + $0xc4] sm:$0x40]   ;;  %v4071_v24 = vld [vmem:[%s8544_s0 + $0x282] sm:$0x10]   ;;  %v1922_v26 = vsel %vm243_vm4, %v4108_v11, %v1918_v20  ;;  %v1774_v34 = vsel %vm235_vm2, %v4070_v17, %v1770_v27  ;;  %v4130_v48 = vld [vmem:[%s8544_s0 + $0x11a] sm:$0x1]  }
  0x89   :  { %v6095_v18 = vpop.permute.xlu1 %357   ;;  %v4110_v21 = vld [vmem:[%s8544_s0 + $0xe3] sm:$0x80]   ;;  %v4072_v25 = vld [vmem:[%s8544_s0 + $0x2a1] sm:$0x20]   ;;  %v1926_v32 = vsel %vm247_vm5, %v4109_v12, %v1922_v26  ;;  %v1778_v41 = vsel %vm239_vm3, %v4071_v24, %v1774_v34  ;;  %v4131_v49 = vld [vmem:[%s8544_s0 + $0x139] sm:$0x2]  }
  0x8a   :  { %1826 = vrot.lane.b32.xlu0 %v1825_v0, %s4538_s13  ;;  %v4073_v28 = vld [vmem:[%s8544_s0 + $0x2c0] sm:$0x40]   ;;  %v4139_v29 = vld [vmem:[%s8544_s0 + $0x20a] sm:$0x1]   ;;  %v1782_v45 = vsel %vm243_vm4, %v4072_v25, %v1778_v41  ;;  %v4132_v50 = vld [vmem:[%s8544_s0 + $0x158] sm:$0x4]   ;;  %v1930_v51 = vsel %vm251_vm6, %v4110_v21, %v1926_v32  ;;  %v2011_v56 = vsel %vm227_vm0, %v4131_v49, %v4130_v48 }
  0x8b   :  { %1686 = vrot.lane.b32.xlu2 %v1685_v7, %s4538_s13  ;;  %v4140_v30 = vld [vmem:[%s8544_s0 + $0x229] sm:$0x2]   ;;  %v4074_v42 = vld [vmem:[%s8544_s0 + $0x2df] sm:$0x80]   ;;  %v1786_v52 = vsel %vm247_vm5, %v4073_v28, %v1782_v45  ;;  %v4133_v57 = vld [vmem:[%s8544_s0 + $0x177] sm:$0x8]   ;;  %v2015_v62 = vsel %vm231_vm1, %v4132_v50, %v2011_v56 }
  0x8c   :  { %v6102_v22 = vpop.permute.xlu2 %532   ;;  %v6122_v31 = vpop.permute.xlu0 %287   ;;  %v2046_v35 = vsel %vm227_vm0, %v4140_v30, %v4139_v29  ;;  %v4141_v36 = vld [vmem:[%s8544_s0 + $0x248] sm:$0x4]   ;;  %v4134_v58 = vld [vmem:[%s8544_s0 + $0x196] sm:$0x10]   ;;  %v1790_v59 = vsel %vm251_vm6, %v4074_v42, %v1786_v52  ;;  %v4094_v1 = vld [vmem:[%s8544_s0 + $0x316] sm:$0x1]   ;;  %v2019_v2 = vsel %vm235_vm2, %v4133_v57, %v2015_v62 }
  0x8d   :  { %v4142_v38 = vld [vmem:[%s8544_s0 + $0x267] sm:$0x8]   ;;  %v2050_v43 = vsel %vm231_vm1, %v4141_v36, %v2046_v35  ;;  %v4135_v63 = vld [vmem:[%s8544_s0 + $0x1b5] sm:$0x20]   ;;  %v4095_v3 = vld [vmem:[%s8544_s0 + $0x335] sm:$0x2]   ;;  %v2023_v8 = vsel %vm239_vm3, %v4134_v58, %v2019_v2 }
  0x8e   :  { %v4143_v39 = vld [vmem:[%s8544_s0 + $0x286] sm:$0x10]   ;;  %v2054_v47 = vsel %vm235_vm2, %v4142_v38, %v2050_v43  ;;  %v4136_v0 = vld [vmem:[%s8544_s0 + $0x1d4] sm:$0x40]   ;;  %v4096_v4 = vld [vmem:[%s8544_s0 + $0x354] sm:$0x4]   ;;  %v1871_v10 = vsel %vm227_vm0, %v4095_v3, %v4094_v1  ;;  %v2027_v13 = vsel %vm243_vm4, %v4135_v63, %v2023_v8 }
  0x8f   :  { %v4144_v44 = vld [vmem:[%s8544_s0 + $0x2a5] sm:$0x20]   ;;  %v2058_v53 = vsel %vm239_vm3, %v4143_v39, %v2054_v47  ;;  %1966 = vrot.lane.b32.xlu1 %v1965_v40, %s4538_s13  ;;  %v4097_v5 = vld [vmem:[%s8544_s0 + $0x373] sm:$0x8]   ;;  %v4137_v9 = vld [vmem:[%s8544_s0 + $0x1f3] sm:$0x80]   ;;  %v1875_v15 = vsel %vm231_vm1, %v4096_v4, %v1871_v10  ;;  %v2031_v21 = vsel %vm247_vm5, %v4136_v0, %v2027_v13 }
  0x90   :  { %v4145_v55 = vld [vmem:[%s8544_s0 + $0x2c4] sm:$0x40]   ;;  %v2062_v60 = vsel %vm243_vm4, %v4144_v44, %v2058_v53  ;;  %v4098_v11 = vld [vmem:[%s8544_s0 + $0x392] sm:$0x10]   ;;  %v4166_v17 = vld [vmem:[%s8544_s0 + $0x31a] sm:$0x1]   ;;  %v1879_v23 = vsel %vm235_vm2, %v4097_v5, %v1875_v15  ;;  %v2035_v41 = vsel %vm251_vm6, %v4137_v9, %v2031_v21 }
  0x91   :  { %v4146_v61 = vld [vmem:[%s8544_s0 + $0x2e3] sm:$0x80]   ;;  %v6197_v6 = vpop.permute.xlu1 %497   ;;  %v2066_v7 = vsel %vm247_vm5, %v4145_v55, %v2062_v60  ;;  %v4099_v12 = vld [vmem:[%s8544_s0 + $0x3b1] sm:$0x20]   ;;  %v4167_v19 = vld [vmem:[%s8544_s0 + $0x339] sm:$0x2]   ;;  %v1883_v29 = vsel %vm239_vm3, %v4098_v11, %v1879_v23 }
  0x92   :  { %1931 = vrot.lane.b32.xlu0 %v1930_v51, %s4538_s13  ;;  %v4100_v16 = vld [vmem:[%s8544_s0 + $0x3d0] sm:$0x40]   ;;  %v2151_v24 = vsel %vm227_vm0, %v4167_v19, %v4166_v17  ;;  %v4168_v25 = vld [vmem:[%s8544_s0 + $0x358] sm:$0x4]   ;;  %v2070_v28 = vsel %vm251_vm6, %v4146_v61, %v2066_v7  ;;  %v1887_v35 = vsel %vm243_vm4, %v4099_v12, %v1883_v29  ;;  %v4157_v38 = vld [vmem:[%s8544_s0 + $0x30a] sm:$0x1]  }
  0x93   :  { %1791 = vrot.lane.b32.xlu2 %v1790_v59, %s4538_s13  ;;  %v4169_v26 = vld [vmem:[%s8544_s0 + $0x377] sm:$0x8]   ;;  %v4101_v30 = vld [vmem:[%s8544_s0 + $0x3ef] sm:$0x80]   ;;  %v2155_v32 = vsel %vm231_vm1, %v4168_v25, %v2151_v24  ;;  %v4158_v39 = vld [vmem:[%s8544_s0 + $0x329] sm:$0x2]   ;;  %v1891_v42 = vsel %vm247_vm5, %v4100_v16, %v1887_v35 }
  0x94   :  { %v6212_v14 = vpop.permute.xlu2 %637   ;;  %v6224_v20 = vpop.permute.xlu0 %462   ;;  %v4170_v27 = vld [vmem:[%s8544_s0 + $0x396] sm:$0x10]   ;;  %v2159_v36 = vsel %vm235_vm2, %v4169_v26, %v2155_v32  ;;  %v4159_v40 = vld [vmem:[%s8544_s0 + $0x348] sm:$0x4]   ;;  %v2116_v45 = vsel %vm227_vm0, %v4158_v39, %v4157_v38  ;;  %v1895_v49 = vsel %vm251_vm6, %v4101_v30, %v1891_v42  ;;  %v4193_v9 = vld [vmem:[%s8544_s0 + $0x10e] sm:$0x1]  }
  0x95   :  { %v4171_v34 = vld [vmem:[%s8544_s0 + $0x3b5] sm:$0x20]   ;;  %v2163_v43 = vsel %vm239_vm3, %v4170_v27, %v2159_v36  ;;  %v4160_v47 = vld [vmem:[%s8544_s0 + $0x367] sm:$0x8]   ;;  %v2120_v52 = vsel %vm231_vm1, %v4159_v40, %v2116_v45  ;;  %v4194_v10 = vld [vmem:[%s8544_s0 + $0x12d] sm:$0x2]  }
  0x96   :  { %v4172_v44 = vld [vmem:[%s8544_s0 + $0x3d4] sm:$0x40]   ;;  %v4161_v48 = vld [vmem:[%s8544_s0 + $0x386] sm:$0x10]   ;;  %v2167_v50 = vsel %vm243_vm4, %v4171_v34, %v2163_v43  ;;  %v2124_v57 = vsel %vm235_vm2, %v4160_v47, %v2120_v52  ;;  %v2256_v15 = vsel %vm227_vm0, %v4194_v10, %v4193_v9  ;;  %v4195_v16 = vld [vmem:[%s8544_s0 + $0x14c] sm:$0x4]  }
  0x97   :  { %2071 = vrot.lane.b32.xlu1 %v2070_v28, %s4538_s13  ;;  %v4173_v51 = vld [vmem:[%s8544_s0 + $0x3f3] sm:$0x80]   ;;  %v4162_v53 = vld [vmem:[%s8544_s0 + $0x3a5] sm:$0x20]   ;;  %v2171_v62 = vsel %vm247_vm5, %v4172_v44, %v2167_v50  ;;  %v2128_v63 = vsel %vm239_vm3, %v4161_v48, %v2124_v57  ;;  %v4196_v17 = vld [vmem:[%s8544_s0 + $0x16b] sm:$0x8]   ;;  %v2260_v25 = vsel %vm231_vm1, %v4195_v16, %v2256_v15 }
  0x98   :  { %v4163_v55 = vld [vmem:[%s8544_s0 + $0x3c4] sm:$0x40]   ;;  %v2132_v4 = vsel %vm243_vm4, %v4162_v53, %v2128_v63  ;;  %v4197_v19 = vld [vmem:[%s8544_s0 + $0x18a] sm:$0x10]   ;;  %v2175_v21 = vsel %vm251_vm6, %v4173_v51, %v2171_v62  ;;  %v2264_v28 = vsel %vm235_vm2, %v4196_v17, %v2260_v25  ;;  %v4184_v29 = vld [vmem:[%s8544_s0 + $0x1e] sm:$0x1]  }
  0x99   :  { %v4121_v56 = vld [vmem:[%s8544_s0 + $0x10a] sm:$0x1]   ;;  %v6299_v61 = vpop.permute.xlu1 %602   ;;  %v2136_v12 = vsel %vm247_vm5, %v4163_v55, %v2132_v4  ;;  %v4198_v26 = vld [vmem:[%s8544_s0 + $0x1a9] sm:$0x20]   ;;  %v4185_v30 = vld [vmem:[%s8544_s0 + $0x3d] sm:$0x2]   ;;  %v2268_v36 = vsel %vm239_vm3, %v4197_v19, %v2264_v28 }
  0x9a   :  { %v4122_v58 = vld [vmem:[%s8544_s0 + $0x129] sm:$0x2]   ;;  %2036 = vrot.lane.b32.xlu0 %v2035_v41, %s4538_s13  ;;  %v4186_v32 = vld [vmem:[%s8544_s0 + $0x5c] sm:$0x4]   ;;  %v4199_v38 = vld [vmem:[%s8544_s0 + $0x1c8] sm:$0x40]   ;;  %v2221_v39 = vsel %vm227_vm0, %v4185_v30, %v4184_v29  ;;  %v2272_v43 = vsel %vm243_vm4, %v4198_v26, %v2268_v36 }
  0x9b   :  { %1896 = vrot.lane.b32.xlu2 %v1895_v49, %s4538_s13  ;;  %v4123_v59 = vld [vmem:[%s8544_s0 + $0x148] sm:$0x4]   ;;  %v1976_v1 = vsel %vm227_vm0, %v4122_v58, %v4121_v56  ;;  %v4187_v40 = vld [vmem:[%s8544_s0 + $0x7b] sm:$0x8]   ;;  %v4200_v44 = vld [vmem:[%s8544_s0 + $0x1e7] sm:$0x80]   ;;  %v2225_v45 = vsel %vm231_vm1, %v4186_v32, %v2221_v39  ;;  %v2276_v56 = vsel %vm247_vm5, %v4199_v38, %v2272_v43 }
  0x9c   :  { %v4124_v60 = vld [vmem:[%s8544_s0 + $0x167] sm:$0x8]   ;;  %v6314_v5 = vpop.permute.xlu2 %742   ;;  %v1980_v7 = vsel %vm231_vm1, %v4123_v59, %v1976_v1  ;;  %v6326_v11 = vpop.permute.xlu0 %567   ;;  %v4188_v41 = vld [vmem:[%s8544_s0 + $0x9a] sm:$0x10]   ;;  %v4148_v49 = vld [vmem:[%s8544_s0 + $0x21a] sm:$0x1]   ;;  %v2229_v50 = vsel %vm235_vm2, %v4187_v40, %v2225_v45  ;;  %v2280_v16 = vsel %vm251_vm6, %v4200_v44, %v2276_v56 }
  0x9d   :  { %v4164_v0 = vld [vmem:[%s8544_s0 + $0x3e3] sm:$0x80]   ;;  %v1984_v13 = vsel %vm235_vm2, %v4124_v60, %v1980_v7  ;;  %v4189_v47 = vld [vmem:[%s8544_s0 + $0xb9] sm:$0x20]   ;;  %v4149_v51 = vld [vmem:[%s8544_s0 + $0x239] sm:$0x2]   ;;  %v2233_v57 = vsel %vm239_vm3, %v4188_v41, %v2229_v50 }
  0x9e   :  { %v4125_v2 = vld [vmem:[%s8544_s0 + $0x186] sm:$0x10]   ;;  %v2140_v34 = vsel %vm251_vm6, %v4164_v0, %v2136_v12  ;;  %v4190_v48 = vld [vmem:[%s8544_s0 + $0xd8] sm:$0x40]   ;;  %v4150_v52 = vld [vmem:[%s8544_s0 + $0x258] sm:$0x4]   ;;  %v2081_v59 = vsel %vm227_vm0, %v4149_v51, %v4148_v49  ;;  %v2237_v63 = vsel %vm243_vm4, %v4189_v47, %v2233_v57 }
  0x9f   :  { %v4126_v3 = vld [vmem:[%s8544_s0 + $0x1a5] sm:$0x20]   ;;  %v1988_v23 = vsel %vm239_vm3, %v4125_v2, %v1984_v13  ;;  %2176 = vrot.lane.b32.xlu1 %v2175_v21, %s4538_s13  ;;  %v4151_v53 = vld [vmem:[%s8544_s0 + $0x277] sm:$0x8]   ;;  %v4191_v58 = vld [vmem:[%s8544_s0 + $0xf7] sm:$0x80]   ;;  %v2085_v1 = vsel %vm231_vm1, %v4150_v52, %v2081_v59 }
  0xa0   :  { %v4127_v8 = vld [vmem:[%s8544_s0 + $0x1c4] sm:$0x40]   ;;  %v1992_v27 = vsel %vm243_vm4, %v4126_v3, %v1988_v23  ;;  %v4152_v60 = vld [vmem:[%s8544_s0 + $0x296] sm:$0x10]   ;;  %v4220_v3 = vld [vmem:[%s8544_s0 + $0x21e] sm:$0x1]   ;;  %v2089_v9 = vsel %vm235_vm2, %v4151_v53, %v2085_v1 }
  0xa1   :  { %v4128_v24 = vld [vmem:[%s8544_s0 + $0x1e3] sm:$0x80]   ;;  %v1996_v35 = vsel %vm247_vm5, %v4127_v8, %v1992_v27  ;;  %v6401_v55 = vpop.permute.xlu1 %707   ;;  %v4153_v62 = vld [vmem:[%s8544_s0 + $0x2b5] sm:$0x20]   ;;  %v4221_v4 = vld [vmem:[%s8544_s0 + $0x23d] sm:$0x2]   ;;  %v2241_v8 = vsel %vm247_vm5, %v4190_v48, %v2237_v63  ;;  %v2093_v17 = vsel %vm239_vm3, %v4152_v60, %v2089_v9 }
  0xa2   :  { %v2000_v42 = vsel %vm251_vm6, %v4128_v24, %v1996_v35  ;;  %2141 = vrot.lane.b32.xlu0 %v2140_v34, %s4538_s13  ;;  %v4154_v2 = vld [vmem:[%s8544_s0 + $0x2d4] sm:$0x40]   ;;  %v2361_v10 = vsel %vm227_vm0, %v4221_v4, %v4220_v3  ;;  %v4222_v12 = vld [vmem:[%s8544_s0 + $0x25c] sm:$0x4]   ;;  %v2097_v24 = vsel %vm243_vm4, %v4153_v62, %v2093_v17  ;;  %v4211_v26 = vld [vmem:[%s8544_s0 + $0x20e] sm:$0x1]   ;;  %v2245_v29 = vsel %vm251_vm6, %v4191_v58, %v2241_v8 }
  0xa3   :  { %2001 = vrot.lane.b32.xlu2 %v2000_v42, %s4538_s13  ;;  %v4223_v13 = vld [vmem:[%s8544_s0 + $0x27b] sm:$0x8]   ;;  %v4155_v19 = vld [vmem:[%s8544_s0 + $0x2f3] sm:$0x80]   ;;  %v2365_v21 = vsel %vm231_vm1, %v4222_v12, %v2361_v10  ;;  %v4212_v27 = vld [vmem:[%s8544_s0 + $0x22d] sm:$0x2]   ;;  %v2101_v30 = vsel %vm247_vm5, %v4154_v2, %v2097_v24 }
  0xa4   :  { %v6416_v0 = vpop.permute.xlu2 %847   ;;  %v6428_v7 = vpop.permute.xlu0 %672   ;;  %v4224_v15 = vld [vmem:[%s8544_s0 + $0x29a] sm:$0x10]   ;;  %v2369_v25 = vsel %vm235_vm2, %v4223_v13, %v2365_v21  ;;  %v4213_v28 = vld [vmem:[%s8544_s0 + $0x24c] sm:$0x4]   ;;  %v2326_v35 = vsel %vm227_vm0, %v4212_v27, %v4211_v26  ;;  %v2105_v39 = vsel %vm251_vm6, %v4155_v19, %v2101_v30  ;;  %v4247_v2 = vld [vmem:[%s8544_s0 + $0x1] sm:$0x1]  }
  0xa5   :  { %v4225_v23 = vld [vmem:[%s8544_s0 + $0x2b9] sm:$0x20]   ;;  %v2373_v32 = vsel %vm239_vm3, %v4224_v15, %v2369_v25  ;;  %v4214_v36 = vld [vmem:[%s8544_s0 + $0x26b] sm:$0x8]   ;;  %v2330_v42 = vsel %vm231_vm1, %v4213_v28, %v2326_v35  ;;  %v4248_v3 = vld [vmem:[%s8544_s0 + $0x20] sm:$0x2]  }
  0xa6   :  { %v4226_v34 = vld [vmem:[%s8544_s0 + $0x2d8] sm:$0x40]   ;;  %v4215_v38 = vld [vmem:[%s8544_s0 + $0x28a] sm:$0x10]   ;;  %v2377_v40 = vsel %vm243_vm4, %v4225_v23, %v2373_v32  ;;  %v2334_v47 = vsel %vm235_vm2, %v4214_v36, %v2330_v42  ;;  %v2466_v10 = vsel %vm227_vm0, %v4248_v3, %v4247_v2  ;;  %v4249_v12 = vld [vmem:[%s8544_s0 + $0x3f] sm:$0x4]  }
  0xa7   :  { %2281 = vrot.lane.b32.xlu1 %v2280_v16, %s4538_s13  ;;  %v4227_v41 = vld [vmem:[%s8544_s0 + $0x2f7] sm:$0x80]   ;;  %v4216_v43 = vld [vmem:[%s8544_s0 + $0x2a9] sm:$0x20]   ;;  %v2381_v52 = vsel %vm247_vm5, %v4226_v34, %v2377_v40  ;;  %v2338_v53 = vsel %vm239_vm3, %v4215_v38, %v2334_v47  ;;  %v4250_v13 = vld [vmem:[%s8544_s0 + $0x5e] sm:$0x8]   ;;  %v2470_v21 = vsel %vm231_vm1, %v4249_v12, %v2466_v10 }
  0xa8   :  { %v4217_v44 = vld [vmem:[%s8544_s0 + $0x2c8] sm:$0x40]   ;;  %v2342_v60 = vsel %vm243_vm4, %v4216_v43, %v2338_v53  ;;  %v4251_v15 = vld [vmem:[%s8544_s0 + $0x7d] sm:$0x10]   ;;  %v2385_v16 = vsel %vm251_vm6, %v4227_v41, %v2381_v52  ;;  %v2474_v25 = vsel %vm235_vm2, %v4250_v13, %v2470_v21  ;;  %v4238_v27 = vld [vmem:[%s8544_s0 + $0x31e] sm:$0x1]  }
  0xa9   :  { %v4175_v45 = vld [vmem:[%s8544_s0 + $0xe] sm:$0x1]   ;;  %v6503_v51 = vpop.permute.xlu1 %812   ;;  %v2346_v8 = vsel %vm247_vm5, %v4217_v44, %v2342_v60  ;;  %v4252_v23 = vld [vmem:[%s8544_s0 + $0x9c] sm:$0x20]   ;;  %v4239_v28 = vld [vmem:[%s8544_s0 + $0x33d] sm:$0x2]   ;;  %v2478_v32 = vsel %vm239_vm3, %v4251_v15, %v2474_v25 }
  0xaa   :  { %v4176_v48 = vld [vmem:[%s8544_s0 + $0x2d] sm:$0x2]   ;;  %2246 = vrot.lane.b32.xlu0 %v2245_v29, %s4538_s13  ;;  %v4253_v26 = vld [vmem:[%s8544_s0 + $0xbb] sm:$0x40]   ;;  %v2431_v34 = vsel %vm227_vm0, %v4239_v28, %v4238_v27  ;;  %v4240_v35 = vld [vmem:[%s8544_s0 + $0x35c] sm:$0x4]   ;;  %v2482_v40 = vsel %vm243_vm4, %v4252_v23, %v2478_v32 }
  0xab   :  { %2106 = vrot.lane.b32.xlu2 %v2105_v39, %s4538_s13  ;;  %v4177_v49 = vld [vmem:[%s8544_s0 + $0x4c] sm:$0x4]   ;;  %v2186_v57 = vsel %vm227_vm0, %v4176_v48, %v4175_v45  ;;  %v4241_v36 = vld [vmem:[%s8544_s0 + $0x37b] sm:$0x8]   ;;  %v4254_v41 = vld [vmem:[%s8544_s0 + $0xda] sm:$0x80]   ;;  %v2435_v42 = vsel %vm231_vm1, %v4240_v35, %v2431_v34  ;;  %v2486_v52 = vsel %vm247_vm5, %v4253_v26, %v2482_v40 }
  0xac   :  { %v4178_v50 = vld [vmem:[%s8544_s0 + $0x6b] sm:$0x8]   ;;  %v6518_v62 = vpop.permute.xlu2 %952   ;;  %v2190_v63 = vsel %vm231_vm1, %v4177_v49, %v2186_v57  ;;  %v6530_v4 = vpop.permute.xlu0 %777   ;;  %v4242_v38 = vld [vmem:[%s8544_s0 + $0x39a] sm:$0x10]   ;;  %v2439_v45 = vsel %vm235_vm2, %v4241_v36, %v2435_v42  ;;  %v4274_v13 = vld [vmem:[%s8544_s0 + $0x130] sm:$0x2]  }
  0xad   :  { %v4218_v56 = vld [vmem:[%s8544_s0 + $0x2e7] sm:$0x80]   ;;  %v2194_v9 = vsel %vm235_vm2, %v4178_v50, %v2190_v63  ;;  %v4243_v43 = vld [vmem:[%s8544_s0 + $0x3b9] sm:$0x20]   ;;  %v2443_v53 = vsel %vm239_vm3, %v4242_v38, %v2439_v45  ;;  %v4275_v15 = vld [vmem:[%s8544_s0 + $0x14f] sm:$0x4]  }
  0xae   :  { %v4179_v58 = vld [vmem:[%s8544_s0 + $0x8a] sm:$0x10]   ;;  %v2350_v29 = vsel %vm251_vm6, %v4218_v56, %v2346_v8  ;;  %v4244_v44 = vld [vmem:[%s8544_s0 + $0x3d8] sm:$0x40]   ;;  %v2447_v60 = vsel %vm243_vm4, %v4243_v43, %v2443_v53  ;;  %v4273_v8 = vld [vmem:[%s8544_s0 + $0x111] sm:$0x1]  }
  0xaf   :  { %v4180_v59 = vld [vmem:[%s8544_s0 + $0xa9] sm:$0x20]   ;;  %v2198_v17 = vsel %vm239_vm3, %v4179_v58, %v2194_v9  ;;  %2386 = vrot.lane.b32.xlu1 %v2385_v16, %s4538_s13  ;;  %v4202_v47 = vld [vmem:[%s8544_s0 + $0x11e] sm:$0x1]   ;;  %v2451_v10 = vsel %vm247_vm5, %v4244_v44, %v2447_v60  ;;  %v4276_v16 = vld [vmem:[%s8544_s0 + $0x16e] sm:$0x8]   ;;  %v2570_v23 = vsel %vm227_vm0, %v4274_v13, %v4273_v8 }
  0xb0   :  { %v4181_v1 = vld [vmem:[%s8544_s0 + $0xc8] sm:$0x40]   ;;  %v2202_v24 = vsel %vm243_vm4, %v4180_v59, %v2198_v17  ;;  %v4203_v48 = vld [vmem:[%s8544_s0 + $0x13d] sm:$0x2]   ;;  %v2490_v17 = vsel %vm251_vm6, %v4254_v41, %v2486_v52  ;;  %v4278_v25 = vld [vmem:[%s8544_s0 + $0x1ac] sm:$0x20]   ;;  %v2574_v27 = vsel %vm231_vm1, %v4275_v15, %v2570_v23 }
  0xb1   :  { %v4182_v19 = vld [vmem:[%s8544_s0 + $0xe7] sm:$0x80]   ;;  %v2206_v30 = vsel %vm247_vm5, %v4181_v1, %v2202_v24  ;;  %v4204_v49 = vld [vmem:[%s8544_s0 + $0x15c] sm:$0x4]   ;;  %v6602_v50 = vpop.permute.xlu1 %917   ;;  %v2291_v57 = vsel %vm227_vm0, %v4203_v48, %v4202_v47  ;;  %v4277_v24 = vld [vmem:[%s8544_s0 + $0x18d] sm:$0x10]   ;;  %v2578_v35 = vsel %vm235_vm2, %v4276_v16, %v2574_v27 }
  0xb2   :  { %v2210_v39 = vsel %vm251_vm6, %v4182_v19, %v2206_v30  ;;  %2351 = vrot.lane.b32.xlu0 %v2350_v29, %s4538_s13  ;;  %v4245_v56 = vld [vmem:[%s8544_s0 + $0x3f7] sm:$0x80]   ;;  %v2295_v1 = vsel %vm231_vm1, %v4204_v49, %v2291_v57  ;;  %v4279_v28 = vld [vmem:[%s8544_s0 + $0x1cb] sm:$0x40]   ;;  %v4264_v29 = vld [vmem:[%s8544_s0 + $0x101] sm:$0x1]   ;;  %v2582_v42 = vsel %vm239_vm3, %v4277_v24, %v2578_v35 }
  0xb3   :  { %2211 = vrot.lane.b32.xlu2 %v2210_v39, %s4538_s13  ;;  %v4205_v58 = vld [vmem:[%s8544_s0 + $0x17b] sm:$0x8]   ;;  %v4265_v30 = vld [vmem:[%s8544_s0 + $0x120] sm:$0x2]   ;;  %v2455_v32 = vsel %vm251_vm6, %v4245_v56, %v2451_v10  ;;  %v4280_v43 = vld [vmem:[%s8544_s0 + $0x1ea] sm:$0x80]   ;;  %v2586_v48 = vsel %vm243_vm4, %v4278_v25, %v2582_v42 }
  0xb4   :  { %v4206_v59 = vld [vmem:[%s8544_s0 + $0x19a] sm:$0x10]   ;;  %v6617_v63 = vpop.permute.xlu2 %1057   ;;  %v6629_v9 = vpop.permute.xlu0 %882   ;;  %v2299_v12 = vsel %vm235_vm2, %v4205_v58, %v2295_v1  ;;  %v2535_v36 = vsel %vm227_vm0, %v4265_v30, %v4264_v29  ;;  %v4266_v38 = vld [vmem:[%s8544_s0 + $0x13f] sm:$0x4]   ;;  %v4229_v52 = vld [vmem:[%s8544_s0 + $0x30e] sm:$0x1]   ;;  %v2590_v58 = vsel %vm247_vm5, %v4279_v28, %v2586_v48 }
  0xb5   :  { %v4207_v2 = vld [vmem:[%s8544_s0 + $0x1b9] sm:$0x20]   ;;  %v2303_v19 = vsel %vm239_vm3, %v4206_v59, %v2299_v12  ;;  %v4267_v39 = vld [vmem:[%s8544_s0 + $0x15e] sm:$0x8]   ;;  %v2539_v44 = vsel %vm231_vm1, %v4266_v38, %v2535_v36  ;;  %v4230_v53 = vld [vmem:[%s8544_s0 + $0x32d] sm:$0x2]  }
  0xb6   :  { %v4208_v3 = vld [vmem:[%s8544_s0 + $0x1d8] sm:$0x40]   ;;  %v2307_v26 = vsel %vm243_vm4, %v4207_v2, %v2303_v19  ;;  %v4268_v40 = vld [vmem:[%s8544_s0 + $0x17d] sm:$0x10]   ;;  %v2543_v49 = vsel %vm235_vm2, %v4267_v39, %v2539_v44  ;;  %v4231_v56 = vld [vmem:[%s8544_s0 + $0x34c] sm:$0x4]   ;;  %v2396_v1 = vsel %vm227_vm0, %v4230_v53, %v4229_v52 }
  0xb7   :  { %v4209_v21 = vld [vmem:[%s8544_s0 + $0x1f7] sm:$0x80]   ;;  %v2311_v34 = vsel %vm247_vm5, %v4208_v3, %v2307_v26  ;;  %2491 = vrot.lane.b32.xlu1 %v2490_v17, %s4539_s18  ;;  %v4269_v45 = vld [vmem:[%s8544_s0 + $0x19c] sm:$0x20]   ;;  %v2547_v59 = vsel %vm239_vm3, %v4268_v40, %v2543_v49  ;;  %v4232_v2 = vld [vmem:[%s8544_s0 + $0x36b] sm:$0x8]   ;;  %v2400_v12 = vsel %vm231_vm1, %v4231_v56, %v2396_v1  ;;  %v2594_v26 = vsel %vm251_vm6, %v4280_v43, %v2590_v58 }
  0xb8   :  { %v2315_v41 = vsel %vm251_vm6, %v4209_v21, %v2311_v34  ;;  %v4270_v47 = vld [vmem:[%s8544_s0 + $0x1bb] sm:$0x40]   ;;  %v4233_v3 = vld [vmem:[%s8544_s0 + $0x38a] sm:$0x10]   ;;  %v2551_v8 = vsel %vm243_vm4, %v4269_v45, %v2547_v59  ;;  %v2404_v21 = vsel %vm235_vm2, %v4232_v2, %v2400_v12  ;;  %v4291_v38 = vld [vmem:[%s8544_s0 + $0x211] sm:$0x1]  }
  0xb9   :  { %v6704_v57 = vpop.permute.xlu1 %1022   ;;  %v4271_v60 = vld [vmem:[%s8544_s0 + $0x1da] sm:$0x80]   ;;  %v4234_v13 = vld [vmem:[%s8544_s0 + $0x3a9] sm:$0x20]   ;;  %v2555_v19 = vsel %vm247_vm5, %v4270_v47, %v2551_v8  ;;  %v2408_v27 = vsel %vm239_vm3, %v4233_v3, %v2404_v21  ;;  %v4292_v39 = vld [vmem:[%s8544_s0 + $0x230] sm:$0x2]  }
  0xba   :  { %2456 = vrot.lane.b32.xlu0 %v2455_v32, %s4538_s13  ;;  %v4235_v15 = vld [vmem:[%s8544_s0 + $0x3c8] sm:$0x40]   ;;  %v4300_v16 = vld [vmem:[%s8544_s0 + $0x301] sm:$0x1]   ;;  %v2412_v34 = vsel %vm243_vm4, %v4234_v13, %v2408_v27  ;;  %v2559_v40 = vsel %vm251_vm6, %v4271_v60, %v2555_v19  ;;  %v2640_v43 = vsel %vm227_vm0, %v4292_v39, %v4291_v38  ;;  %v4293_v44 = vld [vmem:[%s8544_s0 + $0x24f] sm:$0x4]  }
  0xbb   :  { %2316 = vrot.lane.b32.xlu2 %v2315_v41, %s4538_s13  ;;  %v4301_v23 = vld [vmem:[%s8544_s0 + $0x320] sm:$0x2]   ;;  %v4236_v28 = vld [vmem:[%s8544_s0 + $0x3e7] sm:$0x80]   ;;  %v2416_v41 = vsel %vm247_vm5, %v4235_v15, %v2412_v34  ;;  %v4294_v45 = vld [vmem:[%s8544_s0 + $0x26e] sm:$0x8]   ;;  %v2644_v53 = vsel %vm231_vm1, %v4293_v44, %v2640_v43 }
  0xbc   :  { %v6719_v10 = vpop.permute.xlu2 %1162   ;;  %v6731_v17 = vpop.permute.xlu0 %987   ;;  %v4302_v24 = vld [vmem:[%s8544_s0 + $0x33f] sm:$0x4]   ;;  %v2675_v29 = vsel %vm227_vm0, %v4301_v23, %v4300_v16  ;;  %v4295_v47 = vld [vmem:[%s8544_s0 + $0x28d] sm:$0x10]   ;;  %v2420_v48 = vsel %vm251_vm6, %v4236_v28, %v2416_v41  ;;  %v2648_v60 = vsel %vm235_vm2, %v4294_v45, %v2644_v53  ;;  %v4327_v28 = vld [vmem:[%s8544_s0 + $0x15] sm:$0x1]  }
  0xbd   :  { %v4303_v25 = vld [vmem:[%s8544_s0 + $0x35e] sm:$0x8]   ;;  %v2679_v35 = vsel %vm231_vm1, %v4302_v24, %v2675_v29  ;;  %v4296_v56 = vld [vmem:[%s8544_s0 + $0x2ac] sm:$0x20]   ;;  %v2652_v13 = vsel %vm239_vm3, %v4295_v47, %v2648_v60  ;;  %v4328_v34 = vld [vmem:[%s8544_s0 + $0x34] sm:$0x2]  }
  0xbe   :  { %v4304_v30 = vld [vmem:[%s8544_s0 + $0x37d] sm:$0x10]   ;;  %v2683_v42 = vsel %vm235_vm2, %v4303_v25, %v2679_v35  ;;  %v4297_v58 = vld [vmem:[%s8544_s0 + $0x2cb] sm:$0x40]   ;;  %v2656_v23 = vsel %vm243_vm4, %v4296_v56, %v2652_v13  ;;  %v4329_v35 = vld [vmem:[%s8544_s0 + $0x53] sm:$0x4]   ;;  %v2780_v41 = vsel %vm227_vm0, %v4328_v34, %v4327_v28 }
  0xbf   :  { %v4305_v32 = vld [vmem:[%s8544_s0 + $0x39c] sm:$0x20]   ;;  %2595 = vrot.lane.b32.xlu1 %v2594_v26, %s4539_s18  ;;  %v2687_v49 = vsel %vm239_vm3, %v4304_v30, %v2683_v42  ;;  %v4255_v1 = vld [vmem:[%s8544_s0 + $0x11] sm:$0x1]   ;;  %v2660_v30 = vsel %vm247_vm5, %v4297_v58, %v2656_v23  ;;  %v4331_v42 = vld [vmem:[%s8544_s0 + $0x91] sm:$0x10]   ;;  %v2784_v45 = vsel %vm231_vm1, %v4329_v35, %v2780_v41 }
  0xc0   :  { %v4306_v36 = vld [vmem:[%s8544_s0 + $0x3bb] sm:$0x40]   ;;  %v2691_v59 = vsel %vm243_vm4, %v4305_v32, %v2687_v49  ;;  %v4256_v2 = vld [vmem:[%s8544_s0 + $0x30] sm:$0x2]   ;;  %v4332_v43 = vld [vmem:[%s8544_s0 + $0xb0] sm:$0x20]  }
  0xc1   :  { %v4307_v52 = vld [vmem:[%s8544_s0 + $0x3da] sm:$0x80]   ;;  %v4257_v3 = vld [vmem:[%s8544_s0 + $0x4f] sm:$0x4]   ;;  %v6806_v8 = vpop.permute.xlu1 %1127   ;;  %v2695_v12 = vsel %vm247_vm5, %v4306_v36, %v2691_v59  ;;  %v2500_v16 = vsel %vm227_vm0, %v4256_v2, %v4255_v1  ;;  %v4330_v36 = vld [vmem:[%s8544_s0 + $0x72] sm:$0x8]  }
  0xc2   :  { %2560 = vrot.lane.b32.xlu0 %v2559_v40, %s4539_s18  ;;  %v4298_v15 = vld [vmem:[%s8544_s0 + $0x2ea] sm:$0x80]   ;;  %v2504_v25 = vsel %vm231_vm1, %v4257_v3, %v2500_v16  ;;  %v2699_v38 = vsel %vm251_vm6, %v4307_v52, %v2695_v12  ;;  %v4333_v47 = vld [vmem:[%s8544_s0 + $0xcf] sm:$0x40]   ;;  %v4319_v49 = vld [vmem:[%s8544_s0 + $0x24] sm:$0x2]   ;;  %v2788_v56 = vsel %vm235_vm2, %v4330_v36, %v2784_v45 }
  0xc3   :  { %2421 = vrot.lane.b32.xlu2 %v2420_v48, %s4538_s13  ;;  %v4258_v19 = vld [vmem:[%s8544_s0 + $0x6e] sm:$0x8]   ;;  %v4318_v48 = vld [vmem:[%s8544_s0 + $0x5] sm:$0x1]   ;;  %v2664_v52 = vsel %vm251_vm6, %v4298_v15, %v2660_v30  ;;  %v2792_v3 = vsel %vm239_vm3, %v4331_v42, %v2788_v56  ;;  %v4334_v12 = vld [vmem:[%s8544_s0 + $0xee] sm:$0x80]  }
  0xc4   :  { %v4259_v21 = vld [vmem:[%s8544_s0 + $0x8d] sm:$0x10]   ;;  %v6821_v24 = vpop.permute.xlu2 %1267   ;;  %v6833_v29 = vpop.permute.xlu0 %1092   ;;  %v2508_v32 = vsel %vm235_vm2, %v4258_v19, %v2504_v25  ;;  %v2745_v58 = vsel %vm227_vm0, %v4319_v49, %v4318_v48  ;;  %v4320_v59 = vld [vmem:[%s8544_s0 + $0x43] sm:$0x4]   ;;  %v2796_v16 = vsel %vm243_vm4, %v4332_v43, %v2792_v3  ;;  %v2_v23 = vld [vmem:[%s8544_s0] ss:$4 sm:$0xff]  }
  0xc5   :  { %v4260_v26 = vld [vmem:[%s8544_s0 + $0xac] sm:$0x20]   ;;  %v2512_v39 = vsel %vm239_vm3, %v4259_v21, %v2508_v32  ;;  %v4321_v60 = vld [vmem:[%s8544_s0 + $0x62] sm:$0x8]   ;;  %v2749_v13 = vsel %vm231_vm1, %v4320_v59, %v2745_v58  ;;  %v3580_v25 = vld [vmem:[%s8544_s0 + $0x20] ss:$4 sm:$0xff]  }
  0xc6   :  { %v4261_v27 = vld [vmem:[%s8544_s0 + $0xcb] sm:$0x40]   ;;  %v2516_v44 = vsel %vm243_vm4, %v4260_v26, %v2512_v39  ;;  %v4322_v1 = vld [vmem:[%s8544_s0 + $0x81] sm:$0x10]   ;;  %v2753_v19 = vsel %vm235_vm2, %v4321_v60, %v2749_v13  ;;  %v3583_v32 = vld [vmem:[%s8544_s0 + $0x40] ss:$4 sm:$0xff]  }
  0xc7   :  { %v4262_v40 = vld [vmem:[%s8544_s0 + $0xea] sm:$0x80]   ;;  %v2520_v53 = vsel %vm247_vm5, %v4261_v27, %v2516_v44  ;;  %2700 = vrot.lane.b32.xlu1 %v2699_v38, %s4539_s18  ;;  %v4323_v15 = vld [vmem:[%s8544_s0 + $0xa0] sm:$0x20]   ;;  %v2800_v27 = vsel %vm247_vm5, %v4333_v47, %v2796_v16  ;;  %v2757_v28 = vsel %vm239_vm3, %v4322_v1, %v2753_v19  ;;  %v3586_v36 = vld [vmem:[%s8544_s0 + $0x60] ss:$4 sm:$0xff]  }
  0xc8   :  { %v2524_v2 = vsel %vm251_vm6, %v4262_v40, %v2520_v53  ;;  %v4324_v21 = vld [vmem:[%s8544_s0 + $0xbf] sm:$0x40]   ;;  %4 = vst.msk [vmem:[%s8545_s1] ss:$8 sm:$0xf] %vm3_vm7, %v2_v23   ;;  %v2761_v34 = vsel %vm243_vm4, %v4323_v15, %v2757_v28  ;;  %v2804_v41 = vsel %vm251_vm6, %v4334_v12, %v2800_v27 }
  0xc9   :  { %v6905_v26 = vpop.permute.xlu1 %1232   ;;  %v4325_v30 = vld [vmem:[%s8544_s0 + $0xde] sm:$0x80]   ;;  %3581 = vst.msk [vmem:[%s8545_s1 + $0x1] ss:$8 sm:$0xf] %vm3_vm7, %v3580_v25   ;;  %v2765_v39 = vsel %vm247_vm5, %v4324_v21, %v2761_v34 }
  0xca   :  { %2665 = vrot.lane.b32.xlu0 %v2664_v52, %s4539_s18  ;;  %3584 = vst.msk [vmem:[%s8545_s1 + $0x2] ss:$8 sm:$0xf] %vm3_vm7, %v3583_v32   ;;  %v3589_v40 = vld [vmem:[%s8544_s0 + $0x80] ss:$4 sm:$0xff]   ;;  %v2769_v44 = vsel %vm251_vm6, %v4325_v30, %v2765_v39 }
  0xcb   :  { %2525 = vrot.lane.b32.xlu2 %v2524_v2, %s4539_s18  ;;  %3587 = vst.msk [vmem:[%s8545_s1 + $0x3] ss:$8 sm:$0xf] %vm3_vm7, %v3586_v36   ;;  %v3592_v42 = vld [vmem:[%s8544_s0 + $0xa0] ss:$4 sm:$0xff]  }
  0xcc   :  { %v6927_v38 = vpop.permute.xlu0 %1197   ;;  %3590 = vst.msk [vmem:[%s8545_s1 + $0x4] ss:$8 sm:$0xf] %vm3_vm7, %v3589_v40   ;;  %v3595_v43 = vld [vmem:[%s8544_s0 + $0xc0] ss:$4 sm:$0xff]  }
  0xcd   :  { %v1373_v35 = vpop.permute.xlu2 %1372   ;;  %3593 = vst.msk [vmem:[%s8545_s1 + $0x5] ss:$8 sm:$0xf] %vm3_vm7, %v3592_v42   ;;  %v3598_v45 = vld [vmem:[%s8544_s0 + $0xe0] ss:$4 sm:$0xff]  }
  0xce   :  { %3596 = vst.msk [vmem:[%s8545_s1 + $0x6] ss:$8 sm:$0xf] %vm3_vm7, %v3595_v43   ;;  %v4282_v47 = vld [vmem:[%s8544_s0 + $0x201] sm:$0x1]  }
  0xcf   :  { %2805 = vrot.lane.b32.xlu1 %v2804_v41, %s4539_s18  ;;  %3599 = vst.msk [vmem:[%s8545_s1 + $0x7] ss:$8 sm:$0xf] %vm3_vm7, %v3598_v45   ;;  %v4283_v48 = vld [vmem:[%s8544_s0 + $0x220] sm:$0x2]  }
  0xd0   :  { %256 = vst.msk [vmem:[%s8545_s1] sm:$0xff] %vm255_vm8, %v6020_v46   ;;  %v2605_v49 = vsel %vm227_vm0, %v4283_v48, %v4282_v47  ;;  %v4284_v52 = vld [vmem:[%s8544_s0 + $0x23f] sm:$0x4]   ;;  %v4354_v16 = vld [vmem:[%s8544_s0 + $0x205] sm:$0x1]  }
  0xd1   :  { %v6981_v46 = vpop.permute.xlu1 %1337   ;;  %v4285_v53 = vld [vmem:[%s8544_s0 + $0x25e] sm:$0x8]   ;;  %1375 = vst.msk [vmem:[%s8545_s1] sm:$0xff] %vm1374_vm9, %v1373_v35   ;;  %v2609_v56 = vsel %vm231_vm1, %v4284_v52, %v2605_v49  ;;  %v4355_v21 = vld [vmem:[%s8544_s0 + $0x224] sm:$0x2]  }
  0xd2   :  { %2770 = vrot.lane.b32.xlu0 %v2769_v44, %s4539_s18  ;;  %v4286_v58 = vld [vmem:[%s8544_s0 + $0x27d] sm:$0x10]   ;;  %5 = vst.msk [vmem:[%s8545_s1] ss:$8 sm:$0xf0] %vm3_vm7, %v2_v23   ;;  %v2613_v2 = vsel %vm235_vm2, %v4285_v53, %v2609_v56 }
  0xd3   :  { %v4287_v59 = vld [vmem:[%s8544_s0 + $0x29c] sm:$0x20]   ;;  %3582 = vst.msk [vmem:[%s8545_s1 + $0x1] ss:$8 sm:$0xf0] %vm3_vm7, %v3580_v25   ;;  %v2617_v12 = vsel %vm239_vm3, %v4286_v58, %v2613_v2  ;;  %v2885_v25 = vsel %vm227_vm0, %v4355_v21, %v4354_v16 }
  0xd4   :  { %v7007_v1 = vpop.permute.xlu0 %1302   ;;  %v4288_v3 = vld [vmem:[%s8544_s0 + $0x2bb] sm:$0x40]   ;;  %3585 = vst.msk [vmem:[%s8545_s1 + $0x2] ss:$8 sm:$0xf0] %vm3_vm7, %v3583_v32   ;;  %v2621_v15 = vsel %vm243_vm4, %v4287_v59, %v2617_v12 }
  0xd5   :  { %v7001_v60 = vpop.permute.xlu2 %1476   ;;  %v4289_v13 = vld [vmem:[%s8544_s0 + $0x2da] sm:$0x80]   ;;  %3588 = vst.msk [vmem:[%s8545_s1 + $0x3] ss:$8 sm:$0xf0] %vm3_vm7, %v3586_v36   ;;  %v2625_v19 = vsel %vm247_vm5, %v4288_v3, %v2621_v15 }
  0xd6   :  { %3591 = vst.msk [vmem:[%s8545_s1 + $0x4] ss:$8 sm:$0xf0] %vm3_vm7, %v3589_v40   ;;  %v2629_v23 = vsel %vm251_vm6, %v4289_v13, %v2625_v19  ;;  %v4356_v27 = vld [vmem:[%s8544_s0 + $0x243] sm:$0x4]  }
  0xd7   :  { %3594 = vst.msk [vmem:[%s8545_s1 + $0x5] ss:$8 sm:$0xf0] %vm3_vm7, %v3592_v42   ;;  %2630 = vrot.lane.b32.xlu2 %v2629_v23, %s4539_s18  ;;  %v2889_v28 = vsel %vm231_vm1, %v4356_v27, %v2885_v25  ;;  %v4357_v30 = vld [vmem:[%s8544_s0 + $0x262] sm:$0x8]  }
  0xd8   :  { %3597 = vst.msk [vmem:[%s8545_s1 + $0x6] ss:$8 sm:$0xf0] %vm3_vm7, %v3595_v43   ;;  %v2893_v32 = vsel %vm235_vm2, %v4357_v30, %v2889_v28  ;;  %v4358_v34 = vld [vmem:[%s8544_s0 + $0x281] sm:$0x10]  }
  0xd9   :  { %v7063_v35 = vpop.permute.xlu1 %1441   ;;  %3600 = vst.msk [vmem:[%s8545_s1 + $0x7] ss:$8 sm:$0xf0] %vm3_vm7, %v3598_v45   ;;  %v2897_v36 = vsel %vm239_vm3, %v4358_v34, %v2893_v32  ;;  %v4359_v39 = vld [vmem:[%s8544_s0 + $0x2a0] sm:$0x20]  }
  0xda   :  { %3752 = vst.msk [vmem:[%s8545_s1 + $0x8] sm:$0xff] %vm255_vm8, %v6102_v22   ;;  %v2901_v22 = vsel %vm243_vm4, %v4359_v39, %v2897_v36  ;;  %v4360_v40 = vld [vmem:[%s8544_s0 + $0x2bf] sm:$0x40]   ;;  %v4345_v43 = vld [vmem:[%s8544_s0 + $0x115] sm:$0x1]  }
  0xdb   :  { %v4361_v41 = vld [vmem:[%s8544_s0 + $0x2de] sm:$0x80]   ;;  %3824 = vst.msk [vmem:[%s8545_s1 + $0x10] sm:$0xff] %vm255_vm8, %v6503_v51   ;;  %v2905_v51 = vsel %vm247_vm5, %v4360_v40, %v2901_v22  ;;  %v4346_v44 = vld [vmem:[%s8544_s0 + $0x134] sm:$0x2]  }
  0xdc   :  { %v7085_v42 = vpop.permute.xlu0 %1406   ;;  %3896 = vst.msk [vmem:[%s8545_s1 + $0x18] sm:$0xff] %vm255_vm8, %v6833_v29   ;;  %v2909_v29 = vsel %vm251_vm6, %v4361_v41, %v2905_v51  ;;  %v2850_v47 = vsel %vm227_vm0, %v4346_v44, %v4345_v43  ;;  %v4347_v48 = vld [vmem:[%s8544_s0 + $0x153] sm:$0x4]   ;;  %v3601_v59 = vld [vmem:[%s8544_s0 + $0x100] ss:$4 sm:$0xff]  }
  0xdd   :  { %v7099_v45 = vpop.permute.xlu2 %1581   ;;  %v4348_v49 = vld [vmem:[%s8544_s0 + $0x172] sm:$0x8]   ;;  %3689 = vst.msk [vmem:[%s8545_s1 + $0x20] sm:$0xff] %vm255_vm8, %v6122_v31   ;;  %2910 = vrot.lane.b32.xlu1 %v2909_v29, %s4539_s18  ;;  %v2854_v31 = vsel %vm231_vm1, %v4347_v48, %v2850_v47  ;;  %v3604_v2 = vld [vmem:[%s8544_s0 + $0x120] ss:$4 sm:$0xff]  }
  0xde   :  { %v4349_v52 = vld [vmem:[%s8544_s0 + $0x191] sm:$0x10]   ;;  %3761 = vst.msk [vmem:[%s8545_s1 + $0x28] sm:$0xff] %vm255_vm8, %v6326_v11   ;;  %v2858_v11 = vsel %vm235_vm2, %v4348_v49, %v2854_v31  ;;  %v3607_v3 = vld [vmem:[%s8544_s0 + $0x140] ss:$4 sm:$0xff]  }
  0xdf   :  { %v4350_v53 = vld [vmem:[%s8544_s0 + $0x1b0] sm:$0x20]   ;;  %3833 = vst.msk [vmem:[%s8545_s1 + $0x30] sm:$0xff] %vm255_vm8, %v6416_v0   ;;  %v2862_v0 = vsel %vm239_vm3, %v4349_v52, %v2858_v11  ;;  %v3610_v13 = vld [vmem:[%s8544_s0 + $0x160] ss:$4 sm:$0xff]  }
  0xe0   :  { %v4351_v56 = vld [vmem:[%s8544_s0 + $0x1cf] sm:$0x40]   ;;  %3905 = vst.msk [vmem:[%s8545_s1 + $0x38] sm:$0xff] %vm255_vm8, %v6806_v8   ;;  %v2866_v8 = vsel %vm243_vm4, %v4350_v53, %v2862_v0  ;;  %v3613_v16 = vld [vmem:[%s8544_s0 + $0x180] ss:$4 sm:$0xff]  }
  0xe1   :  { %v4352_v58 = vld [vmem:[%s8544_s0 + $0x1ee] sm:$0x80]   ;;  %v2870_v12 = vsel %vm247_vm5, %v4351_v56, %v2866_v8  ;;  %3603 = vst.msk [vmem:[%s8545_s1 + $0x40] ss:$8 sm:$0xf0] %vm3_vm7, %v3601_v59   ;;  %v7298_v0 = vpop.permute.xlu1 %1546  }
  0xe2   :  { %v2874_v15 = vsel %vm251_vm6, %v4352_v58, %v2870_v12  ;;  %3606 = vst.msk [vmem:[%s8545_s1 + $0x41] ss:$8 sm:$0xf0] %vm3_vm7, %v3604_v2   ;;  %v3616_v19 = vld [vmem:[%s8544_s0 + $0x1a0] ss:$4 sm:$0xff]  }
  0xe3   :  { %2875 = vrot.lane.b32.xlu0 %v2874_v15, %s4539_s18  ;;  %3609 = vst.msk [vmem:[%s8545_s1 + $0x42] ss:$8 sm:$0xf0] %vm3_vm7, %v3607_v3   ;;  %v3619_v21 = vld [vmem:[%s8544_s0 + $0x1c0] ss:$4 sm:$0xff]  }
  0xe4   :  { %3612 = vst.msk [vmem:[%s8545_s1 + $0x43] ss:$8 sm:$0xf0] %vm3_vm7, %v3610_v13   ;;  %v3622_v23 = vld [vmem:[%s8544_s0 + $0x1e0] ss:$4 sm:$0xff]  }
  0xe5   :  { %3615 = vst.msk [vmem:[%s8545_s1 + $0x44] ss:$8 sm:$0xf0] %vm3_vm7, %v3613_v16   ;;  %v4309_v25 = vld [vmem:[%s8544_s0 + $0x311] sm:$0x1]  }
  0xe6   :  { %3618 = vst.msk [vmem:[%s8545_s1 + $0x45] ss:$8 sm:$0xf0] %vm3_vm7, %v3616_v19   ;;  %v4310_v27 = vld [vmem:[%s8544_s0 + $0x330] sm:$0x2]  }
  0xe7   :  { %3621 = vst.msk [vmem:[%s8545_s1 + $0x46] ss:$8 sm:$0xf0] %vm3_vm7, %v3619_v21   ;;  %v2710_v28 = vsel %vm227_vm0, %v4310_v27, %v4309_v25  ;;  %v4311_v30 = vld [vmem:[%s8544_s0 + $0x34f] sm:$0x4]  }
  0xe8   :  { %3624 = vst.msk [vmem:[%s8545_s1 + $0x47] ss:$8 sm:$0xf0] %vm3_vm7, %v3622_v23   ;;  %v2714_v32 = vsel %vm231_vm1, %v4311_v30, %v2710_v28  ;;  %v4312_v34 = vld [vmem:[%s8544_s0 + $0x36e] sm:$0x8]  }
  0xe9   :  { %3707 = vst.msk [vmem:[%s8545_s1 + $0x60] sm:$0xff] %vm255_vm8, %v6095_v18   ;;  %v2718_v18 = vsel %vm235_vm2, %v4312_v34, %v2714_v32  ;;  %v4313_v36 = vld [vmem:[%s8544_s0 + $0x38d] sm:$0x10]   ;;  %v4381_v51 = vld [vmem:[%s8544_s0 + $0x315] sm:$0x1]  }
  0xea   :  { %v4314_v39 = vld [vmem:[%s8544_s0 + $0x3ac] sm:$0x20]   ;;  %3994 = vst.msk [vmem:[%s8545_s1 + $0x60] sm:$0xff] %vm1374_vm9, %v7001_v60   ;;  %v2722_v60 = vsel %vm239_vm3, %v4313_v36, %v2718_v18  ;;  %v4382_v44 = vld [vmem:[%s8544_s0 + $0x334] sm:$0x2]  }
  0xeb   :  { %v4315_v22 = vld [vmem:[%s8544_s0 + $0x3cb] sm:$0x40]   ;;  %3602 = vst.msk [vmem:[%s8545_s1 + $0x40] ss:$8 sm:$0xf] %vm3_vm7, %v3601_v59   ;;  %v2726_v41 = vsel %vm243_vm4, %v4314_v39, %v2722_v60  ;;  %v2990_v47 = vsel %vm227_vm0, %v4382_v44, %v4381_v51  ;;  %v7509_v39 = vpop.permute.xlu2 %1686  }
  0xec   :  { %v4316_v40 = vld [vmem:[%s8544_s0 + $0x3ea] sm:$0x80]   ;;  %3605 = vst.msk [vmem:[%s8545_s1 + $0x41] ss:$8 sm:$0xf] %vm3_vm7, %v3604_v2   ;;  %v2730_v43 = vsel %vm247_vm5, %v4315_v22, %v2726_v41  ;;  %v7526_v41 = vpop.permute.xlu1 %1651  }
  0xed   :  { %3608 = vst.msk [vmem:[%s8545_s1 + $0x42] ss:$8 sm:$0xf] %vm3_vm7, %v3607_v3   ;;  %v2734_v29 = vsel %vm251_vm6, %v4316_v40, %v2730_v43  ;;  %v4383_v48 = vld [vmem:[%s8544_s0 + $0x353] sm:$0x4]  }
  0xee   :  { %3611 = vst.msk [vmem:[%s8545_s1 + $0x43] ss:$8 sm:$0xf] %vm3_vm7, %v3610_v13   ;;  %2735 = vrot.lane.b32.xlu2 %v2734_v29, %s4539_s18  ;;  %v2994_v49 = vsel %vm231_vm1, %v4383_v48, %v2990_v47  ;;  %v4384_v31 = vld [vmem:[%s8544_s0 + $0x372] sm:$0x8]  }
  0xef   :  { %3614 = vst.msk [vmem:[%s8545_s1 + $0x44] ss:$8 sm:$0xf] %vm3_vm7, %v3613_v16   ;;  %v2998_v52 = vsel %vm235_vm2, %v4384_v31, %v2994_v49  ;;  %v4385_v53 = vld [vmem:[%s8544_s0 + $0x391] sm:$0x10]  }
  0xf0   :  { %3617 = vst.msk [vmem:[%s8545_s1 + $0x45] ss:$8 sm:$0xf] %vm3_vm7, %v3616_v19   ;;  %v3002_v11 = vsel %vm239_vm3, %v4385_v53, %v2998_v52  ;;  %v4386_v56 = vld [vmem:[%s8544_s0 + $0x3b0] sm:$0x20]  }
  0xf1   :  { %3620 = vst.msk [vmem:[%s8545_s1 + $0x46] ss:$8 sm:$0xf] %vm3_vm7, %v3619_v21   ;;  %v3006_v58 = vsel %vm243_vm4, %v4386_v56, %v3002_v11  ;;  %v4387_v59 = vld [vmem:[%s8544_s0 + $0x3cf] sm:$0x40]  }
  0xf2   :  { %3623 = vst.msk [vmem:[%s8545_s1 + $0x47] ss:$8 sm:$0xf] %vm3_vm7, %v3622_v23   ;;  %v3010_v8 = vsel %vm247_vm5, %v4387_v59, %v3006_v58  ;;  %v4388_v2 = vld [vmem:[%s8544_s0 + $0x3ee] sm:$0x80]  }
  0xf3   :  { %3779 = vst.msk [vmem:[%s8545_s1 + $0x68] sm:$0xff] %vm255_vm8, %v6212_v14   ;;  %v3014_v14 = vsel %vm251_vm6, %v4388_v2, %v3010_v8  ;;  %v4372_v3 = vld [vmem:[%s8544_s0 + $0x305] sm:$0x1]   ;;  %v3649_v25 = vld [vmem:[%s8544_s0 + $0x300] ss:$4 sm:$0xff]  }
  0xf4   :  { %v4373_v12 = vld [vmem:[%s8544_s0 + $0x324] sm:$0x2]   ;;  %3851 = vst.msk [vmem:[%s8545_s1 + $0x70] sm:$0xff] %vm255_vm8, %v6602_v50   ;;  %3015 = vrot.lane.b32.xlu1 %v3014_v14, %s4539_s18  ;;  %v3652_v27 = vld [vmem:[%s8544_s0 + $0x320] ss:$4 sm:$0xff]  }
  0xf5   :  { %v2955_v50 = vsel %vm227_vm0, %v4373_v12, %v4372_v3  ;;  %v4374_v13 = vld [vmem:[%s8544_s0 + $0x343] sm:$0x4]   ;;  %3923 = vst.msk [vmem:[%s8545_s1 + $0x78] sm:$0xff] %vm255_vm8, %v6927_v38   ;;  %v3658_v28 = vld [vmem:[%s8544_s0 + $0x360] ss:$4 sm:$0xff]  }
  0xf6   :  { %v4375_v15 = vld [vmem:[%s8544_s0 + $0x362] sm:$0x8]   ;;  %v2959_v38 = vsel %vm231_vm1, %v4374_v13, %v2955_v50  ;;  %3698 = vst.msk [vmem:[%s8545_s1 + $0x40] sm:$0xff] %vm255_vm8, %v5993_v33   ;;  %v3661_v30 = vld [vmem:[%s8544_s0 + $0x380] ss:$4 sm:$0xff]  }
  0xf7   :  { %v4376_v16 = vld [vmem:[%s8544_s0 + $0x381] sm:$0x10]   ;;  %v2963_v33 = vsel %vm235_vm2, %v4375_v15, %v2959_v38  ;;  %3985 = vst.msk [vmem:[%s8545_s1 + $0x40] sm:$0xff] %vm1374_vm9, %v7063_v35   ;;  %v3664_v32 = vld [vmem:[%s8544_s0 + $0x3a0] ss:$4 sm:$0xff]   ;;  %v7610_v38 = vpop.permute.xlu2 %1791  }
  0xf8   :  { %v4377_v19 = vld [vmem:[%s8544_s0 + $0x3a0] sm:$0x20]   ;;  %v2967_v35 = vsel %vm239_vm3, %v4376_v16, %v2963_v33  ;;  %3770 = vst.msk [vmem:[%s8545_s1 + $0x48] sm:$0xff] %vm255_vm8, %v6299_v61   ;;  %v3667_v34 = vld [vmem:[%s8544_s0 + $0x3c0] ss:$4 sm:$0xff]   ;;  %v7620_v33 = vpop.permute.xlu1 %1756  }
  0xf9   :  { %v4378_v21 = vld [vmem:[%s8544_s0 + $0x3bf] sm:$0x40]   ;;  %v2971_v61 = vsel %vm243_vm4, %v4377_v19, %v2967_v35  ;;  %3842 = vst.msk [vmem:[%s8545_s1 + $0x50] sm:$0xff] %vm255_vm8, %v6629_v9   ;;  %v3670_v18 = vld [vmem:[%s8544_s0 + $0x3e0] ss:$4 sm:$0xff]  }
  0xfa   :  { %v4379_v23 = vld [vmem:[%s8544_s0 + $0x3de] sm:$0x80]   ;;  %v2975_v9 = vsel %vm247_vm5, %v4378_v21, %v2971_v61  ;;  %3914 = vst.msk [vmem:[%s8545_s1 + $0x58] sm:$0xff] %vm255_vm8, %v6719_v10   ;;  %v3634_v29 = vld [vmem:[%s8544_s0 + $0x260] ss:$4 sm:$0xff]  }
  0xfb   :  { %v2979_v10 = vsel %vm251_vm6, %v4379_v23, %v2975_v9  ;;  %3976 = vst.msk [vmem:[%s8545_s1 + $0x20] sm:$0xff] %vm1374_vm9, %v7085_v42   ;;  %v3655_v42 = vld [vmem:[%s8544_s0 + $0x340] ss:$4 sm:$0xff]   ;;  %v4337_v36 = vld [vmem:[%s8544_s0 + $0x124] sm:$0x2]  }
  0xfc   :  { %2980 = vrot.lane.b32.xlu0 %v2979_v10, %s4539_s18  ;;  %3650 = vst.msk [vmem:[%s8545_s1 + $0xc0] ss:$8 sm:$0xf] %vm3_vm7, %v3649_v25   ;;  %v4338_v22 = vld [vmem:[%s8544_s0 + $0x143] sm:$0x4]  }
  0xfd   :  { %3653 = vst.msk [vmem:[%s8545_s1 + $0xc1] ss:$8 sm:$0xf] %vm3_vm7, %v3652_v27   ;;  %v4339_v40 = vld [vmem:[%s8544_s0 + $0x162] sm:$0x8]  }
  0xfe   :  { %3656 = vst.msk [vmem:[%s8545_s1 + $0xc2] ss:$8 sm:$0xf] %vm3_vm7, %v3655_v42   ;;  %v4340_v43 = vld [vmem:[%s8544_s0 + $0x181] sm:$0x10]  }
  0xff   :  { %3659 = vst.msk [vmem:[%s8545_s1 + $0xc3] ss:$8 sm:$0xf] %vm3_vm7, %v3658_v28   ;;  %v4341_v44 = vld [vmem:[%s8544_s0 + $0x1a0] sm:$0x20]  }
 0x100   :  { %3662 = vst.msk [vmem:[%s8545_s1 + $0xc4] ss:$8 sm:$0xf] %vm3_vm7, %v3661_v30   ;;  %v4342_v48 = vld [vmem:[%s8544_s0 + $0x1bf] sm:$0x40]  }
 0x101   :  { %3665 = vst.msk [vmem:[%s8545_s1 + $0xc5] ss:$8 sm:$0xf] %vm3_vm7, %v3664_v32   ;;  %v3637_v31 = vld [vmem:[%s8544_s0 + $0x280] ss:$4 sm:$0xff]  }
 0x102   :  { %3668 = vst.msk [vmem:[%s8545_s1 + $0xc6] ss:$8 sm:$0xf] %vm3_vm7, %v3667_v34   ;;  %v4343_v53 = vld [vmem:[%s8544_s0 + $0x1de] sm:$0x80]  }
 0x103   :  { %3671 = vst.msk [vmem:[%s8545_s1 + $0xc7] ss:$8 sm:$0xf] %vm3_vm7, %v3670_v18   ;;  %v3640_v11 = vld [vmem:[%s8544_s0 + $0x2a0] ss:$4 sm:$0xff]  }
 0x104   :  { %3734 = vst.msk [vmem:[%s8545_s1 + $0xc0] sm:$0xff] %vm255_vm8, %v6224_v20   ;;  %v7477_v20 = vpop.permute.xlu0 %1511   ;;  %v4408_v58 = vld [vmem:[%s8544_s0 + $0x109] sm:$0x1]   ;;  %v3643_v59 = vld [vmem:[%s8544_s0 + $0x2c0] ss:$4 sm:$0xff]  }
 0x105   :  { %4021 = vst.msk [vmem:[%s8545_s1 + $0xc0] sm:$0xff] %vm1374_vm9, %v7099_v45   ;;  %v4336_v45 = vld [vmem:[%s8544_s0 + $0x105] sm:$0x1]   ;;  %v4409_v2 = vld [vmem:[%s8544_s0 + $0x128] sm:$0x2]  }
 0x106   :  { %3651 = vst.msk [vmem:[%s8545_s1 + $0xc0] ss:$8 sm:$0xf0] %vm3_vm7, %v3649_v25   ;;  %v2815_v60 = vsel %vm227_vm0, %v4337_v36, %v4336_v45  ;;  %v3646_v14 = vld [vmem:[%s8544_s0 + $0x2e0] ss:$4 sm:$0xff]   ;;  %v3095_v12 = vsel %vm227_vm0, %v4409_v2, %v4408_v58  ;;  %v7690_v36 = vpop.permute.xlu2 %1896  }
 0x107   :  { %3654 = vst.msk [vmem:[%s8545_s1 + $0xc1] ss:$8 sm:$0xf0] %vm3_vm7, %v3652_v27   ;;  %v2819_v51 = vsel %vm231_vm1, %v4338_v22, %v2815_v60  ;;  %v4410_v50 = vld [vmem:[%s8544_s0 + $0x147] sm:$0x4]   ;;  %v7700_v22 = vpop.permute.xlu1 %1861  }
 0x108   :  { %3657 = vst.msk [vmem:[%s8545_s1 + $0xc2] ss:$8 sm:$0xf0] %vm3_vm7, %v3655_v42   ;;  %v2823_v47 = vsel %vm235_vm2, %v4339_v40, %v2819_v51  ;;  %v3099_v13 = vsel %vm231_vm1, %v4410_v50, %v3095_v12  ;;  %v4411_v15 = vld [vmem:[%s8544_s0 + $0x166] sm:$0x8]  }
 0x109   :  { %3660 = vst.msk [vmem:[%s8545_s1 + $0xc3] ss:$8 sm:$0xf0] %vm3_vm7, %v3658_v28   ;;  %v2827_v52 = vsel %vm239_vm3, %v4340_v43, %v2823_v47  ;;  %v3103_v16 = vsel %vm235_vm2, %v4411_v15, %v3099_v13  ;;  %v4412_v19 = vld [vmem:[%s8544_s0 + $0x185] sm:$0x10]  }
 0x10a   :  { %3663 = vst.msk [vmem:[%s8545_s1 + $0xc4] ss:$8 sm:$0xf0] %vm3_vm7, %v3661_v30   ;;  %v2831_v56 = vsel %vm243_vm4, %v4341_v44, %v2827_v52  ;;  %v3107_v21 = vsel %vm239_vm3, %v4412_v19, %v3103_v16  ;;  %v4413_v35 = vld [vmem:[%s8544_s0 + $0x1a4] sm:$0x20]  }
 0x10b   :  { %3666 = vst.msk [vmem:[%s8545_s1 + $0xc5] ss:$8 sm:$0xf0] %vm3_vm7, %v3664_v32   ;;  %v2835_v8 = vsel %vm247_vm5, %v4342_v48, %v2831_v56  ;;  %v4414_v23 = vld [vmem:[%s8544_s0 + $0x1c3] sm:$0x40]  }
 0x10c   :  { %3669 = vst.msk [vmem:[%s8545_s1 + $0xc6] ss:$8 sm:$0xf0] %vm3_vm7, %v3667_v34   ;;  %v7554_v49 = vpop.permute.xlu0 %1616   ;;  %v2839_v3 = vsel %vm251_vm6, %v4343_v53, %v2835_v8  ;;  %v4415_v61 = vld [vmem:[%s8544_s0 + $0x1e2] sm:$0x80]  }
 0x10d   :  { %3672 = vst.msk [vmem:[%s8545_s1 + $0xc7] ss:$8 sm:$0xf0] %vm3_vm7, %v3670_v18   ;;  %2840 = vrot.lane.b32.xlu2 %v2839_v3, %s4539_s18  ;;  %v4399_v25 = vld [vmem:[%s8544_s0 + $0x19] sm:$0x1]  }
 0x10e   :  { %3806 = vst.msk [vmem:[%s8545_s1 + $0xc8] sm:$0xff] %vm255_vm8, %v6314_v5   ;;  %v3625_v5 = vld [vmem:[%s8544_s0 + $0x200] ss:$4 sm:$0xff]   ;;  %v4400_v10 = vld [vmem:[%s8544_s0 + $0x38] sm:$0x2]  }
 0x10f   :  { %3878 = vst.msk [vmem:[%s8545_s1 + $0xd0] sm:$0xff] %vm255_vm8, %v6704_v57   ;;  %v3628_v57 = vld [vmem:[%s8544_s0 + $0x220] ss:$4 sm:$0xff]   ;;  %v3060_v42 = vsel %vm227_vm0, %v4400_v10, %v4399_v25  ;;  %v4401_v28 = vld [vmem:[%s8544_s0 + $0x57] sm:$0x4]   ;;  %v7791_v3 = vpop.permute.xlu1 %1966  }
 0x110   :  { %3950 = vst.msk [vmem:[%s8545_s1 + $0xd8] sm:$0xff] %vm255_vm8, %v7007_v1   ;;  %v3631_v1 = vld [vmem:[%s8544_s0 + $0x240] ss:$4 sm:$0xff]   ;;  %v3064_v30 = vsel %vm231_vm1, %v4401_v28, %v3060_v42  ;;  %v4402_v32 = vld [vmem:[%s8544_s0 + $0x76] sm:$0x8]  }
 0x111   :  { %3627 = vst.msk [vmem:[%s8545_s1 + $0x80] ss:$8 sm:$0xf0] %vm3_vm7, %v3625_v5   ;;  %v3068_v34 = vsel %vm235_vm2, %v4402_v32, %v3064_v30  ;;  %v4403_v18 = vld [vmem:[%s8544_s0 + $0x95] sm:$0x10]  }
 0x112   :  { %3630 = vst.msk [vmem:[%s8545_s1 + $0x81] ss:$8 sm:$0xf0] %vm3_vm7, %v3628_v57   ;;  %v4404_v45 = vld [vmem:[%s8544_s0 + $0xb4] sm:$0x20]  }
 0x113   :  { %3633 = vst.msk [vmem:[%s8545_s1 + $0x82] ss:$8 sm:$0xf0] %vm3_vm7, %v3631_v1   ;;  %v4405_v60 = vld [vmem:[%s8544_s0 + $0xd3] sm:$0x40]  }
 0x114   :  { %3636 = vst.msk [vmem:[%s8545_s1 + $0x83] ss:$8 sm:$0xf0] %vm3_vm7, %v3634_v29   ;;  %v7642_v9 = vpop.permute.xlu0 %1721   ;;  %v4363_v43 = vld [vmem:[%s8544_s0 + $0x215] sm:$0x1]  }
 0x115   :  { %3639 = vst.msk [vmem:[%s8545_s1 + $0x84] ss:$8 sm:$0xf0] %vm3_vm7, %v3637_v31   ;;  %v4365_v47 = vld [vmem:[%s8544_s0 + $0x253] sm:$0x4]  }
 0x116   :  { %3642 = vst.msk [vmem:[%s8545_s1 + $0x85] ss:$8 sm:$0xf0] %vm3_vm7, %v3640_v11   ;;  %v4366_v48 = vld [vmem:[%s8544_s0 + $0x272] sm:$0x8]  }
 0x117   :  { %3645 = vst.msk [vmem:[%s8545_s1 + $0x86] ss:$8 sm:$0xf0] %vm3_vm7, %v3643_v59   ;;  %v4368_v52 = vld [vmem:[%s8544_s0 + $0x2b0] sm:$0x20]  }
 0x118   :  { %3648 = vst.msk [vmem:[%s8545_s1 + $0x87] ss:$8 sm:$0xf0] %vm3_vm7, %v3646_v14   ;;  %v4369_v53 = vld [vmem:[%s8544_s0 + $0x2cf] sm:$0x40]  }
 0x119   :  { %3725 = vst.msk [vmem:[%s8545_s1 + $0xa0] sm:$0xff] %vm255_vm8, %v6000_v37   ;;  %v3111_v37 = vsel %vm243_vm4, %v4413_v35, %v3107_v21  ;;  %v4435_v56 = vld [vmem:[%s8544_s0 + $0x219] sm:$0x1]   ;;  %v4426_v35 = vld [vmem:[%s8544_s0 + $0x209] sm:$0x1]  }
 0x11a   :  { %4012 = vst.msk [vmem:[%s8545_s1 + $0xa0] sm:$0xff] %vm1374_vm9, %v7298_v0   ;;  %v3115_v0 = vsel %vm247_vm5, %v4414_v23, %v3111_v37  ;;  %v4436_v58 = vld [vmem:[%s8544_s0 + $0x238] sm:$0x2]   ;;  %v4427_v37 = vld [vmem:[%s8544_s0 + $0x228] sm:$0x2]  }
 0x11b   :  { %3626 = vst.msk [vmem:[%s8545_s1 + $0x80] ss:$8 sm:$0xf] %vm3_vm7, %v3625_v5   ;;  %v3119_v27 = vsel %vm251_vm6, %v4415_v61, %v3115_v0  ;;  %v3072_v5 = vsel %vm239_vm3, %v4403_v18, %v3068_v34  ;;  %v4437_v8 = vld [vmem:[%s8544_s0 + $0x257] sm:$0x4]   ;;  %v3165_v23 = vsel %vm227_vm0, %v4427_v37, %v4426_v35 }
 0x11c   :  { %3629 = vst.msk [vmem:[%s8545_s1 + $0x81] ss:$8 sm:$0xf] %vm3_vm7, %v3628_v57   ;;  %3120 = vrot.lane.b32.xlu1 %v3119_v27, %s4539_s18  ;;  %v3076_v57 = vsel %vm243_vm4, %v4404_v45, %v3072_v5  ;;  %v7718_v44 = vpop.permute.xlu0 %1826   ;;  %v4438_v2 = vld [vmem:[%s8544_s0 + $0x276] sm:$0x8]  }
 0x11d   :  { %3632 = vst.msk [vmem:[%s8545_s1 + $0x82] ss:$8 sm:$0xf] %vm3_vm7, %v3631_v1   ;;  %v3080_v40 = vsel %vm247_vm5, %v4405_v60, %v3076_v57  ;;  %v4406_v1 = vld [vmem:[%s8544_s0 + $0xf2] sm:$0x80]  }
 0x11e   :  { %3635 = vst.msk [vmem:[%s8545_s1 + $0x83] ss:$8 sm:$0xf] %vm3_vm7, %v3634_v29   ;;  %v3084_v51 = vsel %vm251_vm6, %v4406_v1, %v3080_v40  ;;  %v4364_v29 = vld [vmem:[%s8544_s0 + $0x234] sm:$0x2]  }
 0x11f   :  { %3638 = vst.msk [vmem:[%s8545_s1 + $0x84] ss:$8 sm:$0xf] %vm3_vm7, %v3637_v31   ;;  %3085 = vrot.lane.b32.xlu0 %v3084_v51, %s4539_s18  ;;  %v4367_v31 = vld [vmem:[%s8544_s0 + $0x291] sm:$0x10]   ;;  %v7914_v51 = vpop.permute.xlu1 %2071  }
 0x120   :  { %3641 = vst.msk [vmem:[%s8545_s1 + $0x85] ss:$8 sm:$0xf] %vm3_vm7, %v3640_v11   ;;  %v4370_v11 = vld [vmem:[%s8544_s0 + $0x2ee] sm:$0x80]  }
 0x121   :  { %3644 = vst.msk [vmem:[%s8545_s1 + $0x86] ss:$8 sm:$0xf] %vm3_vm7, %v3643_v59   ;;  %v3200_v59 = vsel %vm227_vm0, %v4436_v58, %v4435_v56  ;;  %v4439_v50 = vld [vmem:[%s8544_s0 + $0x295] sm:$0x10]  }
 0x122   :  { %3647 = vst.msk [vmem:[%s8545_s1 + $0x87] ss:$8 sm:$0xf] %vm3_vm7, %v3646_v14   ;;  %v7789_v14 = vpop.permute.xlu2 %2001   ;;  %v3204_v12 = vsel %vm231_vm1, %v4437_v8, %v3200_v59  ;;  %v4440_v13 = vld [vmem:[%s8544_s0 + $0x2b4] sm:$0x20]  }
 0x123   :  { %3743 = vst.msk [vmem:[%s8545_s1 + $0xe0] sm:$0xff] %vm255_vm8, %v6197_v6   ;;  %v2920_v6 = vsel %vm227_vm0, %v4364_v29, %v4363_v43  ;;  %v3208_v15 = vsel %vm235_vm2, %v4438_v2, %v3204_v12  ;;  %v4441_v16 = vld [vmem:[%s8544_s0 + $0x2d3] sm:$0x40]   ;;  %v4428_v61 = vld [vmem:[%s8544_s0 + $0x247] sm:$0x4]  }
 0x124   :  { %3797 = vst.msk [vmem:[%s8545_s1 + $0xa8] sm:$0xff] %vm255_vm8, %v6401_v55   ;;  %v2924_v55 = vsel %vm231_vm1, %v4365_v47, %v2920_v6  ;;  %v4442_v19 = vld [vmem:[%s8544_s0 + $0x2f2] sm:$0x80]   ;;  %v7819_v21 = vpop.permute.xlu0 %1931   ;;  %v4429_v0 = vld [vmem:[%s8544_s0 + $0x266] sm:$0x8]   ;;  %v3169_v25 = vsel %vm231_vm1, %v4428_v61, %v3165_v23 }
 0x125   :  { %3815 = vst.msk [vmem:[%s8545_s1 + $0xe8] sm:$0xff] %vm255_vm8, %v6530_v4   ;;  %v2928_v4 = vsel %vm235_vm2, %v4366_v48, %v2924_v55  ;;  %v4430_v10 = vld [vmem:[%s8544_s0 + $0x285] sm:$0x10]   ;;  %v3173_v42 = vsel %vm235_vm2, %v4429_v0, %v3169_v25  ;;  %v4462_v48 = vld [vmem:[%s8544_s0 + $0xd] sm:$0x1]  }
 0x126   :  { %3869 = vst.msk [vmem:[%s8545_s1 + $0xb0] sm:$0xff] %vm255_vm8, %v6731_v17   ;;  %v2932_v17 = vsel %vm239_vm3, %v4367_v31, %v2928_v4  ;;  %v4431_v27 = vld [vmem:[%s8544_s0 + $0x2a4] sm:$0x20]   ;;  %v4463_v55 = vld [vmem:[%s8544_s0 + $0x2c] sm:$0x2]  }
 0x127   :  { %3887 = vst.msk [vmem:[%s8545_s1 + $0xf0] sm:$0xff] %vm255_vm8, %v6617_v63   ;;  %v2936_v63 = vsel %vm243_vm4, %v4368_v52, %v2932_v17  ;;  %v4432_v28 = vld [vmem:[%s8544_s0 + $0x2c3] sm:$0x40]   ;;  %v3305_v31 = vsel %vm227_vm0, %v4463_v55, %v4462_v48  ;;  %v4464_v52 = vld [vmem:[%s8544_s0 + $0x4b] sm:$0x4]   ;;  %v8018_v23 = vpop.permute.xlu1 %2176  }
 0x128   :  { %3941 = vst.msk [vmem:[%s8545_s1 + $0xb8] sm:$0xff] %vm255_vm8, %v6821_v24   ;;  %v2940_v24 = vsel %vm247_vm5, %v4369_v53, %v2936_v63  ;;  %v4433_v30 = vld [vmem:[%s8544_s0 + $0x2e2] sm:$0x80]   ;;  %v4465_v4 = vld [vmem:[%s8544_s0 + $0x6a] sm:$0x8]   ;;  %v3309_v53 = vsel %vm231_vm1, %v4464_v52, %v3305_v31 }
 0x129   :  { %3959 = vst.msk [vmem:[%s8545_s1 + $0xf8] sm:$0xff] %vm255_vm8, %v6981_v46   ;;  %v2944_v46 = vsel %vm251_vm6, %v4370_v11, %v2940_v24  ;;  %v4390_v32 = vld [vmem:[%s8544_s0 + $0x9] sm:$0x1]   ;;  %v4466_v11 = vld [vmem:[%s8544_s0 + $0x89] sm:$0x10]   ;;  %v3313_v58 = vsel %vm235_vm2, %v4465_v4, %v3309_v53 }
 0x12a   :  { %3716 = vst.msk [vmem:[%s8545_s1 + $0x80] sm:$0xff] %vm255_vm8, %v5900_v54   ;;  %2945 = vrot.lane.b32.xlu2 %v2944_v46, %s4539_s18  ;;  %v3212_v54 = vsel %vm239_vm3, %v4439_v50, %v3208_v15  ;;  %v4391_v34 = vld [vmem:[%s8544_s0 + $0x28] sm:$0x2]   ;;  %v7912_v1 = vpop.permute.xlu2 %2106   ;;  %v4467_v17 = vld [vmem:[%s8544_s0 + $0xa8] sm:$0x20]   ;;  %v3317_v2 = vsel %vm239_vm3, %v4466_v11, %v3313_v58 }
 0x12b   :  { %4003 = vst.msk [vmem:[%s8545_s1 + $0x80] sm:$0xff] %vm1374_vm9, %v7477_v20   ;;  %v3216_v20 = vsel %vm243_vm4, %v4440_v13, %v3212_v54  ;;  %v3025_v18 = vsel %vm227_vm0, %v4391_v34, %v4390_v32  ;;  %v4392_v5 = vld [vmem:[%s8544_s0 + $0x47] sm:$0x4]   ;;  %v4468_v63 = vld [vmem:[%s8544_s0 + $0xc7] sm:$0x40]   ;;  %v3321_v13 = vsel %vm243_vm4, %v4467_v17, %v3317_v2 }
 0x12c   :  { %3788 = vst.msk [vmem:[%s8545_s1 + $0x88] sm:$0xff] %vm255_vm8, %v6428_v7   ;;  %v3220_v7 = vsel %vm247_vm5, %v4441_v16, %v3216_v20  ;;  %v4393_v45 = vld [vmem:[%s8544_s0 + $0x66] sm:$0x8]   ;;  %v3029_v57 = vsel %vm231_vm1, %v4392_v5, %v3025_v18  ;;  %v7929_v47 = vpop.permute.xlu0 %2036   ;;  %v4469_v59 = vld [vmem:[%s8544_s0 + $0xe6] sm:$0x80]   ;;  %v3325_v54 = vsel %vm247_vm5, %v4468_v63, %v3321_v13 }
 0x12d   :  { %3860 = vst.msk [vmem:[%s8545_s1 + $0x90] sm:$0xff] %vm255_vm8, %v6518_v62   ;;  %v3224_v62 = vsel %vm251_vm6, %v4442_v19, %v3220_v7  ;;  %v4394_v60 = vld [vmem:[%s8544_s0 + $0x85] sm:$0x10]   ;;  %v3033_v43 = vsel %vm235_vm2, %v4393_v45, %v3029_v57  ;;  %v4453_v8 = vld [vmem:[%s8544_s0 + $0x319] sm:$0x1]   ;;  %v3329_v61 = vsel %vm251_vm6, %v4469_v59, %v3325_v54 }
 0x12e   :  { %3932 = vst.msk [vmem:[%s8545_s1 + $0x98] sm:$0xff] %vm255_vm8, %v6905_v26   ;;  %3225 = vrot.lane.b32.xlu1 %v3224_v62, %s4539_s18  ;;  %v3177_v26 = vsel %vm239_vm3, %v4430_v10, %v3173_v42  ;;  %v4395_v40 = vld [vmem:[%s8544_s0 + $0xa4] sm:$0x20]   ;;  %v4454_v24 = vld [vmem:[%s8544_s0 + $0x338] sm:$0x2]  }
 0x12f   :  { %4048 = vst.msk [vmem:[%s8545_s1 + $0x28] sm:$0xff] %vm1374_vm9, %v7509_v39   ;;  %v3181_v39 = vsel %vm243_vm4, %v4431_v27, %v3177_v26  ;;  %v4396_v29 = vld [vmem:[%s8544_s0 + $0xc3] sm:$0x40]   ;;  %v4455_v12 = vld [vmem:[%s8544_s0 + $0x357] sm:$0x4]   ;;  %v3270_v46 = vsel %vm227_vm0, %v4454_v24, %v4453_v8  ;;  %v8120_v8 = vpop.permute.xlu1 %2281  }
 0x130   :  { %4039 = vst.msk [vmem:[%s8545_s1 + $0x8] sm:$0xff] %vm1374_vm9, %v7526_v41   ;;  %v3185_v41 = vsel %vm247_vm5, %v4432_v28, %v3181_v39  ;;  %v4397_v6 = vld [vmem:[%s8544_s0 + $0xe2] sm:$0x80]   ;;  %v4456_v50 = vld [vmem:[%s8544_s0 + $0x376] sm:$0x8]   ;;  %v3274_v35 = vsel %vm231_vm1, %v4455_v12, %v3270_v46 }
 0x131   :  { %4030 = vst.msk [vmem:[%s8545_s1 + $0xe0] sm:$0xff] %vm1374_vm9, %v7554_v49   ;;  %v3189_v49 = vsel %vm251_vm6, %v4433_v30, %v3185_v41  ;;  %v4457_v15 = vld [vmem:[%s8544_s0 + $0x395] sm:$0x10]   ;;  %v3278_v0 = vsel %vm235_vm2, %v4456_v50, %v3274_v35  ;;  %v4489_v18 = vld [vmem:[%s8544_s0 + $0x11d] sm:$0x1]  }
 0x132   :  { %3190 = vrot.lane.b32.xlu0 %v3189_v49, %s4539_s18  ;;  %4075 = vst.msk [vmem:[%s8545_s1 + $0x88] sm:$0xff] %vm1374_vm9, %v7610_v38   ;;  %v3037_v38 = vsel %vm239_vm3, %v4394_v60, %v3033_v43  ;;  %v4458_v16 = vld [vmem:[%s8544_s0 + $0x3b4] sm:$0x20]   ;;  %v8016_v20 = vpop.permute.xlu2 %2211   ;;  %v3282_v10 = vsel %vm239_vm3, %v4457_v15, %v3278_v0  ;;  %v4490_v5 = vld [vmem:[%s8544_s0 + $0x13c] sm:$0x2]  }
 0x133   :  { %4066 = vst.msk [vmem:[%s8545_s1 + $0x68] sm:$0xff] %vm1374_vm9, %v7620_v33   ;;  %v3041_v33 = vsel %vm243_vm4, %v4395_v40, %v3037_v38  ;;  %v4459_v19 = vld [vmem:[%s8544_s0 + $0x3d3] sm:$0x40]   ;;  %v3286_v42 = vsel %vm243_vm4, %v4458_v16, %v3282_v10  ;;  %v4491_v45 = vld [vmem:[%s8544_s0 + $0x15b] sm:$0x4]   ;;  %v3410_v60 = vsel %vm227_vm0, %v4490_v5, %v4489_v18 }
 0x134   :  { %4057 = vst.msk [vmem:[%s8545_s1 + $0x48] sm:$0xff] %vm1374_vm9, %v7642_v9   ;;  %v3045_v9 = vsel %vm247_vm5, %v4396_v29, %v3041_v33  ;;  %v4460_v37 = vld [vmem:[%s8544_s0 + $0x3f2] sm:$0x80]   ;;  %v8033_v25 = vpop.permute.xlu0 %2141   ;;  %v3290_v34 = vsel %vm247_vm5, %v4459_v19, %v3286_v42  ;;  %v4492_v40 = vld [vmem:[%s8544_s0 + $0x17a] sm:$0x8]  }
 0x135   :  { %v3049_v56 = vsel %vm251_vm6, %v4397_v6, %v3045_v9  ;;  %4102 = vst.msk [vmem:[%s8545_s1 + $0xe8] sm:$0xff] %vm1374_vm9, %v7690_v36   ;;  %v4417_v36 = vld [vmem:[%s8544_s0 + $0x119] sm:$0x1]   ;;  %v3294_v41 = vsel %vm251_vm6, %v4460_v37, %v3290_v34  ;;  %v4493_v49 = vld [vmem:[%s8544_s0 + $0x199] sm:$0x10]   ;;  %v3414_v6 = vsel %vm231_vm1, %v4491_v45, %v3410_v60 }
 0x136   :  { %3050 = vrot.lane.b32.xlu2 %v3049_v56, %s4539_s18  ;;  %4093 = vst.msk [vmem:[%s8545_s1 + $0xc8] sm:$0xff] %vm1374_vm9, %v7700_v22   ;;  %v4418_v22 = vld [vmem:[%s8544_s0 + $0x138] sm:$0x2]   ;;  %3330 = vrot.lane.b32.xlu1 %v3329_v61, %s4539_s18  ;;  %v3418_v31 = vsel %vm235_vm2, %v4492_v40, %v3414_v6 }
 0x137   :  { %v4419_v7 = vld [vmem:[%s8544_s0 + $0x157] sm:$0x4]   ;;  %4084 = vst.msk [vmem:[%s8545_s1 + $0xa8] sm:$0xff] %vm1374_vm9, %v7718_v44   ;;  %v3130_v44 = vsel %vm227_vm0, %v4418_v22, %v4417_v36  ;;  %v4494_v43 = vld [vmem:[%s8544_s0 + $0x1b8] sm:$0x20]   ;;  %v3422_v11 = vsel %vm239_vm3, %v4493_v49, %v3418_v31  ;;  %v8225_v6 = vpop.permute.xlu1 %2386  }
 0x138   :  { %v4420_v27 = vld [vmem:[%s8544_s0 + $0x176] sm:$0x8]   ;;  %v3134_v28 = vsel %vm231_vm1, %v4419_v7, %v3130_v44  ;;  %v4495_v38 = vld [vmem:[%s8544_s0 + $0x1d7] sm:$0x40]   ;;  %v4480_v55 = vld [vmem:[%s8544_s0 + $0x10d] sm:$0x1]   ;;  %v3426_v2 = vsel %vm243_vm4, %v4494_v43, %v3422_v11 }
 0x139   :  { %v4421_v62 = vld [vmem:[%s8544_s0 + $0x195] sm:$0x10]   ;;  %v3138_v39 = vsel %vm235_vm2, %v4420_v27, %v3134_v28  ;;  %v4496_v48 = vld [vmem:[%s8544_s0 + $0x1f6] sm:$0x80]   ;;  %v4481_v52 = vld [vmem:[%s8544_s0 + $0x12c] sm:$0x2]   ;;  %v3430_v13 = vsel %vm247_vm5, %v4495_v38, %v3426_v2 }
 0x13a   :  { %v4422_v30 = vld [vmem:[%s8544_s0 + $0x1b4] sm:$0x20]   ;;  %v3142_v57 = vsel %vm239_vm3, %v4421_v62, %v3138_v39  ;;  %3295 = vrot.lane.b32.xlu0 %v3294_v41, %s4539_s18  ;;  %v4482_v4 = vld [vmem:[%s8544_s0 + $0x14b] sm:$0x4]   ;;  %v3375_v17 = vsel %vm227_vm0, %v4481_v52, %v4480_v55  ;;  %v8118_v59 = vpop.permute.xlu2 %2316   ;;  %4129 = vst.msk [vmem:[%s8545_s1 + $0x50] sm:$0xff] %vm1374_vm9, %v7789_v14   ;;  %v3434_v16 = vsel %vm251_vm6, %v4496_v48, %v3430_v13 }
 0x13b   :  { %v4423_v26 = vld [vmem:[%s8544_s0 + $0x1d3] sm:$0x40]   ;;  %v3146_v29 = vsel %vm243_vm4, %v4422_v30, %v3142_v57  ;;  %v4483_v9 = vld [vmem:[%s8544_s0 + $0x16a] sm:$0x8]   ;;  %v3379_v24 = vsel %vm231_vm1, %v4482_v4, %v3375_v17  ;;  %v4444_v14 = vld [vmem:[%s8544_s0 + $0x309] sm:$0x1]  }
 0x13c   :  { %v4424_v32 = vld [vmem:[%s8544_s0 + $0x1f2] sm:$0x80]   ;;  %v3150_v33 = vsel %vm247_vm5, %v4423_v26, %v3146_v29  ;;  %v4484_v56 = vld [vmem:[%s8544_s0 + $0x189] sm:$0x10]   ;;  %v8136_v50 = vpop.permute.xlu0 %2246   ;;  %v3383_v46 = vsel %vm235_vm2, %v4483_v9, %v3379_v24  ;;  %4120 = vst.msk [vmem:[%s8545_s1 + $0x30] sm:$0xff] %vm1374_vm9, %v7791_v3  }
 0x13d   :  { %v3154_v53 = vsel %vm251_vm6, %v4424_v32, %v3150_v33  ;;  %v4485_v58 = vld [vmem:[%s8544_s0 + $0x1a8] sm:$0x20]   ;;  %v4445_v3 = vld [vmem:[%s8544_s0 + $0x328] sm:$0x2]   ;;  %v3387_v19 = vsel %vm239_vm3, %v4484_v56, %v3383_v46  ;;  %4111 = vst.msk [vmem:[%s8545_s1 + $0x10] sm:$0xff] %vm1374_vm9, %v7819_v21  }
 0x13e   :  { %v4486_v63 = vld [vmem:[%s8544_s0 + $0x1c7] sm:$0x40]   ;;  %3155 = vrot.lane.b32.xlu2 %v3154_v53, %s4539_s18  ;;  %v4446_v15 = vld [vmem:[%s8544_s0 + $0x347] sm:$0x4]   ;;  %v3235_v21 = vsel %vm227_vm0, %v4445_v3, %v4444_v14  ;;  %3435 = vrot.lane.b32.xlu1 %v3434_v16, %s4539_s18  ;;  %v3391_v37 = vsel %vm243_vm4, %v4485_v58, %v3387_v19 }
 0x13f   :  { %v4487_v12 = vld [vmem:[%s8544_s0 + $0x1e6] sm:$0x80]   ;;  %v4447_v54 = vld [vmem:[%s8544_s0 + $0x366] sm:$0x8]   ;;  %v3239_v36 = vsel %vm231_vm1, %v4446_v15, %v3235_v21  ;;  %v3395_v7 = vsel %vm247_vm5, %v4486_v63, %v3391_v37  ;;  %v4507_v41 = vld [vmem:[%s8544_s0 + $0x21d] sm:$0x1]  }
 0x140   :  { %v4448_v35 = vld [vmem:[%s8544_s0 + $0x385] sm:$0x10]   ;;  %v3243_v10 = vsel %vm235_vm2, %v4447_v54, %v3239_v36  ;;  %v4516_v44 = vld [vmem:[%s8544_s0 + $0x30d] sm:$0x1]   ;;  %v3399_v42 = vsel %vm251_vm6, %v4487_v12, %v3395_v7  ;;  %v4508_v40 = vld [vmem:[%s8544_s0 + $0x23c] sm:$0x2]  }
 0x141   :  { %v4449_v61 = vld [vmem:[%s8544_s0 + $0x3a4] sm:$0x20]   ;;  %v4517_v27 = vld [vmem:[%s8544_s0 + $0x32c] sm:$0x2]   ;;  %v3247_v28 = vsel %vm239_vm3, %v4448_v35, %v3243_v10  ;;  %v4509_v49 = vld [vmem:[%s8544_s0 + $0x25b] sm:$0x4]   ;;  %v3480_v55 = vsel %vm227_vm0, %v4508_v40, %v4507_v41  ;;  %v2492_v10 = vpop.permute.xlu1 %2491  }
 0x142   :  { %v4450_v0 = vld [vmem:[%s8544_s0 + $0x3c3] sm:$0x40]   ;;  %v4518_v62 = vld [vmem:[%s8544_s0 + $0x34b] sm:$0x4]   ;;  %v3515_v30 = vsel %vm227_vm0, %v4517_v27, %v4516_v44  ;;  %3400 = vrot.lane.b32.xlu0 %v3399_v42, %s4539_s18  ;;  %v3251_v39 = vsel %vm243_vm4, %v4449_v61, %v3247_v28  ;;  %v4510_v43 = vld [vmem:[%s8544_s0 + $0x27a] sm:$0x8]   ;;  %v8223_v29 = vpop.permute.xlu2 %2421   ;;  %v3484_v53 = vsel %vm231_vm1, %v4509_v49, %v3480_v55 }
 0x143   :  { %v4451_v22 = vld [vmem:[%s8544_s0 + $0x3e2] sm:$0x80]   ;;  %v4519_v26 = vld [vmem:[%s8544_s0 + $0x36a] sm:$0x8]   ;;  %v3519_v18 = vsel %vm231_vm1, %v4518_v62, %v3515_v30  ;;  %v3255_v57 = vsel %vm247_vm5, %v4450_v0, %v3251_v39  ;;  %v4511_v33 = vld [vmem:[%s8544_s0 + $0x299] sm:$0x10]   ;;  %v3488_v56 = vsel %vm235_vm2, %v4510_v43, %v3484_v53 }
 0x144   :  { %v4520_v32 = vld [vmem:[%s8544_s0 + $0x389] sm:$0x10]   ;;  %v3523_v60 = vsel %vm235_vm2, %v4519_v26, %v3519_v18  ;;  %v3259_v38 = vsel %vm251_vm6, %v4451_v22, %v3255_v57  ;;  %v4512_v31 = vld [vmem:[%s8544_s0 + $0x2b8] sm:$0x20]   ;;  %v8239_v4 = vpop.permute.xlu0 %2351   ;;  %4156 = vst.msk [vmem:[%s8545_s1 + $0xb0] sm:$0xff] %vm1374_vm9, %v7912_v1   ;;  %v3492_v2 = vsel %vm239_vm3, %v4511_v33, %v3488_v56 }
 0x145   :  { %v4521_v34 = vld [vmem:[%s8544_s0 + $0x3a8] sm:$0x20]   ;;  %v3527_v48 = vsel %vm239_vm3, %v4520_v32, %v3523_v60  ;;  %v4513_v52 = vld [vmem:[%s8544_s0 + $0x2d7] sm:$0x40]   ;;  %4147 = vst.msk [vmem:[%s8545_s1 + $0x90] sm:$0xff] %vm1374_vm9, %v7914_v51   ;;  %v3496_v14 = vsel %vm243_vm4, %v4512_v31, %v3492_v2 }
 0x146   :  { %v4522_v5 = vld [vmem:[%s8544_s0 + $0x3c7] sm:$0x40]   ;;  %3260 = vrot.lane.b32.xlu2 %v3259_v38, %s4539_s18  ;;  %v3531_v9 = vsel %vm243_vm4, %v4521_v34, %v3527_v48  ;;  %v4514_v11 = vld [vmem:[%s8544_s0 + $0x2f6] sm:$0x80]   ;;  %4138 = vst.msk [vmem:[%s8545_s1 + $0x70] sm:$0xff] %vm1374_vm9, %v7929_v47   ;;  %v3500_v16 = vsel %vm247_vm5, %v4513_v52, %v3496_v14 }
 0x147   :  { %v4523_v45 = vld [vmem:[%s8544_s0 + $0x3e6] sm:$0x80]   ;;  %v4471_v1 = vld [vmem:[%s8544_s0 + $0x1d] sm:$0x1]   ;;  %v3535_v17 = vsel %vm247_vm5, %v4522_v5, %v3531_v9  ;;  %4183 = vst.msk [vmem:[%s8545_s1 + $0x18] sm:$0xff] %vm1374_vm9, %v8016_v20   ;;  %v3504_v54 = vsel %vm251_vm6, %v4514_v11, %v3500_v16 }
 0x148   :  { %v4472_v51 = vld [vmem:[%s8544_s0 + $0x3c] sm:$0x2]   ;;  %v3539_v63 = vsel %vm251_vm6, %v4523_v45, %v3535_v17  ;;  %v4498_v20 = vld [vmem:[%s8544_s0 + $0x20d] sm:$0x1]   ;;  %4174 = vst.msk [vmem:[%s8545_s1 + $0xf0] sm:$0xff] %vm1374_vm9, %v8018_v23  }
 0x149   :  { %v4473_v58 = vld [vmem:[%s8544_s0 + $0x5b] sm:$0x4]   ;;  %v3340_v47 = vsel %vm227_vm0, %v4472_v51, %v4471_v1  ;;  %3540 = vrot.lane.b32.xlu1 %v3539_v63, %s4539_s18  ;;  %v4499_v21 = vld [vmem:[%s8544_s0 + $0x22c] sm:$0x2]   ;;  %4165 = vst.msk [vmem:[%s8545_s1 + $0xd0] sm:$0xff] %vm1374_vm9, %v8033_v25   ;;  %v2596_v43 = vpop.permute.xlu1 %2595  }
 0x14a   :  { %v4474_v24 = vld [vmem:[%s8544_s0 + $0x7a] sm:$0x8]   ;;  %v3344_v13 = vsel %vm231_vm1, %v4473_v58, %v3340_v47  ;;  %v3445_v23 = vsel %vm227_vm0, %v4499_v21, %v4498_v20  ;;  %v4500_v37 = vld [vmem:[%s8544_s0 + $0x24b] sm:$0x4]   ;;  %3505 = vrot.lane.b32.xlu0 %v3504_v54, %s4539_s18  ;;  %v2526_v7 = vpop.permute.xlu2 %2525   ;;  %4210 = vst.msk [vmem:[%s8545_s1 + $0x78] sm:$0xff] %vm1374_vm9, %v8118_v59  }
 0x14b   :  { %v4475_v12 = vld [vmem:[%s8544_s0 + $0x99] sm:$0x10]   ;;  %v3348_v19 = vsel %vm235_vm2, %v4474_v24, %v3344_v13  ;;  %v4501_v36 = vld [vmem:[%s8544_s0 + $0x26a] sm:$0x8]   ;;  %v3449_v25 = vsel %vm231_vm1, %v4500_v37, %v3445_v23  ;;  %4201 = vst.msk [vmem:[%s8545_s1 + $0x58] sm:$0xff] %vm1374_vm9, %v8120_v8  }
 0x14c   :  { %v4476_v46 = vld [vmem:[%s8544_s0 + $0xb8] sm:$0x20]   ;;  %v3352_v35 = vsel %vm239_vm3, %v4475_v12, %v3348_v19  ;;  %v4502_v0 = vld [vmem:[%s8544_s0 + $0x289] sm:$0x10]   ;;  %v3453_v27 = vsel %vm235_vm2, %v4501_v36, %v3449_v25  ;;  %v2457_v59 = vpop.permute.xlu0 %2456   ;;  %4192 = vst.msk [vmem:[%s8545_s1 + $0x38] sm:$0xff] %vm1374_vm9, %v8136_v50  }
 0x14d   :  { %v4477_v3 = vld [vmem:[%s8544_s0 + $0xd7] sm:$0x40]   ;;  %v3356_v61 = vsel %vm243_vm4, %v4476_v46, %v3352_v35  ;;  %v4503_v22 = vld [vmem:[%s8544_s0 + $0x2a8] sm:$0x20]   ;;  %v3457_v28 = vsel %vm239_vm3, %v4502_v0, %v3453_v27  ;;  %4237 = vst.msk [vmem:[%s8545_s1 + $0xd8] sm:$0xff] %vm1374_vm9, %v8223_v29  }
 0x14e   :  { %v4478_v15 = vld [vmem:[%s8544_s0 + $0xf6] sm:$0x80]   ;;  %v3360_v44 = vsel %vm247_vm5, %v4477_v3, %v3356_v61  ;;  %v4504_v62 = vld [vmem:[%s8544_s0 + $0x2c7] sm:$0x40]   ;;  %v3461_v26 = vsel %vm243_vm4, %v4503_v22, %v3457_v28  ;;  %4228 = vst.msk [vmem:[%s8545_s1 + $0xb8] sm:$0xff] %vm1374_vm9, %v8225_v6  }
 0x14f   :  { %v3364_v42 = vsel %vm251_vm6, %v4478_v15, %v3360_v44  ;;  %v4525_v8 = vld [vmem:[%s8544_s0 + $0x31d] sm:$0x1]   ;;  %v3465_v5 = vsel %vm247_vm5, %v4504_v62, %v3461_v26  ;;  %v4505_v45 = vld [vmem:[%s8544_s0 + $0x2e6] sm:$0x80]   ;;  %4219 = vst.msk [vmem:[%s8545_s1 + $0x98] sm:$0xff] %vm1374_vm9, %v8239_v4  }
 0x150   :  { %v4526_v30 = vld [vmem:[%s8544_s0 + $0x33c] sm:$0x2]   ;;  %3365 = vrot.lane.b32.xlu2 %v3364_v42, %s4539_s18  ;;  %v3469_v40 = vsel %vm251_vm6, %v4505_v45, %v3465_v5  ;;  %4263 = vst.msk [vmem:[%s8545_s1 + $0x20] sm:$0xff] %vm2493_vm10, %v2526_v7  }
 0x151   :  { %v3550_v50 = vsel %vm227_vm0, %v4526_v30, %v4525_v8  ;;  %v4527_v32 = vld [vmem:[%s8544_s0 + $0x35b] sm:$0x4]   ;;  %2494 = vst.msk [vmem:[%s8545_s1] sm:$0xff] %vm2493_vm10, %v2492_v10   ;;  %v2701_v52 = vpop.permute.xlu1 %2700  }
 0x152   :  { %v4528_v34 = vld [vmem:[%s8544_s0 + $0x37a] sm:$0x8]   ;;  %v3554_v39 = vsel %vm231_vm1, %v4527_v32, %v3550_v50  ;;  %v2631_v49 = vpop.permute.xlu2 %2630   ;;  %4246 = vst.msk [vmem:[%s8545_s1 + $0xf8] sm:$0xff] %vm1374_vm9, %v2457_v59  }
 0x153   :  { %v4529_v18 = vld [vmem:[%s8544_s0 + $0x399] sm:$0x10]   ;;  %v3558_v41 = vsel %vm235_vm2, %v4528_v34, %v3554_v39  ;;  %4290 = vst.msk [vmem:[%s8545_s1 + $0x80] sm:$0xff] %vm2493_vm10, %v2631_v49  }
 0x154   :  { %v3562_v57 = vsel %vm239_vm3, %v4529_v18, %v3558_v41  ;;  %v4530_v60 = vld [vmem:[%s8544_s0 + $0x3b8] sm:$0x20]   ;;  %v2561_v29 = vpop.permute.xlu0 %2560   ;;  %4281 = vst.msk [vmem:[%s8545_s1 + $0x60] sm:$0xff] %vm2493_vm10, %v2596_v43  }
 0x155   :  { %v3566_v6 = vsel %vm243_vm4, %v4530_v60, %v3562_v57  ;;  %v4531_v38 = vld [vmem:[%s8544_s0 + $0x3d7] sm:$0x40]   ;;  %4272 = vst.msk [vmem:[%s8545_s1 + $0x40] sm:$0xff] %vm2493_vm10, %v2561_v29  }
 0x156   :  { %v3570_v48 = vsel %vm247_vm5, %v4531_v38, %v3566_v6  ;;  %v4532_v55 = vld [vmem:[%s8544_s0 + $0x3f6] sm:$0x80]   ;;  %4308 = vst.msk [vmem:[%s8545_s1 + $0xc0] sm:$0xff] %vm2493_vm10, %v2701_v52  }
 0x157   :  { %v3574_v33 = vsel %vm251_vm6, %v4532_v55, %v3570_v48 }
 0x158   :  { %3470 = vrot.lane.b32.xlu2 %v3469_v40, %s4539_s18 }
 0x159   :  { %v2806_v9 = vpop.permute.xlu1 %2805  }
 0x15a   :  { %v2736_v31 = vpop.permute.xlu2 %2735   ;;  %4335 = vst.msk [vmem:[%s8545_s1 + $0x28] sm:$0xff] %vm2493_vm10, %v2806_v9  }
 0x15b   :  { %4317 = vst.msk [vmem:[%s8545_s1 + $0xe0] sm:$0xff] %vm2493_vm10, %v2736_v31  }
 0x15c   :  { %v2666_v4 = vpop.permute.xlu0 %2665  }
 0x15d   :  { %4299 = vst.msk [vmem:[%s8545_s1 + $0xa0] sm:$0xff] %vm2493_vm10, %v2666_v4  }
 0x160   :  { %3575 = vrot.lane.b32.xlu2 %v3574_v33, %s4539_s18 }
 0x161   :  { %v2911_v1 = vpop.permute.xlu1 %2910  }
 0x162   :  { %4362 = vst.msk [vmem:[%s8545_s1 + $0x88] sm:$0xff] %vm2493_vm10, %v2911_v1  }
 0x164   :  { %v2771_v53 = vpop.permute.xlu0 %2770  }
 0x165   :  { %4326 = vst.msk [vmem:[%s8545_s1 + $0x8] sm:$0xff] %vm2493_vm10, %v2771_v53  }
 0x167   :  { %v2841_v11 = vpop.permute.xlu2 %2840  }
 0x168   :  { %4344 = vst.msk [vmem:[%s8545_s1 + $0x48] sm:$0xff] %vm2493_vm10, %v2841_v11  }
 0x169   :  { %v3016_v56 = vpop.permute.xlu1 %3015  }
 0x16a   :  { %4389 = vst.msk [vmem:[%s8545_s1 + $0xe8] sm:$0xff] %vm2493_vm10, %v3016_v56  }
 0x16c   :  { %v2876_v17 = vpop.permute.xlu0 %2875  }
 0x16d   :  { %4353 = vst.msk [vmem:[%s8545_s1 + $0x68] sm:$0xff] %vm2493_vm10, %v2876_v17  }
 0x174   :  { %v2981_v51 = vpop.permute.xlu0 %2980  }
 0x175   :  { %4380 = vst.msk [vmem:[%s8545_s1 + $0xc8] sm:$0xff] %vm2493_vm10, %v2981_v51  }
 0x184   :  { %v2946_v58 = vpop.permute.xlu2 %2945  }
 0x185   :  { %4371 = vst.msk [vmem:[%s8545_s1 + $0xa8] sm:$0xff] %vm2493_vm10, %v2946_v58  }
 0x18e   :  { %v3121_v63 = vpop.permute.xlu1 %3120  }
 0x18f   :  { %4416 = vst.msk [vmem:[%s8545_s1 + $0x50] sm:$0xff] %vm2493_vm10, %v3121_v63  }
 0x190   :  { %v3051_v2 = vpop.permute.xlu2 %3050  }
 0x191   :  { %4398 = vst.msk [vmem:[%s8545_s1 + $0x10] sm:$0xff] %vm2493_vm10, %v3051_v2   ;;  %v3086_v47 = vpop.permute.xlu0 %3085  }
 0x192   :  { %4407 = vst.msk [vmem:[%s8545_s1 + $0x30] sm:$0xff] %vm2493_vm10, %v3086_v47  }
 0x198   :  { %v3156_v24 = vpop.permute.xlu2 %3155  }
 0x199   :  { %4425 = vst.msk [vmem:[%s8545_s1 + $0x70] sm:$0xff] %vm2493_vm10, %v3156_v24  }
 0x1a0   :  { %v3226_v12 = vpop.permute.xlu1 %3225   ;;  %v3261_v14 = vpop.permute.xlu2 %3260  }
 0x1a1   :  { %4443 = vst.msk [vmem:[%s8545_s1 + $0xb0] sm:$0xff] %vm2493_vm10, %v3226_v12  }
 0x1a2   :  { %4452 = vst.msk [vmem:[%s8545_s1 + $0xd0] sm:$0xff] %vm2493_vm10, %v3261_v14  }
 0x1a4   :  { %v3191_v13 = vpop.permute.xlu0 %3190  }
 0x1a5   :  { %4434 = vst.msk [vmem:[%s8545_s1 + $0x90] sm:$0xff] %vm2493_vm10, %v3191_v13  }
 0x1a8   :  { %v3331_v46 = vpop.permute.xlu1 %3330  }
 0x1a9   :  { %4470 = vst.msk [vmem:[%s8545_s1 + $0x18] sm:$0xff] %vm2493_vm10, %v3331_v46  }
 0x1aa   :  { %v3366_v3 = vpop.permute.xlu2 %3365  }
 0x1ab   :  { %4479 = vst.msk [vmem:[%s8545_s1 + $0x38] sm:$0xff] %vm2493_vm10, %v3366_v3  }
 0x1ac   :  { %v3296_v15 = vpop.permute.xlu0 %3295  }
 0x1ad   :  { %4461 = vst.msk [vmem:[%s8545_s1 + $0xf0] sm:$0xff] %vm2493_vm10, %v3296_v15  }
 0x1b0   :  { %v3436_v19 = vpop.permute.xlu1 %3435  }
 0x1b1   :  { %4497 = vst.msk [vmem:[%s8545_s1 + $0x78] sm:$0xff] %vm2493_vm10, %v3436_v19  }
 0x1b2   :  { %v3471_v16 = vpop.permute.xlu2 %3470  }
 0x1b3   :  { %4506 = vst.msk [vmem:[%s8545_s1 + $0x98] sm:$0xff] %vm2493_vm10, %v3471_v16  }
 0x1b4   :  { %v3401_v20 = vpop.permute.xlu0 %3400  }
 0x1b5   :  { %4488 = vst.msk [vmem:[%s8545_s1 + $0x58] sm:$0xff] %vm2493_vm10, %v3401_v20  }
 0x1ba   :  { %v3576_v21 = vpop.permute.xlu2 %3575  }
 0x1bb   :  { %4533 = vst.msk [vmem:[%s8545_s1 + $0xf8] sm:$0xff] %vm2493_vm10, %v3576_v21   ;;  %v3541_v54 = vpop.permute.xlu1 %3540  }
 0x1bc   :  { %4524 = vst.msk [vmem:[%s8545_s1 + $0xd8] sm:$0xff] %vm2493_vm10, %v3541_v54   ;;  %v3506_v35 = vpop.permute.xlu0 %3505  }
 0x1bd   :  { %4515 = vst.msk [vmem:[%s8545_s1 + $0xb8] sm:$0xff] %vm2493_vm10, %v3506_v35  }

// kernel: tile.21
= control target key start
LH: loop header
LB: loop body
LE: loop exit
PB: predicated region body
PF: predicated region fallthrough
CT: control target
= control target key end

     0   :  { %vm69_vm0 = vcmask 1043458   ;;  %s109_s6 = smov 3  ;;  %vm74_vm1 = vcmask 1045508   ;;  %vm79_vm2 = vcmask 1047558   ;;  %s112_s9 = smov 12  ;;  %vm3_vm3 = vcmask 261120   ;;  %s1682_s0 = inlined_call_operand.vmem [shape: f32[18,16,32], index: 0, kind: input, shape index: {}]   ;;  %s1683_s1 = inlined_call_operand.vmem [shape: f32[18,512], index: 1, kind: output, shape index: {}]  }
   0x1   :  { %v769_v0 = vld [vmem:[%s1682_s0 + $0x103] ss:$16 sm:%s109_s6]   ;;  %s117_s10 = smov 48  ;;  %v770_v1 = vld [vmem:[%s1682_s0 - $0x19] ss:$16 sm:%s112_s9]   ;;  %s122_s15 = smov 192 }
   0x2   :  { %v771_v2 = vld [vmem:[%s1682_s0 - $0x19] ss:$16 sm:%s117_s10]   ;;  %s64_s16 = smov 3  ;;  %v115_v3 = vsel %vm69_vm0, %v770_v1, %v769_v0  ;;  %s67_s21 = smov 12  ;;  %vm83_vm4 = vcmask 1048320   ;;  %vm307_vm5 = vcmask 785920  }
   0x3   :  { %v772_v4 = vld [vmem:[%s1682_s0 - $0x19] ss:$16 sm:%s122_s15]   ;;  %v760_v5 = vld [vmem:[%s1682_s0 + $0x3] ss:$16 sm:%s64_s16]   ;;  %s72_s22 = smov 48  ;;  %v120_v6 = vsel %vm74_vm1, %v771_v2, %v115_v3  ;;  %s77_s27 = smov 192 }
   0x4   :  { %v761_v7 = vld [vmem:[%s1682_s0 + $0x3] ss:$16 sm:%s67_s21]   ;;  %s134_s28 = smov 3  ;;  %v125_v9 = vsel %vm79_vm2, %v772_v4, %v120_v6  ;;  %s137_s4 = smov 12  ;;  %vm531_vm6 = vcmask 523520  }
   0x5   :  { %v762_v8 = vld [vmem:[%s1682_s0 + $0x3] ss:$16 sm:%s72_s22]   ;;  %v70_v10 = vsel %vm69_vm0, %v761_v7, %v760_v5  ;;  %v775_v12 = vld [vmem:[%s1682_s0 + $0x87] ss:$16 sm:%s134_s28]   ;;  %s142_s5 = smov 48  ;;  %s922_s6 = smov 96  }
   0x6   :  { %v763_v11 = vld [vmem:[%s1682_s0 + $0x3] ss:$16 sm:%s77_s27]   ;;  %126 = vrot.lane.b32.xlu1 %v125_v9, %s922_s6  ;;  %v75_v13 = vsel %vm74_vm1, %v762_v8, %v70_v10  ;;  %s147_s9 = smov 192  ;;  %s86_s10 = smov 3 }
   0x7   :  { %v776_v14 = vld [vmem:[%s1682_s0 + $0x87] ss:$16 sm:%s137_s4]   ;;  %v80_v15 = vsel %vm79_vm2, %v763_v11, %v75_v13  ;;  %s89_s15 = smov 12  ;;  %s94_s16 = smov 48  ;;  %v764_v20 = vld [vmem:[%s1682_s0 + $0x83] ss:$16 sm:%s86_s10]  }
   0x8   :  { %v140_v16 = vsel %vm69_vm0, %v776_v14, %v775_v12  ;;  %v777_v17 = vld [vmem:[%s1682_s0 + $0x87] ss:$16 sm:%s142_s5]   ;;  %81 = vrot.lane.b32.xlu0 %v80_v15, %s922_s6  ;;  %s99_s19 = smov 192  ;;  %s238_s20 = smov 3 }
   0x9   :  { %v778_v18 = vld [vmem:[%s1682_s0 + $0x7] ss:$16 sm:%s147_s9]   ;;  %v145_v19 = vsel %vm74_vm1, %v777_v17, %v140_v16  ;;  %v765_v21 = vld [vmem:[%s1682_s0 + $0x83] ss:$16 sm:%s89_s15]   ;;  %s241_s25 = smov 12  ;;  %s246_s26 = smov 48 }
   0xa   :  { %v766_v22 = vld [vmem:[%s1682_s0 + $0x83] ss:$16 sm:%s94_s16]   ;;  %v92_v23 = vsel %vm69_vm0, %v765_v21, %v764_v20  ;;  %v801_v25 = vld [vmem:[%s1682_s0 + $0x8f] ss:$16 sm:%s238_s20]   ;;  %s251_s2 = smov 192  ;;  %s211_s3 = smov 3  ;;  %v150_v26 = vsel %vm79_vm2, %v778_v18, %v145_v19 }
   0xb   :  { %v767_v24 = vld [vmem:[%s1682_s0 + $0x83] ss:$16 sm:%s99_s19]   ;;  %v97_v27 = vsel %vm74_vm1, %v766_v22, %v92_v23  ;;  %v802_v28 = vld [vmem:[%s1682_s0 + $0xf] ss:$16 sm:%s241_s25]   ;;  %s214_s7 = smov 12  ;;  %s219_s8 = smov 48 }
   0xc   :  { %v794_v29 = vld [vmem:[%s1682_s0 + $0x10b] ss:$16 sm:%s211_s3]   ;;  %s159_s11 = smov 3  ;;  %v102_v30 = vsel %vm79_vm2, %v767_v24, %v97_v27  ;;  %v244_v31 = vsel %vm69_vm0, %v802_v28, %v801_v25  ;;  %v803_v32 = vld [vmem:[%s1682_s0 + $0xf] ss:$16 sm:%s246_s26]   ;;  %s162_s16 = smov 12 }
   0xd   :  { %v795_v33 = vld [vmem:[%s1682_s0 + $0xab] ss:$16 sm:%s214_s7]   ;;  %s167_s17 = smov 48  ;;  %v804_v34 = vld [vmem:[%s1682_s0 + $0xf] ss:$16 sm:%s251_s2]   ;;  %s224_s22 = smov 192  ;;  %v249_v39 = vsel %vm74_vm1, %v803_v32, %v244_v31 }
   0xe   :  { %151 = vrot.lane.b32.xlu1 %v150_v26, %s922_s6  ;;  %v796_v35 = vld [vmem:[%s1682_s0 + $0xab] ss:$16 sm:%s219_s8]   ;;  %s172_s23 = smov 192  ;;  %v217_v36 = vsel %vm69_vm0, %v795_v33, %v794_v29  ;;  %s310_s28 = smov 3  ;;  %v254_v49 = vsel %vm79_vm2, %v804_v34, %v249_v39 }
   0xf   :  { %v781_v37 = vld [vmem:[%s1682_s0 + $0x107] ss:$16 sm:%s159_s11]   ;;  %s313_s29 = smov 12  ;;  %v783_v41 = vld [vmem:[%s1682_s0 - $0x35] ss:$16 sm:%s167_s17]   ;;  %s288_s8 = smov 3  ;;  %v222_v45 = vsel %vm74_vm1, %v796_v35, %v217_v36 }
  0x10   :  { %v782_v38 = vld [vmem:[%s1682_s0 + $0xc7] ss:$16 sm:%s162_s16]   ;;  %103 = vrot.lane.b32.xlu0 %v102_v30, %s922_s6  ;;  %s291_s9 = smov 12  ;;  %s318_s14 = smov 48 }
  0x11   :  { %v165_v40 = vsel %vm69_vm0, %v782_v38, %v781_v37  ;;  %v797_v42 = vld [vmem:[%s1682_s0 - $0x51] ss:$16 sm:%s224_s22]   ;;  %v784_v44 = vld [vmem:[%s1682_s0 - $0x35] ss:$16 sm:%s172_s23]   ;;  %s296_s15 = smov 48  ;;  %s323_s16 = smov 192 }
  0x12   :  { %v170_v43 = vsel %vm74_vm1, %v783_v41, %v165_v40  ;;  %v817_v47 = vld [vmem:[%s1682_s0 + $0x82] ss:$16 sm:%s310_s28]   ;;  %s186_s17 = smov 3  ;;  %s189_s22 = smov 12  ;;  %v227_v52 = vsel %vm79_vm2, %v797_v42, %v222_v45 }
  0x13   :  { %v175_v46 = vsel %vm79_vm2, %v784_v44, %v170_v43  ;;  %v818_v48 = vld [vmem:[%s1682_s0 + $0x82] ss:$16 sm:%s313_s29]   ;;  %s194_s23 = smov 48  ;;  %s199_s28 = smov 192  ;;  %v788_v57 = vld [vmem:[%s1682_s0 + $0x8b] ss:$16 sm:%s186_s17]  }
  0x14   :  { %176 = vrot.lane.b32.xlu2 %v175_v46, %s922_s6  ;;  %v813_v50 = vld [vmem:[%s1682_s0 + $0x2] ss:$16 sm:%s288_s8]   ;;  %v316_v53 = vsel %vm69_vm0, %v818_v48, %v817_v47  ;;  %s301_s2 = smov 192  ;;  %s383_s10 = smov 3 }
  0x15   :  { %v814_v51 = vld [vmem:[%s1682_s0 + $0x2] ss:$16 sm:%s291_s9]   ;;  %v789_v59 = vld [vmem:[%s1682_s0 + $0x8b] ss:$16 sm:%s189_s22]   ;;  %s386_s11 = smov 12  ;;  %s358_s17 = smov 3 }
  0x16   :  { %v819_v54 = vld [vmem:[%s1682_s0 + $0x82] ss:$16 sm:%s318_s14]   ;;  %255 = vrot.lane.b32.xlu1 %v254_v49, %s922_s6  ;;  %v294_v58 = vsel %vm69_vm0, %v814_v51, %v813_v50  ;;  %v192_v62 = vsel %vm69_vm0, %v789_v59, %v788_v57  ;;  %s391_s14 = smov 48  ;;  %s361_s18 = smov 12 }
  0x17   :  { %v815_v55 = vld [vmem:[%s1682_s0 + $0x2] ss:$16 sm:%s296_s15]   ;;  %v790_v60 = vld [vmem:[%s1682_s0 + $0xb] ss:$16 sm:%s194_s23]   ;;  %v321_v61 = vsel %vm74_vm1, %v819_v54, %v316_v53  ;;  %s366_s23 = smov 48  ;;  %s263_s24 = smov 3 }
  0x18   :  { %v820_v56 = vld [vmem:[%s1682_s0 + $0x82] ss:$16 sm:%s323_s16]   ;;  %228 = vrot.lane.b32.xlu0 %v227_v52, %s922_s6  ;;  %v197_v1 = vsel %vm74_vm1, %v790_v60, %v192_v62  ;;  %v299_v2 = vsel %vm74_vm1, %v815_v55, %v294_v58  ;;  %s266_s27 = smov 12  ;;  %s271_s3 = smov 48 }
  0x19   :  { %v791_v63 = vld [vmem:[%s1682_s0 + $0xb] ss:$16 sm:%s199_s28]   ;;  %v816_v0 = vld [vmem:[%s1682_s0 + $0x2] ss:$16 sm:%s301_s2]   ;;  %v326_v6 = vsel %vm79_vm2, %v820_v56, %v321_v61  ;;  %s276_s4 = smov 192  ;;  %s396_s5 = smov 192 }
  0x1a   :  { %v202_v3 = vsel %vm79_vm2, %v791_v63, %v197_v1  ;;  %v834_v4 = vld [vmem:[%s1682_s0 + $0x106] ss:$16 sm:%s383_s10]   ;;  %v836_v7 = vld [vmem:[%s1682_s0 - $0x36] ss:$16 sm:%s391_s14]   ;;  %v304_v10 = vsel %vm79_vm2, %v816_v0, %v299_v2  ;;  %s371_s12 = smov 192  ;;  %s462_s19 = smov 3 }
  0x1b   :  { %v835_v5 = vld [vmem:[%s1682_s0 + $0xc6] ss:$16 sm:%s386_s11]   ;;  %v807_v13 = vld [vmem:[%s1682_s0 + $0x10f] ss:$16 sm:%s263_s24]   ;;  %s923_s11 = smov 64   ;;  %s465_s20 = smov 12 }
  0x1c   :  { %203 = vrot.lane.b32.xlu2 %v202_v3, %s922_s6  ;;  %v828_v8 = vld [vmem:[%s1682_s0 + $0x86] ss:$16 sm:%s358_s17]   ;;  %v389_v11 = vsel %vm69_vm0, %v835_v5, %v834_v4  ;;  %s435_s26 = smov 3  ;;  %s341_s7 = smov 48 }
  0x1d   :  { %v829_v9 = vld [vmem:[%s1682_s0 + $0x86] ss:$16 sm:%s361_s18]   ;;  %v808_v14 = vld [vmem:[%s1682_s0 + $0x8f] ss:$16 sm:%s266_s27]   ;;  %v394_v19 = vsel %vm74_vm1, %v836_v7, %v389_v11  ;;  %s438_s27 = smov 12  ;;  %s443_s13 = smov 48 }
  0x1e   :  { %v830_v12 = vld [vmem:[%s1682_s0 + $0x86] ss:$16 sm:%s366_s23]   ;;  %327 = vrot.lane.b32.xlu1 %v326_v6, %s923_s11  ;;  %v364_v15 = vsel %vm69_vm0, %v829_v9, %v828_v8  ;;  %v269_v16 = vsel %vm69_vm0, %v808_v14, %v807_v13  ;;  %s470_s23 = smov 48  ;;  %s346_s14 = smov 192 }
  0x1f   :  { %v809_v17 = vld [vmem:[%s1682_s0 + $0x8f] ss:$16 sm:%s271_s3]   ;;  %v837_v20 = vld [vmem:[%s1682_s0 - $0x36] ss:$16 sm:%s396_s5]   ;;  %v369_v24 = vsel %vm74_vm1, %v830_v12, %v364_v15  ;;  %s333_s3 = smov 3  ;;  %s475_s15 = smov 192 }
  0x20   :  { %v810_v18 = vld [vmem:[%s1682_s0 + $0x8f] ss:$16 sm:%s276_s4]   ;;  %305 = vrot.lane.b32.xlu0 %v304_v10, %s923_s11  ;;  %v274_v21 = vsel %vm74_vm1, %v809_v17, %v269_v16  ;;  %s336_s4 = smov 12  ;;  %v399_v27 = vsel %vm79_vm2, %v837_v20, %v394_v19  ;;  %s537_s28 = smov 12 }
  0x21   :  { %v831_v22 = vld [vmem:[%s1682_s0 + $0x6] ss:$16 sm:%s371_s12]   ;;  %v279_v23 = vsel %vm79_vm2, %v810_v18, %v274_v21  ;;  %v854_v25 = vld [vmem:[%s1682_s0 + $0x8e] ss:$16 sm:%s462_s19]   ;;  %s542_s2 = smov 48  ;;  %s515_s5 = smov 12 }
  0x22   :  { %v855_v26 = vld [vmem:[%s1682_s0 + $0xe] ss:$16 sm:%s465_s20]   ;;  %v847_v29 = vld [vmem:[%s1682_s0 + $0x10a] ss:$16 sm:%s435_s26]   ;;  %v374_v31 = vsel %vm79_vm2, %v831_v22, %v369_v24  ;;  %s448_s20 = smov 192  ;;  %s423_s19 = smov 192 }
  0x23   :  { %v856_v28 = vld [vmem:[%s1682_s0 + $0xe] ss:$16 sm:%s470_s23]   ;;  %v848_v30 = vld [vmem:[%s1682_s0 + $0xaa] ss:$16 sm:%s438_s27]   ;;  %v468_v32 = vsel %vm69_vm0, %v855_v26, %v854_v25  ;;  %s534_s27 = smov 3  ;;  %s520_s22 = smov 48 }
  0x24   :  { %280 = vrot.lane.b32.xlu2 %v279_v23, %s922_s6  ;;  %v822_v33 = vld [vmem:[%s1682_s0 + $0x102] ss:$16 sm:%s333_s3]   ;;  %v441_v37 = vsel %vm69_vm0, %v848_v30, %v847_v29  ;;  %v473_v41 = vsel %vm74_vm1, %v856_v28, %v468_v32  ;;  %s512_s3 = smov 3  ;;  %s547_s25 = smov 192 }
  0x25   :  { %v823_v34 = vld [vmem:[%s1682_s0 - $0x1a] ss:$16 sm:%s336_s4]   ;;  %v849_v38 = vld [vmem:[%s1682_s0 + $0xaa] ss:$16 sm:%s443_s13]   ;;  %s413_s13 = smov 12  ;;  %s525_s26 = smov 192 }
  0x26   :  { %400 = vrot.lane.b32.xlu1 %v399_v27, %s923_s11  ;;  %v339_v35 = vsel %vm69_vm0, %v823_v34, %v822_v33  ;;  %v824_v36 = vld [vmem:[%s1682_s0 - $0x1a] ss:$16 sm:%s341_s7]   ;;  %s410_s7 = smov 3  ;;  %v446_v45 = vsel %vm74_vm1, %v849_v38, %v441_v37  ;;  %s607_s4 = smov 3 }
  0x27   :  { %v344_v39 = vsel %vm74_vm1, %v824_v36, %v339_v35  ;;  %v825_v40 = vld [vmem:[%s1682_s0 - $0x1a] ss:$16 sm:%s346_s14]   ;;  %v857_v42 = vld [vmem:[%s1682_s0 + $0xe] ss:$16 sm:%s475_s15]   ;;  %s418_s14 = smov 48  ;;  %s610_s6 = smov 12 }
  0x28   :  { %375 = vrot.lane.b32.xlu0 %v374_v31, %s923_s11  ;;  %v349_v43 = vsel %vm79_vm2, %v825_v40, %v344_v39  ;;  %v850_v44 = vld [vmem:[%s1682_s0 - $0x52] ss:$16 sm:%s448_s20]   ;;  %v478_v48 = vsel %vm79_vm2, %v857_v42, %v473_v41  ;;  %s615_s8 = smov 48  ;;  %s582_s9 = smov 3 }
  0x29   :  { %v870_v46 = vld [vmem:[%s1682_s0 + $0x81] ss:$16 sm:%s534_s27]   ;;  %v841_v52 = vld [vmem:[%s1682_s0 + $0x8a] ss:$16 sm:%s410_s7]   ;;  %v451_v53 = vsel %vm79_vm2, %v850_v44, %v446_v45  ;;  %s490_s20 = smov 12  ;;  %s620_s29 = smov 192 }
  0x2a   :  { %v871_v47 = vld [vmem:[%s1682_s0 + $0x81] ss:$16 sm:%s537_s28]   ;;  %v842_v55 = vld [vmem:[%s1682_s0 + $0x8a] ss:$16 sm:%s413_s13]   ;;  %s585_s13 = smov 12  ;;  %s699_s18 = smov 192 }
  0x2b   :  { %v872_v49 = vld [vmem:[%s1682_s0 + $0x81] ss:$16 sm:%s542_s2]   ;;  %v540_v54 = vsel %vm69_vm0, %v871_v47, %v870_v46  ;;  %v843_v56 = vld [vmem:[%s1682_s0 + $0xa] ss:$16 sm:%s418_s14]   ;;  %v416_v57 = vsel %vm69_vm0, %v842_v55, %v841_v52  ;;  %s590_s14 = smov 48  ;;  %s659_s24 = smov 3 }
  0x2c   :  { %350 = vrot.lane.b32.xlu2 %v349_v43, %s923_s11  ;;  %v866_v50 = vld [vmem:[%s1682_s0 + $0x1] ss:$16 sm:%s512_s3]   ;;  %v421_v61 = vsel %vm74_vm1, %v843_v56, %v416_v57  ;;  %v545_v62 = vsel %vm74_vm1, %v872_v49, %v540_v54  ;;  %s686_s3 = smov 3  ;;  %s667_s30 = smov 48 }
  0x2d   :  { %v867_v51 = vld [vmem:[%s1682_s0 + $0x1] ss:$16 sm:%s515_s5]   ;;  %v844_v58 = vld [vmem:[%s1682_s0 + $0xa] ss:$16 sm:%s423_s19]   ;;  %s487_s19 = smov 3  ;;  %s672_s2 = smov 192 }
  0x2e   :  { %479 = vrot.lane.b32.xlu1 %v478_v48, %s923_s11  ;;  %v518_v59 = vsel %vm69_vm0, %v867_v51, %v866_v50  ;;  %v868_v60 = vld [vmem:[%s1682_s0 + $0x1] ss:$16 sm:%s520_s22]   ;;  %v426_v0 = vsel %vm79_vm2, %v844_v58, %v421_v61  ;;  %s557_s7 = smov 3  ;;  %s634_s21 = smov 3  ;;  %v754_v61 = vld [vmem:[%s1682_s0 + $0xe0] ss:$4 sm:$0xff]  }
  0x2f   :  { %v873_v63 = vld [vmem:[%s1682_s0 + $0x81] ss:$16 sm:%s547_s25]   ;;  %v887_v2 = vld [vmem:[%s1682_s0 + $0x105] ss:$16 sm:%s607_s4]   ;;  %v523_v3 = vsel %vm74_vm1, %v868_v60, %v518_v59  ;;  %s495_s25 = smov 48  ;;  %s637_s23 = smov 12 }
  0x30   :  { %452 = vrot.lane.b32.xlu0 %v451_v53, %s923_s11  ;;  %v869_v1 = vld [vmem:[%s1682_s0 + $0x1] ss:$16 sm:%s525_s26]   ;;  %s500_s26 = smov 192  ;;  %v550_v6 = vsel %vm79_vm2, %v873_v63, %v545_v62  ;;  %s642_s28 = smov 48  ;;  %v757_v62 = vld [vmem:[%s1682_s0 + $0x100] ss:$4 sm:$0xff]  }
  0x31   :  { %v888_v4 = vld [vmem:[%s1682_s0 + $0xc5] ss:$16 sm:%s610_s6]   ;;  %v889_v7 = vld [vmem:[%s1682_s0 - $0x37] ss:$16 sm:%s615_s8]   ;;  %s689_s8 = smov 12  ;;  %v528_v11 = vsel %vm79_vm2, %v869_v1, %v523_v3  ;;  %s711_s6 = smov 3 }
  0x32   :  { %v881_v5 = vld [vmem:[%s1682_s0 + $0x85] ss:$16 sm:%s582_s9]   ;;  %v860_v9 = vld [vmem:[%s1682_s0 + $0x10e] ss:$16 sm:%s487_s19]   ;;  %s694_s9 = smov 48  ;;  %v613_v12 = vsel %vm69_vm0, %v888_v4, %v887_v2  ;;  %s924_s19 = smov 32  }
  0x33   :  { %v882_v8 = vld [vmem:[%s1682_s0 + $0x85] ss:$16 sm:%s585_s13]   ;;  %v861_v10 = vld [vmem:[%s1682_s0 + $0x8e] ss:$16 sm:%s490_s20]   ;;  %s595_s13 = smov 192  ;;  %v618_v23 = vsel %vm74_vm1, %v889_v7, %v613_v12  ;;  %s570_s20 = smov 192 }
  0x34   :  { %427 = vrot.lane.b32.xlu2 %v426_v0, %s923_s11  ;;  %v883_v13 = vld [vmem:[%s1682_s0 + $0x85] ss:$16 sm:%s590_s14]   ;;  %v493_v14 = vsel %vm69_vm0, %v861_v10, %v860_v9  ;;  %v588_v20 = vsel %vm69_vm0, %v882_v8, %v881_v5  ;;  %s565_s14 = smov 48  ;;  %s724_s15 = smov 192  ;;  %v742_v63 = vld [vmem:[%s1682_s0 + $0x60] ss:$4 sm:$0xff]  }
  0x35   :  { %v862_v15 = vld [vmem:[%s1682_s0 + $0x8e] ss:$16 sm:%s495_s25]   ;;  %v890_v17 = vld [vmem:[%s1682_s0 - $0x37] ss:$16 sm:%s620_s29]   ;;  %s662_s25 = smov 12  ;;  %v593_v31 = vsel %vm74_vm1, %v883_v13, %v588_v20  ;;  %s647_s29 = smov 192 }
  0x36   :  { %v863_v16 = vld [vmem:[%s1682_s0 + $0x8e] ss:$16 sm:%s500_s26]   ;;  %551 = vrot.lane.b32.xlu1 %v550_v6, %s924_s19  ;;  %v498_v18 = vsel %vm74_vm1, %v862_v15, %v493_v14  ;;  %v623_v36 = vsel %vm79_vm2, %v890_v17, %v618_v23  ;;  %755 = vst.msk [vmem:[%s1683_s1 + $0x26] ss:$8 sm:$0xf] %vm3_vm3, %v754_v61  }
  0x37   :  { %v907_v19 = vld [vmem:[%s1682_s0 + $0x8d] ss:$16 sm:%s686_s3]   ;;  %v884_v24 = vld [vmem:[%s1682_s0 + $0x5] ss:$16 sm:%s595_s13]   ;;  %v503_v25 = vsel %vm79_vm2, %v863_v16, %v498_v18  ;;  %s560_s13 = smov 12 }
  0x38   :  { %v908_v21 = vld [vmem:[%s1682_s0 + $0xd] ss:$16 sm:%s689_s8]   ;;  %529 = vrot.lane.b32.xlu0 %v528_v11, %s924_s19  ;;  %v598_v42 = vsel %vm79_vm2, %v884_v24, %v593_v31  ;;  %s714_s8 = smov 12  ;;  %756 = vst.msk [vmem:[%s1683_s1 + $0x7] ss:$8 sm:$0xf0] %vm3_vm3, %v754_v61  }
  0x39   :  { %v909_v22 = vld [vmem:[%s1682_s0 + $0xd] ss:$16 sm:%s694_s9]   ;;  %v692_v26 = vsel %vm69_vm0, %v908_v21, %v907_v19  ;;  %v900_v29 = vld [vmem:[%s1682_s0 + $0x109] ss:$16 sm:%s659_s24]   ;;  %s719_s9 = smov 48 }
  0x3a   :  { %v910_v27 = vld [vmem:[%s1682_s0 + $0xd] ss:$16 sm:%s699_s18]   ;;  %v697_v28 = vsel %vm74_vm1, %v909_v22, %v692_v26  ;;  %v901_v30 = vld [vmem:[%s1682_s0 + $0xa9] ss:$16 sm:%s662_s25]  }
  0x3b   :  { %v702_v32 = vsel %vm79_vm2, %v910_v27, %v697_v28  ;;  %v665_v33 = vsel %vm69_vm0, %v901_v30, %v900_v29  ;;  %v902_v34 = vld [vmem:[%s1682_s0 + $0xa9] ss:$16 sm:%s667_s30]   ;;  %v903_v35 = vld [vmem:[%s1682_s0 - $0x53] ss:$16 sm:%s672_s2]  }
  0x3c   :  { %504 = vrot.lane.b32.xlu2 %v503_v25, %s923_s11  ;;  %v670_v37 = vsel %vm74_vm1, %v902_v34, %v665_v33  ;;  %v875_v38 = vld [vmem:[%s1682_s0 + $0x101] ss:$16 sm:%s557_s7]   ;;  %758 = vst.msk [vmem:[%s1683_s1 + $0x40] ss:$8 sm:$0xf] %vm3_vm3, %v757_v62  }
  0x3d   :  { %v675_v39 = vsel %vm79_vm2, %v903_v35, %v670_v37  ;;  %v876_v40 = vld [vmem:[%s1682_s0 - $0x1b] ss:$16 sm:%s560_s13]   ;;  %v894_v45 = vld [vmem:[%s1682_s0 + $0x89] ss:$16 sm:%s634_s21]  }
  0x3e   :  { %v877_v41 = vld [vmem:[%s1682_s0 - $0x1b] ss:$16 sm:%s565_s14]   ;;  %v563_v43 = vsel %vm69_vm0, %v876_v40, %v875_v38  ;;  %624 = vrot.lane.b32.xlu1 %v623_v36, %s924_s19  ;;  %759 = vst.msk [vmem:[%s1683_s1 + $0x21] ss:$8 sm:$0xf0] %vm3_vm3, %v757_v62  }
  0x3f   :  { %v878_v44 = vld [vmem:[%s1682_s0 - $0x1b] ss:$16 sm:%s570_s20]   ;;  %v568_v46 = vsel %vm74_vm1, %v877_v41, %v563_v43  ;;  %v895_v47 = vld [vmem:[%s1682_s0 + $0x89] ss:$16 sm:%s637_s23]  }
  0x40   :  { %v640_v48 = vsel %vm69_vm0, %v895_v47, %v894_v45  ;;  %v896_v49 = vld [vmem:[%s1682_s0 + $0x9] ss:$16 sm:%s642_s28]   ;;  %599 = vrot.lane.b32.xlu0 %v598_v42, %s924_s19  ;;  %v573_v51 = vsel %vm79_vm2, %v878_v44, %v568_v46  ;;  %v2_v0 = vld [vmem:[%s1682_s0] ss:$4 sm:$0xff]  }
  0x41   :  { %v897_v50 = vld [vmem:[%s1682_s0 + $0x9] ss:$16 sm:%s647_s29]   ;;  %v645_v52 = vsel %vm74_vm1, %v896_v49, %v640_v48  ;;  %v913_v53 = vld [vmem:[%s1682_s0 + $0x10d] ss:$16 sm:%s711_s6]  }
  0x42   :  { %v650_v54 = vsel %vm79_vm2, %v897_v50, %v645_v52  ;;  %v914_v55 = vld [vmem:[%s1682_s0 + $0x8d] ss:$16 sm:%s714_s8]   ;;  %743 = vst.msk [vmem:[%s1683_s1 + $0x6] ss:$8 sm:$0xf] %vm3_vm3, %v742_v63  }
  0x43   :  { %v915_v56 = vld [vmem:[%s1682_s0 + $0x8d] ss:$16 sm:%s719_s9]   ;;  %v717_v57 = vsel %vm69_vm0, %v914_v55, %v913_v53  ;;  %744 = vst.msk [vmem:[%s1683_s1 - $0x19] ss:$8 sm:$0xf0] %vm3_vm3, %v742_v63  }
  0x44   :  { %v916_v58 = vld [vmem:[%s1682_s0 + $0x8d] ss:$16 sm:%s724_s15]   ;;  %574 = vrot.lane.b32.xlu2 %v573_v51, %s924_s19  ;;  %v722_v59 = vsel %vm74_vm1, %v915_v56, %v717_v57  ;;  %v736_v1 = vld [vmem:[%s1682_s0 + $0x20] ss:$4 sm:$0xff]  }
  0x45   :  { %v727_v60 = vsel %vm79_vm2, %v916_v58, %v722_v59  ;;  %4 = vst.msk [vmem:[%s1683_s1] ss:$8 sm:$0xf] %vm3_vm3, %v2_v0   ;;  %v739_v2 = vld [vmem:[%s1682_s0 + $0x40] ss:$4 sm:$0xff]  }
  0x46   :  { %703 = vrot.lane.b32.xlu1 %v702_v32, %s924_s19  ;;  %735 = vst.msk [vmem:[%s1683_s1 - $0x1f] ss:$8 sm:$0xf0] %vm3_vm3, %v2_v0   ;;  %v745_v3 = vld [vmem:[%s1682_s0 + $0x80] ss:$4 sm:$0xff]  }
  0x47   :  { %737 = vst.msk [vmem:[%s1683_s1 + $0x2] ss:$8 sm:$0xf] %vm3_vm3, %v736_v1   ;;  %v748_v4 = vld [vmem:[%s1682_s0 + $0xa0] ss:$4 sm:$0xff]  }
  0x48   :  { %676 = vrot.lane.b32.xlu0 %v675_v39, %s924_s19  ;;  %738 = vst.msk [vmem:[%s1683_s1 - $0x1d] ss:$8 sm:$0xf0] %vm3_vm3, %v736_v1   ;;  %v751_v5 = vld [vmem:[%s1682_s0 + $0xc0] ss:$4 sm:$0xff]  }
  0x49   :  { %740 = vst.msk [vmem:[%s1683_s1 + $0x4] ss:$8 sm:$0xf] %vm3_vm3, %v739_v2  }
  0x4a   :  { %741 = vst.msk [vmem:[%s1683_s1 - $0x1b] ss:$8 sm:$0xf0] %vm3_vm3, %v739_v2  }
  0x4b   :  { %746 = vst.msk [vmem:[%s1683_s1 + $0x20] ss:$8 sm:$0xf] %vm3_vm3, %v745_v3  }
  0x4c   :  { %651 = vrot.lane.b32.xlu2 %v650_v54, %s924_s19  ;;  %747 = vst.msk [vmem:[%s1683_s1 + $0x1] ss:$8 sm:$0xf0] %vm3_vm3, %v745_v3  }
  0x4d   :  { %749 = vst.msk [vmem:[%s1683_s1 + $0x22] ss:$8 sm:$0xf] %vm3_vm3, %v748_v4  }
  0x4e   :  { %750 = vst.msk [vmem:[%s1683_s1 + $0x3] ss:$8 sm:$0xf0] %vm3_vm3, %v748_v4  }
  0x4f   :  { %752 = vst.msk [vmem:[%s1683_s1 + $0x24] ss:$8 sm:$0xf] %vm3_vm3, %v751_v5  }
  0x50   :  { %753 = vst.msk [vmem:[%s1683_s1 + $0x5] ss:$8 sm:$0xf0] %vm3_vm3, %v751_v5  }
  0x54   :  { %728 = vrot.lane.b32.xlu2 %v727_v60, %s924_s19 }
  0x6e   :  { %v177_v6 = vpop.permute.xlu2 %176  }
  0x6f   :  { %785 = vst.msk [vmem:[%s1683_s1 + $0x48] sm:$0x3] %vm83_vm4, %v177_v6  }
  0x70   :  { %786 = vst.msk [vmem:[%s1683_s1 + $0x2c] sm:$0xc] %vm83_vm4, %v177_v6  }
  0x71   :  { %787 = vst.msk [vmem:[%s1683_s1 + $0xc] sm:$0xf0] %vm83_vm4, %v177_v6  }
  0x76   :  { %v204_v7 = vpop.permute.xlu2 %203  }
  0x77   :  { %793 = vst.msk [vmem:[%s1683_s1 + $0x10] sm:$0xf0] %vm83_vm4, %v204_v7  }
  0x78   :  { %792 = vst.msk [vmem:[%s1683_s1 + $0x30] sm:$0xf] %vm83_vm4, %v204_v7   ;;  %v127_v8 = vpop.permute.xlu1 %126  }
  0x79   :  { %773 = vst.msk [vmem:[%s1683_s1 + $0x40] sm:$0x3] %vm83_vm4, %v127_v8  }
  0x7a   :  { %v82_v9 = vpop.permute.xlu0 %81   ;;  %774 = vst.msk [vmem:[%s1683_s1 + $0x6] sm:$0xfc] %vm83_vm4, %v127_v8  }
  0x7b   :  { %84 = vst.msk [vmem:[%s1683_s1] sm:$0xff] %vm83_vm4, %v82_v9  }
  0x7e   :  { %v281_v10 = vpop.permute.xlu2 %280  }
  0x7f   :  { %811 = vst.msk [vmem:[%s1683_s1 + $0x58] sm:$0x3] %vm83_vm4, %v281_v10  }
  0x80   :  { %812 = vst.msk [vmem:[%s1683_s1 + $0x38] sm:$0xfc] %vm83_vm4, %v281_v10   ;;  %v152_v11 = vpop.permute.xlu1 %151  }
  0x81   :  { %780 = vst.msk [vmem:[%s1683_s1 + $0x8] sm:$0xc0] %vm83_vm4, %v152_v11  }
  0x82   :  { %v104_v12 = vpop.permute.xlu0 %103   ;;  %779 = vst.msk [vmem:[%s1683_s1 + $0x28] sm:$0x3f] %vm83_vm4, %v152_v11  }
  0x83   :  { %768 = vst.msk [vmem:[%s1683_s1 + $0x20] sm:$0xff] %vm83_vm4, %v104_v12  }
  0x86   :  { %v351_v13 = vpop.permute.xlu2 %350  }
  0x87   :  { %826 = vst.msk [vmem:[%s1683_s1 + $0x40] sm:$0x3] %vm307_vm5, %v351_v13  }
  0x88   :  { %827 = vst.msk [vmem:[%s1683_s1 + $0x6] sm:$0xfc] %vm307_vm5, %v351_v13   ;;  %v256_v14 = vpop.permute.xlu1 %255  }
  0x89   :  { %805 = vst.msk [vmem:[%s1683_s1 + $0x38] sm:$0x3] %vm83_vm4, %v256_v14  }
  0x8a   :  { %v229_v15 = vpop.permute.xlu0 %228   ;;  %806 = vst.msk [vmem:[%s1683_s1 + $0x18] sm:$0xfc] %vm83_vm4, %v256_v14  }
  0x8b   :  { %798 = vst.msk [vmem:[%s1683_s1 + $0x50] sm:$0x3] %vm83_vm4, %v229_v15  }
  0x8c   :  { %800 = vst.msk [vmem:[%s1683_s1 + $0x12] sm:$0xc0] %vm83_vm4, %v229_v15  }
  0x8d   :  { %799 = vst.msk [vmem:[%s1683_s1 + $0x32] sm:$0x3c] %vm83_vm4, %v229_v15  }
  0x8e   :  { %v428_v16 = vpop.permute.xlu2 %427  }
  0x8f   :  { %845 = vst.msk [vmem:[%s1683_s1 + $0x30] sm:$0xf] %vm307_vm5, %v428_v16  }
  0x90   :  { %846 = vst.msk [vmem:[%s1683_s1 + $0x10] sm:$0xf0] %vm307_vm5, %v428_v16   ;;  %v328_v17 = vpop.permute.xlu1 %327  }
  0x91   :  { %821 = vst.msk [vmem:[%s1683_s1 + $0x20] sm:$0xff] %vm307_vm5, %v328_v17  }
  0x92   :  { %v306_v18 = vpop.permute.xlu0 %305  }
  0x93   :  { %308 = vst.msk [vmem:[%s1683_s1] sm:$0xff] %vm307_vm5, %v306_v18  }
  0x96   :  { %v505_v19 = vpop.permute.xlu2 %504  }
  0x97   :  { %864 = vst.msk [vmem:[%s1683_s1 + $0x58] sm:$0x3] %vm307_vm5, %v505_v19  }
  0x98   :  { %865 = vst.msk [vmem:[%s1683_s1 + $0x38] sm:$0xfc] %vm307_vm5, %v505_v19   ;;  %v401_v20 = vpop.permute.xlu1 %400  }
  0x99   :  { %838 = vst.msk [vmem:[%s1683_s1 + $0x48] sm:$0x3] %vm307_vm5, %v401_v20  }
  0x9a   :  { %839 = vst.msk [vmem:[%s1683_s1 + $0x2c] sm:$0xc] %vm307_vm5, %v401_v20   ;;  %v376_v21 = vpop.permute.xlu0 %375  }
  0x9b   :  { %840 = vst.msk [vmem:[%s1683_s1 + $0xc] sm:$0xf0] %vm307_vm5, %v401_v20  }
  0x9c   :  { %832 = vst.msk [vmem:[%s1683_s1 + $0x28] sm:$0x3f] %vm307_vm5, %v376_v21  }
  0x9d   :  { %833 = vst.msk [vmem:[%s1683_s1 + $0x8] sm:$0xc0] %vm307_vm5, %v376_v21  }
  0x9e   :  { %v575_v22 = vpop.permute.xlu2 %574  }
  0x9f   :  { %879 = vst.msk [vmem:[%s1683_s1 + $0x40] sm:$0x3] %vm531_vm6, %v575_v22  }
  0xa0   :  { %880 = vst.msk [vmem:[%s1683_s1 + $0x6] sm:$0xfc] %vm531_vm6, %v575_v22   ;;  %v480_v23 = vpop.permute.xlu1 %479  }
  0xa1   :  { %858 = vst.msk [vmem:[%s1683_s1 + $0x38] sm:$0x3] %vm307_vm5, %v480_v23  }
  0xa2   :  { %859 = vst.msk [vmem:[%s1683_s1 + $0x18] sm:$0xfc] %vm307_vm5, %v480_v23   ;;  %v453_v24 = vpop.permute.xlu0 %452  }
  0xa3   :  { %851 = vst.msk [vmem:[%s1683_s1 + $0x50] sm:$0x3] %vm307_vm5, %v453_v24  }
  0xa4   :  { %852 = vst.msk [vmem:[%s1683_s1 + $0x32] sm:$0x3c] %vm307_vm5, %v453_v24  }
  0xa5   :  { %853 = vst.msk [vmem:[%s1683_s1 + $0x12] sm:$0xc0] %vm307_vm5, %v453_v24  }
  0xa6   :  { %v652_v25 = vpop.permute.xlu2 %651  }
  0xa7   :  { %898 = vst.msk [vmem:[%s1683_s1 + $0x30] sm:$0xf] %vm531_vm6, %v652_v25  }
  0xa8   :  { %899 = vst.msk [vmem:[%s1683_s1 + $0x10] sm:$0xf0] %vm531_vm6, %v652_v25   ;;  %v552_v26 = vpop.permute.xlu1 %551  }
  0xa9   :  { %874 = vst.msk [vmem:[%s1683_s1 + $0x20] sm:$0xff] %vm531_vm6, %v552_v26  }
  0xaa   :  { %v530_v27 = vpop.permute.xlu0 %529  }
  0xab   :  { %532 = vst.msk [vmem:[%s1683_s1] sm:$0xff] %vm531_vm6, %v530_v27  }
  0xae   :  { %v729_v28 = vpop.permute.xlu2 %728  }
  0xaf   :  { %917 = vst.msk [vmem:[%s1683_s1 + $0x58] sm:$0x3] %vm531_vm6, %v729_v28  }
  0xb0   :  { %918 = vst.msk [vmem:[%s1683_s1 + $0x38] sm:$0xfc] %vm531_vm6, %v729_v28   ;;  %v625_v29 = vpop.permute.xlu1 %624  }
  0xb1   :  { %891 = vst.msk [vmem:[%s1683_s1 + $0x48] sm:$0x3] %vm531_vm6, %v625_v29  }
  0xb2   :  { %892 = vst.msk [vmem:[%s1683_s1 + $0x2c] sm:$0xc] %vm531_vm6, %v625_v29   ;;  %v600_v30 = vpop.permute.xlu0 %599  }
  0xb3   :  { %893 = vst.msk [vmem:[%s1683_s1 + $0xc] sm:$0xf0] %vm531_vm6, %v625_v29  }
  0xb4   :  { %885 = vst.msk [vmem:[%s1683_s1 + $0x28] sm:$0x3f] %vm531_vm6, %v600_v30  }
  0xb5   :  { %886 = vst.msk [vmem:[%s1683_s1 + $0x8] sm:$0xc0] %vm531_vm6, %v600_v30  }
  0xb8   :  { %v704_v31 = vpop.permute.xlu1 %703  }
  0xb9   :  { %911 = vst.msk [vmem:[%s1683_s1 + $0x38] sm:$0x3] %vm531_vm6, %v704_v31  }
  0xba   :  { %912 = vst.msk [vmem:[%s1683_s1 + $0x18] sm:$0xfc] %vm531_vm6, %v704_v31   ;;  %v677_v32 = vpop.permute.xlu0 %676  }
  0xbb   :  { %904 = vst.msk [vmem:[%s1683_s1 + $0x50] sm:$0x3] %vm531_vm6, %v677_v32  }
  0xbc   :  { %905 = vst.msk [vmem:[%s1683_s1 + $0x32] sm:$0x3c] %vm531_vm6, %v677_v32  }
  0xbd   :  { %906 = vst.msk [vmem:[%s1683_s1 + $0x12] sm:$0xc0] %vm531_vm6, %v677_v32  }

// kernel: tile.26
= control target key start
LH: loop header
LB: loop body
LE: loop exit
PB: predicated region body
PF: predicated region fallthrough
CT: control target
= control target key end

     0   :  { %s8_s6 = smov 3  ;;  %s11_s7 = smov 12  ;;  %vm13_vm0 = vcmask 1043458   ;;  %vm18_vm1 = vcmask 1045508   ;;  %vm23_vm2 = vcmask 1047558   ;;  %vm3_vm3 = vcmask 261120   ;;  %s206_s0 = inlined_call_operand.vmem [shape: f32[2,16,32], index: 0, kind: input, shape index: {}]   ;;  %s207_s1 = inlined_call_operand.vmem [shape: f32[2,512], index: 1, kind: output, shape index: {}]  }
   0x1   :  { %v115_v0 = vld [vmem:[%s206_s0 + $0x3] ss:$16 sm:%s8_s6]   ;;  %v116_v1 = vld [vmem:[%s206_s0 - $0x19] ss:$16 sm:%s11_s7]   ;;  %s16_s12 = smov 48  ;;  %s21_s13 = smov 192 }
   0x2   :  { %v14_v2 = vsel %vm13_vm0, %v116_v1, %v115_v0  ;;  %v117_v3 = vld [vmem:[%s206_s0 - $0x35] ss:$16 sm:%s16_s12]   ;;  %v118_v4 = vld [vmem:[%s206_s0 - $0x51] ss:$16 sm:%s21_s13]   ;;  %s36_s18 = smov 3  ;;  %s39_s21 = smov 12 }
   0x3   :  { %v19_v5 = vsel %vm18_vm1, %v117_v3, %v14_v2  ;;  %v119_v6 = vld [vmem:[%s206_s0 + $0x2] ss:$16 sm:%s36_s18]   ;;  %s44_s22 = smov 48  ;;  %v120_v8 = vld [vmem:[%s206_s0 - $0x1a] ss:$16 sm:%s39_s21]   ;;  %s49_s27 = smov 192 }
   0x4   :  { %v24_v7 = vsel %vm23_vm2, %v118_v4, %v19_v5  ;;  %v121_v9 = vld [vmem:[%s206_s0 - $0x36] ss:$16 sm:%s44_s22]   ;;  %s133_s28 = smov 96   ;;  %v42_v10 = vsel %vm13_vm0, %v120_v8, %v119_v6  ;;  %v122_v11 = vld [vmem:[%s206_s0 - $0x52] ss:$16 sm:%s49_s27]   ;;  %s64_s2 = smov 3 }
   0x5   :  { %25 = vrot.lane.b32.xlu0 %v24_v7, %s133_s28  ;;  %s67_s3 = smov 12  ;;  %v123_v12 = vld [vmem:[%s206_s0 + $0x1] ss:$16 sm:%s64_s2]   ;;  %s72_s8 = smov 48  ;;  %v47_v14 = vsel %vm18_vm1, %v121_v9, %v42_v10  ;;  %v2_v21 = vld [vmem:[%s206_s0] ss:$4 sm:$0xff]  }
   0x6   :  { %v124_v13 = vld [vmem:[%s206_s0 - $0x1b] ss:$16 sm:%s67_s3]   ;;  %s77_s9 = smov 192  ;;  %v125_v16 = vld [vmem:[%s206_s0 - $0x37] ss:$16 sm:%s72_s8]   ;;  %v52_v20 = vsel %vm23_vm2, %v122_v11, %v47_v14  ;;  %s134_s14 = smov 32  }
   0x7   :  { %v70_v15 = vsel %vm13_vm0, %v124_v13, %v123_v12  ;;  %v126_v17 = vld [vmem:[%s206_s0 - $0x53] ss:$16 sm:%s77_s9]   ;;  %s135_s15 = smov 64   ;;  %4 = vst.msk [vmem:[#allocation0] ss:$8 sm:$0xf] %vm3_vm3, %v2_v21  }
   0x8   :  { %v75_v18 = vsel %vm18_vm1, %v125_v16, %v70_v15  ;;  %6 = vst.msk [vmem:[#allocation0 - $0x1f] ss:$8 sm:$0xf0] %vm3_vm3, %v2_v21   ;;  %vm27_vm4 = vcmask 1048320   ;;  %vm55_vm5 = vcmask 785920   ;;  %vm83_vm6 = vcmask 523520  }
   0x9   :  { %v80_v19 = vsel %vm23_vm2, %v126_v17, %v75_v18 }
   0xa   :  { %81 = vrot.lane.b32.xlu1 %v80_v19, %s134_s14 }
   0xd   :  { %53 = vrot.lane.b32.xlu0 %v52_v20, %s135_s15 }
  0x77   :  { %v26_v22 = vpop.permute.xlu0 %25  }
  0x78   :  { %28 = vst.msk [vmem:[#allocation0] sm:$0x3] %vm27_vm4, %v26_v22  }
  0x79   :  { %30 = vst.msk [vmem:[#allocation0 + $0x6] sm:$0xc] %vm27_vm4, %v26_v22  }
  0x7a   :  { %32 = vst.msk [vmem:[#allocation0 + $0xc] sm:$0x30] %vm27_vm4, %v26_v22  }
  0x7b   :  { %34 = vst.msk [vmem:[#allocation0 + $0x12] sm:$0xc0] %vm27_vm4, %v26_v22  }
  0x7c   :  { %v82_v23 = vpop.permute.xlu1 %81  }
  0x7f   :  { %v54_v24 = vpop.permute.xlu0 %53  }
  0x80   :  { %56 = vst.msk [vmem:[#allocation0] sm:$0x3] %vm55_vm5, %v54_v24  }
  0x81   :  { %58 = vst.msk [vmem:[#allocation0 + $0x6] sm:$0xc] %vm55_vm5, %v54_v24  }
  0x82   :  { %60 = vst.msk [vmem:[#allocation0 + $0xc] sm:$0x30] %vm55_vm5, %v54_v24  }
  0x83   :  { %62 = vst.msk [vmem:[#allocation0 + $0x12] sm:$0xc0] %vm55_vm5, %v54_v24  }
  0x84   :  { %84 = vst.msk [vmem:[#allocation0] sm:$0x3] %vm83_vm6, %v82_v23  }
  0x85   :  { %86 = vst.msk [vmem:[#allocation0 + $0x6] sm:$0xc] %vm83_vm6, %v82_v23  }
  0x86   :  { %88 = vst.msk [vmem:[#allocation0 + $0xc] sm:$0x30] %vm83_vm6, %v82_v23  }
  0x87   :  { %90 = vst.msk [vmem:[#allocation0 + $0x12] sm:$0xc0] %vm83_vm6, %v82_v23  }
  0x8b   :  { %v93_v25 = vld [vmem:[#allocation0] sm:$0x3] }
  0x8c   :  { %96 = vst [vmem:[%s207_s1] sm:$0x3] %v93_v25  ;;  %v98_v26 = vld [vmem:[#allocation0 + $0x8] sm:$0x3] }
  0x8d   :  { %127 = vst [vmem:[%s207_s1 + $0x2] sm:$0x3] %v98_v26  ;;  %v104_v27 = vld [vmem:[#allocation0 + $0x10] sm:$0x3] }
  0x8e   :  { %128 = vst [vmem:[%s207_s1 + $0x4] sm:$0x3] %v104_v27  ;;  %v110_v28 = vld [vmem:[#allocation0 + $0x18] sm:$0x3] }
  0x8f   :  { %129 = vst [vmem:[%s207_s1 + $0x6] sm:$0x3] %v110_v28 }

// kernel: sk_block_forward.1
= control target key start
LH: loop header
LB: loop body
LE: loop exit
PB: predicated region body
PF: predicated region fallthrough
CT: control target
= control target key end

     0   :  { %s3008_s21 = smov 0   ;;  %s5546_s0 = inlined_call_operand.vmem [shape: f32[2,20,640], index: 0, kind: input, shape index: {}]   ;;  %s5547_s1 = inlined_call_operand.vmem [shape: f32[18,512], index: 1, kind: input, shape index: {}]   ;;  %s5548_s2 = inlined_call_operand.vmem [shape: f32[2,512], index: 2, kind: input, shape index: {}]   ;;  %s5549_s3 = inlined_call_operand.vmem [shape: f32[512,32], index: 3, kind: input, shape index: {}]   ;;  %s5550_s4 = inlined_call_operand.vmem [shape: f32[1,32], index: 4, kind: input, shape index: {}]   ;;  %s5551_s5 = inlined_call_operand.vmem [shape: f32[32,1024], index: 5, kind: input, shape index: {}]   ;;  %s5552_s6 = inlined_call_operand.vmem [shape: f32[2,16,512], index: 6, kind: output, shape index: {}]  }
   0x1 LB: > { %s2876_s22 = sadd.s32 4294967295, %s2968_s21   ;;  %p2880_p0 = scmp.ge.s32.totalorder %s2968_s21, 1  ;;  %s2968_s21 = sphi %s3008_s21, %s16_s21  }
   0x2   : > { %p212_p1 = scmp.lt.s32.totalorder %s2968_s21, 3 }
   0x4   : > { %p213_p2 = pnand %p2880_p0, %p212_p1 }
   0x6   : > { %216 = sbr.rel (%p213_p2) target bundleno = 1151 (0x47f), region = 44 }
   0xb   : > { %v3019_v0 = vld [vmem:[%s5547_s1 + $0x10] sm:$0xff]  ;;  %v3024_v1 = vld [vmem:[%s5547_s1] sm:$0xff]  ;;  %s2970_s27 = smov 32   ;;  %v3035_v5 = vld [vmem:[%s5547_s1 + $0x18] sm:$0xff]  ;;  %s2971_s8 = smov 64   ;;  %vm698_vm0 = vcmask 523264  }
   0xc   : > { %v425_v2 = vperm.slane %v3019_v0, 0  ;;  %v423_v3 = vperm.slane %v3024_v1, 0  ;;  %v463_v4 = vperm.slane %v3024_v1, 3  ;;  %v3040_v6 = vld [vmem:[%s5547_s1 + $0x8] sm:$0xff]  ;;  %v426_v7 = vperm.slane %v3035_v5, 0  ;;  %v3068_v19 = vld [vmem:[%s5547_s1 + $0x20] sm:$0xff] }
   0xd   : > { %v424_v8 = vperm.slane %v3040_v6, 0  ;;  %v464_v9 = vperm.slane %v3040_v6, 3  ;;  %v466_v10 = vperm.slane %v3035_v5, 3  ;;  %v465_v11 = vperm.slane %v3019_v0, 3  ;;  %v3076_v22 = vld [vmem:[%s5547_s1 + $0x28] sm:$0xff]  ;;  %v3084_v24 = vld [vmem:[%s5547_s1 + $0x38] sm:$0xff] }
   0xe   : > { %435 = vrot.lane.b32.xlu1 %v425_v2, %s2970_s27  ;;  %431 = vrot.lane.b32.xlu0 %v423_v3, %s2970_s27  ;;  %v573_v12 = vperm.slane %v3024_v1, 6  ;;  %v575_v13 = vperm.slane %v3019_v0, 6  ;;  %v574_v14 = vperm.slane %v3040_v6, 6  ;;  %v576_v15 = vperm.slane %v3035_v5, 6  ;;  %v3089_v25 = vld [vmem:[%s5547_s1 + $0x30] sm:$0xff]  ;;  %p242_p3 = scmp.lt.s32.totalorder %s2876_s22, 1 }
   0xf   : > { %471 = vrot.lane.b32.xlu2 %v463_v4, %s2970_s27  ;;  %v683_v16 = vperm.slane %v3040_v6, 1  ;;  %v682_v17 = vperm.slane %v3024_v1, 1  ;;  %v684_v18 = vperm.slane %v3019_v0, 1  ;;  %v685_v20 = vperm.slane %v3035_v5, 1  ;;  %v3107_v32 = vld [vmem:[%s5547_s1 + $0x48] sm:$0x3] }
  0x10   : > { %v1200_v21 = vperm.slane %v3068_v19, 5  ;;  %v1201_v23 = vperm.slane %v3076_v22, 5  ;;  %v1203_v26 = vperm.slane %v3084_v24, 5  ;;  %v1202_v27 = vperm.slane %v3089_v25, 5  ;;  %v3113_v34 = vld [vmem:[%s5547_s1 + $0x40] sm:$0x3] }
  0x11   : > { %v1112_v28 = vperm.slane %v3068_v19, 2  ;;  %v1114_v29 = vperm.slane %v3089_v25, 2  ;;  %v1113_v30 = vperm.slane %v3076_v22, 2  ;;  %v1115_v31 = vperm.slane %v3084_v24, 2  ;;  %v3121_v36 = vld [vmem:[%s5547_s1 + $0x58] sm:$0x3] }
  0x12   : > { %v1324_v33 = vperm.slane %v3107_v32, 0  ;;  %v1323_v35 = vperm.slane %v3113_v34, 0  ;;  %v1326_v37 = vperm.slane %v3121_v36, 0  ;;  %v3128_v38 = vld [vmem:[%s5547_s1 + $0x50] sm:$0x3]  ;;  %v812_v39 = vperm.slane %v3019_v0, 4 }
  0x13   : > { %v1325_v40 = vperm.slane %v3128_v38, 0  ;;  %v811_v41 = vperm.slane %v3040_v6, 4  ;;  %v813_v45 = vperm.slane %v3035_v5, 4  ;;  %s5846_s22 = smov (!%p242_p3, %s2876_s22), 1  ;;  %s2972_s9 = smov 96   ;;  %vm321_vm1 = vcmask 1045504  }
  0x14   : > { %s2895_s28 = smul.u32 120, %s5846_s22  ;;  %vm386_vm2 = vcmask 1043456   ;;  %vm517_vm3 = vcmask 1046528   ;;  %vm767_vm4 = vcmask 785408   ;;  %vm439_vm5 = vcmask 261120   ;;  %s2894_s19 = sshll.u32 %s5846_s22, 6 }
  0x15   : > { %vm2121_vm6 = vcmask 1040384   ;;  %vm2247_vm7 = vcmask 1047808   ;;  %s5511_s22 = scalar_lea.vmem %s5552_s6, %s2894_s19 }
  0x16   : > { %437 = vrot.lane.b32.xlu1 %v426_v7, %s2970_s27  ;;  %433 = vrot.lane.b32.xlu0 %v424_v8, %s2970_s27  ;;  %s3172_s7 = scalar_lea.vmem %s5546_s0, %s2895_s28 }
  0x17   : > { %473 = vrot.lane.b32.xlu2 %v464_v9, %s2970_s27  ;;  %v3175_v55 = vld [vmem:[%s3172_s7] sm:$0xff]  ;;  %v3178_v56 = vld [vmem:[%s3172_s7 + $0x28] sm:$0xff]  ;;  %v3186_v63 = vld [vmem:[%s3172_s7 + $0x10] sm:$0xff] }
  0x18   : > { %v3190_v3 = vld [vmem:[%s3172_s7 + $0x20] sm:$0xff]  ;;  %v3193_v4 = vld [vmem:[%s3172_s7 + $0x48] sm:$0xff] }
  0x19   : > { %5630 = vst [vmem:[#allocation14_spill] sm:$0xff] %v3190_v3 }
  0x1a   : > { %5631 = vst [vmem:[#allocation15_spill] sm:$0xff] %v3193_v4 }
  0x1e   : > { %477 = vrot.lane.b32.xlu1 %v466_v10, %s2970_s27  ;;  %475 = vrot.lane.b32.xlu0 %v465_v11, %s2970_s27 }
  0x1f   : > { %581 = vrot.lane.b32.xlu2 %v573_v12, %s2970_s27  ;;  %v3209_v12 = vld [vmem:[%s3172_s7 + $0x50] sm:$0xf] }
  0x26   : > { %585 = vrot.lane.b32.xlu1 %v575_v13, %s2970_s27  ;;  %583 = vrot.lane.b32.xlu0 %v574_v14, %s2970_s27  ;;  %v3212_v13 = vld [vmem:[%s3172_s7 + $0x40] sm:$0xff] }
  0x27   : > { %587 = vrot.lane.b32.xlu2 %v576_v15, %s2970_s27 }
  0x2e   : > { %692 = vrot.lane.b32.xlu1 %v683_v16, %s2971_s8  ;;  %690 = vrot.lane.b32.xlu0 %v682_v17, %s2971_s8  ;;  %v3219_v16 = vld [vmem:[%s3172_s7 + $0x18] sm:$0xff] }
  0x2f   : > { %694 = vrot.lane.b32.xlu2 %v684_v18, %s2971_s8 }
  0x36   : > { %696 = vrot.lane.b32.xlu0 %v685_v20, %s2971_s8  ;;  %1208 = vrot.lane.b32.xlu1 %v1200_v21, %s2971_s8 }
  0x37   : > { %1210 = vrot.lane.b32.xlu2 %v1201_v23, %s2971_s8  ;;  %v3229_v23 = vld [vmem:[%s3172_s7 + $0x8] sm:$0xff] }
  0x3e   : > { %1214 = vrot.lane.b32.xlu1 %v1203_v26, %s2971_s8  ;;  %1212 = vrot.lane.b32.xlu0 %v1202_v27, %s2971_s8  ;;  %v3232_v26 = vld [vmem:[%s3172_s7 + $0x58] sm:$0xf]  ;;  %v3235_v27 = vld [vmem:[%s3172_s7 + $0x30] sm:$0xff] }
  0x3f   : > { %1120 = vrot.lane.b32.xlu2 %v1112_v28, %s2971_s8 }
  0x46   : > { %1124 = vrot.lane.b32.xlu1 %v1114_v29, %s2971_s8  ;;  %1122 = vrot.lane.b32.xlu0 %v1113_v30, %s2971_s8 }
  0x47   : > { %1126 = vrot.lane.b32.xlu2 %v1115_v31, %s2971_s8 }
  0x4e   : > { %1333 = vrot.lane.b32.xlu1 %v1324_v33, %s2971_s8  ;;  %1331 = vrot.lane.b32.xlu0 %v1323_v35, %s2971_s8 }
  0x4f   : > { %1335 = vrot.lane.b32.xlu2 %v1325_v40, %s2971_s8  ;;  %v3248_v40 = vld [vmem:[%s3172_s7 + $0x38] sm:$0xff] }
  0x56   : > { %1337 = vrot.lane.b32.xlu0 %v1326_v37, %s2971_s8  ;;  %822 = vrot.lane.b32.xlu1 %v812_v39, %s2971_s8 }
  0x57   : > { %824 = vrot.lane.b32.xlu2 %v813_v45, %s2971_s8 }
  0x5e   : > { %820 = vrot.lane.b32.xlu0 %v811_v41, %s2971_s8  ;;  %v3251_v41 = vld [vmem:[%s3172_s7 + $0x60] sm:$0xf] }
  0x69   : > { %v3133_v42 = vpop.permute.xlu2 %471 }
  0x6a   : > { %5618 = vst [vmem:[#allocation2_spill] sm:$0xff] %v3133_v42 }
  0x71   : > { %v3144_v46 = vpop.permute.xlu2 %473 }
  0x72   : > { %5621 = vst [vmem:[#allocation5_spill] sm:$0xff] %v3144_v46 }
  0x79   : > { %v3156_v51 = vpop.permute.xlu2 %581 }
  0x7a   : > { %5626 = vst [vmem:[#allocation10_spill] sm:$0xff] %v3156_v51 }
  0x80   : > { %v3138_v43 = vpop.permute.xlu1 %435  ;;  %v3140_v44 = vpop.permute.xlu0 %431 }
  0x81   : > { %5619 = vst [vmem:[#allocation3_spill] sm:$0xff] %v3138_v43  ;;  %v3165_v53 = vpop.permute.xlu2 %587 }
  0x82   : > { %5620 = vst [vmem:[#allocation4_spill] sm:$0xff] %v3140_v44 }
  0x83   : > { %5628 = vst [vmem:[#allocation12_spill] sm:$0xff] %v3165_v53 }
  0x88   : > { %v3146_v47 = vpop.permute.xlu1 %437  ;;  %v3148_v48 = vpop.permute.xlu0 %433 }
  0x89   : > { %5622 = vst [vmem:[#allocation6_spill] sm:$0xff] %v3146_v47  ;;  %v695_v60 = vpop.permute.xlu2 %694  ;;  %v294_v47 = vperm.slane %v3076_v22, 4 }
  0x8a   : > { %5623 = vst [vmem:[#allocation7_spill] sm:$0xff] %v3148_v48 }
  0x90   : > { %v3150_v49 = vpop.permute.xlu1 %477  ;;  %v3152_v50 = vpop.permute.xlu0 %475 }
  0x91   : > { %5624 = vst [vmem:[#allocation8_spill] sm:$0xff] %v3150_v49  ;;  %v3206_v11 = vpop.permute.xlu2 %1210 }
  0x92   : > { %5625 = vst [vmem:[#allocation9_spill] sm:$0xff] %v3152_v50  ;;  %v3541_v50 = vperm.slane %v3084_v24, 7 }
  0x94   : > { %v3584_v46 = vmul.f32 %v3541_v50, %v3212_v13 }
  0x98   : > { %v3162_v52 = vpop.permute.xlu0 %583  ;;  %v3167_v54 = vpop.permute.xlu1 %585 }
  0x99   : > { %5627 = vst [vmem:[#allocation11_spill] sm:$0xff] %v3162_v52  ;;  %v1121_v30 = vpop.permute.xlu2 %1120 }
  0x9a   : > { %5629 = vst [vmem:[#allocation13_spill] sm:$0xff] %v3167_v54 }
  0xa0   : > { %v691_v57 = vpop.permute.xlu0 %690  ;;  %v693_v61 = vpop.permute.xlu1 %692 }
  0xa1   : > { %v712_v58 = vmul.f32 %v691_v57, %v3178_v56  ;;  %v707_v59 = vmul.f32 %v691_v57, %v3175_v55  ;;  %v700_v62 = vsel %vm698_vm0, %v693_v61, %v695_v60  ;;  %v717_v17 = vmul.f32 %v691_v57, %v3209_v12 }
  0xa2   : > { %v709_v2 = vmul.f32 %v700_v62, %v3186_v63  ;;  %v699_v21 = vsel %vm698_vm0, %v691_v57, %v693_v61  ;;  %v714_v45 = vmul.f32 %v700_v62, %v3248_v40  ;;  %v719_v57 = vmul.f32 %v700_v62, %v3251_v41 }
  0xa3   : > { %747 = vrot.lane.b32.xlu0 %v712_v58, %s2972_s9  ;;  %737 = vrot.lane.b32.xlu1 %v707_v59, %s2972_s9  ;;  %v718_v28 = vmul.f32 %v699_v21, %v3232_v26  ;;  %v708_v29 = vmul.f32 %v699_v21, %v3229_v23  ;;  %v713_v35 = vmul.f32 %v699_v21, %v3235_v27  ;;  %v1127_v59 = vpop.permute.xlu2 %1126 }
  0xa4   : > { %v1140_v61 = vmul.f32 %v1127_v59, %v3190_v3 }
  0xa8   : > { %v3195_v7 = vpop.permute.xlu0 %696  ;;  %v3214_v14 = vpop.permute.xlu1 %1208 }
  0xa9   : > { %v711_v8 = vmul.f32 %v3195_v7, %v3190_v3  ;;  %v716_v9 = vmul.f32 %v3195_v7, %v3193_v4  ;;  %v701_v10 = vsel %vm698_vm0, %v695_v60, %v3195_v7 }
  0xaa   : > { %v715_v18 = vmul.f32 %v701_v10, %v3212_v13  ;;  %v710_v20 = vmul.f32 %v701_v10, %v3219_v16 }
  0xab   : > { %745 = vrot.lane.b32.xlu2 %v711_v8, %s2972_s9  ;;  %741 = vrot.lane.b32.xlu0 %v709_v2, %s2972_s9  ;;  %v3261_v2 = vld [vmem:[%s3172_s7 + $0x68] sm:$0xf] }
  0xac   : > { %755 = vrot.lane.b32.xlu1 %v716_v9, %s2972_s9  ;;  %5632 = vst [vmem:[#allocation16_spill] sm:$0xff] %v3261_v2  ;;  %v720_v8 = vmul.f32 %v701_v10, %v3261_v2  ;;  %v962_v10 = vperm.slane %v3040_v6, 7 }
  0xb0   : > { %v3216_v15 = vpop.permute.xlu0 %1212  ;;  %v3239_v33 = vpop.permute.xlu1 %1214 }
  0xb3   : > { %757 = vrot.lane.b32.xlu2 %v717_v17, %s2972_s9  ;;  %753 = vrot.lane.b32.xlu0 %v715_v18, %s2972_s9 }
  0xb4   : > { %743 = vrot.lane.b32.xlu1 %v710_v20, %s2972_s9 }
  0xb8   : > { %v1123_v31 = vpop.permute.xlu0 %1122  ;;  %v1125_v58 = vpop.permute.xlu1 %1124 }
  0xb9   : > { %v1128_v37 = vsel %vm698_vm0, %v1121_v30, %v1123_v31  ;;  %v1129_v60 = vsel %vm698_vm0, %v1123_v31, %v1125_v58  ;;  %v1130_v62 = vsel %vm698_vm0, %v1125_v58, %v1127_v59  ;;  %v810_v31 = vperm.slane %v3024_v1, 4 }
  0xba   : > { %v1137_v39 = vmul.f32 %v1128_v37, %v3229_v23  ;;  %v1138_v9 = vmul.f32 %v1129_v60, %v3186_v63  ;;  %v1144_v17 = vmul.f32 %v1130_v62, %v3212_v13  ;;  %v1139_v18 = vmul.f32 %v1130_v62, %v3219_v16 }
  0xbb   : > { %759 = vrot.lane.b32.xlu0 %v718_v28, %s2972_s9  ;;  %739 = vrot.lane.b32.xlu2 %v708_v29, %s2972_s9  ;;  %v1142_v20 = vmul.f32 %v1128_v37, %v3235_v27  ;;  %v1143_v21 = vmul.f32 %v1129_v60, %v3248_v40  ;;  %v1145_v28 = vmul.f32 %v1127_v59, %v3193_v4  ;;  %v964_v60 = vperm.slane %v3035_v5, 7 }
  0xbc   : > { %749 = vrot.lane.b32.xlu1 %v713_v35, %s2972_s9  ;;  %v1217_v29 = vsel %vm698_vm0, %v3206_v11, %v3216_v15  ;;  %v963_v35 = vperm.slane %v3019_v0, 7  ;;  %v1136_v37 = vmul.f32 %v1121_v30, %v3175_v55 }
  0xc3   : > { %1158 = vrot.lane.b32.xlu0 %v1137_v39, %s2971_s8  ;;  %751 = vrot.lane.b32.xlu2 %v714_v45, %s2972_s9  ;;  %v1226_v39 = vmul.f32 %v1217_v29, %v3186_v63  ;;  %v1231_v45 = vmul.f32 %v1217_v29, %v3248_v40 }
  0xc4   : > { %761 = vrot.lane.b32.xlu1 %v719_v57, %s2972_s9  ;;  %v1216_v57 = vsel %vm698_vm0, %v3214_v14, %v3206_v11  ;;  %v1141_v11 = vmul.f32 %v1121_v30, %v3178_v56 }
  0xc5   : > { %v1260_v58 = vrot.slane %v1226_v39, 2  ;;  %v1261_v59 = vrot.slane %v1231_v45, 2  ;;  %v1235_v62 = vmul.f32 %v1216_v57, %v3232_v26  ;;  %v1336_v39 = vpop.permute.xlu2 %1335 }
  0xcb   : > { %1164 = vrot.lane.b32.xlu0 %v1140_v61, %s2971_s8  ;;  %763 = vrot.lane.b32.xlu2 %v720_v8, %s2972_s9  ;;  %v1218_v61 = vsel %vm698_vm0, %v3216_v15, %v3239_v33  ;;  %v1225_v8 = vmul.f32 %v1216_v57, %v3229_v23 }
  0xcc   : > { %1160 = vrot.lane.b32.xlu1 %v1138_v9, %s2971_s8  ;;  %v1230_v9 = vmul.f32 %v1216_v57, %v3235_v27  ;;  %v1228_v57 = vmul.f32 %v3239_v33, %v3190_v3 }
  0xcd   : > { %v1257_v15 = vrot.slane %v1225_v8, 2  ;;  %v1236_v8 = vmul.f32 %v1217_v29, %v3251_v41 }
  0xd3   : > { %1172 = vrot.lane.b32.xlu0 %v1144_v17, %s2971_s8  ;;  %1162 = vrot.lane.b32.xlu2 %v1139_v18, %s2971_s8  ;;  %v1262_v17 = vsel %vm321_vm1, %v1260_v58, %v1261_v59  ;;  %v1227_v18 = vmul.f32 %v1218_v61, %v3219_v16  ;;  %v1233_v58 = vmul.f32 %v3239_v33, %v3193_v4 }
  0xd4   : > { %1168 = vrot.lane.b32.xlu1 %v1142_v20, %s2971_s8  ;;  %v1232_v20 = vmul.f32 %v1218_v61, %v3212_v13 }
  0xdb   : > { %971 = vrot.lane.b32.xlu0 %v962_v10, %s2971_s8  ;;  %1170 = vrot.lane.b32.xlu2 %v1143_v21, %s2971_s8  ;;  %v1258_v10 = vrot.slane %v1230_v9, 2  ;;  %v1271_v21 = vrot.slane %v1235_v62, 2  ;;  %v1266_v62 = vrot.slane %v1228_v57, 2 }
  0xdc   : > { %1174 = vrot.lane.b32.xlu1 %v1145_v28, %s2971_s8  ;;  %v1263_v28 = vrot.slane %v1227_v18, 2  ;;  %v1273_v18 = vrot.slane %v1236_v8, 2 }
  0xdd   : > { %v1259_v30 = vsel %vm321_vm1, %v1257_v15, %v1258_v10  ;;  %v1272_v45 = vsel %vm321_vm1, %v1258_v10, %v1271_v21  ;;  %v1237_v15 = vmul.f32 %v1218_v61, %v3261_v2  ;;  %v1234_v10 = vmul.f32 %v3214_v14, %v3209_v12  ;;  %v1334_v61 = vpop.permute.xlu1 %1333 }
  0xdf   : > { %v1275_v57 = vrot.slane %v1237_v15, 2 }
  0xe3   : > { %818 = vrot.lane.b32.xlu2 %v810_v31, %s2971_s8  ;;  %1156 = vrot.lane.b32.xlu0 %v1136_v37, %s2971_s8  ;;  %v1264_v31 = vrot.slane %v1232_v20, 2  ;;  %v3312_v37 = vld [vmem:[%s3172_s7 + $0x70] sm:$0xf]  ;;  %v1229_v20 = vmul.f32 %v3214_v14, %v3178_v56 }
  0xe4   : > { %973 = vrot.lane.b32.xlu1 %v963_v35, %s2971_s8  ;;  %v3309_v35 = vpop.permute.xlu0 %1331  ;;  %5633 = vst [vmem:[#allocation17_spill] sm:$0xff] %v3312_v37 }
  0xe5   : > { %v1265_v9 = vsel %vm321_vm1, %v1263_v28, %v1264_v31  ;;  %v1274_v28 = vsel %vm321_vm1, %v1261_v59, %v1273_v18  ;;  %v1339_v8 = vsel %vm698_vm0, %v3309_v35, %v1334_v61  ;;  %v1224_v18 = vmul.f32 %v3214_v14, %v3175_v55 }
  0xe6   : > { %v1353_v15 = vmul.f32 %v1339_v8, %v3235_v27 }
  0xe8   : > { %v1381_v14 = vrot.slane %v1353_v15, 4 }
  0xeb   : > { %975 = vrot.lane.b32.xlu2 %v964_v60, %s2971_s8  ;;  %1283 = vrot.lane.b32.xlu0 %v1262_v17, %s2971_s8  ;;  %v1238_v60 = vmul.f32 %v3239_v33, %v3312_v37  ;;  %v1267_v17 = vrot.slane %v1233_v58, 2  ;;  %v1255_v58 = vrot.slane %v1229_v20, 2  ;;  %v1348_v20 = vmul.f32 %v1339_v8, %v3229_v23 }
  0xec   : > { %1166 = vrot.lane.b32.xlu1 %v1141_v11, %s2971_s8  ;;  %v3334_v21 = vpop.permute.xlu0 %1337 }
  0xed   : > { %v1277_v11 = vrot.slane %v1238_v60, 2  ;;  %v1268_v33 = vsel %vm321_vm1, %v1266_v62, %v1267_v17  ;;  %v1269_v60 = vrot.slane %v1234_v10, 2 }
  0xef   : > { %v1278_v29 = vsel %vm321_vm1, %v1267_v17, %v1277_v11  ;;  %v1276_v17 = vsel %vm321_vm1, %v1264_v31, %v1275_v57  ;;  %v1270_v11 = vsel %vm321_vm1, %v1255_v58, %v1269_v60  ;;  %v1254_v31 = vrot.slane %v1224_v18, 2  ;;  %v3376_v18 = vpop.permute.xlu1 %822 }
  0xf0   : > { %v1380_v57 = vrot.slane %v1348_v20, 4 }
  0xf3   : > { %1281 = vrot.lane.b32.xlu2 %v1259_v30, %s2971_s8  ;;  %1291 = vrot.lane.b32.xlu0 %v1272_v45, %s2971_s8  ;;  %v3339_v30 = vpop.permute.xlu2 %824  ;;  %v1341_v45 = vsel %vm698_vm0, %v1336_v39, %v3334_v21 }
  0xf4   : > { %1285 = vrot.lane.b32.xlu1 %v1265_v9, %s2971_s8  ;;  %v961_v9 = vperm.slane %v3024_v1, 7  ;;  %v1350_v62 = vmul.f32 %v1341_v45, %v3219_v16  ;;  %v1355_v59 = vmul.f32 %v1341_v45, %v3212_v13 }
  0xfb   : > { %1287 = vrot.lane.b32.xlu2 %v1268_v33, %s2971_s8  ;;  %1297 = vrot.lane.b32.xlu0 %v1278_v29, %s2971_s8  ;;  %v1386_v33 = vrot.slane %v1350_v62, 4  ;;  %v1387_v29 = vrot.slane %v1355_v59, 4  ;;  %v1382_v62 = vsel %vm386_vm2, %v1380_v57, %v1381_v14  ;;  %v1356_v59 = vmul.f32 %v3334_v21, %v3193_v4 }
  0xfc   : > { %1293 = vrot.lane.b32.xlu1 %v1274_v28, %s2971_s8  ;;  %v1340_v28 = vsel %vm698_vm0, %v1334_v61, %v1336_v39  ;;  %v3369_v39 = vpop.permute.xlu0 %820  ;;  %v1351_v61 = vmul.f32 %v3334_v21, %v3190_v3  ;;  %v1347_v57 = vmul.f32 %v3309_v35, %v3175_v55 }
  0xfd   : > { %v1388_v60 = vsel %vm386_vm2, %v1386_v33, %v1387_v29  ;;  %v1359_v52 = vmul.f32 %v1340_v28, %v3251_v41 }
  0xff   : > { %v1396_v33 = vrot.slane %v1359_v52, 4 }
 0x103   : > { %1295 = vrot.lane.b32.xlu2 %v1276_v17, %s2971_s8  ;;  %1289 = vrot.lane.b32.xlu0 %v1270_v11, %s2971_s8  ;;  %v1349_v17 = vmul.f32 %v1340_v28, %v3186_v63  ;;  %v1354_v11 = vmul.f32 %v1340_v28, %v3248_v40  ;;  %v1390_v28 = vrot.slane %v1356_v59, 4 }
 0x104   : > { %969 = vrot.lane.b32.xlu1 %v961_v9, %s2971_s8  ;;  %v1256_v9 = vsel %vm321_vm1, %v1254_v31, %v1255_v58  ;;  %v1389_v31 = vrot.slane %v1351_v61, 4 }
 0x105   : > { %v3358_v10 = vpop.permute.xlu2 %745  ;;  %v1383_v58 = vrot.slane %v1349_v17, 4  ;;  %v1384_v15 = vrot.slane %v1354_v11, 4  ;;  %v1360_v17 = vmul.f32 %v1341_v45, %v3261_v2 }
 0x106   : > { %5634 = vst [vmem:[#allocation18_spill] sm:$0xff] %v3358_v10  ;;  %v1358_v10 = vmul.f32 %v1339_v8, %v3232_v26  ;;  %v1391_v52 = vsel %vm386_vm2, %v1389_v31, %v1390_v28  ;;  %v1361_v31 = vmul.f32 %v3334_v21, %v3312_v37  ;;  %v1574_v21 = vperm.slane %v3019_v0, 5 }
 0x108   : > { %v1394_v8 = vrot.slane %v1358_v10, 4 }
 0x10b   : > { %1279 = vrot.lane.b32.xlu2 %v1256_v9, %s2971_s8  ;;  %1408 = vrot.lane.b32.xlu0 %v1388_v60, %s2971_s8  ;;  %v1385_v60 = vsel %vm386_vm2, %v1383_v58, %v1384_v15  ;;  %v1397_v9 = vsel %vm386_vm2, %v1384_v15, %v1396_v33  ;;  %v1377_v58 = vrot.slane %v1347_v57, 4  ;;  %v1398_v33 = vrot.slane %v1360_v17, 4 }
 0x10c   : > { %1404 = vrot.lane.b32.xlu1 %v1382_v62, %s2971_s8  ;;  %v1352_v62 = vmul.f32 %v3309_v35, %v3178_v56 }
 0x10d   : > { %v3378_v20 = vpop.permute.xlu2 %757  ;;  %v1399_v45 = vsel %vm386_vm2, %v1387_v29, %v1398_v33 }
 0x10e   : > { %5635 = vst [vmem:[#allocation19_spill] sm:$0xff] %v3378_v20  ;;  %v1378_v15 = vrot.slane %v1352_v62, 4  ;;  %v1400_v62 = vrot.slane %v1361_v31, 4 }
 0x113   : > { %1406 = vrot.lane.b32.xlu2 %v1385_v60, %s2971_s8  ;;  %1416 = vrot.lane.b32.xlu0 %v1397_v9, %s2971_s8  ;;  %v1395_v60 = vsel %vm386_vm2, %v1381_v14, %v1394_v8  ;;  %v1379_v9 = vsel %vm386_vm2, %v1377_v58, %v1378_v15  ;;  %v1401_v8 = vsel %vm386_vm2, %v1390_v28, %v1400_v62  ;;  %v1575_v28 = vperm.slane %v3035_v5, 5 }
 0x114   : > { %1410 = vrot.lane.b32.xlu1 %v1391_v52, %s2971_s8  ;;  %v1357_v52 = vmul.f32 %v3309_v35, %v3209_v12  ;;  %v1446_v62 = vperm.slane %v3024_v1, 2 }
 0x115   : > { %v3392_v11 = vpop.permute.xlu0 %747  ;;  %v3394_v61 = vpop.permute.xlu2 %739 }
 0x116   : > { %5636 = vst [vmem:[#allocation20_spill] sm:$0xff] %v3392_v11  ;;  %v3396_v59 = vpop.permute.xlu1 %737  ;;  %v1392_v17 = vrot.slane %v1357_v52, 4  ;;  %v1447_v52 = vperm.slane %v3040_v6, 2  ;;  %v1725_v11 = vperm.slane %v3089_v25, 0 }
 0x117   : > { %5637 = vst [vmem:[#allocation21_spill] sm:$0xff] %v3394_v61  ;;  %v3478_v61 = vperm.slane %v3113_v34, 1  ;;  %v1961_v34 = vperm.slane %v3121_v36, 1  ;;  %v3510_v36 = vmul.f32 %v3339_v30, %v3312_v37 }
 0x118   : > { %5638 = vst [vmem:[#allocation22_spill] sm:$0xff] %v3396_v59  ;;  %v1393_v35 = vsel %vm386_vm2, %v1378_v15, %v1392_v17 }
 0x119   : > { %5652 = vst [vmem:[#allocation36_spill] sm:$0xff] %v3478_v61  ;;  %v3530_v44 = vmul.f32 %v1961_v34, %v3190_v3 }
 0x11b   : > { %1414 = vrot.lane.b32.xlu2 %v1395_v60, %s2971_s8  ;;  %1402 = vrot.lane.b32.xlu0 %v1379_v9, %s2971_s8  ;;  %v1573_v60 = vperm.slane %v3040_v6, 5  ;;  %v1448_v9 = vperm.slane %v3019_v0, 2  ;;  %v1449_v0 = vperm.slane %v3035_v5, 2  ;;  %v827_v6 = vsel %vm698_vm0, %v3369_v39, %v3376_v18  ;;  %5660 = vst [vmem:[#allocation44_spill] sm:$0xff] %v3530_v44 }
 0x11c   : > { %1418 = vrot.lane.b32.xlu1 %v1399_v45, %s2971_s8  ;;  %v1726_v5 = vperm.slane %v3084_v24, 0 }
 0x11d   : > { %v3408_v10 = vpop.permute.xlu0 %741  ;;  %v3410_v57 = vpop.permute.xlu2 %751 }
 0x11e   : > { %5639 = vst [vmem:[#allocation23_spill] sm:$0xff] %v3408_v10  ;;  %v3412_v14 = vpop.permute.xlu1 %755 }
 0x11f   : > { %5640 = vst [vmem:[#allocation24_spill] sm:$0xff] %v3410_v57 }
 0x120   : > { %5641 = vst [vmem:[#allocation25_spill] sm:$0xff] %v3412_v14 }
 0x123   : > { %1420 = vrot.lane.b32.xlu2 %v1401_v8, %s2971_s8  ;;  %1584 = vrot.lane.b32.xlu0 %v1574_v21, %s2972_s9 }
 0x124   : > { %1412 = vrot.lane.b32.xlu1 %v1393_v35, %s2971_s8  ;;  %v1572_v35 = vperm.slane %v3024_v1, 5 }
 0x125   : > { %v3420_v29 = vpop.permute.xlu0 %753  ;;  %v3422_v58 = vpop.permute.xlu2 %763 }
 0x126   : > { %5642 = vst [vmem:[#allocation26_spill] sm:$0xff] %v3420_v29  ;;  %v3424_v33 = vpop.permute.xlu1 %743 }
 0x127   : > { %5643 = vst [vmem:[#allocation27_spill] sm:$0xff] %v3422_v58  ;;  %v3523_v58 = vmul.f32 %v3478_v61, %v3235_v27 }
 0x128   : > { %5644 = vst [vmem:[#allocation28_spill] sm:$0xff] %v3424_v33 }
 0x129   : > { %5659 = vst [vmem:[#allocation43_spill] sm:$0xff] %v3523_v58  ;;  %v3602_v58 = vmul.f32 %v3541_v50, %v3219_v16 }
 0x12b   : > { %1582 = vrot.lane.b32.xlu2 %v1573_v60, %s2972_s9  ;;  %1458 = vrot.lane.b32.xlu0 %v1448_v9, %s2972_s9  ;;  %v1724_v60 = vperm.slane %v3076_v22, 0  ;;  %v836_v9 = vmul.f32 %v827_v6, %v3186_v63  ;;  %5670 = vst [vmem:[#allocation51_spill] sm:$0xff] %v3602_v58 }
 0x12c   : > { %1586 = vrot.lane.b32.xlu1 %v1575_v28, %s2972_s9  ;;  %v841_v28 = vmul.f32 %v827_v6, %v3248_v40 }
 0x12d   : > { %v3432_v15 = vpop.permute.xlu0 %759  ;;  %v3434_v31 = vpop.permute.xlu2 %1162  ;;  %v870_v1 = vrot.slane %v836_v9, 1 }
 0x12e   : > { %5645 = vst [vmem:[#allocation29_spill] sm:$0xff] %v3432_v15  ;;  %v3436_v45 = vpop.permute.xlu1 %749  ;;  %v871_v20 = vrot.slane %v841_v28, 1 }
 0x12f   : > { %5646 = vst [vmem:[#allocation30_spill] sm:$0xff] %v3434_v31 }
 0x130   : > { %5647 = vst [vmem:[#allocation31_spill] sm:$0xff] %v3436_v45  ;;  %v1959_v45 = vperm.slane %v3107_v32, 1  ;;  %v872_v59 = vsel %vm517_vm3, %v870_v1, %v871_v20 }
 0x132   : > { %v3485_v32 = vmul.f32 %v1959_v45, %v3186_v63 }
 0x133   : > { %1456 = vrot.lane.b32.xlu2 %v1447_v52, %s2972_s9  ;;  %1454 = vrot.lane.b32.xlu0 %v1446_v62, %s2972_s9 }
 0x134   : > { %1460 = vrot.lane.b32.xlu1 %v1449_v0, %s2972_s9  ;;  %5653 = vst [vmem:[#allocation37_spill] sm:$0xff] %v3485_v32  ;;  %v3629_v32 = vperm.slane %v3076_v22, 7 }
 0x135   : > { %v3444_v21 = vpop.permute.xlu0 %1158  ;;  %v3446_v17 = vpop.permute.xlu2 %1170 }
 0x136   : > { %5648 = vst [vmem:[#allocation32_spill] sm:$0xff] %v3446_v17  ;;  %v3448_v8 = vpop.permute.xlu1 %761 }
 0x137   : > { %5649 = vst [vmem:[#allocation33_spill] sm:$0xff] %v3448_v8 }
 0x13b   : > { %1580 = vrot.lane.b32.xlu2 %v1572_v35, %s2972_s9  ;;  %1737 = vrot.lane.b32.xlu0 %v1726_v5, %s2972_s9  ;;  %v828_v35 = vsel %vm698_vm0, %v3376_v18, %v3339_v30  ;;  %v1723_v5 = vperm.slane %v3068_v19, 0  ;;  %v3488_v18 = vmul.f32 %v1959_v45, %v3248_v40 }
 0x13c   : > { %1733 = vrot.lane.b32.xlu1 %v1724_v60, %s2972_s9  ;;  %v3474_v60 = vmul.f32 %v827_v6, %v3251_v41  ;;  %v837_v9 = vmul.f32 %v828_v35, %v3219_v16  ;;  %v842_v28 = vmul.f32 %v828_v35, %v3212_v13  ;;  %v3492_v6 = vmul.f32 %v1959_v45, %v3251_v41 }
 0x13d   : > { %v3461_v52 = vpop.permute.xlu0 %1164  ;;  %v3463_v62 = vpop.permute.xlu2 %818  ;;  %5654 = vst [vmem:[#allocation38_spill] sm:$0xff] %v3488_v18  ;;  %v843_v45 = vmul.f32 %v3339_v30, %v3193_v4  ;;  %v3517_v29 = vmul.f32 %v828_v35, %v3261_v2  ;;  %v3533_v35 = vperm.slane %v3128_v38, 1 }
 0x13e   : > { %5650 = vst [vmem:[#allocation34_spill] sm:$0xff] %v3461_v52  ;;  %v3465_v0 = vpop.permute.xlu1 %1160  ;;  %v883_v57 = vrot.slane %v3474_v60, 1  ;;  %v873_v10 = vrot.slane %v837_v9, 1  ;;  %v874_v33 = vrot.slane %v842_v28, 1  ;;  %v721_v9 = vmul.f32 %v3195_v7, %v3312_v37 }
 0x13f   : > { %5651 = vst [vmem:[#allocation35_spill] sm:$0xff] %v3465_v0  ;;  %v877_v60 = vrot.slane %v843_v45, 1  ;;  %v3572_v48 = vmul.f32 %v3533_v35, %v3219_v16  ;;  %v5668_v42 = vrot.slane %v3517_v29, 1  ;;  %v3645_v0 = vperm.slane %v3089_v25, 7 }
 0x140   : > { %5655 = vst [vmem:[#allocation39_spill] sm:$0xff] %v3492_v6  ;;  %v884_v28 = vsel %vm517_vm3, %v871_v20, %v883_v57  ;;  %v875_v38 = vsel %vm517_vm3, %v873_v10, %v874_v33  ;;  %v3560_v10 = vmul.f32 %v1961_v34, %v3312_v37  ;;  %v3568_v20 = vperm.slane %v3068_v19, 4 }
 0x141   : > { %5661 = vst [vmem:[#allocation45_spill] sm:$0xff] %v3533_v35  ;;  %v886_v49 = vsel %vm517_vm3, %v874_v33, %v5668_v42  ;;  %v3609_v42 = vperm.slane %v3068_v19, 7  ;;  %v3626_v6 = vmul.f32 %v294_v47, %v3235_v27 }
 0x142   : > { %5663 = vst [vmem:[#allocation47_spill] sm:$0xff] %v3560_v10  ;;  %v297_v33 = vmul.f32 %v3568_v20, %v3175_v55  ;;  %v3623_v10 = vmul.f32 %v294_v47, %v3229_v23 }
 0x143   : > { %1735 = vrot.lane.b32.xlu2 %v1725_v11, %s2972_s9  ;;  %893 = vrot.lane.b32.xlu0 %v872_v59, %s2972_s9  ;;  %v838_v11 = vmul.f32 %v3339_v30, %v3190_v3  ;;  %v3526_v30 = vperm.slane %v3084_v24, 4  ;;  %5664 = vst [vmem:[#allocation48_spill] sm:$0xff] %v3572_v48 }
 0x144   : > { %1731 = vrot.lane.b32.xlu1 %v1723_v5, %s2972_s9  ;;  %v3514_v5 = vmul.f32 %v3478_v61, %v3229_v23  ;;  %v322_v31 = vrot.slane %v297_v33, 2  ;;  %v5674_v33 = vperm.slane %v3068_v19, 1 }
 0x145   : > { %v1173_v1 = vpop.permute.xlu0 %1172  ;;  %v3495_v15 = vpop.permute.xlu2 %975  ;;  %v876_v14 = vrot.slane %v838_v11, 1  ;;  %v300_v11 = vmul.f32 %v3526_v30, %v3219_v16  ;;  %v3553_v45 = vmul.f32 %v3526_v30, %v3212_v13  ;;  %v308_v37 = vmul.f32 %v3526_v30, %v3261_v2 }
 0x146   : > { %v3501_v59 = vsel %vm698_vm0, %v3446_v17, %v1173_v1  ;;  %v3503_v8 = vpop.permute.xlu1 %1168  ;;  %5658 = vst [vmem:[#allocation42_spill] sm:$0xff] %v3514_v5 }
 0x147   : > { %5656 = vst [vmem:[#allocation40_spill] sm:$0xff] %v3501_v59  ;;  %v331_v5 = vrot.slane %v300_v11, 2  ;;  %v3617_v11 = vmul.f32 %v3463_v62, %v3178_v56  ;;  %v5671_v18 = vrot.slane %v3553_v45, 2 }
 0x148   : > { %5657 = vst [vmem:[#allocation41_spill] sm:$0xff] %v3503_v8 }
 0x14b   : > { %765 = vrot.lane.b32.xlu2 %v721_v9, %s2972_s9  ;;  %903 = vrot.lane.b32.xlu0 %v884_v28, %s2972_s9  ;;  %v3557_v9 = vmul.f32 %v1961_v34, %v3193_v4  ;;  %v878_v34 = vsel %vm517_vm3, %v876_v14, %v877_v60  ;;  %v5666_v28 = vrot.slane %v3510_v36, 1  ;;  %v5669_v14 = vperm.slane %v3084_v24, 1 }
 0x14c   : > { %895 = vrot.lane.b32.xlu1 %v875_v38, %s2972_s9  ;;  %v3576_v38 = vmul.f32 %v3533_v35, %v3212_v13 }
 0x14d   : > { %5662 = vst [vmem:[#allocation46_spill] sm:$0xff] %v3557_v9  ;;  %v3563_v54 = vpop.permute.xlu0 %971  ;;  %v3565_v7 = vpop.permute.xlu2 %1281  ;;  %v888_v51 = vsel %vm517_vm3, %v877_v60, %v5666_v28  ;;  %v3596_v61 = vmul.f32 %v5669_v14, %v3219_v16  ;;  %v295_v28 = vperm.slane %v3089_v25, 4  ;;  %v282_v14 = vperm.slane %v3076_v22, 1 }
 0x14e   : > { %5665 = vst [vmem:[#allocation49_spill] sm:$0xff] %v3576_v38  ;;  %v1175_v43 = vpop.permute.xlu1 %1174  ;;  %v283_v60 = vperm.slane %v3089_v25, 1  ;;  %v3636_v38 = vsel %vm321_vm1, %v331_v5, %v5671_v18  ;;  %v3654_v18 = vmul.f32 %v3609_v42, %v3178_v56  ;;  %v362_v25 = vmul.f32 %v3609_v42, %v3175_v55 }
 0x14f   : > { %v3588_v53 = vsel %vm698_vm0, %v1173_v1, %v1175_v43  ;;  %v3606_v43 = vmul.f32 %v3568_v20, %v3178_v56  ;;  %v834_v1 = vmul.f32 %v3463_v62, %v3175_v55  ;;  %v3639_v44 = vmul.f32 %v295_v28, %v3186_v63 }
 0x150   : > { %5667 = vst [vmem:[#allocation50_spill] sm:$0xff] %v3588_v53  ;;  %v3642_v48 = vmul.f32 %v295_v28, %v3248_v40  ;;  %v3657_v52 = vmul.f32 %v282_v14, %v3229_v23  ;;  %v3673_v9 = vmul.f32 %v3629_v32, %v3235_v27  ;;  %v307_v3 = vmul.f32 %v295_v28, %v3251_v41 }
 0x151   : > { %v5675_v53 = vrot.slane %v3606_v43, 2  ;;  %v387_v28 = vrot.slane %v362_v25, 4  ;;  %v291_v17 = vmul.f32 %v283_v60, %v3248_v40 }
 0x152   : > { %5672 = vst [vmem:[#allocation52_spill] sm:$0xff] %v3657_v52  ;;  %v285_v52 = vmul.f32 %v5674_v33, %v3175_v55  ;;  %v372_v55 = vmul.f32 %v3645_v0, %v3251_v41  ;;  %v340_v33 = vrot.slane %v308_v37, 2 }
 0x153   : > { %897 = vrot.lane.b32.xlu2 %v878_v34, %s2972_s9  ;;  %913 = vrot.lane.b32.xlu0 %v883_v57, %s2972_s9  ;;  %v826_v34 = vsel %vm698_vm0, %v3463_v62, %v3369_v39  ;;  %v3668_v57 = vmul.f32 %v283_v60, %v3186_v63  ;;  %v3682_v39 = vmul.f32 %v3645_v0, %v3248_v40  ;;  %v5682_v60 = vrot.slane %v3626_v6, 2 }
 0x154   : > { %905 = vrot.lane.b32.xlu1 %v886_v49, %s2972_s9  ;;  %v864_v49 = vrot.slane %v834_v1, 1  ;;  %v306_v1 = vmul.f32 %v294_v47, %v3232_v26  ;;  %v324_v4 = vsel %vm321_vm1, %v322_v31, %v5675_v53  ;;  %v5676_v47 = vrot.slane %v3617_v11, 1 }
 0x155   : > { %v3648_v22 = vpop.permute.xlu2 %1287  ;;  %v1157_v5 = vpop.permute.xlu0 %1156  ;;  %5673 = vst [vmem:[#allocation53_spill] sm:$0xff] %v3668_v57  ;;  %v840_v30 = vmul.f32 %v826_v34, %v3235_v27  ;;  %v3696_v8 = vmul.f32 %v826_v34, %v3232_v26  ;;  %v835_v53 = vmul.f32 %v826_v34, %v3229_v23  ;;  %v338_v31 = vrot.slane %v307_v3, 2 }
 0x156   : > { %v3661_v35 = vpop.permute.xlu1 %973  ;;  %v866_v59 = vsel %vm517_vm3, %v864_v49, %v5676_v47  ;;  %v336_v25 = vrot.slane %v306_v1, 2  ;;  %v371_v49 = vmul.f32 %v3629_v32, %v3232_v26  ;;  %v5677_v47 = vrot.slane %v3517_v29, 1 }
 0x157   : > { %v290_v57 = vmul.f32 %v282_v14, %v3235_v27  ;;  %v5678_v34 = vrot.slane %v3654_v18, 4  ;;  %v868_v1 = vrot.slane %v840_v30, 1  ;;  %v403_v14 = vrot.slane %v372_v55, 4 }
 0x158   : > { %v337_v30 = vsel %vm321_vm1, %v5682_v60, %v336_v25  ;;  %v5683_v55 = vrot.slane %v3553_v45, 2  ;;  %v5684_v45 = vrot.slane %v3696_v8, 1 }
 0x159   : > { %v389_v26 = vsel %vm386_vm2, %v387_v28, %v5678_v34  ;;  %v5681_v28 = vrot.slane %v3642_v48, 2 }
 0x15a   : > { %v341_v27 = vsel %vm321_vm1, %v5683_v55, %v340_v33  ;;  %v325_v33 = vrot.slane %v3623_v10, 2  ;;  %v5687_v55 = vrot.slane %v3673_v9, 4 }
 0x15b   : > { %907 = vrot.lane.b32.xlu2 %v888_v51, %s2972_s9  ;;  %889 = vrot.lane.b32.xlu0 %v866_v59, %s2972_s9  ;;  %v373_v51 = vmul.f32 %v3541_v50, %v3261_v2  ;;  %v350_v59 = vadd.f32 %v324_v4, %v285_v52  ;;  %v5680_v50 = vperm.slane %v3084_v24, 1  ;;  %v978_v52 = vsel %vm698_vm0, %v3563_v54, %v3661_v35 }
 0x15c   : > { %915 = vrot.lane.b32.xlu1 %v5677_v47, %s2972_s9  ;;  %v867_v47 = vrot.slane %v835_v53, 1  ;;  %v339_v34 = vsel %vm321_vm1, %v5681_v28, %v338_v31  ;;  %v844_v24 = vmul.f32 %v3463_v62, %v3209_v12  ;;  %v305_v53 = vmul.f32 %v3568_v20, %v3209_v12 }
 0x15d   : > { %v3714_v58 = vpop.permute.xlu2 %1295  ;;  %v1284_v3 = vpop.permute.xlu0 %1283  ;;  %v292_v4 = vmul.f32 %v5680_v50, %v3212_v13  ;;  %v405_v50 = vrot.slane %v373_v51, 4  ;;  %v415_v2 = vadd.f32 %v389_v26, %v350_v59  ;;  %v1176_v31 = vsel %vm698_vm0, %v1157_v5, %v3444_v21 }
 0x15e   : > { %v3721_v37 = vsel %vm698_vm0, %v3565_v7, %v1284_v3  ;;  %v3723_v29 = vpop.permute.xlu1 %1166  ;;  %v987_v28 = vmul.f32 %v978_v52, %v3186_v63  ;;  %v3749_v25 = vmul.f32 %v978_v52, %v3248_v40  ;;  %v328_v62 = vrot.slane %v3639_v44, 2 }
 0x15f   : > { %5679 = vst [vmem:[#allocation54_spill] sm:$0xff] %v3721_v37  ;;  %v401_v37 = vrot.slane %v371_v49, 4  ;;  %v882_v49 = vsel %vm517_vm3, %v868_v1, %v5684_v45  ;;  %v356_v60 = vadd.f32 %v339_v34, %v291_v17  ;;  %v5685_v20 = vrot.slane %v3510_v36, 1 }
 0x160   : > { %v869_v5 = vsel %vm517_vm3, %v867_v47, %v868_v1  ;;  %v5686_v51 = vrot.slane %v3682_v39, 4  ;;  %v355_v26 = vadd.f32 %v337_v30, %v290_v57  ;;  %v357_v45 = vadd.f32 %v341_v27, %v292_v4 }
 0x161   : > { %v402_v10 = vsel %vm386_vm2, %v5687_v55, %v401_v37  ;;  %v5688_v44 = vrot.slane %v3584_v46, 4  ;;  %v1192_v36 = vadd.f32 %v1176_v31, %v415_v2  ;;  %v370_v1 = vmul.f32 %v3609_v42, %v3209_v12 }
 0x162   : > { %v404_v59 = vsel %vm386_vm2, %v5686_v51, %v403_v14  ;;  %v879_v14 = vrot.slane %v844_v24, 1  ;;  %v1021_v57 = vrot.slane %v987_v28, 2  ;;  %v1022_v30 = vrot.slane %v3749_v25, 2  ;;  %v5693_v51 = vld [vmem:[#allocation32_spill] sm:$0xff] }
 0x163   : > { %917 = vrot.lane.b32.xlu2 %v5685_v20, %s2972_s9  ;;  %901 = vrot.lane.b32.xlu0 %v882_v49, %s2972_s9  ;;  %v406_v17 = vsel %vm386_vm2, %v5688_v44, %v405_v50  ;;  %v334_v49 = vrot.slane %v305_v53, 2  ;;  %v979_v4 = vsel %vm698_vm0, %v3661_v35, %v3495_v15  ;;  %v363_v24 = vmul.f32 %v3629_v32, %v3229_v23 }
 0x164   : > { %891 = vrot.lane.b32.xlu1 %v869_v5, %s2972_s9  ;;  %v421_v50 = vadd.f32 %v404_v59, %v356_v60  ;;  %v420_v53 = vadd.f32 %v402_v10, %v355_v26  ;;  %v422_v31 = vadd.f32 %v406_v17, %v357_v45  ;;  %v5689_v35 = vperm.slane %v3068_v19, 1  ;;  %v5697_v45 = vld [vmem:[#allocation40_spill] sm:$0xff]  ;;  %v5698_v17 = vld [vmem:[#allocation50_spill] sm:$0xff] }
 0x165   : > { %v1280_v47 = vpop.permute.xlu2 %1279  ;;  %v3773_v34 = vpop.permute.xlu0 %1291  ;;  %v399_v25 = vrot.slane %v370_v1, 4  ;;  %v3802_v5 = vmul.f32 %v978_v52, %v3251_v41  ;;  %v5691_v23 = vrot.slane %v3606_v43, 2  ;;  %v1023_v32 = vsel %vm321_vm1, %v1021_v57, %v1022_v30 }
 0x166   : > { %v1299_v37 = vsel %vm698_vm0, %v1280_v47, %v3565_v7  ;;  %v1286_v27 = vpop.permute.xlu1 %1285  ;;  %v364_v7 = vmul.f32 %v3645_v0, %v3186_v63  ;;  %v289_v28 = vmul.f32 %v5689_v35, %v3178_v56  ;;  %v353_v19 = vadd.f32 %v3636_v38, %v3596_v61  ;;  %v5692_v56 = vld [vmem:[#allocation51_spill] sm:$0xff] }
 0x167   : > { %v3781_v2 = vadd.f32 %v1299_v37, %v1192_v36  ;;  %v3784_v12 = vsel %vm698_vm0, %v1284_v3, %v1286_v27  ;;  %v3788_v42 = vsel %vm698_vm0, %v1286_v27, %v3648_v22  ;;  %v5690_v3 = vrot.slane %v3617_v11, 1  ;;  %v5694_v11 = vld [vmem:[#allocation41_spill] sm:$0xff] }
 0x168   : > { %v988_v22 = vmul.f32 %v979_v4, %v3219_v16  ;;  %v335_v0 = vsel %vm321_vm1, %v5691_v23, %v334_v49  ;;  %v396_v60 = vrot.slane %v5692_v56, 4  ;;  %v1181_v59 = vsel %vm698_vm0, %v5694_v11, %v5693_v51 }
 0x169   : > { %v880_v20 = vsel %vm517_vm3, %v5690_v3, %v879_v14  ;;  %v3815_v26 = vmul.f32 %v979_v4, %v3212_v13  ;;  %v5695_v43 = vrot.slane %v3626_v6, 2  ;;  %v5696_v55 = vrot.slane %v3642_v48, 2  ;;  %v5702_v3 = vld [vmem:[#allocation53_spill] sm:$0xff] }
 0x16a   : > { %v390_v38 = vrot.slane %v363_v24, 4  ;;  %v393_v10 = vrot.slane %v364_v7, 4  ;;  %v1198_v44 = vadd.f32 %v5697_v45, %v421_v50  ;;  %v1199_v36 = vadd.f32 %v5698_v17, %v422_v31  ;;  %v5701_v31 = vld [vmem:[#allocation52_spill] sm:$0xff]  ;;  %v5713_v17 = vld [vmem:[#allocation30_spill] sm:$0xff] }
 0x16b   : > { %899 = vrot.lane.b32.xlu2 %v880_v20, %s2972_s9  ;;  %1044 = vrot.lane.b32.xlu0 %v1023_v32, %s2972_s9  ;;  %v327_v52 = vsel %vm321_vm1, %v325_v33, %v5695_v43  ;;  %v330_v61 = vsel %vm321_vm1, %v328_v62, %v5696_v55  ;;  %v354_v1 = vadd.f32 %v335_v0, %v289_v28  ;;  %v5699_v47 = vrot.slane %v3654_v18, 4  ;;  %v5709_v55 = vld [vmem:[#allocation16_spill] sm:$0xff] }
 0x16c   : > { %909 = vrot.lane.b32.xlu1 %v879_v14, %s2972_s9  ;;  %v1197_v49 = vadd.f32 %v1181_v59, %v420_v53  ;;  %v1024_v48 = vrot.slane %v988_v22, 2  ;;  %v1034_v62 = vrot.slane %v3802_v5, 2  ;;  %v1025_v27 = vrot.slane %v3815_v26, 2  ;;  %v5707_v26 = vld [vmem:[#allocation46_spill] sm:$0xff] }
 0x16d   : > { %v400_v57 = vsel %vm386_vm2, %v5699_v47, %v399_v25  ;;  %v3831_v6 = vpop.permute.xlu2 %1406  ;;  %v1298_v33 = vpop.permute.xlu0 %1297  ;;  %v5700_v50 = vrot.slane %v3584_v46, 4  ;;  %v351_v35 = vadd.f32 %v327_v52, %v5701_v31  ;;  %v352_v20 = vadd.f32 %v330_v61, %v5702_v3  ;;  %v5705_v46 = vld [vmem:[#allocation14_spill] sm:$0xff] }
 0x16e   : > { %v1306_v37 = vsel %vm698_vm0, %v3714_v58, %v1298_v33  ;;  %v1294_v14 = vpop.permute.xlu1 %1293  ;;  %v5703_v22 = vrot.slane %v3673_v9, 4  ;;  %v5704_v0 = vrot.slane %v3682_v39, 4  ;;  %v419_v32 = vadd.f32 %v400_v57, %v354_v1  ;;  %v5708_v39 = vld [vmem:[#allocation17_spill] sm:$0xff] }
 0x16f   : > { %v3837_v24 = vadd.f32 %v1306_v37, %v1199_v36  ;;  %v1304_v18 = vsel %vm698_vm0, %v3773_v34, %v1294_v14  ;;  %v1305_v7 = vsel %vm698_vm0, %v1294_v14, %v3714_v58  ;;  %v398_v53 = vsel %vm386_vm2, %v396_v60, %v5700_v50  ;;  %v5706_v60 = vld [vmem:[#allocation15_spill] sm:$0xff] }
 0x170   : > { %v3847_v28 = vadd.f32 %v1304_v18, %v1197_v49  ;;  %v3849_v25 = vadd.f32 %v1305_v7, %v1198_v44  ;;  %v392_v23 = vsel %vm386_vm2, %v390_v38, %v5703_v22  ;;  %v395_v58 = vsel %vm386_vm2, %v393_v10, %v5704_v0  ;;  %v5712_v44 = vld [vmem:[#allocation34_spill] sm:$0xff]  ;;  %v5714_v49 = vld [vmem:[#allocation35_spill] sm:$0xff]  ;;  %v5715_v22 = vld [vmem:[#allocation48_spill] sm:$0xff] }
 0x171   : > { %v989_v56 = vmul.f32 %v3495_v15, %v5705_v46  ;;  %v994_v51 = vmul.f32 %v3495_v15, %v5706_v60  ;;  %v1180_v59 = vsel %vm698_vm0, %v3723_v29, %v5694_v11  ;;  %v1035_v9 = vsel %vm321_vm1, %v1022_v30, %v1034_v62  ;;  %v5711_v29 = vld [vmem:[#allocation45_spill] sm:$0xff]  ;;  %v3932_v46 = vld [vmem:[%s3172_s7] sm:$0xff]  ;;  %v3937_v60 = vld [vmem:[%s3172_s7 + $0x28] sm:$0xff] }
 0x172   : > { %v1996_v43 = vrot.slane %v5707_v26, 4  ;;  %v3871_v52 = vmul.f32 %v3495_v15, %v5708_v39  ;;  %v3874_v61 = vmul.f32 %v979_v4, %v5709_v55  ;;  %v5710_v38 = vrot.slane %v3696_v8, 1  ;;  %v3889_v15 = vld [vmem:[%s5547_s1 + $0x30] sm:$0xff]  ;;  %v3897_v8 = vld [vmem:[%s5547_s1 + $0x28] sm:$0xff] }
 0x173   : > { %v1026_v10 = vsel %vm321_vm1, %v1024_v48, %v1025_v27  ;;  %1054 = vrot.lane.b32.xlu0 %v1035_v9, %s2972_s9  ;;  %v3883_v30 = vmul.f32 %v5711_v29, %v5709_v55  ;;  %v418_v11 = vadd.f32 %v398_v53, %v353_v19  ;;  %v3892_v4 = vperm.slane %v3889_v15, 6 }
 0x174   : > { %911 = vrot.lane.b32.xlu2 %v5710_v38, %s2972_s9  ;;  %1046 = vrot.lane.b32.xlu1 %v1026_v10, %s2972_s9  ;;  %v1895_v45 = vperm.slane %v3897_v8, 6  ;;  %v1179_v19 = vsel %vm698_vm0, %v5713_v17, %v5712_v44  ;;  %v416_v36 = vadd.f32 %v392_v23, %v351_v35  ;;  %v417_v1 = vadd.f32 %v395_v58, %v352_v20  ;;  %v5717_v44 = vld [vmem:[#allocation54_spill] sm:$0xff] }
 0x175   : > { %v1196_v47 = vadd.f32 %v1180_v59, %v419_v32  ;;  %v3903_v57 = vpop.permute.xlu2 %1414  ;;  %v1290_v33 = vpop.permute.xlu0 %1289  ;;  %v1177_v48 = vsel %vm698_vm0, %v3444_v21, %v5714_v49  ;;  %v1027_v18 = vrot.slane %v989_v56, 2  ;;  %v1028_v7 = vrot.slane %v994_v51, 2  ;;  %v5716_v51 = vld [vmem:[#allocation49_spill] sm:$0xff] }
 0x176   : > { %v1303_v37 = vsel %vm698_vm0, %v1290_v33, %v3773_v34  ;;  %v3910_v14 = vpop.permute.xlu1 %969  ;;  %v1178_v50 = vsel %vm698_vm0, %v5714_v49, %v5713_v17  ;;  %v1036_v53 = vrot.slane %v3874_v61, 2  ;;  %v1038_v35 = vrot.slane %v3871_v52, 2 }
 0x177   : > { %v3916_v31 = vadd.f32 %v1303_v37, %v1196_v47  ;;  %v1900_v21 = vmul.f32 %v3892_v4, %v3219_v16  ;;  %v3923_v34 = vmul.f32 %v3892_v4, %v3212_v13  ;;  %v1899_v3 = vmul.f32 %v1895_v45, %v3186_v63 }
 0x178   : > { %v3927_v20 = vmul.f32 %v1895_v45, %v3248_v40  ;;  %v1992_v23 = vrot.slane %v5715_v22, 4  ;;  %v1195_v0 = vadd.f32 %v1179_v19, %v418_v11  ;;  %v1193_v58 = vadd.f32 %v1177_v48, %v416_v36  ;;  %v3969_v36 = vld [vmem:[%s5547_s1 + $0x38] sm:$0xff] }
 0x179   : > { %v1876_v32 = vperm.slane %v3889_v15, 3  ;;  %v985_v56 = vmul.f32 %v3932_v46, %v3910_v14  ;;  %v3941_v13 = vmul.f32 %v3937_v60, %v3910_v14  ;;  %v1029_v63 = vsel %vm321_vm1, %v1027_v18, %v1028_v7 }
 0x17a   : > { %v1875_v40 = vperm.slane %v3897_v8, 3  ;;  %v5598_v59 = vrot.slane %v5716_v51, 4  ;;  %v1194_v9 = vadd.f32 %v1178_v50, %v417_v1  ;;  %v1037_v55 = vsel %vm321_vm1, %v1025_v27, %v1036_v53 }
 0x17b   : > { %1064 = vrot.lane.b32.xlu0 %v1034_v62, %s2972_s9  ;;  %v1039_v38 = vsel %vm321_vm1, %v1028_v7, %v1038_v35  ;;  %v1928_v10 = vrot.slane %v1900_v21, 2  ;;  %v5600_v29 = vrot.slane %v3923_v34, 2  ;;  %v1925_v11 = vrot.slane %v1899_v3, 2 }
 0x17c   : > { %1048 = vrot.lane.b32.xlu2 %v1029_v63, %s2972_s9  ;;  %1056 = vrot.lane.b32.xlu1 %v1037_v55, %s2972_s9  ;;  %v1926_v8 = vrot.slane %v3927_v20, 2  ;;  %v1316_v17 = vadd.f32 %v5717_v44, %v1193_v58  ;;  %v1317_v27 = vadd.f32 %v3784_v12, %v1194_v9  ;;  %v1880_v5 = vmul.f32 %v1876_v32, %v3219_v16  ;;  %v3977_v12 = vld [vmem:[%s3172_s7 + $0x10] sm:$0xff] }
 0x17d   : > { %v3961_v19 = vpop.permute.xlu2 %1420  ;;  %v1409_v62 = vpop.permute.xlu0 %1408  ;;  %v3972_v1 = vperm.slane %v3969_v36, 6  ;;  %v1879_v33 = vmul.f32 %v3977_v12, %v1875_v40  ;;  %v1015_v16 = vrot.slane %v985_v56, 2  ;;  %v5599_v48 = vrot.slane %v3941_v13, 2  ;;  %v3999_v56 = vld [vmem:[%s3172_s7 + $0x20] sm:$0xff]  ;;  %v4014_v9 = vld [vmem:[%s3172_s7 + $0x30] sm:$0xff] }
 0x17e   : > { %v1424_v47 = vsel %vm698_vm0, %v3831_v6, %v1409_v62  ;;  %v3980_v49 = vpop.permute.xlu1 %1404  ;;  %v977_v37 = vsel %vm698_vm0, %v3910_v14, %v3563_v54  ;;  %v1907_v50 = vmul.f32 %v1895_v45, %v3251_v41  ;;  %v1930_v21 = vsel %vm321_vm1, %v1928_v10, %v5600_v29  ;;  %5718 = vst [vmem:[#allocation51_spill] sm:$0xff] %v3999_v56  ;;  %v4018_v10 = vld [vmem:[%s3172_s7 + $0x58] sm:$0xf] }
 0x17f   : > { %v1440_v18 = vadd.f32 %v1424_v47, %v1317_v27  ;;  %v1423_v7 = vsel %vm698_vm0, %v3980_v49, %v3831_v6  ;;  %v1994_v3 = vsel %vm386_vm2, %v1992_v23, %v5598_v59  ;;  %v1927_v20 = vsel %vm321_vm1, %v1925_v11, %v1926_v8  ;;  %v4004_v6 = vld [vmem:[%s3172_s7 + $0x48] sm:$0xff] }
 0x180   : > { %v1439_v54 = vadd.f32 %v1423_v7, %v1316_v17  ;;  %v5601_v58 = vperm.slane %v3969_v36, 3  ;;  %v1901_v41 = vmul.f32 %v3999_v56, %v3972_v1  ;;  %v4008_v45 = vmul.f32 %v4004_v6, %v3972_v1  ;;  %v5719_v17 = vld [vmem:[#allocation38_spill] sm:$0xff] }
 0x181   : > { %v1888_v22 = vadd.f32 %v1880_v5, %v1440_v18  ;;  %v1017_v23 = vsel %vm321_vm1, %v1015_v16, %v5599_v48  ;;  %v991_v55 = vmul.f32 %v4014_v9, %v977_v37  ;;  %v4021_v11 = vmul.f32 %v4018_v10, %v977_v37  ;;  %v5721_v5 = vld [vmem:[#allocation37_spill] sm:$0xff]  ;;  %v4031_v18 = vld [vmem:[%s3172_s7 + $0x8] sm:$0xff] }
 0x182   : > { %v1887_v63 = vadd.f32 %v1879_v33, %v1439_v54  ;;  %v5720_v27 = vrot.slane %v5719_v17, 4  ;;  %v5722_v47 = vrot.slane %v5721_v5, 4  ;;  %v1936_v16 = vrot.slane %v1907_v50, 2 }
 0x183   : > { %v1952_v44 = vadd.f32 %v1930_v21, %v1888_v22  ;;  %1040 = vrot.lane.b32.xlu0 %v1017_v23, %s2972_s9  ;;  %v986_v7 = vmul.f32 %v4031_v18, %v977_v37  ;;  %v1318_v54 = vadd.f32 %v3788_v42, %v1195_v0  ;;  %v4039_v21 = vld [vmem:[%s3172_s7 + $0x38] sm:$0xff]  ;;  %v1881_v61 = vmul.f32 %v3999_v56, %v5601_v58  ;;  %v4075_v58 = vld [vmem:[%s3172_s7 + $0x68] sm:$0xf] }
 0x184   : > { %v1991_v33 = vsel %vm386_vm2, %v5722_v47, %v5720_v27  ;;  %1058 = vrot.lane.b32.xlu2 %v1039_v38, %s2972_s9  ;;  %v1951_v59 = vadd.f32 %v1927_v20, %v1887_v63  ;;  %1066 = vrot.lane.b32.xlu1 %v1036_v53, %s2972_s9  ;;  %v1883_v22 = vmul.f32 %v4039_v21, %v1875_v40  ;;  %v4045_v38 = vld [vmem:[%s5547_s1 + $0x20] sm:$0xff]  ;;  %v1931_v53 = vrot.slane %v1901_v41, 2 }
 0x185   : > { %v4048_v50 = vperm.slane %v4045_v38, 6  ;;  %v4050_v37 = vadd.f32 %v1994_v3, %v1952_v44  ;;  %v4052_v42 = vpop.permute.xlu2 %1582  ;;  %v1417_v0 = vpop.permute.xlu0 %1416  ;;  %v1932_v40 = vrot.slane %v4008_v45, 2  ;;  %v1019_v3 = vrot.slane %v991_v55, 2  ;;  %5725 = vst [vmem:[#allocation40_spill] sm:$0xff] %v4075_v58 }
 0x186   : > { %v4058_v20 = vadd.f32 %v1991_v33, %v1951_v59  ;;  %v1427_v63 = vsel %vm698_vm0, %v3903_v57, %v1417_v0  ;;  %v1411_v23 = vpop.permute.xlu1 %1410  ;;  %v1032_v44 = vrot.slane %v4021_v11, 2  ;;  %v1937_v27 = vsel %vm321_vm1, %v1926_v8, %v1936_v16 }
 0x187   : > { %5723 = vst [vmem:[#allocation32_spill] sm:$0xff] %v4050_v37  ;;  %v1443_v5 = vadd.f32 %v1427_v63, %v3847_v28  ;;  %v1425_v47 = vsel %vm698_vm0, %v1409_v62, %v1411_v23  ;;  %v1018_v41 = vrot.slane %v986_v7, 2  ;;  %v1874_v45 = vperm.slane %v4045_v38, 3  ;;  %v4082_v62 = vld [vmem:[%s3172_s7 + $0x50] sm:$0xf]  ;;  %v5726_v7 = vld [vmem:[#allocation39_spill] sm:$0xff] }
 0x188   : > { %5724 = vst [vmem:[#allocation41_spill] sm:$0xff] %v4058_v20  ;;  %v1441_v48 = vadd.f32 %v1425_v47, %v1318_v54  ;;  %v1898_v59 = vmul.f32 %v4031_v18, %v4048_v50  ;;  %v4071_v33 = vmul.f32 %v4014_v9, %v4048_v50  ;;  %v1933_v29 = vsel %vm321_vm1, %v1931_v53, %v1932_v40  ;;  %v5729_v23 = vld [vmem:[#allocation47_spill] sm:$0xff] }
 0x189   : > { %v1891_v55 = vadd.f32 %v1883_v22, %v1443_v5  ;;  %v1908_v28 = vmul.f32 %v4075_v58, %v3892_v4  ;;  %v1909_v8 = vmul.f32 %v3972_v1, %v5708_v39  ;;  %v995_v16 = vmul.f32 %v4082_v62, %v3910_v14  ;;  %v5730_v1 = vld [vmem:[#allocation44_spill] sm:$0xff] }
 0x18a   : > { %v5727_v54 = vrot.slane %v5726_v7, 4  ;;  %v5728_v63 = vrot.slane %v5719_v17, 4  ;;  %v1889_v53 = vadd.f32 %v1881_v61, %v1441_v48  ;;  %v1033_v4 = vsel %vm321_vm1, %v1019_v3, %v1032_v44 }
 0x18b   : > { %v2004_v5 = vrot.slane %v5729_v23, 4  ;;  %v1955_v39 = vadd.f32 %v1937_v27, %v1891_v55  ;;  %v5731_v47 = vrot.slane %v5730_v1, 4  ;;  %1052 = vrot.lane.b32.xlu0 %v1033_v4, %s2972_s9  ;;  %v1020_v48 = vsel %vm321_vm1, %v1018_v41, %v1019_v3 }
 0x18c   : > { %v2001_v22 = vsel %vm386_vm2, %v5728_v63, %v5727_v54  ;;  %1068 = vrot.lane.b32.xlu2 %v1038_v35, %s2972_s9  ;;  %v1953_v17 = vadd.f32 %v1933_v29, %v1889_v53  ;;  %1042 = vrot.lane.b32.xlu1 %v1020_v48, %s2972_s9  ;;  %v1878_v61 = vmul.f32 %v4031_v18, %v1874_v45  ;;  %v1922_v27 = vrot.slane %v1898_v59, 2  ;;  %v4115_v35 = vld [vmem:[%s3172_s7 + $0x40] sm:$0xff] }
 0x18d   : > { %v1997_v14 = vsel %vm386_vm2, %v5731_v47, %v1996_v43  ;;  %v1923_v55 = vrot.slane %v4071_v33, 2  ;;  %v4110_v7 = vadd.f32 %v2001_v22, %v1955_v39  ;;  %v4112_v54 = vpop.permute.xlu2 %1456  ;;  %v1403_v52 = vpop.permute.xlu0 %1402  ;;  %v1884_v29 = vmul.f32 %v4115_v35, %v1876_v32  ;;  %v5736_v47 = vld [vmem:[#allocation43_spill] sm:$0xff] }
 0x18e   : > { %v1938_v3 = vrot.slane %v1908_v28, 2  ;;  %v1940_v41 = vrot.slane %v1909_v8, 2  ;;  %v4120_v63 = vadd.f32 %v1997_v14, %v1953_v17  ;;  %v1422_v59 = vsel %vm698_vm0, %v1403_v52, %v3980_v49  ;;  %v1419_v53 = vpop.permute.xlu1 %1418  ;;  %v5738_v14 = vld [vmem:[#allocation42_spill] sm:$0xff] }
 0x18f   : > { %5732 = vst [vmem:[#allocation50_spill] sm:$0xff] %v4110_v7  ;;  %v5734_v33 = vperm.slane %v3969_v36, 3  ;;  %v1030_v4 = vrot.slane %v995_v16, 2  ;;  %v2002_v23 = vrot.slane %v3883_v30, 4  ;;  %v1438_v39 = vadd.f32 %v1422_v59, %v3781_v2 }
 0x190   : > { %5733 = vst [vmem:[#allocation52_spill] sm:$0xff] %v4120_v63  ;;  %v1428_v15 = vsel %vm698_vm0, %v1417_v0, %v1419_v53  ;;  %v1429_v32 = vsel %vm698_vm0, %v1419_v53, %v3961_v19  ;;  %v1924_v28 = vsel %vm321_vm1, %v1922_v27, %v1923_v55  ;;  %v5735_v1 = vrot.slane %v3923_v34, 2  ;;  %v5768_v63 = vld [vmem:[#allocation13_spill] sm:$0xff] }
 0x191   : > { %v1885_v22 = vmul.f32 %v4004_v6, %v5734_v33  ;;  %v1444_v8 = vadd.f32 %v1428_v15, %v3849_v25  ;;  %v1445_v49 = vadd.f32 %v1429_v32, %v3837_v24  ;;  %v1886_v36 = vadd.f32 %v1878_v61, %v1438_v39 }
 0x192   : > { %v1939_v16 = vsel %vm321_vm1, %v5735_v1, %v1938_v3  ;;  %v1941_v30 = vsel %vm321_vm1, %v1932_v40, %v1940_v41  ;;  %v5737_v2 = vrot.slane %v5736_v47, 4  ;;  %v5739_v0 = vrot.slane %v5738_v14, 4  ;;  %v4200_v47 = vld [vmem:[%s3172_s7 + $0x18] sm:$0xff] }
 0x193   : > { %v1892_v19 = vadd.f32 %v1884_v29, %v1444_v8  ;;  %v1893_v17 = vadd.f32 %v1885_v22, %v1445_v49  ;;  %v5740_v27 = vrot.slane %v3941_v13, 2  ;;  %v1950_v24 = vadd.f32 %v1924_v28, %v1886_v36  ;;  %v5742_v13 = vld [vmem:[#allocation36_spill] sm:$0xff] }
 0x194   : > { %v1988_v48 = vsel %vm386_vm2, %v5739_v0, %v5737_v2  ;;  %v5741_v61 = vrot.slane %v5716_v51, 4  ;;  %v2005_v40 = vsel %vm386_vm2, %v1996_v43, %v2004_v5  ;;  %v1906_v52 = vmul.f32 %v4018_v10, %v4048_v50  ;;  %1060 = vrot.lane.b32.xlu1 %v1030_v4, %s2972_s9 }
 0x195   : > { %v1031_v25 = vsel %vm321_vm1, %v5740_v27, %v1030_v4  ;;  %v1956_v29 = vadd.f32 %v1939_v16, %v1892_v19  ;;  %v1957_v3 = vadd.f32 %v1941_v30, %v1893_v17  ;;  %v1970_v41 = vmul.f32 %v4018_v10, %v5742_v13  ;;  %v4161_v51 = vpop.permute.xlu2 %1580  ;;  %v4163_v33 = vpop.permute.xlu0 %1584  ;;  %v5750_v19 = vld [vmem:[#allocation8_spill] sm:$0xff] }
 0x196   : > { %v2003_v34 = vsel %vm386_vm2, %v5741_v61, %v2002_v23  ;;  %1050 = vrot.lane.b32.xlu2 %v1031_v25, %s2972_s9  ;;  %v4159_v59 = vadd.f32 %v1988_v48, %v1950_v24  ;;  %v1413_v5 = vpop.permute.xlu1 %1412  ;;  %v1934_v22 = vrot.slane %v1906_v52, 2  ;;  %v1882_v50 = vmul.f32 %v4014_v9, %v1874_v45  ;;  %v4211_v48 = vld [vmem:[%s3172_s7 + $0x70] sm:$0xf]  ;;  %v4221_v24 = vld [vmem:[%s3172_s7 + $0x60] sm:$0xf] }
 0x197   : > { %v4165_v26 = vadd.f32 %v2003_v34, %v1956_v29  ;;  %v4167_v43 = vadd.f32 %v2005_v40, %v1957_v3  ;;  %v1426_v53 = vsel %vm698_vm0, %v1413_v5, %v3903_v57  ;;  %v1998_v4 = vrot.slane %v1970_v41, 4  ;;  %v5752_v40 = vld [vmem:[#allocation2_spill] sm:$0xff]  ;;  %v5753_v3 = vld [vmem:[#allocation12_spill] sm:$0xff] }
 0x198   : > { %5743 = vst [vmem:[#allocation53_spill] sm:$0xff] %v4159_v59  ;;  %v1442_v23 = vadd.f32 %v1426_v53, %v3916_v31  ;;  %v1935_v39 = vsel %vm321_vm1, %v1923_v55, %v1934_v22  ;;  %v5746_v32 = vmov %v5737_v2  ;;  %v4215_v17 = vmul.f32 %v4211_v48, %v5750_v19  ;;  %v5755_v22 = vld [vmem:[#allocation6_spill] sm:$0xff]  ;;  %v5756_v53 = vld [vmem:[#allocation5_spill] sm:$0xff] }
 0x199   : > { %5744 = vst [vmem:[#allocation14_spill] sm:$0xff] %v4165_v26  ;;  %v1999_v38 = vsel %vm386_vm2, %v5746_v32, %v1998_v4  ;;  %v487_v52 = vmul.f32 %v3932_v46, %v5752_v40  ;;  %v4231_v13 = vmul.f32 %v4211_v48, %v5753_v3  ;;  %v492_v41 = vmul.f32 %v3937_v60, %v5752_v40 }
 0x19a   : > { %5745 = vst [vmem:[#allocation15_spill] sm:$0xff] %v4167_v43  ;;  %v1890_v15 = vadd.f32 %v1882_v50, %v1442_v23  ;;  %v5602_v29 = vrot.slane %v4215_v17, 1  ;;  %v4239_v5 = vmul.f32 %v4082_v62, %v5752_v40  ;;  %v462_v50 = vmul.f32 %v4211_v48, %v5755_v22 }
 0x19b   : > { %v479_v4 = vsel %vm439_vm5, %v5752_v40, %v5756_v53  ;;  %v5604_v32 = vrot.slane %v4231_v13, 2  ;;  %v5760_v40 = vld [vmem:[#allocation10_spill] sm:$0xff]  ;;  %v4335_v37 = vsel %vm439_vm5, %v5768_v63, %v5753_v3 }
 0x19c   : > { %v1954_v57 = vadd.f32 %v1935_v39, %v1890_v15  ;;  %5754 = vst [vmem:[#allocation34_spill] sm:$0xff] %v4239_v5  ;;  %v518_v15 = vrot.slane %v487_v52, 1  ;;  %v597_v52 = vmul.f32 %v3932_v46, %v5760_v40 }
 0x19d   : > { %v4182_v45 = vpop.permute.xlu2 %1735  ;;  %v1459_v28 = vpop.permute.xlu0 %1458 }
 0x19e   : > { %1062 = vrot.lane.b32.xlu2 %v1032_v44, %s2972_s9  ;;  %5747 = vst [vmem:[#allocation46_spill] sm:$0xff] %v4182_v45  ;;  %v1463_v31 = vsel %vm767_vm4, %v4112_v54, %v1459_v28  ;;  %v4186_v8 = vpop.permute.xlu1 %1586  ;;  %v4188_v55 = vadd.f32 %v1999_v38, %v1954_v57  ;;  %v572_v38 = vadd.f32 %v5602_v29, %v462_v50  ;;  %v519_v57 = vrot.slane %v492_v41, 1 }
 0x19f   : > { %v1472_v11 = vmul.f32 %v3977_v12, %v1463_v31  ;;  %v1477_v30 = vmul.f32 %v4039_v21, %v1463_v31  ;;  %v1482_v61 = vmul.f32 %v4221_v24, %v1463_v31  ;;  %v5603_v31 = vrot.slane %v4239_v5, 1  ;;  %v5770_v5 = vld [vmem:[#allocation3_spill] sm:$0xff] }
 0x1a0   : > { %5748 = vst [vmem:[#allocation17_spill] sm:$0xff] %v4188_v55  ;;  %v4278_v41 = vsel %vm517_vm3, %v518_v15, %v519_v57  ;;  %v627_v15 = vrot.slane %v597_v52, 2  ;;  %v457_v45 = vmul.f32 %v4004_v6, %v5755_v22 }
 0x1a1   : > { %1504 = vrot.lane.b32.xlu0 %v1472_v11, %s2971_s8  ;;  %5761 = vst [vmem:[#allocation49_spill] sm:$0xff] %v4278_v41  ;;  %v4356_v41 = vsel %vm439_vm5, %v5770_v5, %v5755_v22 }
 0x1a5   : > { %v4192_v44 = vpop.permute.xlu2 %765  ;;  %v4194_v49 = vpop.permute.xlu0 %1454 }
 0x1a6   : > { %v1461_v36 = vpop.permute.xlu1 %1460  ;;  %v1462_v29 = vsel %vm767_vm4, %v4194_v49, %v4112_v54  ;;  %v5765_v54 = vld [vmem:[#allocation9_spill] sm:$0xff]  ;;  %v1475_v43 = vmul.f32 %v3937_v60, %v4194_v49 }
 0x1a7   : > { %v1464_v1 = vsel %vm767_vm4, %v1459_v28, %v1461_v36  ;;  %v1474_v16 = vmul.f32 %v3999_v56, %v1461_v36  ;;  %v1479_v25 = vmul.f32 %v4004_v6, %v1461_v36  ;;  %v1476_v26 = vmul.f32 %v4014_v9, %v1462_v29 }
 0x1a8   : > { %v1473_v2 = vmul.f32 %v4200_v47, %v1464_v1  ;;  %v1478_v34 = vmul.f32 %v4115_v35, %v1464_v1  ;;  %v1471_v20 = vmul.f32 %v4031_v18, %v1462_v29 }
 0x1a9   : > { %1508 = vrot.lane.b32.xlu2 %v1474_v16, %s2971_s8  ;;  %1514 = vrot.lane.b32.xlu0 %v1477_v30, %s2971_s8  ;;  %v1484_v16 = vmul.f32 %v4211_v48, %v1461_v36  ;;  %v488_v30 = vmul.f32 %v4031_v18, %v479_v4  ;;  %v681_v36 = vadd.f32 %v5604_v32, %v572_v38 }
 0x1aa   : > { %1506 = vrot.lane.b32.xlu1 %v1473_v2, %s2971_s8  ;;  %v1470_v2 = vmul.f32 %v3932_v46, %v4194_v49  ;;  %v4304_v32 = vmul.f32 %v4004_v6, %v5750_v19 }
 0x1ab   : > { %v521_v50 = vrot.slane %v488_v30, 1  ;;  %v809_v38 = vadd.f32 %v4192_v44, %v681_v36 }
 0x1ad   : > { %v4206_v14 = vpop.permute.xlu2 %897  ;;  %v4208_v0 = vpop.permute.xlu0 %1737 }
 0x1ae   : > { %5749 = vst [vmem:[#allocation16_spill] sm:$0xff] %v4208_v0  ;;  %v4217_v27 = vpop.permute.xlu1 %1733  ;;  %v531_v0 = vrot.slane %v4304_v32, 1 }
 0x1af   : > { %5751 = vst [vmem:[#allocation45_spill] sm:$0xff] %v4217_v27 }
 0x1b1   : > { %1518 = vrot.lane.b32.xlu2 %v1479_v25, %s2971_s8  ;;  %1524 = vrot.lane.b32.xlu0 %v1482_v61, %s2971_s8  ;;  %v1483_v25 = vmul.f32 %v4075_v58, %v1464_v1  ;;  %v493_v61 = vmul.f32 %v4014_v9, %v479_v4  ;;  %v4283_v1 = vsel %vm517_vm3, %v519_v57, %v5603_v31 }
 0x1b2   : > { %1516 = vrot.lane.b32.xlu1 %v1478_v34, %s2971_s8  ;;  %v4268_v34 = vmul.f32 %v4018_v10, %v479_v4  ;;  %5762 = vst [vmem:[#allocation54_spill] sm:$0xff] %v4283_v1  ;;  %v602_v4 = vmul.f32 %v3937_v60, %v5760_v40  ;;  %v491_v31 = vmul.f32 %v3999_v56, %v5750_v19  ;;  %v5773_v1 = vld [vmem:[#allocation4_spill] sm:$0xff] }
 0x1b4   : > { %5759 = vst [vmem:[#allocation48_spill] sm:$0xff] %v4268_v34  ;;  %v628_v7 = vrot.slane %v602_v4, 2 }
 0x1b5   : > { %v4246_v23 = vpop.permute.xlu2 %907  ;;  %v4248_v39 = vpop.permute.xlu0 %893 }
 0x1b6   : > { %v4253_v28 = vpop.permute.xlu1 %1731 }
 0x1b7   : > { %5757 = vst [vmem:[#allocation30_spill] sm:$0xff] %v4253_v28  ;;  %v4259_v11 = vsel %vm767_vm4, %v4253_v28, %v4217_v27  ;;  %v606_v28 = vmul.f32 %v4004_v6, %v5753_v3 }
 0x1b8   : > { %5758 = vst [vmem:[#allocation35_spill] sm:$0xff] %v4259_v11 }
 0x1b9   : > { %1528 = vrot.lane.b32.xlu2 %v1484_v16, %s2971_s8  ;;  %1500 = vrot.lane.b32.xlu0 %v1470_v2, %s2971_s8  ;;  %v4289_v16 = vmul.f32 %v4082_v62, %v5760_v40  ;;  %v522_v2 = vrot.slane %v493_v61, 1  ;;  %v1589_v61 = vsel %vm767_vm4, %v4052_v42, %v4163_v33 }
 0x1ba   : > { %1526 = vrot.lane.b32.xlu1 %v1483_v25, %s2971_s8  ;;  %v4315_v25 = vsel %vm439_vm5, %v5765_v54, %v5750_v19  ;;  %v601_v19 = vmul.f32 %v3999_v56, %v5753_v3  ;;  %v4339_v11 = vmul.f32 %v4039_v21, %v1589_v61  ;;  %v4366_v3 = vmul.f32 %v3932_v46, %v5773_v1 }
 0x1bb   : > { %5763 = vst [vmem:[#allocation38_spill] sm:$0xff] %v4289_v16  ;;  %v4343_v4 = vsel %vm517_vm3, %v521_v50, %v522_v2 }
 0x1bc   : > { %5769 = vst [vmem:[#allocation44_spill] sm:$0xff] %v4343_v4  ;;  %v530_v4 = vrot.slane %v491_v31, 1  ;;  %v4382_v31 = vmul.f32 %v3937_v60, %v5773_v1  ;;  %v639_v32 = vrot.slane %v601_v19, 2 }
 0x1bd   : > { %v4296_v57 = vpop.permute.xlu2 %917  ;;  %v4298_v30 = vpop.permute.xlu0 %903  ;;  %5774 = vst [vmem:[#allocation42_spill] sm:$0xff] %v4366_v3 }
 0x1be   : > { %v4310_v52 = vadd.f32 %v4296_v57, %v809_v38  ;;  %v896_v36 = vpop.permute.xlu1 %895  ;;  %v4347_v38 = vmul.f32 %v4075_v58, %v4315_v25  ;;  %5778 = vst [vmem:[#allocation2_spill] sm:$0xff] %v4382_v31 }
 0x1bf   : > { %v4319_v55 = vsel %vm767_vm4, %v4248_v39, %v896_v36  ;;  %v4323_v59 = vsel %vm767_vm4, %v896_v36, %v4206_v14  ;;  %v1598_v36 = vmul.f32 %v3977_v12, %v1589_v61 }
 0x1c0   : > { %5764 = vst [vmem:[#allocation37_spill] sm:$0xff] %v4310_v52  ;;  %v5776_v52 = vrot.slane %v4289_v16, 2  ;;  %v1590_v16 = vsel %vm767_vm4, %v4163_v33, %v4186_v8  ;;  %v1600_v33 = vmul.f32 %v3999_v56, %v4186_v8  ;;  %v5781_v31 = vrot.slane %v4347_v38, 1 }
 0x1c1   : > { %5766 = vst [vmem:[#allocation39_spill] sm:$0xff] %v4319_v55  ;;  %1510 = vrot.lane.b32.xlu2 %v1475_v43, %s2971_s8  ;;  %1512 = vrot.lane.b32.xlu0 %v1476_v26, %s2971_s8  ;;  %v5771_v43 = vrot.slane %v4268_v34, 1  ;;  %v4373_v26 = vsel %vm321_vm1, %v627_v15, %v628_v7  ;;  %v640_v15 = vrot.slane %v606_v28, 2  ;;  %v1481_v28 = vmul.f32 %v4018_v10, %v1462_v29  ;;  %v5784_v55 = vld [vmem:[#allocation27_spill] sm:$0xff] }
 0x1c2   : > { %5767 = vst [vmem:[#allocation47_spill] sm:$0xff] %v4323_v59  ;;  %1502 = vrot.lane.b32.xlu1 %v1471_v20, %s2971_s8  ;;  %v4370_v20 = vmul.f32 %v4075_v58, %v4335_v37  ;;  %v4378_v34 = vsel %vm321_vm1, %v628_v7, %v5776_v52  ;;  %v461_v7 = vmul.f32 %v4075_v58, %v4356_v41  ;;  %v1638_v27 = vrot.slane %v1600_v33, 1 }
 0x1c3   : > { %v4361_v50 = vsel %vm517_vm3, %v522_v2, %v5771_v43  ;;  %5775 = vst [vmem:[#allocation36_spill] sm:$0xff] %v4373_v26  ;;  %v1632_v2 = vrot.slane %v1598_v36, 1  ;;  %v1633_v43 = vrot.slane %v4339_v11, 1  ;;  %v532_v26 = vsel %vm517_vm3, %v530_v4, %v531_v0 }
 0x1c4   : > { %5772 = vst [vmem:[#allocation43_spill] sm:$0xff] %v4361_v50  ;;  %v4408_v59 = vmul.f32 %v4004_v6, %v4186_v8  ;;  %v1480_v4 = vmul.f32 %v4082_v62, %v4194_v49  ;;  %v1599_v29 = vmul.f32 %v4200_v47, %v1590_v16  ;;  %v4419_v36 = vmul.f32 %v4115_v35, %v1590_v16 }
 0x1c5   : > { %5777 = vst [vmem:[#allocation8_spill] sm:$0xff] %v4378_v34  ;;  %v4385_v3 = vpop.permute.xlu2 %899  ;;  %v914_v50 = vpop.permute.xlu0 %913  ;;  %v4413_v34 = vmul.f32 %v4221_v24, %v1589_v61  ;;  %v571_v49 = vadd.f32 %v5781_v31, %v461_v7  ;;  %v5782_v61 = vld [vmem:[#allocation7_spill] sm:$0xff]  ;;  %v779_v31 = vsel %vm767_vm4, %v5784_v55, %v4192_v44 }
 0x1c6   : > { %v906_v52 = vpop.permute.xlu1 %905  ;;  %v4454_v44 = vsel %vm439_vm5, %v5782_v61, %v5770_v5 }
 0x1c7   : > { %v4396_v19 = vsel %vm767_vm4, %v4298_v30, %v906_v52  ;;  %v4400_v11 = vsel %vm767_vm4, %v906_v52, %v4246_v23  ;;  %v1634_v52 = vsel %vm517_vm3, %v1632_v2, %v1633_v43  ;;  %v4431_v2 = vsel %vm439_vm5, %v5773_v1, %v5782_v61 }
 0x1c8   : > { %5779 = vst [vmem:[#allocation12_spill] sm:$0xff] %v4396_v19  ;;  %v641_v19 = vsel %vm321_vm1, %v639_v32, %v640_v15  ;;  %v1639_v1 = vrot.slane %v4408_v59, 1  ;;  %v4475_v61 = vmul.f32 %v4211_v48, %v4186_v8  ;;  %v450_v8 = vmul.f32 %v3977_v12, %v4454_v44 }
 0x1c9   : > { %5780 = vst [vmem:[#allocation6_spill] sm:$0xff] %v4400_v11  ;;  %1522 = vrot.lane.b32.xlu2 %v1481_v28, %s2971_s8  ;;  %v452_v11 = vmul.f32 %v3999_v56, %v5755_v22  ;;  %1655 = vrot.lane.b32.xlu0 %v1634_v52, %s2971_s8  ;;  %v480_v28 = vsel %vm439_vm5, %v5756_v53, %v5765_v54  ;;  %v5783_v56 = vrot.slane %v4231_v13, 2 }
 0x1ca   : > { %1520 = vrot.lane.b32.xlu1 %v1480_v4, %s2971_s8  ;;  %v5785_v4 = vrot.slane %v4370_v20, 2  ;;  %v4465_v33 = vmul.f32 %v3977_v12, %v480_v28 }
 0x1cb   : > { %v651_v32 = vsel %vm321_vm1, %v640_v15, %v5783_v56  ;;  %v562_v7 = vadd.f32 %v532_v26, %v452_v11  ;;  %v1635_v56 = vrot.slane %v1599_v29, 1  ;;  %v1636_v15 = vrot.slane %v4419_v36, 1 }
 0x1cc   : > { %v680_v52 = vadd.f32 %v5785_v4, %v571_v49  ;;  %v4458_v26 = vmul.f32 %v4018_v10, %v4431_v2  ;;  %v494_v36 = vmul.f32 %v4039_v21, %v480_v28  ;;  %v1640_v4 = vsel %vm517_vm3, %v1638_v27, %v1639_v1 }
 0x1cd   : > { %v890_v13 = vpop.permute.xlu0 %889  ;;  %v671_v49 = vadd.f32 %v641_v19, %v562_v7  ;;  %v4489_v19 = vmul.f32 %v4075_v58, %v1590_v16  ;;  %v4495_v27 = vmul.f32 %v4039_v21, %v4454_v44  ;;  %v495_v16 = vmul.f32 %v4115_v35, %v4315_v25 }
 0x1ce   : > { %v4448_v54 = vpop.permute.xlu2 %911  ;;  %v808_v59 = vadd.f32 %v779_v31, %v680_v52  ;;  %v916_v11 = vpop.permute.xlu1 %915  ;;  %v5787_v52 = vrot.slane %v4215_v17, 1  ;;  %v5789_v17 = vld [vmem:[#allocation18_spill] sm:$0xff]  ;;  %v4505_v7 = vmul.f32 %v4221_v24, %v480_v28  ;;  %v4524_v58 = vmul.f32 %v4115_v35, %v4335_v37 }
 0x1cf   : > { %v4462_v22 = vsel %vm767_vm4, %v4448_v54, %v914_v50  ;;  %v4469_v29 = vsel %vm767_vm4, %v914_v50, %v916_v11  ;;  %v930_v5 = vsel %vm767_vm4, %v916_v11, %v4296_v57  ;;  %v5788_v50 = vrot.slane %v4413_v34, 1 }
 0x1d0   : > { %5786 = vst [vmem:[#allocation5_spill] sm:$0xff] %v4469_v29  ;;  %v4477_v31 = vadd.f32 %v930_v5, %v808_v59  ;;  %v542_v53 = vsel %vm517_vm3, %v531_v0, %v5787_v52  ;;  %v1637_v57 = vsel %vm517_vm3, %v1635_v56, %v1636_v15  ;;  %v799_v0 = vadd.f32 %v5789_v17, %v671_v49  ;;  %v5790_v59 = vld [vmem:[#allocation11_spill] sm:$0xff] }
 0x1d1   : > { %1659 = vrot.lane.b32.xlu2 %v1640_v4, %s2971_s8  ;;  %v1646_v29 = vsel %vm517_vm3, %v1633_v43, %v5788_v50  ;;  %v490_v43 = vmul.f32 %v4200_v47, %v4315_v25  ;;  %v4509_v56 = vmul.f32 %v4115_v35, %v4356_v41  ;;  %v590_v11 = vsel %vm439_vm5, %v5790_v59, %v5768_v63 }
 0x1d2   : > { %1665 = vrot.lane.b32.xlu0 %v1646_v29, %s2971_s8  ;;  %1657 = vrot.lane.b32.xlu1 %v1637_v57, %s2971_s8  ;;  %v567_v29 = vadd.f32 %v542_v53, %v457_v45  ;;  %v950_v5 = vadd.f32 %v4206_v14, %v799_v0  ;;  %v1649_v49 = vrot.slane %v4475_v61, 1  ;;  %v524_v4 = vrot.slane %v4465_v33, 1 }
 0x1d3   : > { %v525_v52 = vrot.slane %v494_v36, 1  ;;  %v600_v25 = vmul.f32 %v4200_v47, %v4335_v37  ;;  %v1647_v57 = vrot.slane %v4489_v19, 1  ;;  %v599_v33 = vmul.f32 %v3977_v12, %v590_v11 }
 0x1d4   : > { %v4539_v36 = vmul.f32 %v4039_v21, %v590_v11  ;;  %v528_v19 = vrot.slane %v495_v16, 1  ;;  %v676_v0 = vadd.f32 %v651_v32, %v567_v29  ;;  %v5792_v16 = vld [vmem:[#allocation25_spill] sm:$0xff] }
 0x1d5   : > { %v902_v50 = vpop.permute.xlu0 %901  ;;  %v633_v29 = vrot.slane %v599_v33, 2 }
 0x1d6   : > { %v4519_v28 = vpop.permute.xlu2 %1048  ;;  %v4531_v45 = vsel %vm767_vm4, %v4385_v3, %v902_v50  ;;  %v4535_v14 = vsel %vm767_vm4, %v902_v50, %v4298_v30  ;;  %v892_v53 = vpop.permute.xlu1 %891  ;;  %v537_v3 = vrot.slane %v4505_v7, 1  ;;  %v1650_v30 = vsel %vm517_vm3, %v1639_v1, %v1649_v49  ;;  %v5811_v7 = vld [vmem:[#allocation12_spill] sm:$0xff] }
 0x1d7   : > { %v4527_v63 = vadd.f32 %v4519_v28, %v950_v5  ;;  %v4542_v37 = vsel %vm767_vm4, %v890_v13, %v892_v53  ;;  %v4546_v61 = vsel %vm767_vm4, %v892_v53, %v4248_v39  ;;  %v527_v5 = vrot.slane %v490_v43, 1 }
 0x1d8   : > { %v1596_v50 = vmul.f32 %v3932_v46, %v4161_v51  ;;  %v1648_v13 = vsel %vm517_vm3, %v1636_v15, %v1647_v57  ;;  %v589_v39 = vsel %vm439_vm5, %v5760_v40, %v5790_v59  ;;  %v804_v32 = vadd.f32 %v5792_v16, %v676_v0 }
 0x1d9   : > { %5791 = vst [vmem:[#allocation10_spill] sm:$0xff] %v4527_v63  ;;  %v4554_v63 = vmul.f32 %v3937_v60, %v4161_v51  ;;  %1669 = vrot.lane.b32.xlu2 %v1650_v30, %s2971_s8  ;;  %v451_v1 = vmul.f32 %v4200_v47, %v4356_v41  ;;  %v5793_v46 = vrot.slane %v4413_v34, 1  ;;  %v636_v60 = vrot.slane %v600_v25, 2 }
 0x1da   : > { %1667 = vrot.lane.b32.xlu1 %v1648_v13, %s2971_s8  ;;  %v637_v43 = vrot.slane %v4524_v58, 2  ;;  %v634_v15 = vrot.slane %v4539_v36, 2  ;;  %v538_v40 = vsel %vm517_vm3, %v525_v52, %v537_v3  ;;  %v5794_v59 = vrot.slane %v4347_v38, 1 }
 0x1db   : > { %1675 = vrot.lane.b32.xlu0 %v5793_v46, %s2971_s8  ;;  %v526_v53 = vsel %vm517_vm3, %v524_v4, %v525_v52  ;;  %v955_v34 = vadd.f32 %v4246_v23, %v804_v32  ;;  %v4579_v0 = vmul.f32 %v4014_v9, %v589_v39  ;;  %v529_v58 = vsel %vm517_vm3, %v527_v5, %v528_v19  ;;  %v5796_v46 = vld [vmem:[#allocation23_spill] sm:$0xff] }
 0x1dc   : > { %v540_v41 = vsel %vm517_vm3, %v528_v19, %v5794_v59  ;;  %v1626_v25 = vrot.slane %v1596_v50, 1  ;;  %v1627_v33 = vrot.slane %v4554_v63, 1  ;;  %v4588_v38 = vmul.f32 %v4018_v10, %v589_v39 }
 0x1dd   : > { %v4585_v30 = vpop.permute.xlu0 %1044  ;;  %v4591_v13 = vmul.f32 %v4221_v24, %v590_v11  ;;  %v1588_v23 = vsel %vm767_vm4, %v4161_v51, %v4052_v42  ;;  %v560_v19 = vadd.f32 %v526_v53, %v450_v8  ;;  %v635_v63 = vsel %vm321_vm1, %v633_v29, %v634_v15  ;;  %v5795_v11 = vld [vmem:[#allocation28_spill] sm:$0xff] }
 0x1de   : > { %v4583_v36 = vpop.permute.xlu2 %1058  ;;  %v910_v52 = vpop.permute.xlu1 %909  ;;  %v638_v5 = vsel %vm321_vm1, %v636_v60, %v637_v43  ;;  %v561_v32 = vadd.f32 %v529_v58, %v451_v1  ;;  %v770_v59 = vsel %vm767_vm4, %v5796_v46, %v5795_v11  ;;  %v771_v42 = vsel %vm767_vm4, %v5795_v11, %v5789_v17 }
 0x1df   : > { %v4597_v4 = vadd.f32 %v4583_v36, %v955_v34  ;;  %v4603_v50 = vsel %vm767_vm4, %v910_v52, %v4448_v54  ;;  %v4613_v8 = vmul.f32 %v4082_v62, %v4161_v51  ;;  %v1597_v29 = vmul.f32 %v4031_v18, %v1588_v23 }
 0x1e0   : > { %v1602_v60 = vmul.f32 %v4014_v9, %v1588_v23  ;;  %v4618_v54 = vmul.f32 %v4018_v10, %v1588_v23  ;;  %v1628_v1 = vsel %vm517_vm3, %v1626_v25, %v1627_v33  ;;  %v565_v53 = vadd.f32 %v538_v40, %v4495_v27 }
 0x1e1   : > { %1679 = vrot.lane.b32.xlu2 %v1649_v49, %s2971_s8  ;;  %v669_v34 = vadd.f32 %v635_v63, %v560_v19  ;;  %v670_v58 = vadd.f32 %v638_v5, %v561_v32  ;;  %v4626_v51 = vmul.f32 %v4031_v18, %v589_v39  ;;  %v631_v17 = vrot.slane %v4579_v0, 2 }
 0x1e2   : > { %1677 = vrot.lane.b32.xlu1 %v1647_v57, %s2971_s8  ;;  %v5617_v23 = vrot.slane %v4591_v13, 2  ;;  %v566_v52 = vadd.f32 %v540_v41, %v4509_v56  ;;  %v644_v49 = vrot.slane %v4588_v38, 2  ;;  %v1641_v27 = vrot.slane %v4613_v8, 1  ;;  %v5799_v56 = vld [vmem:[#allocation45_spill] sm:$0xff]  ;;  %v5800_v38 = vld [vmem:[#allocation39_spill] sm:$0xff] }
 0x1e3   : > { %1651 = vrot.lane.b32.xlu0 %v1628_v1, %s2971_s8  ;;  %v797_v25 = vadd.f32 %v770_v59, %v669_v34  ;;  %v798_v11 = vadd.f32 %v771_v42, %v670_v58  ;;  %v5797_v40 = vrot.slane %v4370_v20, 2  ;;  %v1630_v63 = vrot.slane %v1602_v60, 1  ;;  %v5798_v1 = vld [vmem:[#allocation46_spill] sm:$0xff]  ;;  %v5801_v42 = vld [vmem:[#allocation47_spill] sm:$0xff]  ;;  %v5802_v58 = vld [vmem:[#allocation37_spill] sm:$0xff] }
 0x1e4   : > { %v1643_v5 = vrot.slane %v4618_v54, 1  ;;  %v1629_v32 = vrot.slane %v1597_v29, 1  ;;  %v1740_v41 = vsel %vm767_vm4, %v5799_v56, %v5798_v1  ;;  %v647_v60 = vsel %vm321_vm1, %v634_v15, %v5617_v23  ;;  %v5804_v54 = vld [vmem:[#allocation24_spill] sm:$0xff] }
 0x1e5   : > { %v649_v19 = vsel %vm321_vm1, %v637_v43, %v5797_v40  ;;  %v4638_v39 = vpop.permute.xlu0 %1054  ;;  %v948_v59 = vadd.f32 %v5800_v38, %v797_v25  ;;  %v949_v34 = vadd.f32 %v5801_v42, %v798_v11  ;;  %v5803_v40 = vld [vmem:[#allocation26_spill] sm:$0xff]  ;;  %v1642_v15 = vsel %vm517_vm3, %v1627_v33, %v1641_v27  ;;  %v5805_v33 = vld [vmem:[#allocation4_spill] sm:$0xff] }
 0x1e6   : > { %v4636_v57 = vpop.permute.xlu2 %1068  ;;  %v1047_v43 = vpop.permute.xlu1 %1046  ;;  %v774_v29 = vsel %vm767_vm4, %v5804_v54, %v5803_v40  ;;  %v775_v11 = vsel %vm767_vm4, %v5803_v40, %v5792_v16  ;;  %v4672_v23 = vmul.f32 %v4039_v21, %v1740_v41  ;;  %v460_v16 = vmul.f32 %v4221_v24, %v4454_v44  ;;  %v5808_v44 = vld [vmem:[#allocation48_spill] sm:$0xff] }
 0x1e7   : > { %v4648_v20 = vadd.f32 %v4636_v57, %v5802_v58  ;;  %v1072_v56 = vsel %vm767_vm4, %v4585_v30, %v1047_v43  ;;  %v1073_v25 = vsel %vm767_vm4, %v1047_v43, %v4519_v28  ;;  %v1749_v58 = vmul.f32 %v3977_v12, %v1740_v41 }
 0x1e8   : > { %v4663_v38 = vadd.f32 %v1072_v56, %v948_v59  ;;  %v4665_v42 = vadd.f32 %v1073_v25, %v949_v34  ;;  %v1644_v28 = vsel %vm517_vm3, %v1630_v63, %v1643_v5  ;;  %v1631_v43 = vsel %vm517_vm3, %v1629_v32, %v1630_v63  ;;  %v5806_v63 = vld [vmem:[#allocation2_spill] sm:$0xff] }
 0x1e9   : > { %1661 = vrot.lane.b32.xlu2 %v1642_v15, %s2971_s8  ;;  %v674_v59 = vadd.f32 %v647_v60, %v565_v53  ;;  %v675_v34 = vadd.f32 %v649_v19, %v566_v52  ;;  %v4683_v12 = vmul.f32 %v4082_v62, %v5805_v33  ;;  %v449_v21 = vmul.f32 %v4031_v18, %v4431_v2  ;;  %v5807_v32 = vld [vmem:[#allocation54_spill] sm:$0xff] }
 0x1ea   : > { %1653 = vrot.lane.b32.xlu1 %v1631_v43, %s2971_s8  ;;  %v454_v40 = vmul.f32 %v4014_v9, %v4431_v2  ;;  %v563_v56 = vadd.f32 %v5807_v32, %v5806_v63  ;;  %v5809_v53 = vrot.slane %v5808_v44, 1  ;;  %v570_v19 = vadd.f32 %v537_v3, %v460_v16  ;;  %v5810_v44 = vld [vmem:[#allocation16_spill] sm:$0xff]  ;;  %v5813_v16 = vld [vmem:[#allocation33_spill] sm:$0xff] }
 0x1eb   : > { %1663 = vrot.lane.b32.xlu0 %v1644_v28, %s2971_s8  ;;  %v802_v60 = vadd.f32 %v774_v29, %v674_v59  ;;  %v803_v25 = vadd.f32 %v775_v11, %v675_v34  ;;  %v630_v15 = vrot.slane %v4626_v51, 2  ;;  %v645_v28 = vsel %vm321_vm1, %v631_v17, %v644_v49  ;;  %v5812_v29 = vld [vmem:[#allocation6_spill] sm:$0xff]  ;;  %v5814_v59 = vld [vmem:[#allocation29_spill] sm:$0xff] }
 0x1ec   : > { %v569_v52 = vadd.f32 %v5809_v53, %v4458_v26  ;;  %v1783_v43 = vrot.slane %v1749_v58, 2  ;;  %v1784_v2 = vrot.slane %v4672_v23, 2  ;;  %v1741_v26 = vsel %vm767_vm4, %v5798_v1, %v5810_v44  ;;  %v5815_v1 = vld [vmem:[#allocation51_spill] sm:$0xff] }
 0x1ed   : > { %v1065_v33 = vpop.permute.xlu0 %1064  ;;  %v953_v3 = vadd.f32 %v5811_v7, %v802_v60  ;;  %v954_v11 = vadd.f32 %v5812_v29, %v803_v25  ;;  %v777_v34 = vsel %vm767_vm4, %v5814_v59, %v5813_v16  ;;  %v778_v23 = vsel %vm767_vm4, %v5813_v16, %v5784_v55 }
 0x1ee   : > { %v678_v32 = vadd.f32 %v644_v49, %v569_v52  ;;  %v1057_v51 = vpop.permute.xlu1 %1056  ;;  %v1751_v53 = vmul.f32 %v5815_v1, %v5810_v44  ;;  %v4722_v52 = vmul.f32 %v4004_v6, %v5810_v44  ;;  %v1750_v7 = vmul.f32 %v4200_v47, %v1741_v26  ;;  %v5817_v6 = vld [vmem:[#allocation42_spill] sm:$0xff]  ;;  %v5818_v1 = vld [vmem:[#allocation49_spill] sm:$0xff] }
 0x1ef   : > { %v1076_v49 = vsel %vm767_vm4, %v4638_v39, %v1057_v51  ;;  %v1077_v58 = vsel %vm767_vm4, %v1057_v51, %v4583_v36  ;;  %v4730_v55 = vmul.f32 %v4115_v35, %v1741_v26  ;;  %v4733_v29 = vmul.f32 %v4221_v24, %v1740_v41  ;;  %v5816_v51 = vld [vmem:[#allocation43_spill] sm:$0xff]  ;;  %v5820_v35 = vld [vmem:[#allocation44_spill] sm:$0xff] }
 0x1f0   : > { %v4701_v63 = vpop.permute.xlu2 %1050  ;;  %v4724_v60 = vadd.f32 %v1076_v49, %v953_v3  ;;  %v4726_v25 = vadd.f32 %v1077_v58, %v954_v11  ;;  %v1785_v36 = vsel %vm321_vm1, %v1783_v43, %v1784_v2  ;;  %v564_v16 = vadd.f32 %v5816_v51, %v454_v40 }
 0x1f1   : > { %1673 = vrot.lane.b32.xlu2 %v1643_v5, %s2971_s8  ;;  %v558_v3 = vadd.f32 %v5818_v1, %v5817_v6  ;;  %v5819_v11 = vrot.slane %v4591_v13, 2  ;;  %v559_v47 = vadd.f32 %v5820_v35, %v449_v21  ;;  %v632_v24 = vsel %vm321_vm1, %v630_v15, %v631_v17  ;;  %v5821_v5 = vld [vmem:[#allocation8_spill] sm:$0xff]  ;;  %v5822_v6 = vld [vmem:[#allocation21_spill] sm:$0xff]  ;;  %v5823_v17 = vld [vmem:[#allocation22_spill] sm:$0xff] }
 0x1f2   : > { %1671 = vrot.lane.b32.xlu1 %v1641_v27, %s2971_s8  ;;  %v672_v41 = vadd.f32 %v5821_v5, %v563_v56  ;;  %v806_v40 = vadd.f32 %v777_v34, %v678_v32  ;;  %v673_v43 = vadd.f32 %v645_v28, %v564_v16  ;;  %v1789_v51 = vrot.slane %v1751_v53, 2  ;;  %v5824_v15 = vld [vmem:[#allocation31_spill] sm:$0xff]  ;;  %v5825_v28 = vld [vmem:[#allocation20_spill] sm:$0xff]  ;;  %v5826_v34 = vld [vmem:[#allocation5_spill] sm:$0xff] }
 0x1f3   : > { %v679_v49 = vadd.f32 %v5819_v11, %v570_v19  ;;  %1806 = vrot.lane.b32.xlu0 %v1785_v36, %s2971_s8  ;;  %v1790_v13 = vrot.slane %v4722_v52, 2  ;;  %v1796_v19 = vrot.slane %v4733_v29, 2  ;;  %v1786_v21 = vrot.slane %v1750_v7, 2  ;;  %v5827_v35 = vld [vmem:[#allocation40_spill] sm:$0xff] }
 0x1f4   : > { %v957_v8 = vadd.f32 %v4462_v22, %v806_v40  ;;  %v1787_v0 = vrot.slane %v4730_v55, 2  ;;  %v768_v56 = vsel %vm767_vm4, %v5823_v17, %v5822_v6  ;;  %v772_v32 = vsel %vm767_vm4, %v5825_v28, %v5824_v15 }
 0x1f5   : > { %v807_v58 = vadd.f32 %v778_v23, %v679_v49  ;;  %v1041_v27 = vpop.permute.xlu0 %1040  ;;  %v773_v52 = vsel %vm767_vm4, %v5824_v15, %v5804_v54  ;;  %v1761_v16 = vmul.f32 %v4211_v48, %v5810_v44  ;;  %v1791_v49 = vsel %vm321_vm1, %v1789_v51, %v1790_v13  ;;  %v5828_v48 = vld [vmem:[#allocation36_spill] sm:$0xff] }
 0x1f6   : > { %v1067_v22 = vpop.permute.xlu1 %1066  ;;  %v769_v54 = vsel %vm767_vm4, %v5822_v6, %v5796_v46  ;;  %v1760_v5 = vmul.f32 %v5827_v35, %v1741_v26  ;;  %v667_v44 = vadd.f32 %v5828_v48, %v558_v3  ;;  %v668_v40 = vadd.f32 %v632_v24, %v559_v47  ;;  %v5829_v26 = vld [vmem:[#allocation34_spill] sm:$0xff] }
 0x1f7   : > { %v958_v23 = vadd.f32 %v5826_v34, %v807_v58  ;;  %v1080_v55 = vsel %vm767_vm4, %v1065_v33, %v1067_v22  ;;  %v1081_v29 = vsel %vm767_vm4, %v1067_v22, %v4636_v57  ;;  %v1788_v57 = vsel %vm321_vm1, %v1786_v21, %v1787_v0  ;;  %v2960_v34 = vld [vmem:[%s3172_s7] sm:$0xff]  ;;  %v2961_v22 = vld [vmem:[%s3172_s7 + $0x28] sm:$0xff] }
 0x1f8   : > { %v4754_v36 = vpop.permute.xlu2 %1062  ;;  %v4779_v11 = vadd.f32 %v1081_v29, %v4477_v31  ;;  %v800_v31 = vadd.f32 %v772_v32, %v672_v41  ;;  %v801_v58 = vadd.f32 %v773_v52, %v673_v43  ;;  %v795_v51 = vadd.f32 %v768_v56, %v667_v44  ;;  %v5836_v44 = vld [vmem:[#allocation35_spill] sm:$0xff] }
 0x1f9   : > { %v1079_v53 = vsel %vm767_vm4, %v4754_v36, %v1065_v33  ;;  %v4776_v1 = vadd.f32 %v1080_v55, %v958_v23  ;;  %1810 = vrot.lane.b32.xlu2 %v1791_v49, %s2971_s8  ;;  %v1797_v33 = vsel %vm321_vm1, %v1784_v2, %v1796_v19  ;;  %v1800_v46 = vrot.slane %v1761_v16, 2  ;;  %v5832_v23 = vld [vmem:[#allocation30_spill] sm:$0xff] }
 0x1fa   : > { %v4769_v7 = vadd.f32 %v1079_v53, %v957_v8  ;;  %1808 = vrot.lane.b32.xlu1 %v1788_v57, %s2971_s8  ;;  %v796_v8 = vadd.f32 %v769_v54, %v668_v40  ;;  %v5830_v6 = vrot.slane %v5829_v26, 1  ;;  %v951_v21 = vadd.f32 %v4531_v45, %v800_v31  ;;  %v4858_v26 = vld [vmem:[%s5548_s2] sm:$0xff] }
 0x1fb   : > { %1816 = vrot.lane.b32.xlu0 %v1797_v33, %s2971_s8  ;;  %v952_v2 = vadd.f32 %v4535_v14, %v801_v58  ;;  %v1798_v47 = vrot.slane %v1760_v5, 2  ;;  %v946_v24 = vadd.f32 %v4542_v37, %v795_v51  ;;  %v1747_v53 = vmul.f32 %v2960_v34, %v5832_v23 }
 0x1fc   : > { %v568_v17 = vadd.f32 %v5830_v6, %v4683_v12  ;;  %v947_v41 = vadd.f32 %v4546_v61, %v796_v8  ;;  %v1801_v61 = vsel %vm321_vm1, %v1790_v13, %v1800_v46  ;;  %v1752_v52 = vmul.f32 %v2961_v22, %v5832_v23 }
 0x1fd   : > { %v1053_v3 = vpop.permute.xlu0 %1052  ;;  %v1777_v54 = vrot.slane %v1747_v53, 2  ;;  %v1757_v33 = vmul.f32 %v4082_v62, %v5832_v23  ;;  %v1753_v40 = vmul.f32 %v4014_v9, %v5836_v44  ;;  %v1758_v31 = vmul.f32 %v4018_v10, %v5836_v44 }
 0x1fe   : > { %v1074_v43 = vsel %vm767_vm4, %v4701_v63, %v1053_v3  ;;  %v1075_v56 = vsel %vm767_vm4, %v1053_v3, %v4638_v39  ;;  %v1043_v15 = vpop.permute.xlu1 %1042  ;;  %v5831_v63 = vld [vmem:[#allocation19_spill] sm:$0xff]  ;;  %v1778_v35 = vrot.slane %v1752_v52, 2  ;;  %v2087_v3 = vperm.slane %v4858_v26, 5 }
 0x1ff   : > { %v4803_v12 = vadd.f32 %v1074_v43, %v951_v21  ;;  %v4805_v45 = vadd.f32 %v1075_v56, %v952_v2  ;;  %v1070_v14 = vsel %vm767_vm4, %v1041_v27, %v1043_v15  ;;  %v1071_v28 = vsel %vm767_vm4, %v1043_v15, %v4585_v30  ;;  %v5833_v27 = vld [vmem:[#allocation38_spill] sm:$0xff] }
 0x200   : > { %v4810_v32 = vadd.f32 %v1070_v14, %v946_v24  ;;  %v4812_v37 = vadd.f32 %v1071_v28, %v947_v41  ;;  %v776_v39 = vsel %vm767_vm4, %v5831_v63, %v5814_v59  ;;  %v1799_v30 = vsel %vm321_vm1, %v1787_v0, %v1798_v47  ;;  %v5835_v59 = vld [vmem:[#allocation10_spill] sm:$0xff] }
 0x201   : > { %1820 = vrot.lane.b32.xlu2 %v1801_v61, %s2971_s8  ;;  %v5834_v55 = vrot.slane %v5833_v27, 2  ;;  %v1794_v51 = vrot.slane %v1758_v31, 2  ;;  %v2086_v24 = vperm.slane %v4858_v26, 3  ;;  %v2026_v41 = vperm.slane %v4858_v26, 6  ;;  %v5837_v27 = vld [vmem:[#allocation32_spill] sm:$0xff] }
 0x202   : > { %1818 = vrot.lane.b32.xlu1 %v1799_v30, %s2971_s8  ;;  %v2025_v43 = vperm.slane %v4858_v26, 4  ;;  %v2095_v15 = vperm.slane %v2087_v3, 1 }
 0x203   : > { %v677_v29 = vadd.f32 %v5834_v55, %v568_v17  ;;  %1826 = vrot.lane.b32.xlu0 %v1796_v19, %s2971_s8  ;;  %v1509_v13 = vpop.permute.xlu2 %1508  ;;  %v1748_v19 = vmul.f32 %v4031_v18, %v5836_v44  ;;  %v1781_v18 = vrot.slane %v1753_v40, 2  ;;  %v2094_v63 = vperm.slane %v2086_v24, 1  ;;  %v5841_v44 = vld [vmem:[#allocation50_spill] sm:$0xff] }
 0x204   : > { %v4829_v49 = vadd.f32 %v1509_v13, %v5835_v59  ;;  %v2034_v23 = vperm.slane %v2026_v41, 0  ;;  %v2033_v30 = vperm.slane %v2025_v43, 0  ;;  %v4894_v55 = vadd.f32 %v2095_v15, %v5837_v27  ;;  %v5839_v59 = vld [vmem:[#allocation41_spill] sm:$0xff] }
 0x205   : > { %v805_v16 = vadd.f32 %v776_v39, %v677_v29  ;;  %v1780_v8 = vrot.slane %v1748_v19, 2  ;;  %v1795_v10 = vsel %vm321_vm1, %v1781_v18, %v1794_v51  ;;  %v5838_v29 = vld [vmem:[#allocation52_spill] sm:$0xff]  ;;  %v4914_v19 = vadd.f32 %v2094_v63, %v5841_v44  ;;  %v5844_v27 = vld [vmem:[#allocation17_spill] sm:$0xff] }
 0x206   : > { %v1061_v57 = vpop.permute.xlu1 %1060  ;;  %v2085_v41 = vperm.slane %v4858_v26, 1 }
 0x207   : > { %v956_v5 = vadd.f32 %v4603_v50, %v805_v16  ;;  %v1078_v0 = vsel %vm767_vm4, %v1061_v57, %v4754_v36  ;;  %v1779_v50 = vsel %vm321_vm1, %v1777_v54, %v1778_v35  ;;  %v1792_v36 = vrot.slane %v1757_v33, 2 }
 0x208   : > { %v4900_v54 = vadd.f32 %v2094_v63, %v5839_v59 }
 0x209   : > { %v4836_v48 = vadd.f32 %v1078_v0, %v956_v5  ;;  %1830 = vrot.lane.b32.xlu2 %v1800_v46, %s2971_s8  ;;  %v1793_v9 = vsel %vm321_vm1, %v1778_v35, %v1792_v36  ;;  %v1782_v46 = vsel %vm321_vm1, %v1780_v8, %v1781_v18  ;;  %v5840_v0 = vld [vmem:[#allocation14_spill] sm:$0xff] }
 0x20a   : > { %1828 = vrot.lane.b32.xlu1 %v1798_v47, %s2971_s8  ;;  %v2088_v47 = vperm.slane %v4858_v26, 7  ;;  %v2106_v57 = vmax.f32 %v4900_v54, 0.0  ;;  %v4911_v33 = vadd.f32 %v2095_v15, %v5840_v0 }
 0x20b   : > { %1802 = vrot.lane.b32.xlu0 %v1779_v50, %s2971_s8  ;;  %v1519_v62 = vpop.permute.xlu2 %1518 }
 0x20c   : > { %v4849_v58 = vadd.f32 %v1519_v62, %v4597_v4  ;;  %v2024_v4 = vperm.slane %v4858_v26, 2  ;;  %v2096_v61 = vperm.slane %v2088_v47, 1 }
 0x20e   : > { %v2032_v2 = vperm.slane %v2024_v4, 0  ;;  %v4897_v16 = vadd.f32 %v2096_v61, %v5838_v29  ;;  %v2111_v4 = vmax.f32 %v4911_v33, 0.0 }
 0x210   : > { %v2108_v5 = vmax.f32 %v4897_v16, 0.0  ;;  %v2130_v24 = vrot.slane %v2111_v4, 7 }
 0x211   : > { %1812 = vrot.lane.b32.xlu2 %v1793_v9, %s2971_s8 }
 0x212   : > { %1804 = vrot.lane.b32.xlu1 %v1782_v46, %s2971_s8  ;;  %v2125_v46 = vrot.slane %v2108_v5, 7 }
 0x213   : > { %1814 = vrot.lane.b32.xlu0 %v1795_v10, %s2971_s8  ;;  %v4863_v6 = vpop.permute.xlu2 %1528  ;;  %v4869_v21 = vpop.permute.xlu0 %1504 }
 0x214   : > { %v4867_v17 = vadd.f32 %v4863_v6, %v4648_v20  ;;  %v2023_v20 = vperm.slane %v4858_v26, 0  ;;  %v2093_v26 = vperm.slane %v2085_v41, 1 }
 0x216   : > { %v2031_v52 = vperm.slane %v2023_v20, 0  ;;  %v4975_v29 = vadd.f32 %v2093_v26, %v5844_v27 }
 0x219   : > { %1824 = vrot.lane.b32.xlu2 %v1794_v51, %s2971_s8 }
 0x21a   : > { %1822 = vrot.lane.b32.xlu1 %v1792_v36, %s2971_s8  ;;  %v5842_v36 = vld [vmem:[#allocation15_spill] sm:$0xff] }
 0x21b   : > { %2041 = vrot.lane.b32.xlu0 %v2032_v2, %s2970_s27  ;;  %v4880_v56 = vpop.permute.xlu2 %1510  ;;  %v4882_v14 = vpop.permute.xlu0 %1514  ;;  %v4922_v18 = vadd.f32 %v2096_v61, %v5842_v36 }
 0x21c   : > { %v1507_v28 = vpop.permute.xlu1 %1506 }
 0x21d   : > { %v1532_v39 = vsel %vm698_vm0, %v4869_v21, %v1507_v28  ;;  %v1533_v34 = vsel %vm698_vm0, %v1507_v28, %v1509_v13 }
 0x21e   : > { %v4888_v53 = vadd.f32 %v1532_v39, %v4663_v38  ;;  %v4891_v22 = vadd.f32 %v1533_v34, %v4665_v42  ;;  %v2107_v42 = vmax.f32 %v4894_v55, 0.0 }
 0x220   : > { %v2124_v10 = vrot.slane %v2107_v42, 7 }
 0x221   : > { %2045 = vrot.lane.b32.xlu2 %v2034_v23, %s2970_s27 }
 0x222   : > { %2043 = vrot.lane.b32.xlu1 %v2033_v30, %s2970_s27  ;;  %v2131_v63 = vsel %vm2121_vm6, %v2124_v10, %v2130_v24 }
 0x223   : > { %2039 = vrot.lane.b32.xlu0 %v2031_v52, %s2970_s27  ;;  %v4905_v38 = vpop.permute.xlu2 %1522  ;;  %v1525_v13 = vpop.permute.xlu0 %1524  ;;  %v5843_v52 = vld [vmem:[#allocation53_spill] sm:$0xff] }
 0x224   : > { %v1517_v35 = vpop.permute.xlu1 %1516  ;;  %v1539_v40 = vsel %vm698_vm0, %v4905_v38, %v1525_v13  ;;  %v4972_v30 = vadd.f32 %v2093_v26, %v5843_v52 }
 0x225   : > { %v1536_v31 = vsel %vm698_vm0, %v4882_v14, %v1517_v35  ;;  %v1537_v50 = vsel %vm698_vm0, %v1517_v35, %v1519_v62  ;;  %v4925_v51 = vadd.f32 %v1539_v40, %v4769_v7  ;;  %v2123_v62 = vrot.slane %v2106_v57, 7 }
 0x226   : > { %v4928_v8 = vadd.f32 %v1536_v31, %v4724_v60  ;;  %v4931_v9 = vadd.f32 %v1537_v50, %v4726_v25  ;;  %v2112_v7 = vmax.f32 %v4922_v18, 0.0  ;;  %v2110_v60 = vmax.f32 %v4914_v19, 0.0 }
 0x227   : > { %v2109_v50 = vmax.f32 %v4975_v29, 0.0 }
 0x228   : > { %v2132_v15 = vrot.slane %v2112_v7, 7  ;;  %v2128_v28 = vrot.slane %v2110_v60, 7 }
 0x229   : > { %2138 = vrot.lane.b32.xlu2 %v2124_v10, %s2970_s27 }
 0x22a   : > { %2136 = vrot.lane.b32.xlu1 %v2123_v62, %s2970_s27  ;;  %v2133_v39 = vsel %vm2121_vm6, %v2125_v46, %v2132_v15 }
 0x22b   : > { %2140 = vrot.lane.b32.xlu0 %v2125_v46, %s2970_s27  ;;  %v1660_v25 = vpop.permute.xlu2 %1659  ;;  %v1501_v3 = vpop.permute.xlu0 %1500 }
 0x22c   : > { %v4946_v2 = vadd.f32 %v1660_v25, %v4829_v49  ;;  %v1527_v47 = vpop.permute.xlu1 %1526 }
 0x22d   : > { %v1540_v20 = vsel %vm698_vm0, %v1525_v13, %v1527_v47  ;;  %v1541_v43 = vsel %vm698_vm0, %v1527_v47, %v4863_v6  ;;  %v2129_v6 = vsel %vm2121_vm6, %v2123_v62, %v2128_v28 }
 0x22e   : > { %v4959_v49 = vadd.f32 %v1540_v20, %v4776_v1  ;;  %v1570_v61 = vadd.f32 %v1541_v43, %v4779_v11 }
 0x231   : > { %2146 = vrot.lane.b32.xlu2 %v2131_v63, %s2970_s27 }
 0x232   : > { %2144 = vrot.lane.b32.xlu1 %v2129_v6, %s2970_s27 }
 0x233   : > { %2148 = vrot.lane.b32.xlu0 %v2133_v39, %s2970_s27  ;;  %v1670_v34 = vpop.permute.xlu2 %1669  ;;  %v1513_v23 = vpop.permute.xlu0 %1512 }
 0x234   : > { %v4969_v1 = vadd.f32 %v1670_v34, %v4849_v58  ;;  %v1503_v11 = vpop.permute.xlu1 %1502  ;;  %v1534_v59 = vsel %vm698_vm0, %v4880_v56, %v1513_v23  ;;  %v1535_v13 = vsel %vm698_vm0, %v1513_v23, %v4882_v14  ;;  %v2105_v56 = vmax.f32 %v4972_v30, 0.0 }
 0x235   : > { %v1530_v35 = vsel %vm698_vm0, %v1501_v3, %v1503_v11  ;;  %v1531_v58 = vsel %vm698_vm0, %v1503_v11, %v4869_v21  ;;  %v1562_v0 = vadd.f32 %v1534_v59, %v4803_v12  ;;  %v1563_v44 = vadd.f32 %v1535_v13, %v4805_v45 }
 0x236   : > { %v1557_v40 = vadd.f32 %v1530_v35, %v4810_v32  ;;  %v1558_v31 = vadd.f32 %v1531_v58, %v4812_v37  ;;  %v2126_v32 = vrot.slane %v2109_v50, 7  ;;  %v2122_v10 = vrot.slane %v2105_v56, 7 }
 0x238   : > { %v2127_v46 = vsel %vm2121_vm6, %v2122_v10, %v2126_v32 }
 0x239   : > { %2154 = vrot.lane.b32.xlu2 %v2130_v24, %s2970_s27 }
 0x23a   : > { %2152 = vrot.lane.b32.xlu1 %v2128_v28, %s2970_s27 }
 0x23b   : > { %2156 = vrot.lane.b32.xlu0 %v2132_v15, %s2970_s27  ;;  %v1680_v14 = vpop.permute.xlu2 %1679  ;;  %v1656_v12 = vpop.permute.xlu0 %1655 }
 0x23c   : > { %v4994_v21 = vadd.f32 %v1680_v14, %v4867_v17  ;;  %v1521_v45 = vpop.permute.xlu1 %1520 }
 0x23d   : > { %v1538_v37 = vsel %vm698_vm0, %v1521_v45, %v4905_v38 }
 0x23e   : > { %v1567_v36 = vadd.f32 %v1538_v37, %v4836_v48 }
 0x241   : > { %2142 = vrot.lane.b32.xlu2 %v2127_v46, %s2970_s27 }
 0x242   : > { %2134 = vrot.lane.b32.xlu1 %v2122_v10, %s2970_s27 }
 0x243   : > { %2150 = vrot.lane.b32.xlu0 %v2126_v32, %s2970_s27  ;;  %v1662_v17 = vpop.permute.xlu2 %1661 }
 0x244   : > { %v1666_v62 = vpop.permute.xlu0 %1665  ;;  %v1658_v3 = vpop.permute.xlu1 %1657 }
 0x245   : > { %v1683_v47 = vsel %vm698_vm0, %v1656_v12, %v1658_v3  ;;  %v1684_v38 = vsel %vm698_vm0, %v1658_v3, %v1660_v25 }
 0x246   : > { %v1710_v48 = vadd.f32 %v1683_v47, %v4888_v53  ;;  %v5011_v24 = vadd.f32 %v1684_v38, %v4891_v22 }
 0x24b   : > { %v1674_v41 = vpop.permute.xlu2 %1673 }
 0x24c   : > { %v1668_v43 = vpop.permute.xlu1 %1667 }
 0x24d   : > { %v1676_v20 = vpop.permute.xlu0 %1675  ;;  %v1687_v28 = vsel %vm698_vm0, %v1666_v62, %v1668_v43  ;;  %v1688_v63 = vsel %vm698_vm0, %v1668_v43, %v1670_v34 }
 0x24e   : > { %v1690_v15 = vsel %vm698_vm0, %v1674_v41, %v1676_v20  ;;  %v5020_v39 = vadd.f32 %v1687_v28, %v4928_v8  ;;  %v5023_v53 = vadd.f32 %v1688_v63, %v4931_v9 }
 0x24f   : > { %v5017_v26 = vadd.f32 %v1690_v15, %v4925_v51 }
 0x253   : > { %v1811_v22 = vpop.permute.xlu2 %1810 }
 0x254   : > { %v1678_v6 = vpop.permute.xlu1 %1677 }
 0x255   : > { %v1652_v25 = vpop.permute.xlu0 %1651  ;;  %v1691_v23 = vsel %vm698_vm0, %v1676_v20, %v1678_v6  ;;  %v1692_v11 = vsel %vm698_vm0, %v1678_v6, %v1680_v14 }
 0x256   : > { %v5028_v52 = vadd.f32 %v1691_v23, %v4959_v49  ;;  %v5030_v34 = vadd.f32 %v1692_v11, %v1570_v61 }
 0x25b   : > { %v1821_v51 = vpop.permute.xlu2 %1820 }
 0x25c   : > { %v1654_v59 = vpop.permute.xlu1 %1653 }
 0x25d   : > { %v1664_v27 = vpop.permute.xlu0 %1663  ;;  %v1681_v13 = vsel %vm698_vm0, %v1652_v25, %v1654_v59  ;;  %v1682_v35 = vsel %vm698_vm0, %v1654_v59, %v1656_v12 }
 0x25e   : > { %v1685_v8 = vsel %vm698_vm0, %v1662_v17, %v1664_v27  ;;  %v1686_v9 = vsel %vm698_vm0, %v1664_v27, %v1666_v62  ;;  %v1708_v32 = vadd.f32 %v1681_v13, %v1557_v40  ;;  %v1709_v14 = vadd.f32 %v1682_v35, %v1558_v31 }
 0x25f   : > { %v1713_v58 = vadd.f32 %v1685_v8, %v1562_v0  ;;  %v1714_v45 = vadd.f32 %v1686_v9, %v1563_v44  ;;  %v1863_v8 = vadd.f32 %v1811_v22, %v4946_v2  ;;  %v1868_v9 = vadd.f32 %v1821_v51, %v4969_v1 }
 0x263   : > { %v1831_v37 = vpop.permute.xlu2 %1830 }
 0x264   : > { %v1672_v10 = vpop.permute.xlu1 %1671  ;;  %v1873_v13 = vadd.f32 %v1831_v37, %v4994_v21 }
 0x265   : > { %v1807_v49 = vpop.permute.xlu0 %1806  ;;  %v1689_v61 = vsel %vm698_vm0, %v1672_v10, %v1674_v41 }
 0x266   : > { %v1718_v46 = vadd.f32 %v1689_v61, %v1567_v36 }
 0x26b   : > { %v1813_v38 = vpop.permute.xlu2 %1812 }
 0x26c   : > { %v1809_v47 = vpop.permute.xlu1 %1808 }
 0x26d   : > { %v1817_v3 = vpop.permute.xlu0 %1816  ;;  %v1834_v17 = vsel %vm698_vm0, %v1807_v49, %v1809_v47  ;;  %v1835_v27 = vsel %vm698_vm0, %v1809_v47, %v1811_v22 }
 0x26e   : > { %v1861_v62 = vadd.f32 %v1834_v17, %v1710_v48 }
 0x273   : > { %v1825_v15 = vpop.permute.xlu2 %1824 }
 0x274   : > { %v1819_v43 = vpop.permute.xlu1 %1818 }
 0x275   : > { %v1827_v20 = vpop.permute.xlu0 %1826 }
 0x276   : > { %v1841_v35 = vsel %vm698_vm0, %v1825_v15, %v1827_v20 }
 0x277   : > { %v1870_v21 = vadd.f32 %v1841_v35, %v5017_v26 }
 0x27b   : > { %v2046_v44 = vpop.permute.xlu2 %2045 }
 0x27c   : > { %v1829_v0 = vpop.permute.xlu1 %1828  ;;  %v2059_v10 = vadd.f32 %v2046_v44, %v1863_v8  ;;  %v2064_v47 = vadd.f32 %v2046_v44, %v1868_v9  ;;  %v5053_v17 = vadd.f32 %v2046_v44, %v1873_v13 }
 0x27d   : > { %v1803_v12 = vpop.permute.xlu0 %1802  ;;  %v1842_v2 = vsel %vm698_vm0, %v1827_v20, %v1829_v0  ;;  %v1843_v1 = vsel %vm698_vm0, %v1829_v0, %v1831_v37 }
 0x27e   : > { %v1871_v20 = vadd.f32 %v1842_v2, %v5028_v52  ;;  %v1872_v37 = vadd.f32 %v1843_v1, %v5030_v34  ;;  %v2074_v0 = vmax.f32 %v2059_v10, 0.0 }
 0x283   : > { %v2139_v25 = vpop.permute.xlu2 %2138 }
 0x284   : > { %v1805_v31 = vpop.permute.xlu1 %1804 }
 0x285   : > { %v1815_v40 = vpop.permute.xlu0 %1814  ;;  %v1833_v63 = vsel %vm698_vm0, %v1805_v31, %v1807_v49  ;;  %v1862_v49 = vadd.f32 %v1835_v27, %v5011_v24  ;;  %v1832_v24 = vsel %vm698_vm0, %v1803_v12, %v1805_v31  ;;  %v2084_v12 = vmax.f32 %v5053_v17, 0.0 }
 0x286   : > { %v1837_v28 = vsel %vm698_vm0, %v1815_v40, %v1817_v3  ;;  %v5040_v36 = vadd.f32 %v1833_v63, %v1709_v14  ;;  %v1839_v14 = vsel %vm698_vm0, %v1819_v43, %v1821_v51  ;;  %v1836_v61 = vsel %vm698_vm0, %v1813_v38, %v1815_v40 }
 0x287   : > { %v1865_v41 = vadd.f32 %v1837_v28, %v1714_v45  ;;  %v1838_v45 = vsel %vm698_vm0, %v1817_v3, %v1819_v43  ;;  %v1867_v3 = vadd.f32 %v1839_v14, %v5023_v53  ;;  %v1864_v43 = vadd.f32 %v1836_v61, %v1713_v58 }
 0x288   : > { %v1866_v22 = vadd.f32 %v1838_v45, %v5020_v39  ;;  %v1859_v31 = vadd.f32 %v1832_v24, %v1708_v32 }
 0x28b   : > { %v5043_v59 = vpop.permute.xlu2 %2146 }
 0x28c   : > { %v1823_v23 = vpop.permute.xlu1 %1822 }
 0x28d   : > { %v2042_v6 = vpop.permute.xlu0 %2041  ;;  %v1840_v26 = vsel %vm698_vm0, %v1823_v23, %v1825_v15 }
 0x28e   : > { %v1869_v52 = vadd.f32 %v1840_v26, %v1718_v46 }
 0x293   : > { %v5077_v34 = vpop.permute.xlu2 %2154 }
 0x294   : > { %v2044_v48 = vpop.permute.xlu1 %2043 }
 0x295   : > { %v2040_v11 = vpop.permute.xlu0 %2039  ;;  %v2049_v51 = vsel %vm439_vm5, %v2044_v48, %v2046_v44  ;;  %v2048_v40 = vsel %vm439_vm5, %v2042_v6, %v2044_v48  ;;  %v2079_v44 = vmax.f32 %v2064_v47, 0.0 }
 0x296   : > { %v5063_v38 = vsel %vm439_vm5, %v2040_v11, %v2042_v6  ;;  %v5071_v53 = vadd.f32 %v2040_v11, %v1864_v43  ;;  %v2058_v58 = vadd.f32 %v2049_v51, %v1862_v49  ;;  %v2057_v63 = vadd.f32 %v2048_v40, %v1861_v62 }
 0x297   : > { %v2062_v27 = vadd.f32 %v2048_v40, %v1866_v22  ;;  %v5075_v6 = vadd.f32 %v5063_v38, %v1865_v41  ;;  %v2063_v15 = vadd.f32 %v2049_v51, %v1867_v3  ;;  %v5079_v23 = vadd.f32 %v2048_v40, %v1871_v20 }
 0x298   : > { %v5081_v48 = vadd.f32 %v2049_v51, %v1872_v37  ;;  %v5085_v35 = vadd.f32 %v5063_v38, %v1870_v21  ;;  %v5087_v32 = vadd.f32 %v2040_v11, %v1859_v31  ;;  %v5089_v62 = vadd.f32 %v2040_v11, %v1869_v52 }
 0x299   : > { %v2073_v41 = vmax.f32 %v2058_v58, 0.0  ;;  %v2075_v46 = vmax.f32 %v5071_v53, 0.0  ;;  %v2072_v45 = vmax.f32 %v2057_v63, 0.0  ;;  %v2077_v14 = vmax.f32 %v2062_v27, 0.0 }
 0x29a   : > { %v2076_v10 = vmax.f32 %v5075_v6, 0.0  ;;  %v2078_v61 = vmax.f32 %v2063_v15, 0.0  ;;  %v2082_v47 = vmax.f32 %v5079_v23, 0.0  ;;  %v2083_v2 = vmax.f32 %v5081_v48, 0.0 }
 0x29b   : > { %v2081_v43 = vmax.f32 %v5085_v35, 0.0  ;;  %v2143_v23 = vpop.permute.xlu2 %2142 }
 0x29c   : > { %v5069_v28 = vpop.permute.xlu1 %2136 }
 0x29d   : > { %v2141_v39 = vpop.permute.xlu0 %2140  ;;  %v2159_v49 = vsel %vm439_vm5, %v5069_v28, %v2139_v25 }
 0x29e   : > { %v2160_v8 = vsel %vm439_vm5, %v2139_v25, %v2141_v39  ;;  %v2186_v9 = vadd.f32 %v2141_v39, %v2074_v0  ;;  %v2706_v13 = vsub.f32 %v2074_v0, %v2141_v39  ;;  %v2184_v24 = vadd.f32 %v2159_v49, %v2072_v45 }
 0x29f   : > { %v2185_v1 = vadd.f32 %v2160_v8, %v2073_v41  ;;  %v2705_v22 = vsub.f32 %v2073_v41, %v2160_v8  ;;  %v2704_v37 = vsub.f32 %v2072_v45, %v2159_v49 }
 0x2a0   : > { %v2224_v21 = vrot.slane %v2186_v9, 1  ;;  %v2748_v11 = vrot.slane %v2706_v13, 1  ;;  %v2218_v48 = vrot.slane %v2184_v24, 1 }
 0x2a1   : > { %v2221_v53 = vrot.slane %v2185_v1, 1  ;;  %v2745_v27 = vrot.slane %v2705_v22, 1  ;;  %v2742_v13 = vrot.slane %v2704_v37, 1  ;;  %v2070_v1 = vmax.f32 %v5087_v32, 0.0 }
 0x2a2   : > { %v5119_v22 = vsub.f32 %v2075_v46, %v2143_v23 }
 0x2a4   : > { %v2145_v51 = vpop.permute.xlu1 %2144 }
 0x2a5   : > { %v2149_v3 = vpop.permute.xlu0 %2148  ;;  %v2162_v39 = vsel %vm439_vm5, %v2145_v51, %v5043_v59 }
 0x2a6   : > { %v2163_v40 = vsel %vm439_vm5, %v5043_v59, %v2149_v3  ;;  %v2191_v25 = vadd.f32 %v2149_v3, %v2079_v44  ;;  %v2711_v20 = vsub.f32 %v2079_v44, %v2149_v3  ;;  %v2189_v63 = vadd.f32 %v2162_v39, %v2077_v14 }
 0x2a7   : > { %v2190_v26 = vadd.f32 %v2163_v40, %v2078_v61  ;;  %v2710_v0 = vsub.f32 %v2078_v61, %v2163_v40  ;;  %v2709_v15 = vsub.f32 %v2077_v14, %v2162_v39  ;;  %v2080_v61 = vmax.f32 %v5089_v62, 0.0 }
 0x2a8   : > { %v2225_v58 = vrot.slane %v2191_v25, 1  ;;  %v2749_v31 = vrot.slane %v2711_v20, 1  ;;  %v2219_v9 = vrot.slane %v2189_v63, 1  ;;  %v5114_v14 = vadd.f32 %v5063_v38, %v5040_v36 }
 0x2a9   : > { %v2222_v6 = vrot.slane %v2190_v26, 1  ;;  %v2746_v52 = vrot.slane %v2710_v0, 1  ;;  %v2743_v59 = vrot.slane %v2709_v15, 1 }
 0x2aa   : > { %v2226_v8 = vsel %vm517_vm3, %v2224_v21, %v2225_v58  ;;  %v5104_v44 = vsel %vm517_vm3, %v2748_v11, %v2749_v31  ;;  %v2220_v49 = vsel %vm517_vm3, %v2218_v48, %v2219_v9  ;;  %v5117_v21 = vadd.f32 %v2143_v23, %v2075_v46 }
 0x2ab   : > { %v2223_v41 = vsel %vm517_vm3, %v2221_v53, %v2222_v6  ;;  %v5108_v45 = vsel %vm517_vm3, %v2745_v27, %v2746_v52  ;;  %v2161_v11 = vsel %vm439_vm5, %v2143_v23, %v2145_v51  ;;  %v5123_v40 = vsel %vm517_vm3, %v2742_v13, %v2743_v59 }
 0x2ac   : > { %v2153_v24 = vpop.permute.xlu1 %2152  ;;  %v2188_v37 = vadd.f32 %v2161_v11, %v2076_v10  ;;  %v5133_v26 = vsub.f32 %v2076_v10, %v2161_v11  ;;  %v2213_v17 = vrot.slane %v5117_v21, 1 }
 0x2ad   : > { %v2157_v3 = vpop.permute.xlu0 %2156  ;;  %v2165_v32 = vsel %vm439_vm5, %v2153_v24, %v5077_v34 }
 0x2ae   : > { %v2166_v62 = vsel %vm439_vm5, %v5077_v34, %v2157_v3  ;;  %v2196_v36 = vadd.f32 %v2157_v3, %v2084_v12  ;;  %v2716_v38 = vsub.f32 %v2084_v12, %v2157_v3  ;;  %v2194_v51 = vadd.f32 %v2165_v32, %v2082_v47 }
 0x2af   : > { %v2195_v46 = vadd.f32 %v2166_v62, %v2083_v2  ;;  %v2715_v25 = vsub.f32 %v2083_v2, %v2166_v62  ;;  %v2714_v20 = vsub.f32 %v2082_v47, %v2165_v32  ;;  %v2278_v12 = vsel %vm439_vm5, %v2226_v8, 0.0 }
 0x2b0   : > { %v2235_v0 = vrot.slane %v2196_v36, 1  ;;  %v2759_v39 = vrot.slane %v2716_v38, 1  ;;  %v2231_v27 = vrot.slane %v2194_v51, 1  ;;  %v2216_v8 = vrot.slane %v2188_v37, 1 }
 0x2b1   : > { %v2233_v53 = vrot.slane %v2195_v46, 1  ;;  %v2757_v63 = vrot.slane %v2715_v25, 1  ;;  %v2755_v15 = vrot.slane %v2714_v20, 1 }
 0x2b2   : > { %v2236_v34 = vsel %vm517_vm3, %v2225_v58, %v2235_v0  ;;  %v5139_v2 = vsel %vm517_vm3, %v2749_v31, %v2759_v39  ;;  %v2232_v23 = vsel %vm517_vm3, %v2219_v9, %v2231_v27  ;;  %v2737_v58 = vrot.slane %v5119_v22, 1 }
 0x2b3   : > { %v2234_v47 = vsel %vm517_vm3, %v2222_v6, %v2233_v53  ;;  %v2279_v10 = vsel %vm439_vm5, %v2236_v34, 0.0  ;;  %v5145_v48 = vsel %vm517_vm3, %v2746_v52, %v2757_v63  ;;  %v2264_v3 = vadd.f32 %v2232_v23, %v2220_v49 }
 0x2b4   : > { %v2271_v13 = vadd.f32 %v2234_v47, %v2223_v41  ;;  %v2280_v11 = vadd.f32 %v2279_v10, %v2278_v12  ;;  %v5148_v21 = vsel %vm517_vm3, %v2743_v59, %v2755_v15  ;;  %v2740_v31 = vrot.slane %v5133_v26, 1  ;;  %v2135_v36 = vpop.permute.xlu1 %2134 }
 0x2b5   : > { %v2151_v62 = vpop.permute.xlu0 %2150  ;;  %v2071_v6 = vmax.f32 %v5114_v14, 0.0  ;;  %v2265_v32 = vrot.slane %v2264_v3, 4  ;;  %v2158_v51 = vsel %vm439_vm5, %v2135_v36, %v5069_v28  ;;  %v2182_v14 = vadd.f32 %v2135_v36, %v2070_v1 }
 0x2b6   : > { %v2272_v38 = vrot.slane %v2271_v13, 4  ;;  %v2281_v9 = vrot.slane %v2280_v11, 4  ;;  %v2164_v52 = vsel %vm439_vm5, %v2151_v62, %v2153_v24  ;;  %v2192_v41 = vadd.f32 %v2151_v62, %v2080_v61 }
 0x2b7   : > { %v2193_v49 = vadd.f32 %v2164_v52, %v2081_v43  ;;  %v2712_v59 = vsub.f32 %v2080_v61, %v2151_v62  ;;  %v2713_v22 = vsub.f32 %v2081_v43, %v2164_v52  ;;  %v2266_v25 = vadd.f32 %v2265_v32, %v2264_v3 }
 0x2b8   : > { %v2273_v46 = vadd.f32 %v2272_v38, %v2271_v13  ;;  %v2227_v20 = vrot.slane %v2192_v41, 1  ;;  %v2183_v24 = vadd.f32 %v2158_v51, %v2071_v6  ;;  %v2212_v53 = vrot.slane %v2182_v14, 1 }
 0x2b9   : > { %v2229_v37 = vrot.slane %v2193_v49, 1  ;;  %v2751_v26 = vrot.slane %v2712_v59, 1  ;;  %v2753_v0 = vrot.slane %v2713_v22, 1  ;;  %v2267_v39 = vrot.slane %v2266_v25, 2 }
 0x2ba   : > { %v2702_v63 = vsub.f32 %v2070_v1, %v2135_v36  ;;  %v2228_v27 = vsel %vm517_vm3, %v2213_v17, %v2227_v20  ;;  %v2703_v35 = vsub.f32 %v2071_v6, %v2158_v51  ;;  %v2282_v43 = vadd.f32 %v2281_v9, %v2280_v11 }
 0x2bb   : > { %v2230_v61 = vsel %vm517_vm3, %v2216_v8, %v2229_v37  ;;  %v2249_v15 = vsel %vm2247_vm7, %v2228_v27, 0.0  ;;  %v2214_v12 = vsel %vm517_vm3, %v2212_v53, %v2213_v17  ;;  %v2215_v28 = vrot.slane %v2183_v24, 1  ;;  %v2300_v27 = vld [vmem:[%s5549_s3 + $0x68] sm:$0xff] }
 0x2bc   : > { %v2736_v34 = vrot.slane %v2702_v63, 1  ;;  %v2248_v47 = vsel %vm2247_vm7, %v2214_v12, 0.0  ;;  %v2739_v10 = vrot.slane %v2703_v35, 1  ;;  %v2283_v23 = vrot.slane %v2282_v43, 2  ;;  %v2318_v35 = vld [vmem:[%s5549_s3 + $0xf8] sm:$0xff]  ;;  %v2299_v12 = vld [vmem:[%s5549_s3 + $0x60] sm:$0xff] }
 0x2bd   : > { %v2268_v13 = vadd.f32 %v2267_v39, %v2266_v25  ;;  %v2217_v3 = vsel %vm517_vm3, %v2215_v28, %v2216_v8  ;;  %v2250_v1 = vadd.f32 %v2249_v15, %v2248_v47  ;;  %v2274_v62 = vrot.slane %v2273_v46, 2  ;;  %v2350_v15 = vld [vmem:[%s5549_s3 + $0x1f8] sm:$0xff]  ;;  %2394 = vmatpush.msra.mxu1 %v2318_v35  ;;  %v2317_v28 = vld [vmem:[%s5549_s3 + $0xf0] sm:$0xff]  ;;  %v2323_v35 = vld [vmem:[%s5549_s3 + $0x120] sm:$0xff] }
 0x2be   : > { %v2738_v36 = vsel %vm517_vm3, %v2736_v34, %v2737_v58  ;;  %v2257_v38 = vadd.f32 %v2230_v61, %v2217_v3  ;;  %v2284_v6 = vadd.f32 %v2283_v23, %v2282_v43  ;;  %v5168_v9 = vsel %vm517_vm3, %v2737_v58, %v2751_v26  ;;  %v2334_v43 = vld [vmem:[%s5549_s3 + $0x178] sm:$0xff]  ;;  %v2333_v47 = vld [vmem:[%s5549_s3 + $0x170] sm:$0xff]  ;;  %2434 = vmatpush.msra.mxu3 %v2350_v15 }
 0x2bf   : > { %v2269_v11 = vrot.slane %v2268_v13, 1  ;;  %v2251_v17 = vrot.slane %v2250_v1, 4  ;;  %v2275_v32 = vadd.f32 %v2274_v62, %v2273_v46  ;;  %v5171_v52 = vsel %vm517_vm3, %v2739_v10, %v2740_v31  ;;  %2414 = vmatpush.msra.mxu2 %v2334_v43  ;;  %v2298_v10 = vld [vmem:[%s5549_s3 + $0x58] sm:$0xff]  ;;  %2395 = vmatpush.msra.mxu1 %v2317_v28  ;;  %v2349_v23 = vld [vmem:[%s5549_s3 + $0x1f0] sm:$0xff]  ;;  %v2315_v62 = vld [vmem:[%s5549_s3 + $0xe0] sm:$0xff] }
 0x2c0   : > { %v5174_v41 = vsel %vm517_vm3, %v2740_v31, %v2753_v0  ;;  %v2258_v49 = vrot.slane %v2257_v38, 4  ;;  %v2285_v8 = vrot.slane %v2284_v6, 1  ;;  %v2302_v31 = vld [vmem:[%s5549_s3 + $0x78] sm:$0xff]  ;;  %v2301_v0 = vld [vmem:[%s5549_s3 + $0x70] sm:$0xff]  ;;  %2435 = vmatpush.msra.mxu3 %v2349_v23  ;;  %v2339_v43 = vld [vmem:[%s5549_s3 + $0x1a0] sm:$0xff] }
 0x2c1   : > { %v2252_v59 = vadd.f32 %v2251_v17, %v2250_v1  ;;  %v2270_v22 = vadd.f32 %v2269_v11, %v2268_v13  ;;  %v2276_v25 = vrot.slane %v2275_v32, 1  ;;  %2374 = vmatpush.msra.mxu0 %v2302_v31  ;;  %v2332_v13 = vld [vmem:[%s5549_s3 + $0x168] sm:$0xff]  ;;  %v2297_v3 = vld [vmem:[%s5549_s3 + $0x50] sm:$0xff]  ;;  %2415 = vmatpush.msra.mxu2 %v2333_v47  ;;  %v2314_v11 = vld [vmem:[%s5549_s3 + $0xd8] sm:$0xff] }
 0x2c2   : > { %v2259_v51 = vadd.f32 %v2258_v49, %v2257_v38  ;;  %v2286_v14 = vadd.f32 %v2285_v8, %v2284_v6  ;;  %v2348_v1 = vld [vmem:[%s5549_s3 + $0x1e8] sm:$0xff]  ;;  %v2331_v38 = vld [vmem:[%s5549_s3 + $0x160] sm:$0xff]  ;;  %v2294_v49 = vld [vmem:[%s5549_s3 + $0x38] sm:$0xff] }
 0x2c3   : > { %v2277_v20 = vadd.f32 %v2276_v25, %v2275_v32  ;;  %v2253_v37 = vrot.slane %v2252_v59, 2  ;;  %2375 = vmatpush.msra.mxu0 %v2301_v0  ;;  %2416 = vmatpush.msra.mxu2 %v2332_v13  ;;  %v2347_v6 = vld [vmem:[%s5549_s3 + $0x1e0] sm:$0xff]  ;;  %v2330_v32 = vld [vmem:[%s5549_s3 + $0x158] sm:$0xff]  ;;  %v2292_v25 = vld [vmem:[%s5549_s3 + $0x28] sm:$0xff] }
 0x2c4   : > { %2364 = vrot.lane.b32.xlu0 %v2286_v14, %s2972_s9  ;;  %v2260_v58 = vrot.slane %v2259_v51, 2  ;;  %2436 = vmatpush.msra.mxu3 %v2348_v1  ;;  %v2295_v17 = vld [vmem:[%s5549_s3 + $0x40] sm:$0xff]  ;;  %v2346_v8 = vld [vmem:[%s5549_s3 + $0x1d8] sm:$0xff]  ;;  %v2289_v14 = vld [vmem:[%s5549_s3 + $0x10] sm:$0xff] }
 0x2c5   : > { %v2907_v26 = vpack.i.bf16 %v2277_v20, %v2270_v22  ;;  %v2254_v46 = vadd.f32 %v2253_v37, %v2252_v59  ;;  %2376 = vmatpush.msra.mxu0 %v2300_v27  ;;  %2417 = vmatpush.msra.mxu2 %v2331_v38  ;;  %v2329_v59 = vld [vmem:[%s5549_s3 + $0x150] sm:$0xff]  ;;  %v2311_v20 = vld [vmem:[%s5549_s3 + $0xc0] sm:$0xff]  ;;  %v2340_v27 = vld [vmem:[%s5549_s3 + $0x1a8] sm:$0xff] }
 0x2c6   : > { %v2261_v39 = vadd.f32 %v2260_v58, %v2259_v51  ;;  %2437 = vmatpush.msra.mxu3 %v2347_v6  ;;  %v2293_v22 = vld [vmem:[%s5549_s3 + $0x30] sm:$0xff]  ;;  %v2290_v51 = vld [vmem:[%s5549_s3 + $0x18] sm:$0xff]  ;;  %v2327_v37 = vld [vmem:[%s5549_s3 + $0x140] sm:$0xff] }
 0x2c7   : > { %2908 = vrot.lane.b32.xlu1 %v2907_v26, %s2972_s9  ;;  %v2255_v24 = vrot.slane %v2254_v46, 1  ;;  %2377 = vmatpush.msra.mxu0 %v2299_v12  ;;  %v2343_v58 = vld [vmem:[%s5549_s3 + $0x1c0] sm:$0xff]  ;;  %v2310_v26 = vld [vmem:[%s5549_s3 + $0xb8] sm:$0xff]  ;;  %v2325_v31 = vld [vmem:[%s5549_s3 + $0x130] sm:$0xff] }
 0x2c8   : > { %v2262_v53 = vrot.slane %v2261_v39, 1  ;;  %2418 = vmatpush.msra.mxu2 %v2330_v32  ;;  %2438 = vmatpush.msra.mxu3 %v2346_v8  ;;  %v2341_v0 = vld [vmem:[%s5549_s3 + $0x1b0] sm:$0xff]  ;;  %v2306_v15 = vld [vmem:[%s5549_s3 + $0x98] sm:$0xff]  ;;  %v2304_v23 = vld [vmem:[%s5549_s3 + $0x88] sm:$0xff] }
 0x2c9   : > { %v2256_v63 = vadd.f32 %v2255_v24, %v2254_v46  ;;  %2378 = vmatpush.msra.mxu0 %v2298_v10  ;;  %v2326_v46 = vld [vmem:[%s5549_s3 + $0x138] sm:$0xff]  ;;  %v2309_v24 = vld [vmem:[%s5549_s3 + $0xb0] sm:$0xff]  ;;  %v2336_v13 = vld [vmem:[%s5549_s3 + $0x188] sm:$0xff] }
 0x2ca   : > { %v2263_v61 = vadd.f32 %v2262_v53, %v2261_v39  ;;  %2419 = vmatpush.msra.mxu2 %v2329_v59  ;;  %v2342_v39 = vld [vmem:[%s5549_s3 + $0x1b8] sm:$0xff]  ;;  %v2308_v53 = vld [vmem:[%s5549_s3 + $0xa8] sm:$0xff]  ;;  %v2321_v47 = vld [vmem:[%s5549_s3 + $0x110] sm:$0xff] }
 0x2cb   : > { %2379 = vmatpush.msra.mxu0 %v2297_v3  ;;  %v2322_v12 = vld [vmem:[%s5549_s3 + $0x118] sm:$0xff]  ;;  %v2337_v10 = vld [vmem:[%s5549_s3 + $0x190] sm:$0xff]  ;;  %v2303_v3 = vld [vmem:[%s5549_s3 + $0x80] sm:$0xff] }
 0x2cc   : > { %2765 = vrot.lane.b32.xlu0 %v5123_v40, %s2972_s9  ;;  %v2912_v34 = vpack.i.bf16 %v2263_v61, %v2256_v63  ;;  %v2316_v40 = vld [vmem:[%s5549_s3 + $0xe8] sm:$0xff]  ;;  %v2307_v61 = vld [vmem:[%s5549_s3 + $0xa0] sm:$0xff]  ;;  %v2338_v28 = vld [vmem:[%s5549_s3 + $0x198] sm:$0xff] }
 0x2cd   : > { %2396 = vmatpush.msra.mxu1 %v2316_v40  ;;  %v2324_v63 = vld [vmem:[%s5549_s3 + $0x128] sm:$0xff]  ;;  %v2319_v1 = vld [vmem:[%s5549_s3 + $0x100] sm:$0xff] }
 0x2ce   : > { %2913 = vrot.lane.b32.xlu2 %v2912_v34, %s2972_s9  ;;  %v2305_v34 = vld [vmem:[%s5549_s3 + $0x90] sm:$0xff]  ;;  %v2320_v40 = vld [vmem:[%s5549_s3 + $0x108] sm:$0xff] }
 0x2cf   : > { %2761 = vrot.lane.b32.xlu1 %v2738_v36, %s2972_s9  ;;  %v2296_v36 = vld [vmem:[%s5549_s3 + $0x48] sm:$0xff]  ;;  %2397 = vmatpush.msra.mxu1 %v2315_v62  ;;  %v2335_v62 = vld [vmem:[%s5549_s3 + $0x180] sm:$0xff] }
 0x2d0   : > { %2380 = vmatpush.msra.mxu0 %v2296_v36 }
 0x2d1   : > { %2398 = vmatpush.msra.mxu1 %v2314_v11 }
 0x2d2   : > { %2381 = vmatpush.msra.mxu0 %v2295_v17 }
 0x2d4   : > { %2771 = vrot.lane.b32.xlu0 %v5168_v9, %s2972_s9  ;;  %v2313_v9 = vld [vmem:[%s5549_s3 + $0xd0] sm:$0xff]  ;;  %2382 = vmatpush.msra.mxu0 %v2294_v49 }
 0x2d5   : > { %2399 = vmatpush.msra.mxu1 %v2313_v9 }
 0x2d6   : > { %2763 = vrot.lane.b32.xlu2 %v5171_v52, %s2972_s9  ;;  %v2345_v52 = vld [vmem:[%s5549_s3 + $0x1d0] sm:$0xff]  ;;  %2383 = vmatpush.msra.mxu0 %v2293_v22 }
 0x2d7   : > { %2767 = vrot.lane.b32.xlu1 %v5108_v45, %s2972_s9  ;;  %2439 = vmatpush.msra.mxu3 %v2345_v52  ;;  %v2291_v45 = vld [vmem:[%s5549_s3 + $0x20] sm:$0xff]  ;;  %v2481_v52 = vld [vmem:[%s5551_s5 + $0xd0] sm:$0xff] }
 0x2d8   : > { %2384 = vmatpush.msra.mxu0 %v2292_v25  ;;  %v2482_v25 = vld [vmem:[%s5551_s5 + $0xd8] sm:$0xff] }
 0x2da   : > { %2385 = vmatpush.msra.mxu0 %v2291_v45  ;;  %v2479_v45 = vld [vmem:[%s5551_s5 + $0xc0] sm:$0xff] }
 0x2dc   : > { %2777 = vrot.lane.b32.xlu0 %v5145_v48, %s2972_s9  ;;  %2386 = vmatpush.msra.mxu0 %v2290_v51  ;;  %v2312_v48 = vld [vmem:[%s5549_s3 + $0xc8] sm:$0xff] }
 0x2dd   : > { %2400 = vmatpush.msra.mxu1 %v2312_v48  ;;  %v2480_v51 = vld [vmem:[%s5551_s5 + $0xc8] sm:$0xff]  ;;  %v2471_v48 = vld [vmem:[%s5551_s5 + $0x80] sm:$0xff] }
 0x2de   : > { %2769 = vrot.lane.b32.xlu2 %v5104_v44, %s2972_s9  ;;  %2387 = vmatpush.msra.mxu0 %v2289_v14  ;;  %v2288_v44 = vld [vmem:[%s5549_s3 + $0x8] sm:$0xff]  ;;  %v2473_v14 = vld [vmem:[%s5551_s5 + $0x90] sm:$0xff] }
 0x2df   : > { %2773 = vrot.lane.b32.xlu1 %v5174_v41, %s2972_s9  ;;  %v2328_v41 = vld [vmem:[%s5549_s3 + $0x148] sm:$0xff]  ;;  %2401 = vmatpush.msra.mxu1 %v2311_v20  ;;  %v2463_v20 = vld [vmem:[%s5551_s5 + $0x40] sm:$0xff] }
 0x2e0   : > { %2388 = vmatpush.msra.mxu0 %v2288_v44  ;;  %2420 = vmatpush.msra.mxu2 %v2328_v41  ;;  %v2474_v44 = vld [vmem:[%s5551_s5 + $0x98] sm:$0xff]  ;;  %v2472_v41 = vld [vmem:[%s5551_s5 + $0x88] sm:$0xff] }
 0x2e1   : > { %2402 = vmatpush.msra.mxu1 %v2310_v26  ;;  %v2458_v26 = vld [vmem:[%s5551_s5 + $0x18] sm:$0xff] }
 0x2e2   : > { %2421 = vmatpush.msra.mxu2 %v2327_v37  ;;  %v2464_v37 = vld [vmem:[%s5551_s5 + $0x48] sm:$0xff] }
 0x2e3   : > { %2403 = vmatpush.msra.mxu1 %v2309_v24  ;;  %v2485_v24 = vld [vmem:[%s5551_s5 + $0xf0] sm:$0xff] }
 0x2e4   : > { %2422 = vmatpush.msra.mxu2 %v2326_v46  ;;  %v2455_v46 = vld [vmem:[%s5551_s5] sm:$0xff] }
 0x2e5   : > { %2404 = vmatpush.msra.mxu1 %v2308_v53  ;;  %v2484_v53 = vld [vmem:[%s5551_s5 + $0xe8] sm:$0xff] }
 0x2e6   : > { %2775 = vrot.lane.b32.xlu2 %v5148_v21, %s2972_s9  ;;  %v2344_v21 = vld [vmem:[%s5549_s3 + $0x1c8] sm:$0xff]  ;;  %2423 = vmatpush.msra.mxu2 %v2325_v31  ;;  %v2486_v31 = vld [vmem:[%s5551_s5 + $0xf8] sm:$0xff] }
 0x2e7   : > { %2779 = vrot.lane.b32.xlu1 %v5139_v2, %s2972_s9  ;;  %v2287_v2 = vld [vmem:[%s5549_s3] sm:$0xff]  ;;  %2440 = vmatpush.msra.mxu3 %v2344_v21  ;;  %v2465_v21 = vld [vmem:[%s5551_s5 + $0x50] sm:$0xff] }
 0x2e8   : > { %2389 = vmatpush.msra.mxu0 %v2287_v2  ;;  %2424 = vmatpush.msra.mxu2 %v2324_v63  ;;  %v2466_v2 = vld [vmem:[%s5551_s5 + $0x58] sm:$0xff]  ;;  %v2477_v63 = vld [vmem:[%s5551_s5 + $0xb0] sm:$0xff] }
 0x2e9   : > { %2441 = vmatpush.msra.mxu3 %v2343_v58  ;;  %2405 = vmatpush.msra.mxu1 %v2307_v61  ;;  %v2457_v58 = vld [vmem:[%s5551_s5 + $0x10] sm:$0xff]  ;;  %v2475_v61 = vld [vmem:[%s5551_s5 + $0xa0] sm:$0xff] }
 0x2ea   : > { %2425 = vmatpush.msra.mxu2 %v2323_v35  ;;  %2502 = vmatpush.msrb.mxu0 %v2479_v45  ;;  %v2476_v35 = vld [vmem:[%s5551_s5 + $0xa8] sm:$0xff] }
 0x2eb   : > { %2442 = vmatpush.msra.mxu3 %v2342_v39  ;;  %2406 = vmatpush.msra.mxu1 %v2306_v15  ;;  %v2456_v39 = vld [vmem:[%s5551_s5 + $0x8] sm:$0xff]  ;;  %v2470_v15 = vld [vmem:[%s5551_s5 + $0x78] sm:$0xff] }
 0x2ec   : > { %2426 = vmatpush.msra.mxu2 %v2322_v12  ;;  %2503 = vmatpush.msrb.mxu0 %v2471_v48  ;;  %v2467_v12 = vld [vmem:[%s5551_s5 + $0x60] sm:$0xff] }
 0x2ed   : > { %2443 = vmatpush.msra.mxu3 %v2341_v0  ;;  %2407 = vmatpush.msra.mxu1 %v2305_v34  ;;  %v2483_v0 = vld [vmem:[%s5551_s5 + $0xe0] sm:$0xff]  ;;  %v2461_v34 = vld [vmem:[%s5551_s5 + $0x30] sm:$0xff] }
 0x2ee   : > { %2427 = vmatpush.msra.mxu2 %v2321_v47  ;;  %2504 = vmatpush.msrb.mxu0 %v2463_v20  ;;  %v2462_v47 = vld [vmem:[%s5551_s5 + $0x38] sm:$0xff] }
 0x2ef   : > { %2444 = vmatpush.msra.mxu3 %v2340_v27  ;;  %2408 = vmatpush.msra.mxu1 %v2304_v23  ;;  %v2478_v27 = vld [vmem:[%s5551_s5 + $0xb8] sm:$0xff]  ;;  %v2460_v23 = vld [vmem:[%s5551_s5 + $0x28] sm:$0xff] }
 0x2f0   : > { %2428 = vmatpush.msra.mxu2 %v2320_v40  ;;  %2505 = vmatpush.msrb.mxu0 %v2455_v46  ;;  %v265_v40 = vld [vmem:[%s5550_s4] sm:$0x1] }
 0x2f1   : > { %2445 = vmatpush.msra.mxu3 %v2339_v43  ;;  %2409 = vmatpush.msra.mxu1 %v2303_v3  ;;  %v2469_v43 = vld [vmem:[%s5551_s5 + $0x70] sm:$0xff] }
 0x2f2   : > { %2429 = vmatpush.msra.mxu2 %v2319_v1 }
 0x2f3   : > { %2446 = vmatpush.msra.mxu3 %v2338_v28  ;;  %2522 = vmatpush.msrb.mxu1 %v2480_v51  ;;  %v2468_v28 = vld [vmem:[%s5551_s5 + $0x68] sm:$0xff] }
 0x2f4   : > { %2542 = vmatpush.msrb.mxu2 %v2481_v52 }
 0x2f5   : > { %2447 = vmatpush.msra.mxu3 %v2337_v10  ;;  %2523 = vmatpush.msrb.mxu1 %v2472_v41  ;;  %v2459_v10 = vld [vmem:[%s5551_s5 + $0x20] sm:$0xff] }
 0x2f6   : > { %2543 = vmatpush.msrb.mxu2 %v2473_v14 }
 0x2f7   : > { %2448 = vmatpush.msra.mxu3 %v2336_v13  ;;  %2524 = vmatpush.msrb.mxu1 %v2464_v37 }
 0x2f8   : > { %2544 = vmatpush.msrb.mxu2 %v2465_v21 }
 0x2f9   : > { %2449 = vmatpush.msra.mxu3 %v2335_v62  ;;  %2525 = vmatpush.msrb.mxu1 %v2456_v39 }
 0x2fa   : > { %2545 = vmatpush.msrb.mxu2 %v2457_v58 }
 0x2fb   : > { %2562 = vmatpush.msrb.mxu3 %v2482_v25 }
 0x2fd   : > { %2563 = vmatpush.msrb.mxu3 %v2474_v44 }
 0x2ff   : > { %2564 = vmatpush.msrb.mxu3 %v2466_v2 }
 0x301   : > { %2565 = vmatpush.msrb.mxu3 %v2458_v26 }
 0x328   : > { %v2914_v38 = vpop.permute.xlu2 %2913 }
 0x329   : > { %v2916_v36 = vunpack.i.h.bf16 %v2914_v38  ;;  %v2915_v6 = vunpack.i.l.bf16 %v2914_v38 }
 0x32b   : > { %v2366_v11 = vsel %vm767_vm4, %v2915_v6, %v2916_v36 }
 0x32c   : > { %2390 = vmatmul.f32.vlgmr.msra.gmra.mxu0 %v2366_v11 }
 0x32d   : > { %2582 = vmatpush.msra.mxu0 %v2483_v0 }
 0x32f   : > { %2583 = vmatpush.msra.mxu0 %v2475_v61 }
 0x331   : > { %2584 = vmatpush.msra.mxu0 %v2467_v12 }
 0x333   : > { %2585 = vmatpush.msra.mxu0 %v2459_v10 }
 0x336   : > { %v2365_v8 = vpop.permute.xlu0 %2364 }
 0x339   : > { %v2909_v17 = vpop.permute.xlu1 %2908 }
 0x33a   : > { %v2911_v32 = vunpack.i.h.bf16 %v2909_v17  ;;  %v2910_v49 = vunpack.i.l.bf16 %v2909_v17 }
 0x33c   : > { %v2367_v9 = vsel %vm767_vm4, %v2916_v36, %v2910_v49  ;;  %v2368_v59 = vsel %vm767_vm4, %v2910_v49, %v2911_v32  ;;  %v2369_v22 = vsel %vm767_vm4, %v2911_v32, %v2365_v8 }
 0x33d   : > { %2410 = vmatmul.f32.vlgmr.msra.gmra.mxu1 %v2367_v9  ;;  %2430 = vmatmul.f32.vlgmr.msra.gmra.mxu2 %v2368_v59 }
 0x33e   : > { %2450 = vmatmul.f32.vlgmr.msra.gmra.mxu3 %v2369_v22  ;;  %2622 = vmatpush.msra.mxu2 %v2485_v24 }
 0x33f   : > { %2642 = vmatpush.msra.mxu3 %v2486_v31  ;;  %2602 = vmatpush.msra.mxu1 %v2484_v53 }
 0x340   : > { %2623 = vmatpush.msra.mxu2 %v2477_v63 }
 0x341   : > { %2643 = vmatpush.msra.mxu3 %v2478_v27  ;;  %2603 = vmatpush.msra.mxu1 %v2476_v35  ;;  %v2762_v46 = vpop.permute.xlu1 %2761 }
 0x342   : > { %2624 = vmatpush.msra.mxu2 %v2469_v43  ;;  %v2764_v43 = vpop.permute.xlu2 %2763 }
 0x343   : > { %2644 = vmatpush.msra.mxu3 %v2470_v15  ;;  %2604 = vmatpush.msra.mxu1 %v2468_v28 }
 0x344   : > { %2625 = vmatpush.msra.mxu2 %v2461_v34 }
 0x345   : > { %2645 = vmatpush.msra.mxu3 %v2462_v47  ;;  %2605 = vmatpush.msra.mxu1 %v2460_v23  ;;  %v2766_v47 = vpop.permute.xlu0 %2765 }
 0x3a9   : > { %v2391_v13 = vpop.f32.mrf.mxu0 }
 0x3aa   : > { %v2392_v1 = vadd.f32 %v2391_v13, %v265_v40  ;;  %v5501_v40 = vpop.permute.xlu1 %2767 }
 0x3ab   : > { %v2783_v29 = vsel %vm767_vm4, %v2766_v47, %v5501_v40 }
 0x3ba   : > { %v2411_v3 = vpop.f32.mrf.mxu1 }
 0x3bb   : > { %v2412_v62 = vadd.f32 %v2411_v3, %v2392_v1 }
 0x3c0   : > { %v2431_v38 = vpop.f32.mrf.mxu2 }
 0x3c1   : > { %v2432_v36 = vadd.f32 %v2431_v38, %v2412_v62  ;;  %v2451_v6 = vpop.f32.mrf.mxu3 }
 0x3c3   : > { %v2452_v11 = vadd.f32 %v2451_v6, %v2432_v36  ;;  %v2770_v36 = vpop.permute.xlu2 %2769 }
 0x3c5   : > { %v2454_v17 = vmax.f32 %v2452_v11, 0.0 }
 0x3c7   : > { %2884 = vmatmul.msk.f32.vlgmr.msrb.gmra.mxu0 %vm439_vm5, %v2454_v17  ;;  %2885 = vmatmul.msk.f32.vlgmr.msrb.gmra.mxu1 %vm439_vm5, %v2454_v17 }
 0x3c8   : > { %2886 = vmatmul.msk.f32.vlgmr.msrb.gmra.mxu2 %vm439_vm5, %v2454_v17  ;;  %2887 = vmatmul.msk.f32.vlgmr.msrb.gmra.mxu3 %vm439_vm5, %v2454_v17 }
 0x3cf   : > { %2888 = vmatmul.msk.f32.vlgmr.msra.gmra.mxu0 %vm439_vm5, %v2454_v17  ;;  %2889 = vmatmul.msk.f32.vlgmr.msra.gmra.mxu1 %vm439_vm5, %v2454_v17 }
 0x3d0   : > { %2890 = vmatmul.msk.f32.vlgmr.msra.gmra.mxu2 %vm439_vm5, %v2454_v17  ;;  %2891 = vmatmul.msk.f32.vlgmr.msra.gmra.mxu3 %vm439_vm5, %v2454_v17 }
 0x444   : > { %v2507_v32 = vpop.f32.mrf.mxu0  ;;  %v2527_v49 = vpop.f32.mrf.mxu1 }
 0x44b   : > { %v2547_v8 = vpop.f32.mrf.mxu2  ;;  %v2567_v9 = vpop.f32.mrf.mxu3 }
 0x44c   : > { %v2587_v59 = vpop.f32.mrf.mxu0  ;;  %v2607_v22 = vpop.f32.mrf.mxu1 }
 0x44d   : > { %v2650_v52 = vmax.f32 %v2507_v32, %v2587_v59  ;;  %v2651_v25 = vmax.f32 %v2527_v49, %v2607_v22 }
 0x44f   : > { %v2654_v45 = vsub.f32 %v2507_v32, %v2650_v52  ;;  %v2666_v51 = vsub.f32 %v2587_v59, %v2650_v52  ;;  %v2655_v14 = vsub.f32 %v2527_v49, %v2651_v25  ;;  %v2667_v44 = vsub.f32 %v2607_v22, %v2651_v25  ;;  %v2774_v52 = vpop.permute.xlu1 %2773 }
 0x451   : > { %v2658_v48 = vmul.f32 1.442695, %v2654_v45  ;;  %v2670_v41 = vmul.f32 1.442695, %v2666_v51  ;;  %v2660_v21 = vmul.f32 1.442695, %v2655_v14 }
 0x452   : > { %v2672_v2 = vmul.f32 1.442695, %v2667_v44 }
 0x453   : > { %2917 = vpow2.f32 %v2658_v48  ;;  %v2627_v20 = vpop.f32.mrf.mxu2  ;;  %v2647_v37 = vpop.f32.mrf.mxu3 }
 0x454   : > { %2919 = vpow2.f32 %v2670_v41  ;;  %v2652_v58 = vmax.f32 %v2547_v8, %v2627_v20  ;;  %v2653_v26 = vmax.f32 %v2567_v9, %v2647_v37  ;;  %v2781_v41 = vsel %vm767_vm4, %v2762_v46, %v2764_v43 }
 0x455   : > { %2921 = vpow2.f32 %v2660_v21 }
 0x456   : > { %2923 = vpow2.f32 %v2672_v2  ;;  %v2656_v39 = vsub.f32 %v2547_v8, %v2652_v58  ;;  %v2668_v24 = vsub.f32 %v2627_v20, %v2652_v58  ;;  %v2657_v31 = vsub.f32 %v2567_v9, %v2653_v26  ;;  %v2772_v8 = vpop.permute.xlu0 %2771  ;;  %v2776_v20 = vpop.permute.xlu2 %2775 }
 0x457   : > { %v2669_v0 = vsub.f32 %v2647_v37, %v2653_v26  ;;  %v2785_v21 = vsel %vm767_vm4, %v2772_v8, %v2774_v52 }
 0x458   : > { %v2662_v53 = vmul.f32 1.442695, %v2656_v39  ;;  %v2674_v63 = vmul.f32 1.442695, %v2668_v24  ;;  %v2664_v27 = vmul.f32 1.442695, %v2657_v31  ;;  %v2782_v24 = vsel %vm767_vm4, %v2764_v43, %v2766_v47 }
 0x459   : > { %v2918_v61 = vpop.eup %2917  ;;  %v2676_v15 = vmul.f32 1.442695, %v2669_v0  ;;  %v2786_v31 = vsel %vm767_vm4, %v2774_v52, %v2776_v20  ;;  %v2784_v47 = vsel %vm767_vm4, %v5501_v40, %v2770_v36 }
 0x45a   : > { %v2920_v35 = vpop.eup %2919  ;;  %2925 = vpow2.f32 %v2662_v53 }
 0x45b   : > { %v2922_v12 = vpop.eup %2921  ;;  %v2678_v28 = vadd.f32 %v2920_v35, %v2918_v61  ;;  %2927 = vpow2.f32 %v2674_v63 }
 0x45c   : > { %v2924_v34 = vpop.eup %2923  ;;  %2929 = vpow2.f32 %v2664_v27 }
 0x45d   : > { %2931 = vrcp.f32 %v2678_v28  ;;  %v2679_v10 = vadd.f32 %v2924_v34, %v2922_v12 }
 0x45e   : > { %2933 = vpow2.f32 %v2676_v15 }
 0x45f   : > { %2935 = vrcp.f32 %v2679_v10 }
 0x460   : > { %v2926_v23 = vpop.eup %2925 }
 0x461   : > { %v2928_v13 = vpop.eup %2927 }
 0x462   : > { %v2930_v3 = vpop.eup %2929  ;;  %v2680_v1 = vadd.f32 %v2928_v13, %v2926_v23 }
 0x463   : > { %v2932_v62 = vpop.eup %2931 }
 0x464   : > { %v2934_v38 = vpop.eup %2933  ;;  %v2686_v6 = vmul.f32 %v2932_v62, %v2678_v28  ;;  %2937 = vrcp.f32 %v2680_v1  ;;  %v2780_v28 = vpop.permute.xlu1 %2779 }
 0x465   : > { %v2936_v11 = vpop.eup %2935  ;;  %v2681_v17 = vadd.f32 %v2934_v38, %v2930_v3 }
 0x466   : > { %v2690_v32 = vsub.f32 2.0, %v2686_v6  ;;  %v2687_v49 = vmul.f32 %v2936_v11, %v2679_v10 }
 0x467   : > { %2939 = vrcp.f32 %v2681_v17 }
 0x468   : > { %v2694_v9 = vmul.f32 %v2932_v62, %v2690_v32  ;;  %v2691_v59 = vsub.f32 2.0, %v2687_v49 }
 0x46a   : > { %v2938_v22 = vpop.eup %2937  ;;  %v2698_v25 = vmul.f32 %v2918_v61, %v2694_v9  ;;  %v2695_v45 = vmul.f32 %v2936_v11, %v2691_v59  ;;  %v2778_v61 = vpop.permute.xlu0 %2777 }
 0x46b   : > { %v2688_v51 = vmul.f32 %v2938_v22, %v2680_v1 }
 0x46c   : > { %v2717_v14 = vperm.slane %v2698_v25, 0  ;;  %v2699_v44 = vmul.f32 %v2922_v12, %v2695_v45 }
 0x46d   : > { %v2940_v48 = vpop.eup %2939  ;;  %v2692_v2 = vsub.f32 2.0, %v2688_v51 }
 0x46e   : > { %v2797_v37 = vmul.f32 %v2781_v41, %v2717_v14  ;;  %v2801_v58 = vmul.f32 %v2785_v21, %v2717_v14  ;;  %v2718_v26 = vperm.slane %v2699_v44, 0  ;;  %v2689_v39 = vmul.f32 %v2940_v48, %v2681_v17 }
 0x46f   : > { %v2696_v46 = vmul.f32 %v2938_v22, %v2692_v2 }
 0x470   : > { %v2805_v0 = vadd.f32 %v2797_v37, %v2105_v56  ;;  %v2809_v53 = vadd.f32 %v2801_v58, %v2109_v50  ;;  %v2798_v63 = vmul.f32 %v2782_v24, %v2718_v26  ;;  %v2802_v27 = vmul.f32 %v2786_v31, %v2718_v26 }
 0x471   : > { %v2700_v35 = vmul.f32 %v2926_v23, %v2696_v46  ;;  %v2693_v43 = vsub.f32 2.0, %v2689_v39  ;;  %v2787_v50 = vsel %vm767_vm4, %v2776_v20, %v2778_v61  ;;  %v2788_v23 = vsel %vm767_vm4, %v2778_v61, %v2780_v28 }
 0x472   : > { %2813 = vst [vmem:[%s5511_s22] sm:$0xff] %v2805_v0  ;;  %v2806_v15 = vadd.f32 %v2798_v63, %v2106_v57  ;;  %v2810_v12 = vadd.f32 %v2802_v27, %v2110_v60 }
 0x473   : > { %2817 = vst [vmem:[%s5511_s22 + $0x20] sm:$0xff] %v2809_v53  ;;  %v2719_v30 = vperm.slane %v2700_v35, 0  ;;  %v2697_v56 = vmul.f32 %v2940_v48, %v2693_v43 }
 0x474   : > { %2814 = vst [vmem:[%s5511_s22 + $0x8] sm:$0xff] %v2806_v15 }
 0x475   : > { %2818 = vst [vmem:[%s5511_s22 + $0x28] sm:$0xff] %v2810_v12  ;;  %v2799_v54 = vmul.f32 %v2783_v29, %v2719_v30  ;;  %v2803_v57 = vmul.f32 %v2787_v50, %v2719_v30  ;;  %v2701_v34 = vmul.f32 %v2930_v3, %v2697_v56 }
 0x477   : > { %v2807_v19 = vadd.f32 %v2799_v54, %v2107_v42  ;;  %v2811_v60 = vadd.f32 %v2803_v57, %v2111_v4  ;;  %v2720_v10 = vperm.slane %v2701_v34, 0 }
 0x479   : > { %2815 = vst [vmem:[%s5511_s22 + $0x10] sm:$0xff] %v2807_v19  ;;  %v2800_v13 = vmul.f32 %v2784_v47, %v2720_v10  ;;  %v2804_v1 = vmul.f32 %v2788_v23, %v2720_v10 }
 0x47a   : > { %2819 = vst [vmem:[%s5511_s22 + $0x30] sm:$0xff] %v2811_v60 }
 0x47b   : > { %v2808_v62 = vadd.f32 %v2800_v13, %v2108_v5  ;;  %v2812_v55 = vadd.f32 %v2804_v1, %v2112_v7 }
 0x47d   : > { %2816 = vst [vmem:[%s5511_s22 + $0x18] sm:$0xff] %v2808_v62 }
 0x47e   : > { %2820 = vst [vmem:[%s5511_s22 + $0x38] sm:$0xff] %v2812_v55 }
 0x47f PF: > { %s16_s21 = sadd.s32 1, %s2968_s21  }
 0x480   : > { %p13_p4 = scmp.ge.s32.totalorder %s16_s21, 4  }
 0x482   :  { %15 = sbr.rel (!%p13_p4) target bundleno = 1 (0x1), region = 74 }

</bundles_post_ra>
